<compile_context>
chip_gen: v7x
topology: tpu7x:2x2x1
jax: 0.10.0
libtpu: 0.0.40
codegen_flags: <defaults>
</compile_context>

<pallas_src>
import functools

import jax
import jax.numpy as jnp
from jax import lax
from jax.experimental import pallas as pl
from jax.experimental.pallas import tpu as pltpu

_LANE = 128


def _round_up(n, m):
    return ((n + m - 1) // m) * m


def _pick_row_tile(H):
    """Largest row tile TH <= 16 dividing H that yields >= 2 tiles; else H."""
    for th in range(min(H, 16), 0, -1):
        if H % th == 0 and H // th >= 2:
            return th
    return H


# ----------------------------- fused Pallas kernel ---------------------------

def _inception_kernel(
    x_ref,
    w_red_ref, s_red_ref, b_red_ref,      # fused, lane-padded 1x1 reduce
    w22_ref, s22_ref, b22_ref,            # branch2 3x3     (9, n3x3red, n3x3)
    w32_ref, s32_ref, b32_ref,            # branch3 3x3 (a) (9, n5x5red, n5x5)
    w33_ref, s33_ref, b33_ref,            # branch3 3x3 (b) (9, n5x5,    n5x5)
    w4_ref, s4_ref, b4_ref,               # branch4 1x1 after maxpool
    o_ref,
    rpad_ref, xpad_ref, upad_ref,         # persistent VMEM scratches
    *, n1x1, n3x3red, n3x3, n5x5red, n5x5, pool_planes, off2, off3,
):
    H, W, Cin = x_ref.shape[1], x_ref.shape[2], x_ref.shape[3]
    TH = o_ref.shape[1]                    # rows per output tile
    h = pl.program_id(1)
    r0 = h * TH                            # first output row of this tile

    # -------- per-image setup: runs once, at the first row tile of each n ----
    @pl.when(h == 0)
    def _setup():
        x = x_ref[0]                                        # (H, W, Cin) bf16
        # -inf-padded x for branch4's maxpool (bf16: max is exact, half bytes).
        xpad_ref[...] = jnp.full(xpad_ref.shape, -jnp.inf, xpad_ref.dtype)
        xpad_ref[1:H + 1, 1:W + 1, :] = x
        # Fused 1x1 reduce (branch1 | branch2.0 | branch3.0): one MXU matmul
        # over the whole image, stored into a zero-padded bf16 scratch with a
        # 2-row / 1-col halo so the 3x3 taps get conv zero padding for free.
        rpad_ref[...] = jnp.zeros(rpad_ref.shape, rpad_ref.dtype)
        xf = x.reshape(H * W, Cin)
        r = jnp.dot(xf, w_red_ref[...], preferred_element_type=jnp.float32)
        r = jnp.maximum(r * s_red_ref[...] + b_red_ref[...], 0.0)
        rpad_ref[2:H + 2, 1:W + 1, :] = r.reshape(H, W, -1).astype(rpad_ref.dtype)
        # Branch3 intermediate scratch: only its interior is overwritten each
        # step, so zero once per image to keep the 1-col halo at zero.
        upad_ref[...] = jnp.zeros(upad_ref.shape, upad_ref.dtype)

    def conv3x3_bn_relu(src_ref, row0, n_rows, c0, cw, w_ref, s_ref, b_ref):
        """3x3 same-conv + folded BN + ReLU from a zero-padded bf16 buffer.

        9 per-tap (K = C) matmuls accumulated in f32 — avoids the
        lane-misaligned 9-way im2col concat and its materialized temporary.
        """
        cout = w_ref.shape[2]
        acc = jnp.zeros((n_rows * W, cout), jnp.float32)
        for ky in range(3):
            for kx in range(3):
                tap = src_ref[pl.ds(row0 + ky, n_rows), kx:kx + W, c0:c0 + cw]
                acc += jnp.dot(tap.reshape(n_rows * W, cw),
                               w_ref[ky * 3 + kx],
                               preferred_element_type=jnp.float32)
        y = jnp.maximum(acc * s_ref[...] + b_ref[...], 0.0)
        return y.reshape(n_rows, W, cout)

    # -------- branch1: rows of the already-computed fused reduce -------------
    y1 = rpad_ref[pl.ds(r0 + 2, TH), 1:W + 1, 0:n1x1].astype(jnp.float32)

    # -------- branch2: 1x1 (in rpad) -> 3x3 -----------------------------------
    y2 = conv3x3_bn_relu(rpad_ref, r0 + 1, TH, off2, n3x3red,
                         w22_ref, s22_ref, b22_ref)          # (TH, W, n3x3)

    # -------- branch3: 1x1 (in rpad) -> 3x3 -> 3x3 -----------------------------
    # First 3x3 on an extended window (global rows r0-1 .. r0+TH).
    u = conv3x3_bn_relu(rpad_ref, r0, TH + 2, off3, n5x5red,
                        w32_ref, s32_ref, b32_ref)           # (TH+2, W, n5x5)
    # Rows outside the image must be the second conv's ZERO padding, not
    # relu(bias): mask them before staging into the zero-padded scratch.
    row_g = r0 - 1 + lax.broadcasted_iota(jnp.int32, (TH + 2, 1, 1), 0)
    u = jnp.where((row_g >= 0) & (row_g < H), u, 0.0)
    upad_ref[:, 1:W + 1, :] = u.astype(upad_ref.dtype)
    y3 = conv3x3_bn_relu(upad_ref, 0, TH, 0, n5x5,
                         w33_ref, s33_ref, b33_ref)          # (TH, W, n5x5)

    # -------- branch4: separable bf16 maxpool 3x3/s1 -> 1x1 -------------------
    xs = xpad_ref[pl.ds(r0, TH + 2), :, :]                   # rows r0-1 .. r0+TH
    hmax = jnp.maximum(jnp.maximum(xs[:, 0:W, :], xs[:, 1:W + 1, :]),
                       xs[:, 2:W + 2, :])                    # (TH+2, W, Cin)
    pooled = jnp.maximum(jnp.maximum(hmax[0:TH], hmax[1:TH + 1]),
                         hmax[2:TH + 2])                     # (TH, W, Cin) bf16
    y4 = jnp.dot(pooled.reshape(TH * W, Cin), w4_ref[...],
                 preferred_element_type=jnp.float32)
    y4 = jnp.maximum(y4 * s4_ref[...] + b4_ref[...], 0.0)
    y4 = y4.reshape(TH, W, pool_planes)

    # -------- single lane-dense channel-concatenated store of the row tile ----
    out = jnp.concatenate([y1, y2, y3, y4], axis=-1)         # (TH, W, c_tot) f32
    o_ref[0] = out.astype(o_ref.dtype)


# ----------------------------- wrapper ----------------------------------------

def _fold_conv3x3(w_hwio, scale, bias):
    kh, kw, cin, cout = w_hwio.shape
    return (w_hwio.reshape(kh * kw, cin, cout).astype(jnp.bfloat16),
            scale.reshape(1, cout).astype(jnp.float32),
            bias.reshape(1, cout).astype(jnp.float32))


def inception_block(x_nhwc, params, *, out_dtype=None):
    """Fused Inception-v1 block on NHWC input. Returns NHWC output."""
    N, H, W, Cin = x_nhwc.shape
    out_dtype = x_nhwc.dtype if out_dtype is None else out_dtype

    w1, s1, b1 = params["b1"]
    w21, s21, b21 = params["b2_1"]
    w22, s22, b22 = params["b2_2"]
    w31, s31, b31 = params["b3_1"]
    w32, s32, b32 = params["b3_2"]
    w33, s33, b33 = params["b3_3"]
    w4, s4, b4 = params["b4"]

    n1x1 = w1.shape[-1]
    n3x3red = w21.shape[-1]
    n3x3 = w22.shape[-1]
    n5x5red = w31.shape[-1]
    n5x5 = w32.shape[-1]
    pool_planes = w4.shape[-1]
    c_tot = n1x1 + n3x3 + n5x5 + pool_planes

    # Lane-align the fused reduce segments (so t2 / t3 slices start at a
    # multiple of 128 lanes); pad columns carry zero weight/scale/bias.
    n1p = _round_up(n1x1, _LANE)
    n2p = _round_up(n3x3red, _LANE)
    n3p = _round_up(n5x5red, _LANE)
    c_red_pad = n1p + n2p + n3p
    off2, off3 = n1p, n1p + n2p

    def _pad_cols(a, width):
        return jnp.pad(a, ((0, 0), (0, width - a.shape[1])))

    def _pad_vec(v, width):
        return jnp.pad(v, (0, width - v.shape[0]))

    w_red = jnp.concatenate(
        [_pad_cols(w1.reshape(Cin, n1x1), n1p),
         _pad_cols(w21.reshape(Cin, n3x3red), n2p),
         _pad_cols(w31.reshape(Cin, n5x5red), n3p)], axis=1).astype(jnp.bfloat16)
    s_red = jnp.concatenate([_pad_vec(s1, n1p), _pad_vec(s21, n2p),
                             _pad_vec(s31, n3p)]).reshape(1, c_red_pad)
    b_red = jnp.concatenate([_pad_vec(b1, n1p), _pad_vec(b21, n2p),
                             _pad_vec(b31, n3p)]).reshape(1, c_red_pad)
    s_red = s_red.astype(jnp.float32)
    b_red = b_red.astype(jnp.float32)

    w22f, s22f, b22f = _fold_conv3x3(w22, s22, b22)
    w32f, s32f, b32f = _fold_conv3x3(w32, s32, b32)
    w33f, s33f, b33f = _fold_conv3x3(w33, s33, b33)
    w4f = w4.reshape(Cin, pool_planes).astype(jnp.bfloat16)
    s4f = s4.reshape(1, pool_planes).astype(jnp.float32)
    b4f = b4.reshape(1, pool_planes).astype(jnp.float32)

    x_bf16 = x_nhwc.astype(jnp.bfloat16)     # halves the kernel's HBM read bytes

    TH = _pick_row_tile(H)
    grid = (N, H // TH)

    kernel = functools.partial(
        _inception_kernel,
        n1x1=n1x1, n3x3red=n3x3red, n3x3=n3x3,
        n5x5red=n5x5red, n5x5=n5x5, pool_planes=pool_planes,
        off2=off2, off3=off3,
    )

    in_specs = [
        # x: full image per batch element, resident across the row-tile axis
        # (same block index for every h -> DMA'd from HBM once per image).
        pl.BlockSpec((1, H, W, Cin), lambda n, h: (n, 0, 0, 0)),
        pl.BlockSpec((Cin, c_red_pad), lambda n, h: (0, 0)),
        pl.BlockSpec((1, c_red_pad), lambda n, h: (0, 0)),
        pl.BlockSpec((1, c_red_pad), lambda n, h: (0, 0)),
        pl.BlockSpec((9, n3x3red, n3x3), lambda n, h: (0, 0, 0)),
        pl.BlockSpec((1, n3x3), lambda n, h: (0, 0)),
        pl.BlockSpec((1, n3x3), lambda n, h: (0, 0)),
        pl.BlockSpec((9, n5x5red, n5x5), lambda n, h: (0, 0, 0)),
        pl.BlockSpec((1, n5x5), lambda n, h: (0, 0)),
        pl.BlockSpec((1, n5x5), lambda n, h: (0, 0)),
        pl.BlockSpec((9, n5x5, n5x5), lambda n, h: (0, 0, 0)),
        pl.BlockSpec((1, n5x5), lambda n, h: (0, 0)),
        pl.BlockSpec((1, n5x5), lambda n, h: (0, 0)),
        pl.BlockSpec((Cin, pool_planes), lambda n, h: (0, 0)),
        pl.BlockSpec((1, pool_planes), lambda n, h: (0, 0)),
        pl.BlockSpec((1, pool_planes), lambda n, h: (0, 0)),
    ]

    return pl.pallas_call(
        kernel,
        out_shape=jax.ShapeDtypeStruct((N, H, W, c_tot), out_dtype),
        grid=grid,
        in_specs=in_specs,
        out_specs=pl.BlockSpec((1, TH, W, c_tot), lambda n, h: (n, h, 0, 0)),
        scratch_shapes=[
            pltpu.VMEM((H + 4, W + 2, c_red_pad), jnp.bfloat16),  # zero-padded reduce
            pltpu.VMEM((H + 2, W + 2, Cin), jnp.bfloat16),        # -inf-padded x
            pltpu.VMEM((TH + 2, W + 2, n5x5), jnp.bfloat16),      # zero-padded b3 mid
        ],
        compiler_params=pltpu.CompilerParams(
            # Row-tile axis must stay "arbitrary": the h == 0 step of each image
            # fills the persistent per-core scratches used by the later tiles.
            dimension_semantics=("parallel", "arbitrary"),
            vmem_limit_bytes=48 * 1024 * 1024,
        ),
    )(x_bf16, w_red, s_red, b_red,
      w22f, s22f, b22f,
      w32f, s32f, b32f,
      w33f, s33f, b33f,
      w4f, s4f, b4f)


# ----------------------- parameters (deterministic) ---------------------------

def make_conv_bn_params(key, cin, cout, ksize):
    """Conv2d(bias=True) + BatchNorm2d(eval), folded to (w_hwio, scale, bias)."""
    ks = jax.random.split(key, 6)
    w = 0.1 * jax.random.normal(ks[0], (ksize, ksize, cin, cout), jnp.float32)
    conv_b = 0.1 * jax.random.normal(ks[1], (cout,), jnp.float32)
    gamma = 1.0 + 0.1 * jax.random.normal(ks[2], (cout,), jnp.float32)
    beta = 0.1 * jax.random.normal(ks[3], (cout,), jnp.float32)
    r_mean = 0.1 * jax.random.normal(ks[4], (cout,), jnp.float32)
    r_var = 1.0 + 0.1 * jnp.abs(jax.random.normal(ks[5], (cout,), jnp.float32))
    eps = 1e-5
    scale = gamma / jnp.sqrt(r_var + eps)
    bias = beta - r_mean * scale + conv_b * scale
    return w, scale, bias


def make_inception_params(key, in_planes, n1x1, n3x3red, n3x3,
                          n5x5red, n5x5, pool_planes):
    ks = jax.random.split(key, 7)
    return {
        "b1":   make_conv_bn_params(ks[0], in_planes, n1x1, 1),
        "b2_1": make_conv_bn_params(ks[1], in_planes, n3x3red, 1),
        "b2_2": make_conv_bn_params(ks[2], n3x3red, n3x3, 3),
        "b3_1": make_conv_bn_params(ks[3], in_planes, n5x5red, 1),
        "b3_2": make_conv_bn_params(ks[4], n5x5red, n5x5, 3),
        "b3_3": make_conv_bn_params(ks[5], n5x5, n5x5, 3),
        "b4":   make_conv_bn_params(ks[6], in_planes, pool_planes, 1),
    }


# ----------------------------- forward pass -----------------------------------

@jax.jit
def inception_v1_forward(x_nchw, params):
    x = jnp.transpose(x_nchw, (0, 2, 3, 1))          # NCHW -> NHWC
    y = inception_block(x, params)
    return jnp.transpose(y, (0, 3, 1, 2))            # NHWC -> NCHW


# ----------------------------- reference (pure JAX, f32) ----------------------

def _ref_conv_bn_relu(x, w, scale, bias, pad):
    y = lax.conv_general_dilated(
        x, w, (1, 1), [(pad, pad), (pad, pad)],
        dimension_numbers=("NHWC", "HWIO", "NHWC"),
    )
    return jnp.maximum(y * scale + bias, 0.0)


def _ref_forward(x_nchw, params):
    x = jnp.transpose(x_nchw, (0, 2, 3, 1))
    y1 = _ref_conv_bn_relu(x, *params["b1"], pad=0)
    t = _ref_conv_bn_relu(x, *params["b2_1"], pad=0)
    y2 = _ref_conv_bn_relu(t, *params["b2_2"], pad=1)
    t = _ref_conv_bn_relu(x, *params["b3_1"], pad=0)
    t = _ref_conv_bn_relu(t, *params["b3_2"], pad=1)
    y3 = _ref_conv_bn_relu(t, *params["b3_3"], pad=1)
    p = lax.reduce_window(
        x, -jnp.inf, lax.max, (1, 3, 3, 1), (1, 1, 1, 1),
        padding=[(0, 0), (1, 1), (1, 1), (0, 0)],
    )
    y4 = _ref_conv_bn_relu(p, *params["b4"], pad=0)
    y = jnp.concatenate([y1, y2, y3, y4], axis=-1)
    return jnp.transpose(y, (0, 3, 1, 2))


# --------------------------------- main ----------------------------------------

if __name__ == "__main__":
    N, in_planes, H, W = 2, 4, 16, 16
    n1x1, n3x3red, n3x3, n5x5red, n5x5, pool_planes = 4, 4, 8, 4, 4, 4

    key = jax.random.PRNGKey(0)
    k_x, k_p = jax.random.split(key)
    x = jax.random.normal(k_x, (N, in_planes, H, W), jnp.float32)
    params = make_inception_params(
        k_p, in_planes, n1x1, n3x3red, n3x3, n5x5red, n5x5, pool_planes
    )

    out = inception_v1_forward(x, params)
    out = jax.block_until_ready(out)

    expected_shape = (N, n1x1 + n3x3 + n5x5 + pool_planes, H, W)
    assert out.shape == expected_shape, (out.shape, expected_shape)

    ref = jax.block_until_ready(_ref_forward(x, params))
    # bf16 MXU compute + bf16-resident activations vs f32 reference.
    assert jnp.allclose(out, ref, rtol=3e-2, atol=3e-2), float(
        jnp.max(jnp.abs(out - ref))
    )

    print("KERNEL_OK")
</pallas_src>

<mosaic_0001>
module attributes {stable_mosaic.version = 11 : i64} {
  func.func @_inception_kernel(%arg0: i32, %arg1: i32, %arg2: memref<1x16x16x4xbf16, #tpu.memory_space<vmem>>, %arg3: memref<4x384xbf16, #tpu.memory_space<vmem>>, %arg4: memref<1x384xf32, #tpu.memory_space<vmem>>, %arg5: memref<1x384xf32, #tpu.memory_space<vmem>>, %arg6: memref<9x4x8xbf16, #tpu.memory_space<vmem>>, %arg7: memref<1x8xf32, #tpu.memory_space<vmem>>, %arg8: memref<1x8xf32, #tpu.memory_space<vmem>>, %arg9: memref<9x4x4xbf16, #tpu.memory_space<vmem>>, %arg10: memref<1x4xf32, #tpu.memory_space<vmem>>, %arg11: memref<1x4xf32, #tpu.memory_space<vmem>>, %arg12: memref<9x4x4xbf16, #tpu.memory_space<vmem>>, %arg13: memref<1x4xf32, #tpu.memory_space<vmem>>, %arg14: memref<1x4xf32, #tpu.memory_space<vmem>>, %arg15: memref<4x4xbf16, #tpu.memory_space<vmem>>, %arg16: memref<1x4xf32, #tpu.memory_space<vmem>>, %arg17: memref<1x4xf32, #tpu.memory_space<vmem>>, %arg18: memref<1x8x16x20xf32, #tpu.memory_space<vmem>>, %arg19: memref<20x18x384xbf16, #tpu.memory_space<vmem>>, %arg20: memref<18x18x4xbf16, #tpu.memory_space<vmem>>, %arg21: memref<10x18x4xbf16, #tpu.memory_space<vmem>>) attributes {dimension_semantics = [#tpu.dimension_semantics<parallel>, #tpu.dimension_semantics<arbitrary>], iteration_bounds = array<i64: 2, 2>, scalar_prefetch = 0 : i64, scratch_operands = 3 : i64, tpu.core_type = #tpu.core_type<tc>, window_params = [{transform_indices = @transform_0, window_bounds = array<i64: 1, 16, 16, 4>}, {pipeline_mode = #tpu.pipeline_mode<synchronous>, transform_indices = @transform_1, window_bounds = array<i64: 4, 384>}, {pipeline_mode = #tpu.pipeline_mode<synchronous>, transform_indices = @transform_2, window_bounds = array<i64: 1, 384>}, {pipeline_mode = #tpu.pipeline_mode<synchronous>, transform_indices = @transform_3, window_bounds = array<i64: 1, 384>}, {pipeline_mode = #tpu.pipeline_mode<synchronous>, transform_indices = @transform_4, window_bounds = array<i64: 9, 4, 8>}, {pipeline_mode = #tpu.pipeline_mode<synchronous>, transform_indices = @transform_5, window_bounds = array<i64: 1, 8>}, {pipeline_mode = #tpu.pipeline_mode<synchronous>, transform_indices = @transform_6, window_bounds = array<i64: 1, 8>}, {pipeline_mode = #tpu.pipeline_mode<synchronous>, transform_indices = @transform_7, window_bounds = array<i64: 9, 4, 4>}, {pipeline_mode = #tpu.pipeline_mode<synchronous>, transform_indices = @transform_8, window_bounds = array<i64: 1, 4>}, {pipeline_mode = #tpu.pipeline_mode<synchronous>, transform_indices = @transform_9, window_bounds = array<i64: 1, 4>}, {pipeline_mode = #tpu.pipeline_mode<synchronous>, transform_indices = @transform_10, window_bounds = array<i64: 9, 4, 4>}, {pipeline_mode = #tpu.pipeline_mode<synchronous>, transform_indices = @transform_11, window_bounds = array<i64: 1, 4>}, {pipeline_mode = #tpu.pipeline_mode<synchronous>, transform_indices = @transform_12, window_bounds = array<i64: 1, 4>}, {pipeline_mode = #tpu.pipeline_mode<synchronous>, transform_indices = @transform_13, window_bounds = array<i64: 4, 4>}, {pipeline_mode = #tpu.pipeline_mode<synchronous>, transform_indices = @transform_14, window_bounds = array<i64: 1, 4>}, {pipeline_mode = #tpu.pipeline_mode<synchronous>, transform_indices = @transform_15, window_bounds = array<i64: 1, 4>}, {transform_indices = @transform_16, window_bounds = array<i64: 1, 8, 16, 20>}]} {
    %c8_i32 = arith.constant 8 : i32
    %0 = arith.muli %arg1, %c8_i32 : i32
    %c0_i32 = arith.constant 0 : i32
    %1 = arith.cmpi eq, %arg1, %c0_i32 : i32
    %2 = arith.extui %1 : i1 to i32
    %c0_i32_0 = arith.constant 0 : i32
    %3 = arith.cmpi ne, %2, %c0_i32_0 : i32
    scf.if %3 {
      %c0_218 = arith.constant 0 : index
      %c0_219 = arith.constant 0 : index
      %c0_220 = arith.constant 0 : index
      %c0_221 = arith.constant 0 : index
      %280 = vector.load %arg2[%c0_218, %c0_219, %c0_220, %c0_221] : memref<1x16x16x4xbf16, #tpu.memory_space<vmem>>, vector<1x16x16x4xbf16>
      %281 = vector.shape_cast %280 : vector<1x16x16x4xbf16> to vector<16x16x4xbf16>
      %cst_222 = arith.constant 0xFF80 : bf16
      %282 = vector.broadcast %cst_222 : bf16 to vector<18x18x4xbf16>
      %c0_223 = arith.constant 0 : index
      %c0_224 = arith.constant 0 : index
      %c0_225 = arith.constant 0 : index
      %283 = vector.load %arg20[%c0_223, %c0_224, %c0_225] : memref<18x18x4xbf16, #tpu.memory_space<vmem>>, vector<18x18x4xbf16>
      tpu.vector_store %arg20[%c0_223, %c0_224, %c0_225], %282 {strides = array<i32>} : memref<18x18x4xbf16, #tpu.memory_space<vmem>>, vector<18x18x4xbf16>,
      %c1_226 = arith.constant 1 : index
      %c1_227 = arith.constant 1 : index
      %c0_228 = arith.constant 0 : index
      %284 = vector.load %arg20[%c1_226, %c1_227, %c0_228] : memref<18x18x4xbf16, #tpu.memory_space<vmem>>, vector<16x16x4xbf16>
      tpu.vector_store %arg20[%c1_226, %c1_227, %c0_228], %281 {strides = array<i32>} : memref<18x18x4xbf16, #tpu.memory_space<vmem>>, vector<16x16x4xbf16>,
      %cst_229 = arith.constant 0.000000e+00 : bf16
      %285 = vector.broadcast %cst_229 : bf16 to vector<20x18x384xbf16>
      %c0_230 = arith.constant 0 : index
      %c0_231 = arith.constant 0 : index
      %c0_232 = arith.constant 0 : index
      %286 = vector.load %arg19[%c0_230, %c0_231, %c0_232] : memref<20x18x384xbf16, #tpu.memory_space<vmem>>, vector<20x18x384xbf16>
      tpu.vector_store %arg19[%c0_230, %c0_231, %c0_232], %285 {strides = array<i32>} : memref<20x18x384xbf16, #tpu.memory_space<vmem>>, vector<20x18x384xbf16>,
      %287 = vector.shape_cast %281 : vector<16x16x4xbf16> to vector<256x4xbf16>
      %c0_233 = arith.constant 0 : index
      %c0_234 = arith.constant 0 : index
      %288 = vector.load %arg3[%c0_233, %c0_234] : memref<4x384xbf16, #tpu.memory_space<vmem>>, vector<4x384xbf16>
      %cst_235 = arith.constant dense<0.000000e+00> : vector<256x384xf32>
      %289 = tpu.matmul %287, %288, %cst_235 {dimension_numbers = #tpu.dot_dimension_numbers<[1], [0], [0], [1], [0, 0, 1, 1], [], []>} : vector<256x4xbf16>, vector<4x384xbf16>, vector<256x384xf32> -> vector<256x384xf32>
      %c0_236 = arith.constant 0 : index
      %c0_237 = arith.constant 0 : index
      %290 = vector.load %arg4[%c0_236, %c0_237] : memref<1x384xf32, #tpu.memory_space<vmem>>, vector<1x384xf32>
      %291 = vector.broadcast %290 : vector<1x384xf32> to vector<256x384xf32>
      %292 = arith.mulf %289, %291 : vector<256x384xf32>
      %c0_238 = arith.constant 0 : index
      %c0_239 = arith.constant 0 : index
      %293 = vector.load %arg5[%c0_238, %c0_239] : memref<1x384xf32, #tpu.memory_space<vmem>>, vector<1x384xf32>
      %294 = vector.broadcast %293 : vector<1x384xf32> to vector<256x384xf32>
      %295 = arith.addf %292, %294 : vector<256x384xf32>
      %cst_240 = arith.constant 0.000000e+00 : f32
      %296 = vector.broadcast %cst_240 : f32 to vector<256x384xf32>
      %297 = arith.maximumf %295, %296 : vector<256x384xf32>
      %298 = vector.shape_cast %297 : vector<256x384xf32> to vector<16x16x384xf32>
      %299 = arith.truncf %298 : vector<16x16x384xf32> to vector<16x16x384xbf16>
      %c2_241 = arith.constant 2 : index
      %c1_242 = arith.constant 1 : index
      %c0_243 = arith.constant 0 : index
      %300 = vector.load %arg19[%c2_241, %c1_242, %c0_243] : memref<20x18x384xbf16, #tpu.memory_space<vmem>>, vector<16x16x384xbf16>
      tpu.vector_store %arg19[%c2_241, %c1_242, %c0_243], %299 {strides = array<i32>} : memref<20x18x384xbf16, #tpu.memory_space<vmem>>, vector<16x16x384xbf16>,
      %cst_244 = arith.constant 0.000000e+00 : bf16
      %301 = vector.broadcast %cst_244 : bf16 to vector<10x18x4xbf16>
      %c0_245 = arith.constant 0 : index
      %c0_246 = arith.constant 0 : index
      %c0_247 = arith.constant 0 : index
      %302 = vector.load %arg21[%c0_245, %c0_246, %c0_247] : memref<10x18x4xbf16, #tpu.memory_space<vmem>>, vector<10x18x4xbf16>
      tpu.vector_store %arg21[%c0_245, %c0_246, %c0_247], %301 {strides = array<i32>} : memref<10x18x4xbf16, #tpu.memory_space<vmem>>, vector<10x18x4xbf16>,
    } else {
    }
    %c2_i32 = arith.constant 2 : i32
    %4 = arith.addi %0, %c2_i32 : i32
    %5 = arith.index_cast %4 : i32 to index
    %c1 = arith.constant 1 : index
    %c0 = arith.constant 0 : index
    %6 = vector.load %arg19[%5, %c1, %c0] : memref<20x18x384xbf16, #tpu.memory_space<vmem>>, vector<8x16x4xbf16>
    %7 = arith.extf %6 : vector<8x16x4xbf16> to vector<8x16x4xf32>
    %c1_i32 = arith.constant 1 : i32
    %8 = arith.addi %0, %c1_i32 : i32
    %cst = arith.constant 0.000000e+00 : f32
    %9 = vector.broadcast %cst : f32 to vector<128x8xf32>
    %c0_i32_1 = arith.constant 0 : i32
    %10 = arith.addi %8, %c0_i32_1 : i32
    %11 = arith.index_cast %10 : i32 to index
    %c0_2 = arith.constant 0 : index
    %c128 = arith.constant 128 : index
    %12 = vector.load %arg19[%11, %c0_2, %c128] : memref<20x18x384xbf16, #tpu.memory_space<vmem>>, vector<8x16x4xbf16>
    %13 = vector.shape_cast %12 : vector<8x16x4xbf16> to vector<128x4xbf16>
    %c0_3 = arith.constant 0 : index
    %c0_4 = arith.constant 0 : index
    %c0_5 = arith.constant 0 : index
    %14 = vector.load %arg6[%c0_3, %c0_4, %c0_5] : memref<9x4x8xbf16, #tpu.memory_space<vmem>>, vector<1x4x8xbf16>
    %15 = vector.shape_cast %14 : vector<1x4x8xbf16> to vector<4x8xbf16>
    %cst_6 = arith.constant dense<0.000000e+00> : vector<128x8xf32>
    %16 = tpu.matmul %13, %15, %cst_6 {dimension_numbers = #tpu.dot_dimension_numbers<[1], [0], [0], [1], [0, 0, 1, 1], [], []>} : vector<128x4xbf16>, vector<4x8xbf16>, vector<128x8xf32> -> vector<128x8xf32>
    %17 = arith.addf %9, %16 : vector<128x8xf32>
    %c0_i32_7 = arith.constant 0 : i32
    %18 = arith.addi %8, %c0_i32_7 : i32
    %19 = arith.index_cast %18 : i32 to index
    %c1_8 = arith.constant 1 : index
    %c128_9 = arith.constant 128 : index
    %20 = vector.load %arg19[%19, %c1_8, %c128_9] : memref<20x18x384xbf16, #tpu.memory_space<vmem>>, vector<8x16x4xbf16>
    %21 = vector.shape_cast %20 : vector<8x16x4xbf16> to vector<128x4xbf16>
    %c1_10 = arith.constant 1 : index
    %c0_11 = arith.constant 0 : index
    %c0_12 = arith.constant 0 : index
    %22 = vector.load %arg6[%c1_10, %c0_11, %c0_12] : memref<9x4x8xbf16, #tpu.memory_space<vmem>>, vector<1x4x8xbf16>
    %23 = vector.shape_cast %22 : vector<1x4x8xbf16> to vector<4x8xbf16>
    %cst_13 = arith.constant dense<0.000000e+00> : vector<128x8xf32>
    %24 = tpu.matmul %21, %23, %cst_13 {dimension_numbers = #tpu.dot_dimension_numbers<[1], [0], [0], [1], [0, 0, 1, 1], [], []>} : vector<128x4xbf16>, vector<4x8xbf16>, vector<128x8xf32> -> vector<128x8xf32>
    %25 = arith.addf %17, %24 : vector<128x8xf32>
    %c0_i32_14 = arith.constant 0 : i32
    %26 = arith.addi %8, %c0_i32_14 : i32
    %27 = arith.index_cast %26 : i32 to index
    %c2 = arith.constant 2 : index
    %c128_15 = arith.constant 128 : index
    %28 = vector.load %arg19[%27, %c2, %c128_15] : memref<20x18x384xbf16, #tpu.memory_space<vmem>>, vector<8x16x4xbf16>
    %29 = vector.shape_cast %28 : vector<8x16x4xbf16> to vector<128x4xbf16>
    %c2_16 = arith.constant 2 : index
    %c0_17 = arith.constant 0 : index
    %c0_18 = arith.constant 0 : index
    %30 = vector.load %arg6[%c2_16, %c0_17, %c0_18] : memref<9x4x8xbf16, #tpu.memory_space<vmem>>, vector<1x4x8xbf16>
    %31 = vector.shape_cast %30 : vector<1x4x8xbf16> to vector<4x8xbf16>
    %cst_19 = arith.constant dense<0.000000e+00> : vector<128x8xf32>
    %32 = tpu.matmul %29, %31, %cst_19 {dimension_numbers = #tpu.dot_dimension_numbers<[1], [0], [0], [1], [0, 0, 1, 1], [], []>} : vector<128x4xbf16>, vector<4x8xbf16>, vector<128x8xf32> -> vector<128x8xf32>
    %33 = arith.addf %25, %32 : vector<128x8xf32>
    %c1_i32_20 = arith.constant 1 : i32
    %34 = arith.addi %8, %c1_i32_20 : i32
    %35 = arith.index_cast %34 : i32 to index
    %c0_21 = arith.constant 0 : index
    %c128_22 = arith.constant 128 : index
    %36 = vector.load %arg19[%35, %c0_21, %c128_22] : memref<20x18x384xbf16, #tpu.memory_space<vmem>>, vector<8x16x4xbf16>
    %37 = vector.shape_cast %36 : vector<8x16x4xbf16> to vector<128x4xbf16>
    %c3 = arith.constant 3 : index
    %c0_23 = arith.constant 0 : index
    %c0_24 = arith.constant 0 : index
    %38 = vector.load %arg6[%c3, %c0_23, %c0_24] : memref<9x4x8xbf16, #tpu.memory_space<vmem>>, vector<1x4x8xbf16>
    %39 = vector.shape_cast %38 : vector<1x4x8xbf16> to vector<4x8xbf16>
    %cst_25 = arith.constant dense<0.000000e+00> : vector<128x8xf32>
    %40 = tpu.matmul %37, %39, %cst_25 {dimension_numbers = #tpu.dot_dimension_numbers<[1], [0], [0], [1], [0, 0, 1, 1], [], []>} : vector<128x4xbf16>, vector<4x8xbf16>, vector<128x8xf32> -> vector<128x8xf32>
    %41 = arith.addf %33, %40 : vector<128x8xf32>
    %c1_i32_26 = arith.constant 1 : i32
    %42 = arith.addi %8, %c1_i32_26 : i32
    %43 = arith.index_cast %42 : i32 to index
    %c1_27 = arith.constant 1 : index
    %c128_28 = arith.constant 128 : index
    %44 = vector.load %arg19[%43, %c1_27, %c128_28] : memref<20x18x384xbf16, #tpu.memory_space<vmem>>, vector<8x16x4xbf16>
    %45 = vector.shape_cast %44 : vector<8x16x4xbf16> to vector<128x4xbf16>
    %c4 = arith.constant 4 : index
    %c0_29 = arith.constant 0 : index
    %c0_30 = arith.constant 0 : index
    %46 = vector.load %arg6[%c4, %c0_29, %c0_30] : memref<9x4x8xbf16, #tpu.memory_space<vmem>>, vector<1x4x8xbf16>
    %47 = vector.shape_cast %46 : vector<1x4x8xbf16> to vector<4x8xbf16>
    %cst_31 = arith.constant dense<0.000000e+00> : vector<128x8xf32>
    %48 = tpu.matmul %45, %47, %cst_31 {dimension_numbers = #tpu.dot_dimension_numbers<[1], [0], [0], [1], [0, 0, 1, 1], [], []>} : vector<128x4xbf16>, vector<4x8xbf16>, vector<128x8xf32> -> vector<128x8xf32>
    %49 = arith.addf %41, %48 : vector<128x8xf32>
    %c1_i32_32 = arith.constant 1 : i32
    %50 = arith.addi %8, %c1_i32_32 : i32
    %51 = arith.index_cast %50 : i32 to index
    %c2_33 = arith.constant 2 : index
    %c128_34 = arith.constant 128 : index
    %52 = vector.load %arg19[%51, %c2_33, %c128_34] : memref<20x18x384xbf16, #tpu.memory_space<vmem>>, vector<8x16x4xbf16>
    %53 = vector.shape_cast %52 : vector<8x16x4xbf16> to vector<128x4xbf16>
    %c5 = arith.constant 5 : index
    %c0_35 = arith.constant 0 : index
    %c0_36 = arith.constant 0 : index
    %54 = vector.load %arg6[%c5, %c0_35, %c0_36] : memref<9x4x8xbf16, #tpu.memory_space<vmem>>, vector<1x4x8xbf16>
    %55 = vector.shape_cast %54 : vector<1x4x8xbf16> to vector<4x8xbf16>
    %cst_37 = arith.constant dense<0.000000e+00> : vector<128x8xf32>
    %56 = tpu.matmul %53, %55, %cst_37 {dimension_numbers = #tpu.dot_dimension_numbers<[1], [0], [0], [1], [0, 0, 1, 1], [], []>} : vector<128x4xbf16>, vector<4x8xbf16>, vector<128x8xf32> -> vector<128x8xf32>
    %57 = arith.addf %49, %56 : vector<128x8xf32>
    %c2_i32_38 = arith.constant 2 : i32
    %58 = arith.addi %8, %c2_i32_38 : i32
    %59 = arith.index_cast %58 : i32 to index
    %c0_39 = arith.constant 0 : index
    %c128_40 = arith.constant 128 : index
    %60 = vector.load %arg19[%59, %c0_39, %c128_40] : memref<20x18x384xbf16, #tpu.memory_space<vmem>>, vector<8x16x4xbf16>
    %61 = vector.shape_cast %60 : vector<8x16x4xbf16> to vector<128x4xbf16>
    %c6 = arith.constant 6 : index
    %c0_41 = arith.constant 0 : index
    %c0_42 = arith.constant 0 : index
    %62 = vector.load %arg6[%c6, %c0_41, %c0_42] : memref<9x4x8xbf16, #tpu.memory_space<vmem>>, vector<1x4x8xbf16>
    %63 = vector.shape_cast %62 : vector<1x4x8xbf16> to vector<4x8xbf16>
    %cst_43 = arith.constant dense<0.000000e+00> : vector<128x8xf32>
    %64 = tpu.matmul %61, %63, %cst_43 {dimension_numbers = #tpu.dot_dimension_numbers<[1], [0], [0], [1], [0, 0, 1, 1], [], []>} : vector<128x4xbf16>, vector<4x8xbf16>, vector<128x8xf32> -> vector<128x8xf32>
    %65 = arith.addf %57, %64 : vector<128x8xf32>
    %c2_i32_44 = arith.constant 2 : i32
    %66 = arith.addi %8, %c2_i32_44 : i32
    %67 = arith.index_cast %66 : i32 to index
    %c1_45 = arith.constant 1 : index
    %c128_46 = arith.constant 128 : index
    %68 = vector.load %arg19[%67, %c1_45, %c128_46] : memref<20x18x384xbf16, #tpu.memory_space<vmem>>, vector<8x16x4xbf16>
    %69 = vector.shape_cast %68 : vector<8x16x4xbf16> to vector<128x4xbf16>
    %c7 = arith.constant 7 : index
    %c0_47 = arith.constant 0 : index
    %c0_48 = arith.constant 0 : index
    %70 = vector.load %arg6[%c7, %c0_47, %c0_48] : memref<9x4x8xbf16, #tpu.memory_space<vmem>>, vector<1x4x8xbf16>
    %71 = vector.shape_cast %70 : vector<1x4x8xbf16> to vector<4x8xbf16>
    %cst_49 = arith.constant dense<0.000000e+00> : vector<128x8xf32>
    %72 = tpu.matmul %69, %71, %cst_49 {dimension_numbers = #tpu.dot_dimension_numbers<[1], [0], [0], [1], [0, 0, 1, 1], [], []>} : vector<128x4xbf16>, vector<4x8xbf16>, vector<128x8xf32> -> vector<128x8xf32>
    %73 = arith.addf %65, %72 : vector<128x8xf32>
    %c2_i32_50 = arith.constant 2 : i32
    %74 = arith.addi %8, %c2_i32_50 : i32
    %75 = arith.index_cast %74 : i32 to index
    %c2_51 = arith.constant 2 : index
    %c128_52 = arith.constant 128 : index
    %76 = vector.load %arg19[%75, %c2_51, %c128_52] : memref<20x18x384xbf16, #tpu.memory_space<vmem>>, vector<8x16x4xbf16>
    %77 = vector.shape_cast %76 : vector<8x16x4xbf16> to vector<128x4xbf16>
    %c8 = arith.constant 8 : index
    %c0_53 = arith.constant 0 : index
    %c0_54 = arith.constant 0 : index
    %78 = vector.load %arg6[%c8, %c0_53, %c0_54] : memref<9x4x8xbf16, #tpu.memory_space<vmem>>, vector<1x4x8xbf16>
    %79 = vector.shape_cast %78 : vector<1x4x8xbf16> to vector<4x8xbf16>
    %cst_55 = arith.constant dense<0.000000e+00> : vector<128x8xf32>
    %80 = tpu.matmul %77, %79, %cst_55 {dimension_numbers = #tpu.dot_dimension_numbers<[1], [0], [0], [1], [0, 0, 1, 1], [], []>} : vector<128x4xbf16>, vector<4x8xbf16>, vector<128x8xf32> -> vector<128x8xf32>
    %81 = arith.addf %73, %80 : vector<128x8xf32>
    %c0_56 = arith.constant 0 : index
    %c0_57 = arith.constant 0 : index
    %82 = vector.load %arg7[%c0_56, %c0_57] : memref<1x8xf32, #tpu.memory_space<vmem>>, vector<1x8xf32>
    %83 = vector.broadcast %82 : vector<1x8xf32> to vector<128x8xf32>
    %84 = arith.mulf %81, %83 : vector<128x8xf32>
    %c0_58 = arith.constant 0 : index
    %c0_59 = arith.constant 0 : index
    %85 = vector.load %arg8[%c0_58, %c0_59] : memref<1x8xf32, #tpu.memory_space<vmem>>, vector<1x8xf32>
    %86 = vector.broadcast %85 : vector<1x8xf32> to vector<128x8xf32>
    %87 = arith.addf %84, %86 : vector<128x8xf32>
    %cst_60 = arith.constant 0.000000e+00 : f32
    %88 = vector.broadcast %cst_60 : f32 to vector<128x8xf32>
    %89 = arith.maximumf %87, %88 : vector<128x8xf32>
    %90 = vector.shape_cast %89 : vector<128x8xf32> to vector<8x16x8xf32>
    %cst_61 = arith.constant 0.000000e+00 : f32
    %91 = vector.broadcast %cst_61 : f32 to vector<160x4xf32>
    %c0_i32_62 = arith.constant 0 : i32
    %92 = arith.addi %0, %c0_i32_62 : i32
    %93 = arith.index_cast %92 : i32 to index
    %c0_63 = arith.constant 0 : index
    %c256 = arith.constant 256 : index
    %94 = vector.load %arg19[%93, %c0_63, %c256] : memref<20x18x384xbf16, #tpu.memory_space<vmem>>, vector<10x16x4xbf16>
    %95 = vector.shape_cast %94 : vector<10x16x4xbf16> to vector<160x4xbf16>
    %c0_64 = arith.constant 0 : index
    %c0_65 = arith.constant 0 : index
    %c0_66 = arith.constant 0 : index
    %96 = vector.load %arg9[%c0_64, %c0_65, %c0_66] : memref<9x4x4xbf16, #tpu.memory_space<vmem>>, vector<1x4x4xbf16>
    %97 = vector.shape_cast %96 : vector<1x4x4xbf16> to vector<4x4xbf16>
    %cst_67 = arith.constant dense<0.000000e+00> : vector<160x4xf32>
    %98 = tpu.matmul %95, %97, %cst_67 {dimension_numbers = #tpu.dot_dimension_numbers<[1], [0], [0], [1], [0, 0, 1, 1], [], []>} : vector<160x4xbf16>, vector<4x4xbf16>, vector<160x4xf32> -> vector<160x4xf32>
    %99 = arith.addf %91, %98 : vector<160x4xf32>
    %c0_i32_68 = arith.constant 0 : i32
    %100 = arith.addi %0, %c0_i32_68 : i32
    %101 = arith.index_cast %100 : i32 to index
    %c1_69 = arith.constant 1 : index
    %c256_70 = arith.constant 256 : index
    %102 = vector.load %arg19[%101, %c1_69, %c256_70] : memref<20x18x384xbf16, #tpu.memory_space<vmem>>, vector<10x16x4xbf16>
    %103 = vector.shape_cast %102 : vector<10x16x4xbf16> to vector<160x4xbf16>
    %c1_71 = arith.constant 1 : index
    %c0_72 = arith.constant 0 : index
    %c0_73 = arith.constant 0 : index
    %104 = vector.load %arg9[%c1_71, %c0_72, %c0_73] : memref<9x4x4xbf16, #tpu.memory_space<vmem>>, vector<1x4x4xbf16>
    %105 = vector.shape_cast %104 : vector<1x4x4xbf16> to vector<4x4xbf16>
    %cst_74 = arith.constant dense<0.000000e+00> : vector<160x4xf32>
    %106 = tpu.matmul %103, %105, %cst_74 {dimension_numbers = #tpu.dot_dimension_numbers<[1], [0], [0], [1], [0, 0, 1, 1], [], []>} : vector<160x4xbf16>, vector<4x4xbf16>, vector<160x4xf32> -> vector<160x4xf32>
    %107 = arith.addf %99, %106 : vector<160x4xf32>
    %c0_i32_75 = arith.constant 0 : i32
    %108 = arith.addi %0, %c0_i32_75 : i32
    %109 = arith.index_cast %108 : i32 to index
    %c2_76 = arith.constant 2 : index
    %c256_77 = arith.constant 256 : index
    %110 = vector.load %arg19[%109, %c2_76, %c256_77] : memref<20x18x384xbf16, #tpu.memory_space<vmem>>, vector<10x16x4xbf16>
    %111 = vector.shape_cast %110 : vector<10x16x4xbf16> to vector<160x4xbf16>
    %c2_78 = arith.constant 2 : index
    %c0_79 = arith.constant 0 : index
    %c0_80 = arith.constant 0 : index
    %112 = vector.load %arg9[%c2_78, %c0_79, %c0_80] : memref<9x4x4xbf16, #tpu.memory_space<vmem>>, vector<1x4x4xbf16>
    %113 = vector.shape_cast %112 : vector<1x4x4xbf16> to vector<4x4xbf16>
    %cst_81 = arith.constant dense<0.000000e+00> : vector<160x4xf32>
    %114 = tpu.matmul %111, %113, %cst_81 {dimension_numbers = #tpu.dot_dimension_numbers<[1], [0], [0], [1], [0, 0, 1, 1], [], []>} : vector<160x4xbf16>, vector<4x4xbf16>, vector<160x4xf32> -> vector<160x4xf32>
    %115 = arith.addf %107, %114 : vector<160x4xf32>
    %c1_i32_82 = arith.constant 1 : i32
    %116 = arith.addi %0, %c1_i32_82 : i32
    %117 = arith.index_cast %116 : i32 to index
    %c0_83 = arith.constant 0 : index
    %c256_84 = arith.constant 256 : index
    %118 = vector.load %arg19[%117, %c0_83, %c256_84] : memref<20x18x384xbf16, #tpu.memory_space<vmem>>, vector<10x16x4xbf16>
    %119 = vector.shape_cast %118 : vector<10x16x4xbf16> to vector<160x4xbf16>
    %c3_85 = arith.constant 3 : index
    %c0_86 = arith.constant 0 : index
    %c0_87 = arith.constant 0 : index
    %120 = vector.load %arg9[%c3_85, %c0_86, %c0_87] : memref<9x4x4xbf16, #tpu.memory_space<vmem>>, vector<1x4x4xbf16>
    %121 = vector.shape_cast %120 : vector<1x4x4xbf16> to vector<4x4xbf16>
    %cst_88 = arith.constant dense<0.000000e+00> : vector<160x4xf32>
    %122 = tpu.matmul %119, %121, %cst_88 {dimension_numbers = #tpu.dot_dimension_numbers<[1], [0], [0], [1], [0, 0, 1, 1], [], []>} : vector<160x4xbf16>, vector<4x4xbf16>, vector<160x4xf32> -> vector<160x4xf32>
    %123 = arith.addf %115, %122 : vector<160x4xf32>
    %c1_i32_89 = arith.constant 1 : i32
    %124 = arith.addi %0, %c1_i32_89 : i32
    %125 = arith.index_cast %124 : i32 to index
    %c1_90 = arith.constant 1 : index
    %c256_91 = arith.constant 256 : index
    %126 = vector.load %arg19[%125, %c1_90, %c256_91] : memref<20x18x384xbf16, #tpu.memory_space<vmem>>, vector<10x16x4xbf16>
    %127 = vector.shape_cast %126 : vector<10x16x4xbf16> to vector<160x4xbf16>
    %c4_92 = arith.constant 4 : index
    %c0_93 = arith.constant 0 : index
    %c0_94 = arith.constant 0 : index
    %128 = vector.load %arg9[%c4_92, %c0_93, %c0_94] : memref<9x4x4xbf16, #tpu.memory_space<vmem>>, vector<1x4x4xbf16>
    %129 = vector.shape_cast %128 : vector<1x4x4xbf16> to vector<4x4xbf16>
    %cst_95 = arith.constant dense<0.000000e+00> : vector<160x4xf32>
    %130 = tpu.matmul %127, %129, %cst_95 {dimension_numbers = #tpu.dot_dimension_numbers<[1], [0], [0], [1], [0, 0, 1, 1], [], []>} : vector<160x4xbf16>, vector<4x4xbf16>, vector<160x4xf32> -> vector<160x4xf32>
    %131 = arith.addf %123, %130 : vector<160x4xf32>
    %c1_i32_96 = arith.constant 1 : i32
    %132 = arith.addi %0, %c1_i32_96 : i32
    %133 = arith.index_cast %132 : i32 to index
    %c2_97 = arith.constant 2 : index
    %c256_98 = arith.constant 256 : index
    %134 = vector.load %arg19[%133, %c2_97, %c256_98] : memref<20x18x384xbf16, #tpu.memory_space<vmem>>, vector<10x16x4xbf16>
    %135 = vector.shape_cast %134 : vector<10x16x4xbf16> to vector<160x4xbf16>
    %c5_99 = arith.constant 5 : index
    %c0_100 = arith.constant 0 : index
    %c0_101 = arith.constant 0 : index
    %136 = vector.load %arg9[%c5_99, %c0_100, %c0_101] : memref<9x4x4xbf16, #tpu.memory_space<vmem>>, vector<1x4x4xbf16>
    %137 = vector.shape_cast %136 : vector<1x4x4xbf16> to vector<4x4xbf16>
    %cst_102 = arith.constant dense<0.000000e+00> : vector<160x4xf32>
    %138 = tpu.matmul %135, %137, %cst_102 {dimension_numbers = #tpu.dot_dimension_numbers<[1], [0], [0], [1], [0, 0, 1, 1], [], []>} : vector<160x4xbf16>, vector<4x4xbf16>, vector<160x4xf32> -> vector<160x4xf32>
    %139 = arith.addf %131, %138 : vector<160x4xf32>
    %c2_i32_103 = arith.constant 2 : i32
    %140 = arith.addi %0, %c2_i32_103 : i32
    %141 = arith.index_cast %140 : i32 to index
    %c0_104 = arith.constant 0 : index
    %c256_105 = arith.constant 256 : index
    %142 = vector.load %arg19[%141, %c0_104, %c256_105] : memref<20x18x384xbf16, #tpu.memory_space<vmem>>, vector<10x16x4xbf16>
    %143 = vector.shape_cast %142 : vector<10x16x4xbf16> to vector<160x4xbf16>
    %c6_106 = arith.constant 6 : index
    %c0_107 = arith.constant 0 : index
    %c0_108 = arith.constant 0 : index
    %144 = vector.load %arg9[%c6_106, %c0_107, %c0_108] : memref<9x4x4xbf16, #tpu.memory_space<vmem>>, vector<1x4x4xbf16>
    %145 = vector.shape_cast %144 : vector<1x4x4xbf16> to vector<4x4xbf16>
    %cst_109 = arith.constant dense<0.000000e+00> : vector<160x4xf32>
    %146 = tpu.matmul %143, %145, %cst_109 {dimension_numbers = #tpu.dot_dimension_numbers<[1], [0], [0], [1], [0, 0, 1, 1], [], []>} : vector<160x4xbf16>, vector<4x4xbf16>, vector<160x4xf32> -> vector<160x4xf32>
    %147 = arith.addf %139, %146 : vector<160x4xf32>
    %c2_i32_110 = arith.constant 2 : i32
    %148 = arith.addi %0, %c2_i32_110 : i32
    %149 = arith.index_cast %148 : i32 to index
    %c1_111 = arith.constant 1 : index
    %c256_112 = arith.constant 256 : index
    %150 = vector.load %arg19[%149, %c1_111, %c256_112] : memref<20x18x384xbf16, #tpu.memory_space<vmem>>, vector<10x16x4xbf16>
    %151 = vector.shape_cast %150 : vector<10x16x4xbf16> to vector<160x4xbf16>
    %c7_113 = arith.constant 7 : index
    %c0_114 = arith.constant 0 : index
    %c0_115 = arith.constant 0 : index
    %152 = vector.load %arg9[%c7_113, %c0_114, %c0_115] : memref<9x4x4xbf16, #tpu.memory_space<vmem>>, vector<1x4x4xbf16>
    %153 = vector.shape_cast %152 : vector<1x4x4xbf16> to vector<4x4xbf16>
    %cst_116 = arith.constant dense<0.000000e+00> : vector<160x4xf32>
    %154 = tpu.matmul %151, %153, %cst_116 {dimension_numbers = #tpu.dot_dimension_numbers<[1], [0], [0], [1], [0, 0, 1, 1], [], []>} : vector<160x4xbf16>, vector<4x4xbf16>, vector<160x4xf32> -> vector<160x4xf32>
    %155 = arith.addf %147, %154 : vector<160x4xf32>
    %c2_i32_117 = arith.constant 2 : i32
    %156 = arith.addi %0, %c2_i32_117 : i32
    %157 = arith.index_cast %156 : i32 to index
    %c2_118 = arith.constant 2 : index
    %c256_119 = arith.constant 256 : index
    %158 = vector.load %arg19[%157, %c2_118, %c256_119] : memref<20x18x384xbf16, #tpu.memory_space<vmem>>, vector<10x16x4xbf16>
    %159 = vector.shape_cast %158 : vector<10x16x4xbf16> to vector<160x4xbf16>
    %c8_120 = arith.constant 8 : index
    %c0_121 = arith.constant 0 : index
    %c0_122 = arith.constant 0 : index
    %160 = vector.load %arg9[%c8_120, %c0_121, %c0_122] : memref<9x4x4xbf16, #tpu.memory_space<vmem>>, vector<1x4x4xbf16>
    %161 = vector.shape_cast %160 : vector<1x4x4xbf16> to vector<4x4xbf16>
    %cst_123 = arith.constant dense<0.000000e+00> : vector<160x4xf32>
    %162 = tpu.matmul %159, %161, %cst_123 {dimension_numbers = #tpu.dot_dimension_numbers<[1], [0], [0], [1], [0, 0, 1, 1], [], []>} : vector<160x4xbf16>, vector<4x4xbf16>, vector<160x4xf32> -> vector<160x4xf32>
    %163 = arith.addf %155, %162 : vector<160x4xf32>
    %c0_124 = arith.constant 0 : index
    %c0_125 = arith.constant 0 : index
    %164 = vector.load %arg10[%c0_124, %c0_125] : memref<1x4xf32, #tpu.memory_space<vmem>>, vector<1x4xf32>
    %165 = vector.broadcast %164 : vector<1x4xf32> to vector<160x4xf32>
    %166 = arith.mulf %163, %165 : vector<160x4xf32>
    %c0_126 = arith.constant 0 : index
    %c0_127 = arith.constant 0 : index
    %167 = vector.load %arg11[%c0_126, %c0_127] : memref<1x4xf32, #tpu.memory_space<vmem>>, vector<1x4xf32>
    %168 = vector.broadcast %167 : vector<1x4xf32> to vector<160x4xf32>
    %169 = arith.addf %166, %168 : vector<160x4xf32>
    %cst_128 = arith.constant 0.000000e+00 : f32
    %170 = vector.broadcast %cst_128 : f32 to vector<160x4xf32>
    %171 = arith.maximumf %169, %170 : vector<160x4xf32>
    %172 = vector.shape_cast %171 : vector<160x4xf32> to vector<10x16x4xf32>
    %c1_i32_129 = arith.constant 1 : i32
    %173 = arith.subi %0, %c1_i32_129 : i32
    %174 = tpu.iota {dimensions = array<i32: 0>} : vector<10x1x1xi32>
    %175 = vector.broadcast %173 : i32 to vector<10x1x1xi32>
    %176 = arith.addi %175, %174 : vector<10x1x1xi32>
    %c0_i32_130 = arith.constant 0 : i32
    %177 = vector.broadcast %c0_i32_130 : i32 to vector<10x1x1xi32>
    %178 = arith.cmpi sge, %176, %177 : vector<10x1x1xi32>
    %c16_i32 = arith.constant 16 : i32
    %179 = vector.broadcast %c16_i32 : i32 to vector<10x1x1xi32>
    %180 = arith.cmpi slt, %176, %179 : vector<10x1x1xi32>
    %181 = arith.andi %178, %180 : vector<10x1x1xi1>
    %cst_131 = arith.constant 0.000000e+00 : f32
    %182 = vector.shape_cast %181 : vector<10x1x1xi1> to vector<10x1x1xi1>
    %183 = vector.broadcast %182 : vector<10x1x1xi1> to vector<10x16x4xi1>
    %184 = vector.broadcast %cst_131 : f32 to vector<10x16x4xf32>
    %185 = arith.select %183, %172, %184 : vector<10x16x4xi1>, vector<10x16x4xf32>
    %186 = arith.truncf %185 : vector<10x16x4xf32> to vector<10x16x4xbf16>
    %c0_132 = arith.constant 0 : index
    %c1_133 = arith.constant 1 : index
    %c0_134 = arith.constant 0 : index
    %187 = vector.load %arg21[%c0_132, %c1_133, %c0_134] : memref<10x18x4xbf16, #tpu.memory_space<vmem>>, vector<10x16x4xbf16>
    tpu.vector_store %arg21[%c0_132, %c1_133, %c0_134], %186 {strides = array<i32>} : memref<10x18x4xbf16, #tpu.memory_space<vmem>>, vector<10x16x4xbf16>,
    %cst_135 = arith.constant 0.000000e+00 : f32
    %188 = vector.broadcast %cst_135 : f32 to vector<128x4xf32>
    %c0_136 = arith.constant 0 : index
    %c0_137 = arith.constant 0 : index
    %c0_138 = arith.constant 0 : index
    %189 = vector.load %arg21[%c0_136, %c0_137, %c0_138] : memref<10x18x4xbf16, #tpu.memory_space<vmem>>, vector<8x16x4xbf16>
    %190 = vector.shape_cast %189 : vector<8x16x4xbf16> to vector<128x4xbf16>
    %c0_139 = arith.constant 0 : index
    %c0_140 = arith.constant 0 : index
    %c0_141 = arith.constant 0 : index
    %191 = vector.load %arg12[%c0_139, %c0_140, %c0_141] : memref<9x4x4xbf16, #tpu.memory_space<vmem>>, vector<1x4x4xbf16>
    %192 = vector.shape_cast %191 : vector<1x4x4xbf16> to vector<4x4xbf16>
    %cst_142 = arith.constant dense<0.000000e+00> : vector<128x4xf32>
    %193 = tpu.matmul %190, %192, %cst_142 {dimension_numbers = #tpu.dot_dimension_numbers<[1], [0], [0], [1], [0, 0, 1, 1], [], []>} : vector<128x4xbf16>, vector<4x4xbf16>, vector<128x4xf32> -> vector<128x4xf32>
    %194 = arith.addf %188, %193 : vector<128x4xf32>
    %c0_143 = arith.constant 0 : index
    %c1_144 = arith.constant 1 : index
    %c0_145 = arith.constant 0 : index
    %195 = vector.load %arg21[%c0_143, %c1_144, %c0_145] : memref<10x18x4xbf16, #tpu.memory_space<vmem>>, vector<8x16x4xbf16>
    %196 = vector.shape_cast %195 : vector<8x16x4xbf16> to vector<128x4xbf16>
    %c1_146 = arith.constant 1 : index
    %c0_147 = arith.constant 0 : index
    %c0_148 = arith.constant 0 : index
    %197 = vector.load %arg12[%c1_146, %c0_147, %c0_148] : memref<9x4x4xbf16, #tpu.memory_space<vmem>>, vector<1x4x4xbf16>
    %198 = vector.shape_cast %197 : vector<1x4x4xbf16> to vector<4x4xbf16>
    %cst_149 = arith.constant dense<0.000000e+00> : vector<128x4xf32>
    %199 = tpu.matmul %196, %198, %cst_149 {dimension_numbers = #tpu.dot_dimension_numbers<[1], [0], [0], [1], [0, 0, 1, 1], [], []>} : vector<128x4xbf16>, vector<4x4xbf16>, vector<128x4xf32> -> vector<128x4xf32>
    %200 = arith.addf %194, %199 : vector<128x4xf32>
    %c0_150 = arith.constant 0 : index
    %c2_151 = arith.constant 2 : index
    %c0_152 = arith.constant 0 : index
    %201 = vector.load %arg21[%c0_150, %c2_151, %c0_152] : memref<10x18x4xbf16, #tpu.memory_space<vmem>>, vector<8x16x4xbf16>
    %202 = vector.shape_cast %201 : vector<8x16x4xbf16> to vector<128x4xbf16>
    %c2_153 = arith.constant 2 : index
    %c0_154 = arith.constant 0 : index
    %c0_155 = arith.constant 0 : index
    %203 = vector.load %arg12[%c2_153, %c0_154, %c0_155] : memref<9x4x4xbf16, #tpu.memory_space<vmem>>, vector<1x4x4xbf16>
    %204 = vector.shape_cast %203 : vector<1x4x4xbf16> to vector<4x4xbf16>
    %cst_156 = arith.constant dense<0.000000e+00> : vector<128x4xf32>
    %205 = tpu.matmul %202, %204, %cst_156 {dimension_numbers = #tpu.dot_dimension_numbers<[1], [0], [0], [1], [0, 0, 1, 1], [], []>} : vector<128x4xbf16>, vector<4x4xbf16>, vector<128x4xf32> -> vector<128x4xf32>
    %206 = arith.addf %200, %205 : vector<128x4xf32>
    %c1_157 = arith.constant 1 : index
    %c0_158 = arith.constant 0 : index
    %c0_159 = arith.constant 0 : index
    %207 = vector.load %arg21[%c1_157, %c0_158, %c0_159] : memref<10x18x4xbf16, #tpu.memory_space<vmem>>, vector<8x16x4xbf16>
    %208 = vector.shape_cast %207 : vector<8x16x4xbf16> to vector<128x4xbf16>
    %c3_160 = arith.constant 3 : index
    %c0_161 = arith.constant 0 : index
    %c0_162 = arith.constant 0 : index
    %209 = vector.load %arg12[%c3_160, %c0_161, %c0_162] : memref<9x4x4xbf16, #tpu.memory_space<vmem>>, vector<1x4x4xbf16>
    %210 = vector.shape_cast %209 : vector<1x4x4xbf16> to vector<4x4xbf16>
    %cst_163 = arith.constant dense<0.000000e+00> : vector<128x4xf32>
    %211 = tpu.matmul %208, %210, %cst_163 {dimension_numbers = #tpu.dot_dimension_numbers<[1], [0], [0], [1], [0, 0, 1, 1], [], []>} : vector<128x4xbf16>, vector<4x4xbf16>, vector<128x4xf32> -> vector<128x4xf32>
    %212 = arith.addf %206, %211 : vector<128x4xf32>
    %c1_164 = arith.constant 1 : index
    %c1_165 = arith.constant 1 : index
    %c0_166 = arith.constant 0 : index
    %213 = vector.load %arg21[%c1_164, %c1_165, %c0_166] : memref<10x18x4xbf16, #tpu.memory_space<vmem>>, vector<8x16x4xbf16>
    %214 = vector.shape_cast %213 : vector<8x16x4xbf16> to vector<128x4xbf16>
    %c4_167 = arith.constant 4 : index
    %c0_168 = arith.constant 0 : index
    %c0_169 = arith.constant 0 : index
    %215 = vector.load %arg12[%c4_167, %c0_168, %c0_169] : memref<9x4x4xbf16, #tpu.memory_space<vmem>>, vector<1x4x4xbf16>
    %216 = vector.shape_cast %215 : vector<1x4x4xbf16> to vector<4x4xbf16>
    %cst_170 = arith.constant dense<0.000000e+00> : vector<128x4xf32>
    %217 = tpu.matmul %214, %216, %cst_170 {dimension_numbers = #tpu.dot_dimension_numbers<[1], [0], [0], [1], [0, 0, 1, 1], [], []>} : vector<128x4xbf16>, vector<4x4xbf16>, vector<128x4xf32> -> vector<128x4xf32>
    %218 = arith.addf %212, %217 : vector<128x4xf32>
    %c1_171 = arith.constant 1 : index
    %c2_172 = arith.constant 2 : index
    %c0_173 = arith.constant 0 : index
    %219 = vector.load %arg21[%c1_171, %c2_172, %c0_173] : memref<10x18x4xbf16, #tpu.memory_space<vmem>>, vector<8x16x4xbf16>
    %220 = vector.shape_cast %219 : vector<8x16x4xbf16> to vector<128x4xbf16>
    %c5_174 = arith.constant 5 : index
    %c0_175 = arith.constant 0 : index
    %c0_176 = arith.constant 0 : index
    %221 = vector.load %arg12[%c5_174, %c0_175, %c0_176] : memref<9x4x4xbf16, #tpu.memory_space<vmem>>, vector<1x4x4xbf16>
    %222 = vector.shape_cast %221 : vector<1x4x4xbf16> to vector<4x4xbf16>
    %cst_177 = arith.constant dense<0.000000e+00> : vector<128x4xf32>
    %223 = tpu.matmul %220, %222, %cst_177 {dimension_numbers = #tpu.dot_dimension_numbers<[1], [0], [0], [1], [0, 0, 1, 1], [], []>} : vector<128x4xbf16>, vector<4x4xbf16>, vector<128x4xf32> -> vector<128x4xf32>
    %224 = arith.addf %218, %223 : vector<128x4xf32>
    %c2_178 = arith.constant 2 : index
    %c0_179 = arith.constant 0 : index
    %c0_180 = arith.constant 0 : index
    %225 = vector.load %arg21[%c2_178, %c0_179, %c0_180] : memref<10x18x4xbf16, #tpu.memory_space<vmem>>, vector<8x16x4xbf16>
    %226 = vector.shape_cast %225 : vector<8x16x4xbf16> to vector<128x4xbf16>
    %c6_181 = arith.constant 6 : index
    %c0_182 = arith.constant 0 : index
    %c0_183 = arith.constant 0 : index
    %227 = vector.load %arg12[%c6_181, %c0_182, %c0_183] : memref<9x4x4xbf16, #tpu.memory_space<vmem>>, vector<1x4x4xbf16>
    %228 = vector.shape_cast %227 : vector<1x4x4xbf16> to vector<4x4xbf16>
    %cst_184 = arith.constant dense<0.000000e+00> : vector<128x4xf32>
    %229 = tpu.matmul %226, %228, %cst_184 {dimension_numbers = #tpu.dot_dimension_numbers<[1], [0], [0], [1], [0, 0, 1, 1], [], []>} : vector<128x4xbf16>, vector<4x4xbf16>, vector<128x4xf32> -> vector<128x4xf32>
    %230 = arith.addf %224, %229 : vector<128x4xf32>
    %c2_185 = arith.constant 2 : index
    %c1_186 = arith.constant 1 : index
    %c0_187 = arith.constant 0 : index
    %231 = vector.load %arg21[%c2_185, %c1_186, %c0_187] : memref<10x18x4xbf16, #tpu.memory_space<vmem>>, vector<8x16x4xbf16>
    %232 = vector.shape_cast %231 : vector<8x16x4xbf16> to vector<128x4xbf16>
    %c7_188 = arith.constant 7 : index
    %c0_189 = arith.constant 0 : index
    %c0_190 = arith.constant 0 : index
    %233 = vector.load %arg12[%c7_188, %c0_189, %c0_190] : memref<9x4x4xbf16, #tpu.memory_space<vmem>>, vector<1x4x4xbf16>
    %234 = vector.shape_cast %233 : vector<1x4x4xbf16> to vector<4x4xbf16>
    %cst_191 = arith.constant dense<0.000000e+00> : vector<128x4xf32>
    %235 = tpu.matmul %232, %234, %cst_191 {dimension_numbers = #tpu.dot_dimension_numbers<[1], [0], [0], [1], [0, 0, 1, 1], [], []>} : vector<128x4xbf16>, vector<4x4xbf16>, vector<128x4xf32> -> vector<128x4xf32>
    %236 = arith.addf %230, %235 : vector<128x4xf32>
    %c2_192 = arith.constant 2 : index
    %c2_193 = arith.constant 2 : index
    %c0_194 = arith.constant 0 : index
    %237 = vector.load %arg21[%c2_192, %c2_193, %c0_194] : memref<10x18x4xbf16, #tpu.memory_space<vmem>>, vector<8x16x4xbf16>
    %238 = vector.shape_cast %237 : vector<8x16x4xbf16> to vector<128x4xbf16>
    %c8_195 = arith.constant 8 : index
    %c0_196 = arith.constant 0 : index
    %c0_197 = arith.constant 0 : index
    %239 = vector.load %arg12[%c8_195, %c0_196, %c0_197] : memref<9x4x4xbf16, #tpu.memory_space<vmem>>, vector<1x4x4xbf16>
    %240 = vector.shape_cast %239 : vector<1x4x4xbf16> to vector<4x4xbf16>
    %cst_198 = arith.constant dense<0.000000e+00> : vector<128x4xf32>
    %241 = tpu.matmul %238, %240, %cst_198 {dimension_numbers = #tpu.dot_dimension_numbers<[1], [0], [0], [1], [0, 0, 1, 1], [], []>} : vector<128x4xbf16>, vector<4x4xbf16>, vector<128x4xf32> -> vector<128x4xf32>
    %242 = arith.addf %236, %241 : vector<128x4xf32>
    %c0_199 = arith.constant 0 : index
    %c0_200 = arith.constant 0 : index
    %243 = vector.load %arg13[%c0_199, %c0_200] : memref<1x4xf32, #tpu.memory_space<vmem>>, vector<1x4xf32>
    %244 = vector.broadcast %243 : vector<1x4xf32> to vector<128x4xf32>
    %245 = arith.mulf %242, %244 : vector<128x4xf32>
    %c0_201 = arith.constant 0 : index
    %c0_202 = arith.constant 0 : index
    %246 = vector.load %arg14[%c0_201, %c0_202] : memref<1x4xf32, #tpu.memory_space<vmem>>, vector<1x4xf32>
    %247 = vector.broadcast %246 : vector<1x4xf32> to vector<128x4xf32>
    %248 = arith.addf %245, %247 : vector<128x4xf32>
    %cst_203 = arith.constant 0.000000e+00 : f32
    %249 = vector.broadcast %cst_203 : f32 to vector<128x4xf32>
    %250 = arith.maximumf %248, %249 : vector<128x4xf32>
    %251 = vector.shape_cast %250 : vector<128x4xf32> to vector<8x16x4xf32>
    %252 = arith.index_cast %0 : i32 to index
    %c0_204 = arith.constant 0 : index
    %c0_205 = arith.constant 0 : index
    %253 = vector.load %arg20[%252, %c0_204, %c0_205] : memref<18x18x4xbf16, #tpu.memory_space<vmem>>, vector<10x18x4xbf16>
    %254 = vector.extract_strided_slice %253 {offsets = [0, 0, 0], sizes = [10, 16, 4], strides = [1, 1, 1]} : vector<10x18x4xbf16> to vector<10x16x4xbf16>
    %255 = vector.extract_strided_slice %253 {offsets = [0, 1, 0], sizes = [10, 16, 4], strides = [1, 1, 1]} : vector<10x18x4xbf16> to vector<10x16x4xbf16>
    %256 = arith.maximumf %254, %255 : vector<10x16x4xbf16>
    %257 = vector.extract_strided_slice %253 {offsets = [0, 2, 0], sizes = [10, 16, 4], strides = [1, 1, 1]} : vector<10x18x4xbf16> to vector<10x16x4xbf16>
    %258 = arith.maximumf %256, %257 : vector<10x16x4xbf16>
    %259 = vector.extract_strided_slice %258 {offsets = [0, 0, 0], sizes = [8, 16, 4], strides = [1, 1, 1]} : vector<10x16x4xbf16> to vector<8x16x4xbf16>
    %260 = vector.extract_strided_slice %258 {offsets = [1, 0, 0], sizes = [8, 16, 4], strides = [1, 1, 1]} : vector<10x16x4xbf16> to vector<8x16x4xbf16>
    %261 = arith.maximumf %259, %260 : vector<8x16x4xbf16>
    %262 = vector.extract_strided_slice %258 {offsets = [2, 0, 0], sizes = [8, 16, 4], strides = [1, 1, 1]} : vector<10x16x4xbf16> to vector<8x16x4xbf16>
    %263 = arith.maximumf %261, %262 : vector<8x16x4xbf16>
    %264 = vector.shape_cast %263 : vector<8x16x4xbf16> to vector<128x4xbf16>
    %c0_206 = arith.constant 0 : index
    %c0_207 = arith.constant 0 : index
    %265 = vector.load %arg15[%c0_206, %c0_207] : memref<4x4xbf16, #tpu.memory_space<vmem>>, vector<4x4xbf16>
    %cst_208 = arith.constant dense<0.000000e+00> : vector<128x4xf32>
    %266 = tpu.matmul %264, %265, %cst_208 {dimension_numbers = #tpu.dot_dimension_numbers<[1], [0], [0], [1], [0, 0, 1, 1], [], []>} : vector<128x4xbf16>, vector<4x4xbf16>, vector<128x4xf32> -> vector<128x4xf32>
    %c0_209 = arith.constant 0 : index
    %c0_210 = arith.constant 0 : index
    %267 = vector.load %arg16[%c0_209, %c0_210] : memref<1x4xf32, #tpu.memory_space<vmem>>, vector<1x4xf32>
    %268 = vector.broadcast %267 : vector<1x4xf32> to vector<128x4xf32>
    %269 = arith.mulf %266, %268 : vector<128x4xf32>
    %c0_211 = arith.constant 0 : index
    %c0_212 = arith.constant 0 : index
    %270 = vector.load %arg17[%c0_211, %c0_212] : memref<1x4xf32, #tpu.memory_space<vmem>>, vector<1x4xf32>
    %271 = vector.broadcast %270 : vector<1x4xf32> to vector<128x4xf32>
    %272 = arith.addf %269, %271 : vector<128x4xf32>
    %cst_213 = arith.constant 0.000000e+00 : f32
    %273 = vector.broadcast %cst_213 : f32 to vector<128x4xf32>
    %274 = arith.maximumf %272, %273 : vector<128x4xf32>
    %275 = vector.shape_cast %274 : vector<128x4xf32> to vector<8x16x4xf32>
    %276 = tpu.concatenate %7, %90, %251, %275 in 2 : vector<8x16x4xf32>, vector<8x16x8xf32>, vector<8x16x4xf32>, vector<8x16x4xf32> -> vector<8x16x20xf32>
    %c0_214 = arith.constant 0 : index
    %c0_215 = arith.constant 0 : index
    %c0_216 = arith.constant 0 : index
    %c0_217 = arith.constant 0 : index
    %277 = vector.load %arg18[%c0_214, %c0_215, %c0_216, %c0_217] : memref<1x8x16x20xf32, #tpu.memory_space<vmem>>, vector<1x8x16x20xf32>
    %278 = vector.shape_cast %277 : vector<1x8x16x20xf32> to vector<8x16x20xf32>
    %279 = vector.shape_cast %276 : vector<8x16x20xf32> to vector<1x8x16x20xf32>
    tpu.vector_store %arg18[%c0_214, %c0_215, %c0_216, %c0_217], %279 {strides = array<i32>} : memref<1x8x16x20xf32, #tpu.memory_space<vmem>>, vector<1x8x16x20xf32>,
    return
  }
  func.func @transform_0(%arg0: i32, %arg1: i32) -> (i32, i32, i32, i32) {
    %c0_i32 = arith.constant 0 : i32
    %c0_i32_0 = arith.constant 0 : i32
    %c0_i32_1 = arith.constant 0 : i32
    %c0_i32_2 = arith.constant 0 : i32
    return %arg0, %c0_i32, %c0_i32_0, %c0_i32_1 : i32, i32, i32, i32
  }
  func.func @transform_1(%arg0: i32, %arg1: i32) -> (i32, i32) {
    %c0_i32 = arith.constant 0 : i32
    %c0_i32_0 = arith.constant 0 : i32
    %c0_i32_1 = arith.constant 0 : i32
    return %c0_i32, %c0_i32_0 : i32, i32
  }
  func.func @transform_2(%arg0: i32, %arg1: i32) -> (i32, i32) {
    %c0_i32 = arith.constant 0 : i32
    %c0_i32_0 = arith.constant 0 : i32
    %c0_i32_1 = arith.constant 0 : i32
    return %c0_i32, %c0_i32_0 : i32, i32
  }
  func.func @transform_3(%arg0: i32, %arg1: i32) -> (i32, i32) {
    %c0_i32 = arith.constant 0 : i32
    %c0_i32_0 = arith.constant 0 : i32
    %c0_i32_1 = arith.constant 0 : i32
    return %c0_i32, %c0_i32_0 : i32, i32
  }
  func.func @transform_4(%arg0: i32, %arg1: i32) -> (i32, i32, i32) {
    %c0_i32 = arith.constant 0 : i32
    %c0_i32_0 = arith.constant 0 : i32
    %c0_i32_1 = arith.constant 0 : i32
    %c0_i32_2 = arith.constant 0 : i32
    return %c0_i32, %c0_i32_0, %c0_i32_1 : i32, i32, i32
  }
  func.func @transform_5(%arg0: i32, %arg1: i32) -> (i32, i32) {
    %c0_i32 = arith.constant 0 : i32
    %c0_i32_0 = arith.constant 0 : i32
    %c0_i32_1 = arith.constant 0 : i32
    return %c0_i32, %c0_i32_0 : i32, i32
  }
  func.func @transform_6(%arg0: i32, %arg1: i32) -> (i32, i32) {
    %c0_i32 = arith.constant 0 : i32
    %c0_i32_0 = arith.constant 0 : i32
    %c0_i32_1 = arith.constant 0 : i32
    return %c0_i32, %c0_i32_0 : i32, i32
  }
  func.func @transform_7(%arg0: i32, %arg1: i32) -> (i32, i32, i32) {
    %c0_i32 = arith.constant 0 : i32
    %c0_i32_0 = arith.constant 0 : i32
    %c0_i32_1 = arith.constant 0 : i32
    %c0_i32_2 = arith.constant 0 : i32
    return %c0_i32, %c0_i32_0, %c0_i32_1 : i32, i32, i32
  }
  func.func @transform_8(%arg0: i32, %arg1: i32) -> (i32, i32) {
    %c0_i32 = arith.constant 0 : i32
    %c0_i32_0 = arith.constant 0 : i32
    %c0_i32_1 = arith.constant 0 : i32
    return %c0_i32, %c0_i32_0 : i32, i32
  }
  func.func @transform_9(%arg0: i32, %arg1: i32) -> (i32, i32) {
    %c0_i32 = arith.constant 0 : i32
    %c0_i32_0 = arith.constant 0 : i32
    %c0_i32_1 = arith.constant 0 : i32
    return %c0_i32, %c0_i32_0 : i32, i32
  }
  func.func @transform_10(%arg0: i32, %arg1: i32) -> (i32, i32, i32) {
    %c0_i32 = arith.constant 0 : i32
    %c0_i32_0 = arith.constant 0 : i32
    %c0_i32_1 = arith.constant 0 : i32
    %c0_i32_2 = arith.constant 0 : i32
    return %c0_i32, %c0_i32_0, %c0_i32_1 : i32, i32, i32
  }
  func.func @transform_11(%arg0: i32, %arg1: i32) -> (i32, i32) {
    %c0_i32 = arith.constant 0 : i32
    %c0_i32_0 = arith.constant 0 : i32
    %c0_i32_1 = arith.constant 0 : i32
    return %c0_i32, %c0_i32_0 : i32, i32
  }
  func.func @transform_12(%arg0: i32, %arg1: i32) -> (i32, i32) {
    %c0_i32 = arith.constant 0 : i32
    %c0_i32_0 = arith.constant 0 : i32
    %c0_i32_1 = arith.constant 0 : i32
    return %c0_i32, %c0_i32_0 : i32, i32
  }
  func.func @transform_13(%arg0: i32, %arg1: i32) -> (i32, i32) {
    %c0_i32 = arith.constant 0 : i32
    %c0_i32_0 = arith.constant 0 : i32
    %c0_i32_1 = arith.constant 0 : i32
    return %c0_i32, %c0_i32_0 : i32, i32
  }
  func.func @transform_14(%arg0: i32, %arg1: i32) -> (i32, i32) {
    %c0_i32 = arith.constant 0 : i32
    %c0_i32_0 = arith.constant 0 : i32
    %c0_i32_1 = arith.constant 0 : i32
    return %c0_i32, %c0_i32_0 : i32, i32
  }
  func.func @transform_15(%arg0: i32, %arg1: i32) -> (i32, i32) {
    %c0_i32 = arith.constant 0 : i32
    %c0_i32_0 = arith.constant 0 : i32
    %c0_i32_1 = arith.constant 0 : i32
    return %c0_i32, %c0_i32_0 : i32, i32
  }
  func.func @transform_16(%arg0: i32, %arg1: i32) -> (i32, i32, i32, i32) {
    %c0_i32 = arith.constant 0 : i32
    %c0_i32_0 = arith.constant 0 : i32
    %c0_i32_1 = arith.constant 0 : i32
    return %arg0, %arg1, %c0_i32, %c0_i32_0 : i32, i32, i32, i32
  }
}

</mosaic_0001>

<bundles_post_ra>
// kernel: inception_v1_forward.1
= control target key start
LH: loop header
LB: loop body
LE: loop exit
PB: predicated region body
PF: predicated region fallthrough
CT: control target
= control target key end

     0   :  { %s20961_s0 = inlined_call_operand.vmem [shape: bf16[2,16,16,4], index: 0, kind: input, shape index: {}]   ;;  %s20962_s1 = inlined_call_operand.vmem [shape: bf16[4,384], index: 1, kind: input, shape index: {}]   ;;  %s20963_s2 = inlined_call_operand.vmem [shape: f32[1,384], index: 2, kind: input, shape index: {}]   ;;  %s20964_s3 = inlined_call_operand.vmem [shape: f32[1,384], index: 3, kind: input, shape index: {}]   ;;  %s20965_s4 = inlined_call_operand.vmem [shape: bf16[9,4,8], index: 4, kind: input, shape index: {}]   ;;  %s20966_s5 = inlined_call_operand.vmem [shape: f32[1,8], index: 5, kind: input, shape index: {}]   ;;  %s20967_s6 = inlined_call_operand.vmem [shape: f32[1,8], index: 6, kind: input, shape index: {}]   ;;  %s20968_s7 = inlined_call_operand.vmem [shape: bf16[9,4,4], index: 7, kind: input, shape index: {}]   ;;  %s20969_s8 = inlined_call_operand.vmem [shape: f32[1,4], index: 8, kind: input, shape index: {}]   ;;  %s20970_s9 = inlined_call_operand.vmem [shape: f32[1,4], index: 9, kind: input, shape index: {}]   ;;  %s20971_s10 = inlined_call_operand.vmem [shape: bf16[9,4,4], index: 10, kind: input, shape index: {}]   ;;  %s20972_s11 = inlined_call_operand.vmem [shape: f32[1,4], index: 11, kind: input, shape index: {}]   ;;  %s20973_s12 = inlined_call_operand.vmem [shape: f32[1,4], index: 12, kind: input, shape index: {}]   ;;  %s20974_s13 = inlined_call_operand.vmem [shape: bf16[4,4], index: 13, kind: input, shape index: {}]   ;;  %s20975_s14 = inlined_call_operand.vmem [shape: f32[1,4], index: 14, kind: input, shape index: {}]   ;;  %s20976_s15 = inlined_call_operand.vmem [shape: f32[1,4], index: 15, kind: input, shape index: {}]   ;;  %s20977_s16 = inlined_call_operand.hbm [shape: f32[2,16,16,20], index: 16, kind: output, shape index: {}]  }
   0x1   :  { %21017 = sst [smem:[#allocation47_spill]] %s20961_s0 }
   0x2   :  { %21018 = sst [smem:[#allocation48_spill]] %s20973_s12 }
   0x3   :  { %21019 = sst [smem:[#allocation49_spill]] %s20977_s16 }
   0x4   :  { %21 = vsyncpa [#allocation6], 0 }
   0x5   :  { %23 = vsyncpa [#allocation6 + $0x1], 0  ;;  %s15790_s21 = smov 0   ;;  %s15792_s22 = smov 0  }
   0x6   :  { %s15794_s23 = smov 0   ;;  %s15796_s24 = smov 0  }
   0x7   :  { %s15798_s25 = smov 0   ;;  %s15800_s26 = smov 0  }
   0x8   :  { %s15802_s27 = smov 0   ;;  %s15804_s28 = smov 0  }
   0x9 LB: > { %21020 = sst [smem:[#allocation8_spill]] %s15666_s21  ;;  %s12998_s29 = sadd.s32 4294967295, %s15694_s28   ;;  %s15694_s28 = sphi %s15804_s28, %s29_s28   ;;  %s15690_s27 = sphi %s15802_s27, %s21324_s27   ;;  %s15686_s26 = sphi %s15800_s26, %s21323_s26   ;;  %s15682_s25 = sphi %s15798_s25, %s21328_s25   ;;  %s15678_s24 = sphi %s15796_s24, %s21321_s24   ;;  %s15674_s23 = sphi %s15794_s23, %s21327_s23   ;;  %s15670_s22 = sphi %s15792_s22, %s21326_s22   ;;  %s15666_s21 = sphi %s15790_s21, %s21325_s21  }
   0xa   : > { %21021 = sst [smem:[#allocation9_spill]] %s15686_s26  ;;  %s12999_s30 = sadd.s32 4294967294, %s15694_s28  }
   0xb   : > { %21022 = sst [smem:[#allocation10_spill]] %s15690_s27  ;;  %s38_s0 = sadd.s32 1, %s15686_s26 }
   0xc   : > { %21023 = sst [smem:[#allocation11_spill]] %s15694_s28  ;;  %p39_p0 = scmp.ge.s32.totalorder %s38_s0, 2 }
   0xd   : > { %s41_s17 = sadd.s32 1, %s15690_s27  ;;  %p401_p1 = scmp.ne.s32.totalorder %s15674_s23, %s15670_s22 }
   0xe   : > { %p402_p2 = scmp.eq.s32.totalorder %s12998_s29, 3  ;;  %s21330_s0 = smov (%p39_p0, %s38_s0), 0 }
   0xf   : > { %21024 = sst [smem:[#allocation12_spill]] %s21330_s0  ;;  %s21332_s17 = smov (!%p39_p0, %s41_s17), %s15690_s27 }
  0x10   : > { %s387_s18 = ssub.s32 %s15686_s26, %s21330_s0  ;;  %p15841_p3 = por %p402_p2, %p401_p1 }
  0x11   : > { %p43_p4 = scmp.ge.s32.totalorder %s21332_s17, 2  ;;  %p407_p5 = scmp.ne.s32.totalorder %s15670_s22, %s15666_s21 }
  0x12   : > { %p408_p6 = scmp.eq.s32.totalorder %s12999_s30, 3  ;;  %p13002_p7 = scmp.ge.s32.totalorder %s15694_s28, 1 }
  0x13   : > { %s21334_s17 = smov (%p43_p4, %s21332_s17), 0  ;;  %p479_p9 = scmp.lt.s32.totalorder %s15694_s28, 5 }
  0x14   : > { %21026 = sst [smem:[#allocation13_spill]] %s21334_s17  ;;  %p15850_p8 = por %p408_p6, %p407_p5 }
  0x15   : > { %s386_s29 = ssub.s32 %s15690_s27, %s21334_s17  ;;  %s391_s16 = sadd.s32 1, %s15674_s23 }
  0x16   : > { %s21027_s20 = scalar_select %p15850_p8, 1, 0 }
  0x17   : > { %s388_s12 = sor.u32 %s387_s18, %s386_s29  ;;  %p480_p10 = pnand %p13002_p7, %p479_p9 }
  0x18   : > { %21028 = sst [smem:[#allocation14_spill]] %s21027_s20  ;;  %p389_p11 = scmp.eq.s32.totalorder %s388_s12, 0 }
  0x19   : > { %483 = sbr.rel (%p480_p10) target bundleno = 1948 (0x79c), region = 84 }
  0x1a   : > { %s15859_s0 = scalar_select %p389_p11, %s15674_s23, %s391_s16  }
  0x1c   : > { %21029 = sst [smem:[#allocation15_spill]] %s15859_s0 }
  0x20   : > { %s526_s30 = sand.u32 1, %s15670_s22   ;;  %p529_p12 = scmp.lt.s32.totalorder %s15682_s25, 1 }
  0x21   : > { %s13003_s26 = sshll.u32 %s526_s30, 7  ;;  %s13006_s21 = sshll.u32 %s15678_s24, 3 }
  0x22   : > { %s530_s20 = scalar_select %p529_p12, %s15682_s25, 1 }
  0x23   : > { %s21030_s18 = sld [smem:[#allocation47_spill]]  ;;  %s15872_s12 = scalar_lea.vmem [#allocation5], %s13003_s26 }
  0x24   : > { %s14035_s28 = sshll.u32 %s530_s20, 7  ;;  %p13007_p13 = scmp.ne.s32.totalorder %s15678_s24, 0 }
  0x26   : > { %541 = sbr.rel (%p13007_p13) target bundleno = 536 (0x218), region = 88 }
  0x29   : > { %s15870_s29 = scalar_lea.vmem %s21030_s18, %s14035_s28 }
  0x2d   : > { %v15878_v0 = vld [vmem:[%s20962_s1] sm:$0x3f]  ;;  %v1277_v1 = vlaneseq  ;;  %v15696_v2 = vmov 1983009808   ;;  %vm1338_vm0 = vcmask 1041408   ;;  %v15697_v4 = vmov 0  }
  0x2e   : > { %v15880_v3 = vunpack.c.l.s4 %v15696_v2  ;;  %1071 = vst [vmem:[#allocation2] sm:$0xff] %v15697_v4  ;;  %1072 = vst [vmem:[#allocation2 + $0x8] sm:$0xf] %v15697_v4  ;;  %1380 = vmatprep.mubr.bf16.mxu0 %v15697_v4  ;;  %1500 = vmatprep.mubr.bf16.mxu1 %v15697_v4  ;;  %v15973_v5 = vld [vmem:[%s15870_s29] sm:$0xf]  ;;  %vm574_vm1 = vcmask 27648   ;;  %v1273_v6 = vcombine.high %v15878_v0, %v15878_v0 }
  0x2f   : > { %1073 = vst [vmem:[#allocation2 + $0xc] sm:$0xff] %v15697_v4  ;;  %1074 = vst [vmem:[#allocation2 + $0x14] sm:$0xf] %v15697_v4  ;;  %vm577_vm2 = vcmask 24576   ;;  %v15978_v7 = vshrl.u32 %v1277_v1, 7  ;;  %v634_v9 = vshrl.u32 %v15973_v5, 16 }
  0x30   : > { %1075 = vst [vmem:[#allocation2 + $0x18] sm:$0x11] %v15697_v4  ;;  %1076 = vst [vmem:[#allocation2 + $0x20] sm:$0x1] %v15697_v4  ;;  %v15981_v8 = vld [vmem:[%s15870_s29 + $0x4] sm:$0xf]  ;;  %v1276_v10 = vunpack.c.0.s8 %v15880_v3 }
  0x31   : > { %1077 = vst [vmem:[#allocation2 + $0x24] sm:$0xff] %v15697_v4  ;;  %1078 = vst [vmem:[#allocation2 + $0x2c] sm:$0xf] %v15697_v4  ;;  %v15698_v11 = vmov 4286644096   ;;  %v637_v12 = vshll.u32 %v15973_v5, 16  ;;  %v16109_v18 = vcombine.low %v15973_v5, %v15981_v8 }
  0x32   : > { %1079 = vst [vmem:[#allocation2 + $0x30] sm:$0xff] %v15697_v4  ;;  %1080 = vst [vmem:[#allocation2 + $0x38] sm:$0xf] %v15697_v4  ;;  %vm630_vm3 = vsmask.f32 256  ;;  %v642_v13 = vshrl.u32 %v15981_v8, 16  ;;  %v1279_v16 = vsub.s32 %v1276_v10, %v15978_v7 }
  0x33   : > { %1081 = vst [vmem:[#allocation2 + $0x3c] sm:$0x11] %v15697_v4  ;;  %1082 = vst [vmem:[#allocation2 + $0x44] sm:$0x1] %v15697_v4  ;;  %vm631_vm4 = vsmask.f32 4368 }
  0x34   : > { %1179 = vst [vmem:[#allocation2 + $0x288] sm:$0xff] %v15697_v4  ;;  %1180 = vst [vmem:[#allocation2 + $0x290] sm:$0xf] %v15697_v4  ;;  %v636_v14 = vrot.slane %v634_v9, 7  ;;  %v645_v15 = vshll.u32 %v15981_v8, 16  ;;  %v644_v17 = vrot.slane %v642_v13, 7  ;;  %v1280_v26 = vrot.slane %v15878_v0, %v1279_v16 }
  0x35   : > { %1181 = vst [vmem:[#allocation2 + $0x294] sm:$0xff] %v15697_v4  ;;  %1182 = vst [vmem:[#allocation2 + $0x29c] sm:$0xf] %v15697_v4  ;;  %vm955_vm5 = vsmask.f32 7938  ;;  %vm1289_vm6 = vcmask 31744   ;;  %v1287_v37 = vrot.slane %v1273_v6, %v1279_v16 }
  0x36   : > { %1183 = vst [vmem:[#allocation2 + $0x2a0] sm:$0x11] %v15697_v4  ;;  %1184 = vst [vmem:[#allocation2 + $0x2a8] sm:$0x1] %v15697_v4  ;;  %v566_v19 = vld [vmem:[%s15870_s29 + $0x60] sm:$0xf]  ;;  %v639_v21 = vor.u32 %v637_v12, %v636_v14  ;;  %v647_v28 = vor.u32 %v645_v15, %v644_v17  ;;  %v1288_v38 = vcombine.high %v1280_v26, %v1280_v26 }
  0x37   : > { %1185 = vst [vmem:[#allocation2 + $0x2ac] sm:$0xff] %v15697_v4  ;;  %1186 = vst [vmem:[#allocation2 + $0x2b4] sm:$0xf] %v15697_v4  ;;  %v567_v20 = vld [vmem:[%s15870_s29 + $0x64] sm:$0xf]  ;;  %v640_v22 = vrot.slane %v636_v14, 4 }
  0x38   : > { %1187 = vst [vmem:[#allocation2 + $0x2b8] sm:$0xff] %v15697_v4  ;;  %1188 = vst [vmem:[#allocation2 + $0x2c0] sm:$0xf] %v15697_v4  ;;  %v838_v24 = vshrl.u32 %v566_v19, 16  ;;  %v841_v25 = vshll.u32 %v566_v19, 16  ;;  %v649_v29 = vrot.slane %v644_v17, 4  ;;  %v16134_v36 = vcombine.low %v566_v19, %v567_v20  ;;  %13024 = vmatprep.subr.msk.bf16.mxu0 %vm1338_vm0, %v1288_v38  ;;  %14984 = vmatprep.subr.msk.bf16.mxu1 %vm1338_vm0, %v1288_v38 }
  0x39   : > { %1189 = vst [vmem:[#allocation2 + $0x2c4] sm:$0x11] %v15697_v4  ;;  %1190 = vst [vmem:[#allocation2 + $0x2cc] sm:$0x1] %v15697_v4  ;;  %v846_v30 = vshrl.u32 %v567_v20, 16  ;;  %v849_v35 = vshll.u32 %v567_v20, 16 }
  0x3a   : > { %1084 = vst [vmem:[#allocation2 + $0x50] sm:$0xf] %v15697_v4  ;;  %1086 = vst [vmem:[#allocation2 + $0x5c] sm:$0xf] %v15697_v4  ;;  %v544_v31 = vld [vmem:[%s15870_s29 + $0x8] sm:$0xf] }
  0x3b   : > { %1087 = vst [vmem:[#allocation2 + $0x60] sm:$0x11] %v15697_v4  ;;  %1088 = vst [vmem:[#allocation2 + $0x68] sm:$0x1] %v15697_v4  ;;  %v545_v32 = vld [vmem:[%s15870_s29 + $0xc] sm:$0xf] }
  0x3c   : > { %1090 = vst [vmem:[#allocation2 + $0x74] sm:$0xf] %v15697_v4  ;;  %1092 = vst [vmem:[#allocation2 + $0x80] sm:$0xf] %v15697_v4  ;;  %v840_v34 = vrot.slane %v838_v24, 7  ;;  %v1340_v39 = vsel %vm1338_vm0, %v1280_v26, 0  ;;  %v16144_v47 = vcombine.low %v544_v31, %v545_v32 }
  0x3d   : > { %1093 = vst [vmem:[#allocation2 + $0x84] sm:$0x11] %v15697_v4  ;;  %1094 = vst [vmem:[#allocation2 + $0x8c] sm:$0x1] %v15697_v4  ;;  %v848_v41 = vrot.slane %v846_v30, 7  ;;  %v1346_v46 = vsel %vm1338_vm0, %v1287_v37, 0  ;;  %1349 = vmatpush1.bf16.msra.mxu0 %v1340_v39  ;;  %14985 = vmatpush1.bf16.msra.mxu1 %v1340_v39 }
  0x3e   : > { %1096 = vst [vmem:[#allocation2 + $0x98] sm:$0xf] %v15697_v4  ;;  %1098 = vst [vmem:[#allocation2 + $0xa4] sm:$0xf] %v15697_v4  ;;  %v843_v44 = vor.u32 %v841_v25, %v840_v34  ;;  %v844_v45 = vrot.slane %v840_v34, 4  ;;  %v651_v56 = vshrl.u32 %v544_v31, 16  ;;  %15402 = vmatprep.subr.msk.bf16.mxu1 %vm1338_vm0, %v1287_v37 }
  0x3f   : > { %1099 = vst [vmem:[#allocation2 + $0xa8] sm:$0x11] %v15697_v4  ;;  %1100 = vst [vmem:[#allocation2 + $0xb0] sm:$0x1] %v15697_v4  ;;  %v568_v48 = vld [vmem:[%s15870_s29 + $0x68] sm:$0xf]  ;;  %v851_v51 = vor.u32 %v849_v35, %v848_v41 }
  0x40   : > { %1102 = vst [vmem:[#allocation2 + $0xbc] sm:$0xf] %v15697_v4  ;;  %1104 = vst [vmem:[#allocation2 + $0xc8] sm:$0xf] %v15697_v4  ;;  %v853_v52 = vrot.slane %v848_v41, 4  ;;  %v654_v57 = vshll.u32 %v544_v31, 16  ;;  %13025 = vmatmul.mubr.msk.bf16.vlgmr.msra.gmra.mrb[0].mxu0 %vm1289_vm6, %v16109_v18  ;;  %13037 = vmatmul.mubr.msk.bf16.vlgmr.msra.gmra.mrb[0].mxu1 %vm1289_vm6, %v16134_v36 }
  0x41   : > { %1105 = vst [vmem:[#allocation2 + $0xcc] sm:$0x11] %v15697_v4  ;;  %1106 = vst [vmem:[#allocation2 + $0xd4] sm:$0x1] %v15697_v4  ;;  %v659_v58 = vshrl.u32 %v545_v32, 16  ;;  %v662_v62 = vshll.u32 %v545_v32, 16  ;;  %14411 = vmatpush3.bf16.msra.mxu1 %v1346_v46  ;;  %1390 = vmatprep.mubr.bf16.mxu0 %v15697_v4 }
  0x42   : > { %1108 = vst [vmem:[#allocation2 + $0xe0] sm:$0xf] %v15697_v4  ;;  %1110 = vst [vmem:[#allocation2 + $0xec] sm:$0xf] %v15697_v4  ;;  %v569_v59 = vld [vmem:[%s15870_s29 + $0x6c] sm:$0xf]  ;;  %1510 = vmatprep.mubr.bf16.mxu1 %v15697_v4 }
  0x43   : > { %1111 = vst [vmem:[#allocation2 + $0xf0] sm:$0x11] %v15697_v4  ;;  %1112 = vst [vmem:[#allocation2 + $0xf8] sm:$0x1] %v15697_v4  ;;  %v855_v63 = vshrl.u32 %v568_v48, 16  ;;  %v653_v1 = vrot.slane %v651_v56, 7 }
  0x44   : > { %1114 = vst [vmem:[#allocation2 + $0x104] sm:$0xf] %v15697_v4  ;;  %1116 = vst [vmem:[#allocation2 + $0x110] sm:$0xf] %v15697_v4  ;;  %v546_v0 = vld [vmem:[%s15870_s29 + $0x10] sm:$0xf] }
  0x45   : > { %1117 = vst [vmem:[#allocation2 + $0x114] sm:$0x11] %v15697_v4  ;;  %1118 = vst [vmem:[#allocation2 + $0x11c] sm:$0x1] %v15697_v4  ;;  %v661_v2 = vrot.slane %v659_v58, 7  ;;  %v858_v5 = vshll.u32 %v568_v48, 16  ;;  %v656_v13 = vor.u32 %v654_v57, %v653_v1 }
  0x46   : > { %1120 = vst [vmem:[#allocation2 + $0x128] sm:$0xf] %v15697_v4  ;;  %1122 = vst [vmem:[#allocation2 + $0x134] sm:$0xf] %v15697_v4  ;;  %v863_v6 = vshrl.u32 %v569_v59, 16  ;;  %v857_v9 = vrot.slane %v855_v63, 7 }
  0x47   : > { %1123 = vst [vmem:[#allocation2 + $0x138] sm:$0x11] %v15697_v4  ;;  %1124 = vst [vmem:[#allocation2 + $0x140] sm:$0x1] %v15697_v4  ;;  %v866_v10 = vshll.u32 %v569_v59, 16  ;;  %v668_v12 = vshrl.u32 %v546_v0, 16  ;;  %v664_v15 = vor.u32 %v662_v62, %v661_v2 }
  0x48   : > { %1126 = vst [vmem:[#allocation2 + $0x14c] sm:$0xf] %v15697_v4  ;;  %1128 = vst [vmem:[#allocation2 + $0x158] sm:$0xf] %v15697_v4  ;;  %v657_v14 = vrot.slane %v653_v1, 4  ;;  %v666_v16 = vrot.slane %v661_v2, 4  ;;  %v860_v19 = vor.u32 %v858_v5, %v857_v9  ;;  %13026 = vmatmul.mubr.msk.bf16.gmra.mrb[4].mxu0 %vm1289_vm6, %v16144_v47 }
  0x49   : > { %1129 = vst [vmem:[#allocation2 + $0x15c] sm:$0x11] %v15697_v4  ;;  %1130 = vst [vmem:[#allocation2 + $0x164] sm:$0x1] %v15697_v4  ;;  %v861_v20 = vrot.slane %v857_v9, 4  ;;  %v670_v24 = vrot.slane %v668_v12, 7  ;;  %1400 = vmatprep.mubr.bf16.mxu0 %v15697_v4 }
  0x4a   : > { %1132 = vst [vmem:[#allocation2 + $0x170] sm:$0xf] %v15697_v4  ;;  %1134 = vst [vmem:[#allocation2 + $0x17c] sm:$0xf] %v15697_v4  ;;  %v671_v30 = vshll.u32 %v546_v0, 16  ;;  %vm2921_vm10 = vcmask 1043456  }
  0x4b   : > { %1135 = vst [vmem:[#allocation2 + $0x180] sm:$0x11] %v15697_v4  ;;  %1136 = vst [vmem:[#allocation2 + $0x188] sm:$0x1] %v15697_v4  ;;  %v674_v35 = vrot.slane %v670_v24, 4  ;;  %vm2923_vm11 = vcmask 1047556  }
  0x4c   : > { %1138 = vst [vmem:[#allocation2 + $0x194] sm:$0xf] %v15697_v4  ;;  %1140 = vst [vmem:[#allocation2 + $0x1a0] sm:$0xf] %v15697_v4  ;;  %v673_v38 = vor.u32 %v671_v30, %v670_v24  ;;  %v549_v57 = vld [vmem:[%s15870_s29 + $0x1c] sm:$0xf] }
  0x4d   : > { %1141 = vst [vmem:[#allocation2 + $0x1a4] sm:$0x11] %v15697_v4  ;;  %1142 = vst [vmem:[#allocation2 + $0x1ac] sm:$0x1] %v15697_v4  ;;  %vm2924_vm12 = vsmask.f32 7954 }
  0x4e   : > { %1144 = vst [vmem:[#allocation2 + $0x1b8] sm:$0xf] %v15697_v4  ;;  %1146 = vst [vmem:[#allocation2 + $0x1c4] sm:$0xf] %v15697_v4  ;;  %vm2935_vm13 = vcmask 1040384   ;;  %vm2937_vm15 = vcmask 1044484  }
  0x4f   : > { %1147 = vst [vmem:[#allocation2 + $0x1c8] sm:$0x11] %v15697_v4  ;;  %1148 = vst [vmem:[#allocation2 + $0x1d0] sm:$0x1] %v15697_v4  ;;  %vm2938_vm0 = vsmask.f32 4352 }
  0x50   : > { %1150 = vst [vmem:[#allocation2 + $0x1dc] sm:$0xf] %v15697_v4  ;;  %1152 = vst [vmem:[#allocation2 + $0x1e8] sm:$0xf] %v15697_v4 }
  0x51   : > { %1153 = vst [vmem:[#allocation2 + $0x1ec] sm:$0x11] %v15697_v4  ;;  %1154 = vst [vmem:[#allocation2 + $0x1f4] sm:$0x1] %v15697_v4 }
  0x52   : > { %1156 = vst [vmem:[#allocation2 + $0x200] sm:$0xf] %v15697_v4  ;;  %1158 = vst [vmem:[#allocation2 + $0x20c] sm:$0xf] %v15697_v4 }
  0x53   : > { %1159 = vst [vmem:[#allocation2 + $0x210] sm:$0x11] %v15697_v4  ;;  %1160 = vst [vmem:[#allocation2 + $0x218] sm:$0x1] %v15697_v4 }
  0x54   : > { %1162 = vst [vmem:[#allocation2 + $0x224] sm:$0xf] %v15697_v4  ;;  %1164 = vst [vmem:[#allocation2 + $0x230] sm:$0xf] %v15697_v4 }
  0x55   : > { %1165 = vst [vmem:[#allocation2 + $0x234] sm:$0x11] %v15697_v4  ;;  %1166 = vst [vmem:[#allocation2 + $0x23c] sm:$0x1] %v15697_v4 }
  0x56   : > { %1168 = vst [vmem:[#allocation2 + $0x248] sm:$0xf] %v15697_v4  ;;  %1170 = vst [vmem:[#allocation2 + $0x254] sm:$0xf] %v15697_v4 }
  0x57   : > { %1171 = vst [vmem:[#allocation2 + $0x258] sm:$0x11] %v15697_v4  ;;  %1172 = vst [vmem:[#allocation2 + $0x260] sm:$0x1] %v15697_v4 }
  0x58   : > { %1174 = vst [vmem:[#allocation2 + $0x26c] sm:$0xf] %v15697_v4  ;;  %1176 = vst [vmem:[#allocation2 + $0x278] sm:$0xf] %v15697_v4 }
  0x59   : > { %1177 = vst [vmem:[#allocation2 + $0x27c] sm:$0x11] %v15697_v4  ;;  %1178 = vst [vmem:[#allocation2 + $0x284] sm:$0x1] %v15697_v4 }
  0x5a   : > { %3157 = vst.msk [vmem:[#allocation4] sm:$0xf] %vm574_vm1, %v15697_v4  ;;  %3158 = vst.msk [vmem:[#allocation4 + $0x4] sm:$0xf] %vm574_vm1, %v15697_v4 }
  0x5b   : > { %3159 = vst.msk [vmem:[#allocation4 + $0x8] sm:$0x1] %vm577_vm2, %v15697_v4  ;;  %3162 = vst.msk [vmem:[#allocation4 + $0x14] sm:$0x1] %vm577_vm2, %v15697_v4 }
  0x5c   : > { %3160 = vst.msk [vmem:[#allocation4 + $0xc] sm:$0xf] %vm574_vm1, %v15697_v4  ;;  %3161 = vst.msk [vmem:[#allocation4 + $0x10] sm:$0xf] %vm574_vm1, %v15697_v4 }
  0x5d   : > { %3163 = vst.msk [vmem:[#allocation4 + $0x18] sm:$0xf] %vm574_vm1, %v15697_v4  ;;  %3164 = vst.msk [vmem:[#allocation4 + $0x1c] sm:$0xf] %vm574_vm1, %v15697_v4 }
  0x5e   : > { %3165 = vst.msk [vmem:[#allocation4 + $0x20] sm:$0x1] %vm577_vm2, %v15697_v4  ;;  %3168 = vst.msk [vmem:[#allocation4 + $0x2c] sm:$0x1] %vm577_vm2, %v15697_v4 }
  0x5f   : > { %3166 = vst.msk [vmem:[#allocation4 + $0x24] sm:$0xf] %vm574_vm1, %v15697_v4  ;;  %3167 = vst.msk [vmem:[#allocation4 + $0x28] sm:$0xf] %vm574_vm1, %v15697_v4 }
  0x60   : > { %3169 = vst.msk [vmem:[#allocation4 + $0x30] sm:$0xf] %vm574_vm1, %v15697_v4  ;;  %3170 = vst.msk [vmem:[#allocation4 + $0x34] sm:$0xf] %vm574_vm1, %v15697_v4 }
  0x61   : > { %3171 = vst.msk [vmem:[#allocation4 + $0x38] sm:$0x1] %vm577_vm2, %v15697_v4  ;;  %3174 = vst.msk [vmem:[#allocation4 + $0x44] sm:$0x1] %vm577_vm2, %v15697_v4 }
  0x62   : > { %3172 = vst.msk [vmem:[#allocation4 + $0x3c] sm:$0xf] %vm574_vm1, %v15697_v4  ;;  %3173 = vst.msk [vmem:[#allocation4 + $0x40] sm:$0xf] %vm574_vm1, %v15697_v4 }
  0x63   : > { %3175 = vst.msk [vmem:[#allocation4 + $0x48] sm:$0xf] %vm574_vm1, %v15697_v4  ;;  %3176 = vst.msk [vmem:[#allocation4 + $0x4c] sm:$0xf] %vm574_vm1, %v15697_v4 }
  0x64   : > { %3177 = vst.msk [vmem:[#allocation4 + $0x50] sm:$0x1] %vm577_vm2, %v15697_v4  ;;  %3180 = vst.msk [vmem:[#allocation4 + $0x5c] sm:$0x1] %vm577_vm2, %v15697_v4 }
  0x65   : > { %3178 = vst.msk [vmem:[#allocation4 + $0x54] sm:$0xf] %vm574_vm1, %v15697_v4  ;;  %3179 = vst.msk [vmem:[#allocation4 + $0x58] sm:$0xf] %vm574_vm1, %v15697_v4 }
  0x66   : > { %3181 = vst.msk [vmem:[#allocation4 + $0x60] sm:$0xf] %vm574_vm1, %v15697_v4  ;;  %3182 = vst.msk [vmem:[#allocation4 + $0x64] sm:$0xf] %vm574_vm1, %v15697_v4 }
  0x67   : > { %3183 = vst.msk [vmem:[#allocation4 + $0x68] sm:$0x1] %vm577_vm2, %v15697_v4  ;;  %3186 = vst.msk [vmem:[#allocation4 + $0x74] sm:$0x1] %vm577_vm2, %v15697_v4 }
  0x68   : > { %3184 = vst.msk [vmem:[#allocation4 + $0x6c] sm:$0xf] %vm574_vm1, %v15697_v4  ;;  %3185 = vst.msk [vmem:[#allocation4 + $0x70] sm:$0xf] %vm574_vm1, %v15697_v4 }
  0x69   : > { %575 = vst.msk [vmem:[#allocation3] sm:$0xf] %vm574_vm1, %v15698_v11  ;;  %576 = vst.msk [vmem:[#allocation3 + $0x4] sm:$0xf] %vm574_vm1, %v15698_v11 }
  0x6a   : > { %578 = vst.msk [vmem:[#allocation3 + $0x8] sm:$0x1] %vm577_vm2, %v15698_v11  ;;  %581 = vst.msk [vmem:[#allocation3 + $0x14] sm:$0x1] %vm577_vm2, %v15698_v11 }
  0x6b   : > { %579 = vst.msk [vmem:[#allocation3 + $0xc] sm:$0xf] %vm574_vm1, %v15698_v11  ;;  %580 = vst.msk [vmem:[#allocation3 + $0x10] sm:$0xf] %vm574_vm1, %v15698_v11 }
  0x6c   : > { %627 = vst.msk [vmem:[#allocation3 + $0xcc] sm:$0xf] %vm574_vm1, %v15698_v11  ;;  %628 = vst.msk [vmem:[#allocation3 + $0xd0] sm:$0xf] %vm574_vm1, %v15698_v11 }
  0x6d   : > { %629 = vst.msk [vmem:[#allocation3 + $0xd4] sm:$0x1] %vm577_vm2, %v15698_v11  ;;  %584 = vst.msk [vmem:[#allocation3 + $0x20] sm:$0x1] %vm577_vm2, %v15698_v11 }
  0x6e   : > { %582 = vst.msk [vmem:[#allocation3 + $0x18] sm:$0xf] %vm574_vm1, %v15698_v11  ;;  %583 = vst.msk [vmem:[#allocation3 + $0x1c] sm:$0xf] %vm574_vm1, %v15698_v11 }
  0x6f   : > { %585 = vst.msk [vmem:[#allocation3 + $0x24] sm:$0xf] %vm574_vm1, %v15698_v11  ;;  %586 = vst.msk [vmem:[#allocation3 + $0x28] sm:$0xf] %vm574_vm1, %v15698_v11 }
  0x70   : > { %587 = vst.msk [vmem:[#allocation3 + $0x2c] sm:$0x1] %vm577_vm2, %v15698_v11  ;;  %590 = vst.msk [vmem:[#allocation3 + $0x38] sm:$0x1] %vm577_vm2, %v15698_v11 }
  0x71   : > { %588 = vst.msk [vmem:[#allocation3 + $0x30] sm:$0xf] %vm574_vm1, %v15698_v11  ;;  %589 = vst.msk [vmem:[#allocation3 + $0x34] sm:$0xf] %vm574_vm1, %v15698_v11  ;;  %v963_v43 = vld [vmem:[#allocation3 + $0x14] sm:$0x1] }
  0x72   : > { %591 = vst.msk [vmem:[#allocation3 + $0x3c] sm:$0xf] %vm574_vm1, %v15698_v11  ;;  %592 = vst.msk [vmem:[#allocation3 + $0x40] sm:$0xf] %vm574_vm1, %v15698_v11  ;;  %v957_v42 = vld [vmem:[#allocation3 + $0xc] sm:$0xf] }
  0x73   : > { %593 = vst.msk [vmem:[#allocation3 + $0x44] sm:$0x1] %vm577_vm2, %v15698_v11  ;;  %596 = vst.msk [vmem:[#allocation3 + $0x50] sm:$0x1] %vm577_vm2, %v15698_v11 }
  0x74   : > { %594 = vst.msk [vmem:[#allocation3 + $0x48] sm:$0xf] %vm574_vm1, %v15698_v11  ;;  %595 = vst.msk [vmem:[#allocation3 + $0x4c] sm:$0xf] %vm574_vm1, %v15698_v11  ;;  %v970_v8 = vld [vmem:[#allocation3 + $0x20] sm:$0x1] }
  0x75   : > { %597 = vst.msk [vmem:[#allocation3 + $0x54] sm:$0xf] %vm574_vm1, %v15698_v11  ;;  %598 = vst.msk [vmem:[#allocation3 + $0x58] sm:$0xf] %vm574_vm1, %v15698_v11  ;;  %v966_v3 = vld [vmem:[#allocation3 + $0x18] sm:$0xf] }
  0x76   : > { %599 = vst.msk [vmem:[#allocation3 + $0x5c] sm:$0x1] %vm577_vm2, %v15698_v11  ;;  %602 = vst.msk [vmem:[#allocation3 + $0x68] sm:$0x1] %vm577_vm2, %v15698_v11  ;;  %v973_v37 = vld [vmem:[#allocation3 + $0x24] sm:$0xf] }
  0x77   : > { %600 = vst.msk [vmem:[#allocation3 + $0x60] sm:$0xf] %vm574_vm1, %v15698_v11  ;;  %601 = vst.msk [vmem:[#allocation3 + $0x64] sm:$0xf] %vm574_vm1, %v15698_v11  ;;  %v977_v46 = vld [vmem:[#allocation3 + $0x2c] sm:$0x1] }
  0x78   : > { %603 = vst.msk [vmem:[#allocation3 + $0x6c] sm:$0xf] %vm574_vm1, %v15698_v11  ;;  %604 = vst.msk [vmem:[#allocation3 + $0x70] sm:$0xf] %vm574_vm1, %v15698_v11 }
  0x79   : > { %605 = vst.msk [vmem:[#allocation3 + $0x74] sm:$0x1] %vm577_vm2, %v15698_v11  ;;  %608 = vst.msk [vmem:[#allocation3 + $0x80] sm:$0x1] %vm577_vm2, %v15698_v11 }
  0x7a   : > { %606 = vst.msk [vmem:[#allocation3 + $0x78] sm:$0xf] %vm574_vm1, %v15698_v11  ;;  %607 = vst.msk [vmem:[#allocation3 + $0x7c] sm:$0xf] %vm574_vm1, %v15698_v11 }
  0x7b   : > { %609 = vst.msk [vmem:[#allocation3 + $0x84] sm:$0xf] %vm574_vm1, %v15698_v11  ;;  %610 = vst.msk [vmem:[#allocation3 + $0x88] sm:$0xf] %vm574_vm1, %v15698_v11 }
  0x7c   : > { %611 = vst.msk [vmem:[#allocation3 + $0x8c] sm:$0x1] %vm577_vm2, %v15698_v11  ;;  %614 = vst.msk [vmem:[#allocation3 + $0x98] sm:$0x1] %vm577_vm2, %v15698_v11 }
  0x7d   : > { %612 = vst.msk [vmem:[#allocation3 + $0x90] sm:$0xf] %vm574_vm1, %v15698_v11  ;;  %613 = vst.msk [vmem:[#allocation3 + $0x94] sm:$0xf] %vm574_vm1, %v15698_v11 }
  0x7e   : > { %615 = vst.msk [vmem:[#allocation3 + $0x9c] sm:$0xf] %vm574_vm1, %v15698_v11  ;;  %616 = vst.msk [vmem:[#allocation3 + $0xa0] sm:$0xf] %vm574_vm1, %v15698_v11 }
  0x7f   : > { %617 = vst.msk [vmem:[#allocation3 + $0xa4] sm:$0x1] %vm577_vm2, %v15698_v11  ;;  %620 = vst.msk [vmem:[#allocation3 + $0xb0] sm:$0x1] %vm577_vm2, %v15698_v11 }
  0x80   : > { %618 = vst.msk [vmem:[#allocation3 + $0xa8] sm:$0xf] %vm574_vm1, %v15698_v11  ;;  %619 = vst.msk [vmem:[#allocation3 + $0xac] sm:$0xf] %vm574_vm1, %v15698_v11 }
  0x81   : > { %621 = vst.msk [vmem:[#allocation3 + $0xb4] sm:$0xf] %vm574_vm1, %v15698_v11  ;;  %622 = vst.msk [vmem:[#allocation3 + $0xb8] sm:$0xf] %vm574_vm1, %v15698_v11 }
  0x82   : > { %623 = vst.msk [vmem:[#allocation3 + $0xbc] sm:$0x1] %vm577_vm2, %v15698_v11  ;;  %626 = vst.msk [vmem:[#allocation3 + $0xc8] sm:$0x1] %vm577_vm2, %v15698_v11 }
  0x83   : > { %624 = vst.msk [vmem:[#allocation3 + $0xc0] sm:$0xf] %vm574_vm1, %v15698_v11  ;;  %625 = vst.msk [vmem:[#allocation3 + $0xc4] sm:$0xf] %vm574_vm1, %v15698_v11  ;;  %v16167_v11 = vcombine.low %v568_v48, %v569_v59 }
  0x84   : > { %vm16115_vm7 = vmand %vm577_vm2, %vm630_vm3 }
  0x85   : > { %vm16122_vm8 = vmor %vm630_vm3, %vm631_vm4  ;;  %v964_v50 = vsel %vm16115_vm7, %v649_v29, %v963_v43  ;;  %v1043_v53 = vld [vmem:[#allocation3 + $0x9c] sm:$0xf]  ;;  %v571_v43 = vld [vmem:[%s15870_s29 + $0x74] sm:$0xf]  ;;  %13038 = vmatmul.mubr.msk.bf16.gmra.mrb[4].mxu1 %vm1289_vm6, %v16167_v11 }
  0x86   : > { %vm16130_vm9 = vmand %vm574_vm1, %vm955_vm5  ;;  %v648_v40 = vsel %vm16122_vm8, %v640_v22, %v647_v28  ;;  %v1047_v54 = vld [vmem:[#allocation3 + $0xa4] sm:$0x1]  ;;  %965 = vst [vmem:[#allocation3 + $0x14] sm:$0x1] %v964_v50  ;;  %v852_v60 = vsel %vm16122_vm8, %v844_v45, %v851_v51  ;;  %v665_v25 = vsel %vm16122_vm8, %v657_v14, %v664_v15  ;;  %v971_v28 = vsel %vm16115_vm7, %v666_v16, %v970_v8  ;;  %v1054_v29 = vld [vmem:[#allocation3 + $0xb0] sm:$0x1] }
  0x87   : > { %960 = vst.msk [vmem:[#allocation3 + $0x10] sm:$0xf] %vm574_vm1, %v648_v40  ;;  %v958_v49 = vsel %vm16130_vm9, %v639_v21, %v957_v42  ;;  %v1044_v55 = vsel %vm16130_vm9, %v843_v44, %v1043_v53  ;;  %v1048_v61 = vsel %vm16115_vm7, %v853_v52, %v1047_v54  ;;  %1046 = vst.msk [vmem:[#allocation3 + $0xa0] sm:$0xf] %vm574_vm1, %v852_v60  ;;  %v1050_v17 = vld [vmem:[#allocation3 + $0xa8] sm:$0xf]  ;;  %1520 = vmatprep.mubr.bf16.mxu1 %v15697_v4 }
  0x88   : > { %959 = vst [vmem:[#allocation3 + $0xc] sm:$0xf] %v958_v49  ;;  %1045 = vst [vmem:[#allocation3 + $0x9c] sm:$0xf] %v1044_v55  ;;  %v865_v21 = vrot.slane %v863_v6, 7  ;;  %v967_v26 = vsel %vm16130_vm9, %v656_v13, %v966_v3  ;;  %v1051_v34 = vsel %vm16130_vm9, %v860_v19, %v1050_v17  ;;  %v974_v51 = vsel %vm16130_vm9, %v673_v38, %v973_v37 }
  0x89   : > { %1049 = vst [vmem:[#allocation3 + $0xa4] sm:$0x1] %v1048_v61  ;;  %v547_v22 = vld [vmem:[%s15870_s29 + $0x14] sm:$0xf]  ;;  %968 = vst [vmem:[#allocation3 + $0x18] sm:$0xf] %v967_v26 }
  0x8a   : > { %969 = vst.msk [vmem:[#allocation3 + $0x1c] sm:$0xf] %vm574_vm1, %v665_v25  ;;  %972 = vst [vmem:[#allocation3 + $0x20] sm:$0x1] %v971_v28  ;;  %v868_v31 = vor.u32 %v866_v10, %v865_v21  ;;  %v870_v32 = vrot.slane %v865_v21, 4  ;;  %v676_v39 = vshrl.u32 %v547_v22, 16  ;;  %v16181_v41 = vcombine.low %v546_v0, %v547_v22 }
  0x8b   : > { %1052 = vst [vmem:[#allocation3 + $0xa8] sm:$0xf] %v1051_v34  ;;  %v679_v40 = vshll.u32 %v547_v22, 16  ;;  %v570_v42 = vld [vmem:[%s15870_s29 + $0x70] sm:$0xf]  ;;  %v880_v52 = vshrl.u32 %v571_v43, 16  ;;  %vm16466_vm14 = vmand %vm2921_vm10, %vm955_vm5 }
  0x8c   : > { %v869_v44 = vsel %vm16122_vm8, %v861_v20, %v868_v31  ;;  %v1055_v45 = vsel %vm16115_vm7, %v870_v32, %v1054_v29  ;;  %v872_v48 = vshrl.u32 %v570_v42, 16  ;;  %v875_v49 = vshll.u32 %v570_v42, 16  ;;  %v548_v54 = vld [vmem:[%s15870_s29 + $0x18] sm:$0xf]  ;;  %975 = vst [vmem:[#allocation3 + $0x24] sm:$0xf] %v974_v51  ;;  %13027 = vmatmul.mubr.msk.bf16.gmra.mrb[8].mxu0 %vm1289_vm6, %v16181_v41  ;;  %vm16494_vm4 = vmand %vm2935_vm13, %vm630_vm3 }
  0x8d   : > { %1053 = vst.msk [vmem:[#allocation3 + $0xac] sm:$0xf] %vm574_vm1, %v869_v44  ;;  %1056 = vst [vmem:[#allocation3 + $0xb0] sm:$0x1] %v1055_v45  ;;  %v678_v50 = vrot.slane %v676_v39, 7  ;;  %v883_v53 = vshll.u32 %v571_v43, 16  ;;  %v16197_v56 = vcombine.low %v570_v42, %v571_v43  ;;  %v16218_v31 = vcombine.low %v548_v54, %v549_v57  ;;  %1410 = vmatprep.mubr.bf16.mxu0 %v15697_v4 }
  0x8e   : > { %v874_v55 = vrot.slane %v872_v48, 7  ;;  %v685_v58 = vshrl.u32 %v548_v54, 16  ;;  %v688_v59 = vshll.u32 %v548_v54, 16  ;;  %v882_v62 = vrot.slane %v880_v52, 7  ;;  %v1057_v63 = vld [vmem:[#allocation3 + $0xb4] sm:$0xf]  ;;  %vm2939_vm5 = vmand %vm2937_vm15, %vm2938_vm0 }
  0x8f   : > { %v681_v60 = vor.u32 %v679_v40, %v678_v50  ;;  %v683_v61 = vrot.slane %v678_v50, 4  ;;  %v693_v0 = vshrl.u32 %v549_v57, 16  ;;  %v1061_v3 = vld [vmem:[#allocation3 + $0xbc] sm:$0x1]  ;;  %v696_v6 = vshll.u32 %v549_v57, 16  ;;  %13039 = vmatmul.mubr.msk.bf16.gmra.mrb[8].mxu1 %vm1289_vm6, %v16197_v56  ;;  %vm16510_vm3 = vmor %vm2939_vm5, %vm16494_vm4 }
  0x90   : > { %v877_v1 = vor.u32 %v875_v49, %v874_v55  ;;  %v878_v2 = vrot.slane %v874_v55, 4  ;;  %v687_v5 = vrot.slane %v685_v58, 7  ;;  %v885_v10 = vor.u32 %v883_v53, %v882_v62  ;;  %v980_v13 = vld [vmem:[#allocation3 + $0x30] sm:$0xf]  ;;  %v572_v19 = vld [vmem:[%s15870_s29 + $0x78] sm:$0xf]  ;;  %1530 = vmatprep.mubr.bf16.mxu1 %v15697_v4 }
  0x91   : > { %v682_v8 = vsel %vm16122_vm8, %v674_v35, %v681_v60  ;;  %v978_v9 = vsel %vm16115_vm7, %v683_v61, %v977_v46  ;;  %v887_v12 = vrot.slane %v882_v62, 4  ;;  %v695_v17 = vrot.slane %v693_v0, 7  ;;  %v984_v22 = vld [vmem:[#allocation3 + $0x38] sm:$0x1]  ;;  %v573_v29 = vld [vmem:[%s15870_s29 + $0x7c] sm:$0xf] }
  0x92   : > { %976 = vst.msk [vmem:[#allocation3 + $0x28] sm:$0xf] %vm574_vm1, %v682_v8  ;;  %979 = vst [vmem:[#allocation3 + $0x2c] sm:$0x1] %v978_v9  ;;  %v1058_v14 = vsel %vm16130_vm9, %v877_v1, %v1057_v63  ;;  %v690_v15 = vor.u32 %v688_v59, %v687_v5  ;;  %v691_v16 = vrot.slane %v687_v5, 4  ;;  %v886_v20 = vsel %vm16122_vm8, %v878_v2, %v885_v10 }
  0x93   : > { %1059 = vst [vmem:[#allocation3 + $0xb4] sm:$0xf] %v1058_v14  ;;  %v1062_v21 = vsel %vm16115_vm7, %v887_v12, %v1061_v3  ;;  %v889_v24 = vshrl.u32 %v572_v19, 16  ;;  %1060 = vst.msk [vmem:[#allocation3 + $0xb8] sm:$0xf] %vm574_vm1, %v886_v20  ;;  %v698_v25 = vor.u32 %v696_v6, %v695_v17  ;;  %v700_v26 = vrot.slane %v695_v17, 4 }
  0x94   : > { %1063 = vst [vmem:[#allocation3 + $0xbc] sm:$0x1] %v1062_v21  ;;  %v981_v28 = vsel %vm16130_vm9, %v690_v15, %v980_v13  ;;  %v892_v30 = vshll.u32 %v572_v19, 16  ;;  %v897_v34 = vshrl.u32 %v573_v29, 16  ;;  %v900_v35 = vshll.u32 %v573_v29, 16  ;;  %13028 = vmatmul.mubr.msk.bf16.gmra.mrb[12].mxu0 %vm1289_vm6, %v16218_v31 }
  0x95   : > { %982 = vst [vmem:[#allocation3 + $0x30] sm:$0xf] %v981_v28  ;;  %v891_v32 = vrot.slane %v889_v24, 7  ;;  %v16221_v37 = vld [vmem:[%s15870_s29 + $0x20] sm:$0xf]  ;;  %v699_v38 = vsel %vm16122_vm8, %v691_v16, %v698_v25  ;;  %v985_v39 = vsel %vm16115_vm7, %v700_v26, %v984_v22  ;;  %v16240_v52 = vcombine.low %v572_v19, %v573_v29  ;;  %1420 = vmatprep.mubr.bf16.mxu0 %v15697_v4 }
  0x96   : > { %v1064_v40 = vld [vmem:[#allocation3 + $0xc0] sm:$0xf]  ;;  %v551_v42 = vld [vmem:[%s15870_s29 + $0x24] sm:$0xf]  ;;  %v702_v43 = vshrl.u32 %v16221_v37, 16  ;;  %v705_v44 = vshll.u32 %v16221_v37, 16 }
  0x97   : > { %983 = vst.msk [vmem:[#allocation3 + $0x34] sm:$0xf] %vm574_vm1, %v699_v38  ;;  %986 = vst [vmem:[#allocation3 + $0x38] sm:$0x1] %v985_v39  ;;  %v894_v45 = vor.u32 %v892_v30, %v891_v32  ;;  %v895_v46 = vrot.slane %v891_v32, 4  ;;  %v899_v48 = vrot.slane %v897_v34, 7  ;;  %13040 = vmatmul.mubr.msk.bf16.gmra.mrb[12].mxu1 %vm1289_vm6, %v16240_v52  ;;  %v16284_v29 = vcombine.low %v16221_v37, %v551_v42 }
  0x98   : > { %v710_v49 = vshrl.u32 %v551_v42, 16  ;;  %v16238_v50 = vld [vmem:[%s15870_s29 + $0x28] sm:$0xf]  ;;  %v1068_v51 = vld [vmem:[#allocation3 + $0xc8] sm:$0x1]  ;;  %v704_v53 = vrot.slane %v702_v43, 7  ;;  %14412 = vmatprep.mubr.msk.bf16.mxu1 %vm1289_vm6, %v16109_v18 }
  0x99   : > { %v713_v54 = vshll.u32 %v551_v42, 16  ;;  %v719_v55 = vshrl.u32 %v16238_v50, 16  ;;  %v902_v57 = vor.u32 %v900_v35, %v899_v48  ;;  %v904_v58 = vrot.slane %v899_v48, 4  ;;  %v987_v61 = vld [vmem:[#allocation3 + $0x3c] sm:$0xf] }
  0x9a   : > { %v1065_v59 = vsel %vm16130_vm9, %v894_v45, %v1064_v40  ;;  %v712_v60 = vrot.slane %v710_v49, 7  ;;  %v707_v62 = vor.u32 %v705_v44, %v704_v53  ;;  %v708_v63 = vrot.slane %v704_v53, 4  ;;  %v991_v0 = vld [vmem:[#allocation3 + $0x44] sm:$0x1]  ;;  %v16251_v9 = vld [vmem:[%s15870_s29 + $0x2c] sm:$0xf] }
  0x9b   : > { %1066 = vst [vmem:[#allocation3 + $0xc0] sm:$0xf] %v1065_v59  ;;  %v721_v1 = vrot.slane %v719_v55, 7  ;;  %v722_v2 = vshll.u32 %v16238_v50, 16  ;;  %v903_v3 = vsel %vm16122_vm8, %v895_v46, %v902_v57  ;;  %v1069_v5 = vsel %vm16115_vm7, %v904_v58, %v1068_v51  ;;  %v994_v10 = vld [vmem:[#allocation3 + $0x48] sm:$0xf] }
  0x9c   : > { %v715_v6 = vor.u32 %v713_v54, %v712_v60  ;;  %v717_v8 = vrot.slane %v712_v60, 4  ;;  %1067 = vst.msk [vmem:[#allocation3 + $0xc4] sm:$0xf] %vm574_vm1, %v903_v3  ;;  %1070 = vst [vmem:[#allocation3 + $0xc8] sm:$0x1] %v1069_v5  ;;  %v988_v12 = vsel %vm16130_vm9, %v707_v62, %v987_v61  ;;  %v727_v14 = vshrl.u32 %v16251_v9, 16  ;;  %13029 = vmatmul.mubr.msk.bf16.gmra.mrb[16].mxu0 %vm1289_vm6, %v16284_v29 }
  0x9d   : > { %v724_v13 = vor.u32 %v722_v2, %v721_v1  ;;  %989 = vst [vmem:[#allocation3 + $0x3c] sm:$0xf] %v988_v12  ;;  %v725_v17 = vrot.slane %v721_v1, 4  ;;  %v730_v19 = vshll.u32 %v16251_v9, 16  ;;  %v16263_v20 = vld [vmem:[%s15870_s29 + $0x30] sm:$0xf]  ;;  %1430 = vmatprep.mubr.bf16.mxu0 %v15697_v4 }
  0x9e   : > { %v716_v15 = vsel %vm16122_vm8, %v708_v63, %v715_v6  ;;  %v992_v16 = vsel %vm16115_vm7, %v717_v8, %v991_v0  ;;  %v16266_v21 = vld [vmem:[%s15870_s29 + $0x34] sm:$0xf]  ;;  %v729_v22 = vrot.slane %v727_v14, 7  ;;  %v736_v25 = vshrl.u32 %v16263_v20, 16  ;;  %v16278_v28 = vld [vmem:[%s15870_s29 + $0x38] sm:$0xf] }
  0x9f   : > { %990 = vst.msk [vmem:[#allocation3 + $0x40] sm:$0xf] %vm574_vm1, %v716_v15  ;;  %993 = vst [vmem:[#allocation3 + $0x44] sm:$0x1] %v992_v16  ;;  %v995_v24 = vsel %vm16130_vm9, %v724_v13, %v994_v10  ;;  %v739_v26 = vshll.u32 %v16263_v20, 16  ;;  %v744_v32 = vshrl.u32 %v16266_v21, 16  ;;  %14413 = vmatmul.mubr.msk.bf16.vlgmr.msra.gmra.mrb[16].mxu1 %vm1289_vm6, %v16144_v47 }
  0xa0   : > { %996 = vst [vmem:[#allocation3 + $0x48] sm:$0xf] %v995_v24  ;;  %v998_v30 = vld [vmem:[#allocation3 + $0x50] sm:$0x1]  ;;  %v747_v34 = vshll.u32 %v16266_v21, 16  ;;  %v753_v35 = vshrl.u32 %v16278_v28, 16  ;;  %v732_v38 = vor.u32 %v730_v19, %v729_v22  ;;  %14416 = vmatprep.mubr.msk.bf16.mxu1 %vm1289_vm6, %v16181_v41 }
  0xa1   : > { %v734_v39 = vrot.slane %v729_v22, 4  ;;  %v738_v40 = vrot.slane %v736_v25, 7  ;;  %v16290_v43 = vld [vmem:[%s15870_s29 + $0x3c] sm:$0xf]  ;;  %v756_v44 = vshll.u32 %v16278_v28, 16  ;;  %v746_v45 = vrot.slane %v744_v32, 7 }
  0xa2   : > { %v1001_v18 = vld [vmem:[#allocation3 + $0x54] sm:$0xf]  ;;  %v755_v37 = vrot.slane %v753_v35, 7  ;;  %v761_v42 = vshrl.u32 %v16290_v43, 16  ;;  %v764_v46 = vshll.u32 %v16290_v43, 16  ;;  %v733_v48 = vsel %vm16122_vm8, %v725_v17, %v732_v38 }
  0xa3   : > { %v999_v49 = vsel %vm16115_vm7, %v734_v39, %v998_v30  ;;  %v741_v51 = vor.u32 %v739_v26, %v738_v40  ;;  %v742_v53 = vrot.slane %v738_v40, 4  ;;  %v1005_v54 = vld [vmem:[#allocation3 + $0x5c] sm:$0x1]  ;;  %v1008_v55 = vld [vmem:[#allocation3 + $0x60] sm:$0xf]  ;;  %v749_v57 = vor.u32 %v747_v34, %v746_v45 }
  0xa4   : > { %997 = vst.msk [vmem:[#allocation3 + $0x4c] sm:$0xf] %vm574_vm1, %v733_v48  ;;  %1000 = vst [vmem:[#allocation3 + $0x50] sm:$0x1] %v999_v49  ;;  %v751_v58 = vrot.slane %v746_v45, 4  ;;  %v758_v59 = vor.u32 %v756_v44, %v755_v37  ;;  %v759_v62 = vrot.slane %v755_v37, 4  ;;  %v16333_v22 = vcombine.low %v16238_v50, %v16251_v9 }
  0xa5   : > { %v16301_v60 = vld [vmem:[%s15870_s29 + $0x40] sm:$0xf]  ;;  %v1002_v61 = vsel %vm16130_vm9, %v741_v51, %v1001_v18  ;;  %v763_v63 = vrot.slane %v761_v42, 7  ;;  %v750_v1 = vsel %vm16122_vm8, %v742_v53, %v749_v57  ;;  %v1012_v5 = vld [vmem:[#allocation3 + $0x68] sm:$0x1]  ;;  %v13015_v33 = vcombine.low %v16278_v28, %v16290_v43 }
  0xa6   : > { %v770_v0 = vshrl.u32 %v16301_v60, 16  ;;  %1003 = vst [vmem:[#allocation3 + $0x54] sm:$0xf] %v1002_v61  ;;  %v1006_v2 = vsel %vm16115_vm7, %v751_v58, %v1005_v54  ;;  %v1009_v3 = vsel %vm16130_vm9, %v758_v59, %v1008_v55  ;;  %v16313_v6 = vld [vmem:[%s15870_s29 + $0x44] sm:$0xf]  ;;  %v773_v8 = vshll.u32 %v16301_v60, 16  ;;  %13030 = vmatmul.mubr.msk.bf16.gmra.mrb[20].mxu0 %vm1289_vm6, %v16333_v22 }
  0xa7   : > { %1004 = vst.msk [vmem:[#allocation3 + $0x58] sm:$0xf] %vm574_vm1, %v750_v1  ;;  %1007 = vst [vmem:[#allocation3 + $0x5c] sm:$0x1] %v1006_v2  ;;  %v766_v10 = vor.u32 %v764_v46, %v763_v63  ;;  %v768_v12 = vrot.slane %v763_v63, 4  ;;  %v778_v14 = vshrl.u32 %v16313_v6, 16  ;;  %14417 = vmatmul.mubr.msk.bf16.gmra.mrb[20].mxu1 %vm1289_vm6, %v16218_v31 }
  0xa8   : > { %1010 = vst [vmem:[#allocation3 + $0x60] sm:$0xf] %v1009_v3  ;;  %v772_v13 = vrot.slane %v770_v0, 7  ;;  %v16323_v15 = vld [vmem:[%s15870_s29 + $0x48] sm:$0xf]  ;;  %v781_v16 = vshll.u32 %v16313_v6, 16  ;;  %14420 = vmatprep.mubr.msk.bf16.mxu1 %vm1289_vm6, %v16284_v29 }
  0xa9   : > { %v1015_v47 = vld [vmem:[#allocation3 + $0x6c] sm:$0xf]  ;;  %v787_v17 = vshrl.u32 %v16323_v15, 16  ;;  %v790_v19 = vshll.u32 %v16323_v15, 16  ;;  %v767_v24 = vsel %vm16122_vm8, %v759_v62, %v766_v10  ;;  %v1013_v4 = vsel %vm16115_vm7, %v768_v12, %v1012_v5  ;;  %v1019_v41 = vld [vmem:[#allocation3 + $0x74] sm:$0x1] }
  0xaa   : > { %v775_v25 = vor.u32 %v773_v8, %v772_v13  ;;  %v16340_v26 = vld [vmem:[%s15870_s29 + $0x4c] sm:$0xf]  ;;  %1011 = vst.msk [vmem:[#allocation3 + $0x64] sm:$0xf] %vm574_vm1, %v767_v24  ;;  %1014 = vst [vmem:[#allocation3 + $0x68] sm:$0x1] %v1013_v4  ;;  %v13014_v4 = vcombine.low %v16263_v20, %v16266_v21 }
  0xab   : > { %v776_v30 = vrot.slane %v772_v13, 4  ;;  %v780_v32 = vrot.slane %v778_v14, 7  ;;  %v789_v34 = vrot.slane %v787_v17, 7  ;;  %v795_v50 = vshrl.u32 %v16340_v26, 16  ;;  %v16345_v9 = vld [vmem:[%s15870_s29 + $0x50] sm:$0xf] }
  0xac   : > { %v1016_v35 = vsel %vm16130_vm9, %v775_v25, %v1015_v47  ;;  %v798_v38 = vshll.u32 %v16340_v26, 16  ;;  %v1022_v39 = vld [vmem:[#allocation3 + $0x78] sm:$0xf]  ;;  %v804_v40 = vshrl.u32 %v16345_v9, 16  ;;  %v807_v44 = vshll.u32 %v16345_v9, 16  ;;  %v16370_v3 = vld [vmem:[#allocation2] sm:$0xff] }
  0xad   : > { %v783_v45 = vor.u32 %v781_v16, %v780_v32  ;;  %v785_v18 = vrot.slane %v780_v32, 4  ;;  %1017 = vst [vmem:[#allocation3 + $0x6c] sm:$0xf] %v1016_v35  ;;  %v792_v37 = vor.u32 %v790_v19, %v789_v34  ;;  %v16353_v42 = vld [vmem:[%s15870_s29 + $0x54] sm:$0xf]  ;;  %v793_v46 = vrot.slane %v789_v34, 4  ;;  %1440 = vmatprep.mubr.bf16.mxu0 %v16370_v3 }
  0xae   : > { %v797_v48 = vrot.slane %v795_v50, 7  ;;  %v806_v49 = vrot.slane %v804_v40, 7  ;;  %v812_v51 = vshrl.u32 %v16353_v42, 16  ;;  %v1026_v57 = vld [vmem:[#allocation3 + $0x80] sm:$0x1]  ;;  %v815_v58 = vshll.u32 %v16353_v42, 16  ;;  %13031 = vmatmul.mubr.msk.bf16.gmra.mrb[24].mxu0 %vm1289_vm6, %v13014_v4 }
  0xaf   : > { %v784_v53 = vsel %vm16122_vm8, %v776_v30, %v783_v45  ;;  %v1020_v54 = vsel %vm16115_vm7, %v785_v18, %v1019_v41  ;;  %v1023_v55 = vsel %vm16130_vm9, %v792_v37, %v1022_v39  ;;  %v1029_v59 = vld [vmem:[#allocation3 + $0x84] sm:$0xf]  ;;  %v564_v1 = vld [vmem:[%s15870_s29 + $0x58] sm:$0xf]  ;;  %v565_v2 = vld [vmem:[%s15870_s29 + $0x5c] sm:$0xf]  ;;  %14421 = vmatmul.mubr.msk.bf16.gmra.mrb[24].mxu1 %vm1289_vm6, %v16333_v22  ;;  %1450 = vmatprep.mubr.bf16.mxu0 %v16370_v3 }
  0xb0   : > { %1018 = vst.msk [vmem:[#allocation3 + $0x70] sm:$0xf] %vm574_vm1, %v784_v53  ;;  %1021 = vst [vmem:[#allocation3 + $0x74] sm:$0x1] %v1020_v54  ;;  %v800_v61 = vor.u32 %v798_v38, %v797_v48  ;;  %v802_v62 = vrot.slane %v797_v48, 4  ;;  %v809_v63 = vor.u32 %v807_v44, %v806_v49  ;;  %v810_v0 = vrot.slane %v806_v49, 4  ;;  %14424 = vmatprep.mubr.msk.bf16.mxu1 %vm1289_vm6, %v13014_v4 }
  0xb1   : > { %1024 = vst [vmem:[#allocation3 + $0x78] sm:$0xf] %v1023_v55  ;;  %v814_v5 = vrot.slane %v812_v51, 7  ;;  %v821_v8 = vshrl.u32 %v564_v1, 16  ;;  %v824_v31 = vshll.u32 %v564_v1, 16  ;;  %v829_v10 = vshrl.u32 %v565_v2, 16 }
  0xb2   : > { %v801_v12 = vsel %vm16122_vm8, %v793_v46, %v800_v61  ;;  %v1027_v13 = vsel %vm16115_vm7, %v802_v62, %v1026_v57  ;;  %v1030_v14 = vsel %vm16130_vm9, %v809_v63, %v1029_v59  ;;  %v1033_v16 = vld [vmem:[#allocation3 + $0x8c] sm:$0x1]  ;;  %v832_v47 = vshll.u32 %v565_v2, 16  ;;  %v1036_v25 = vld [vmem:[#allocation3 + $0x90] sm:$0xf] }
  0xb3   : > { %1025 = vst.msk [vmem:[#allocation3 + $0x7c] sm:$0xf] %vm574_vm1, %v801_v12  ;;  %1028 = vst [vmem:[#allocation3 + $0x80] sm:$0x1] %v1027_v13  ;;  %v817_v17 = vor.u32 %v815_v58, %v814_v5  ;;  %v819_v29 = vrot.slane %v814_v5, 4  ;;  %v823_v19 = vrot.slane %v821_v8, 7  ;;  %v13016_v22 = vcombine.low %v16301_v60, %v16313_v6 }
  0xb4   : > { %1031 = vst [vmem:[#allocation3 + $0x84] sm:$0xf] %v1030_v14  ;;  %v831_v24 = vrot.slane %v829_v10, 7  ;;  %v1040_v50 = vld [vmem:[#allocation3 + $0x98] sm:$0x1]  ;;  %v13017_v23 = vcombine.low %v16323_v15, %v16340_v26  ;;  %v13018_v40 = vcombine.low %v16345_v9, %v16353_v42  ;;  %v13019_v28 = vcombine.low %v564_v1, %v565_v2 }
  0xb5   : > { %v818_v41 = vsel %vm16122_vm8, %v810_v0, %v817_v17  ;;  %v1034_v30 = vsel %vm16115_vm7, %v819_v29, %v1033_v16  ;;  %v826_v32 = vor.u32 %v824_v31, %v823_v19  ;;  %v827_v34 = vrot.slane %v823_v19, 4 }
  0xb6   : > { %1032 = vst.msk [vmem:[#allocation3 + $0x88] sm:$0xf] %vm574_vm1, %v818_v41  ;;  %1035 = vst [vmem:[#allocation3 + $0x8c] sm:$0x1] %v1034_v30  ;;  %v834_v35 = vor.u32 %v832_v47, %v831_v24  ;;  %v836_v38 = vrot.slane %v831_v24, 4  ;;  %13032 = vmatmul.mubr.msk.bf16.gmra.mrb[28].mxu0 %vm1289_vm6, %v13015_v33  ;;  %v1706_v43 = vsub.s32 0, %v15978_v7 }
  0xb7   : > { %v1037_v39 = vsel %vm16130_vm9, %v826_v32, %v1036_v25  ;;  %14425 = vmatmul.mubr.msk.bf16.gmra.mrb[28].mxu1 %vm1289_vm6, %v13015_v33  ;;  %1460 = vmatprep.mubr.bf16.mxu0 %v16370_v3  ;;  %v1710_v60 = vsub.s32 1, %v15978_v7  ;;  %v1714_v51 = vsub.s32 2, %v15978_v7 }
  0xb8   : > { %v835_v20 = vsel %vm16122_vm8, %v827_v34, %v834_v35  ;;  %1038 = vst [vmem:[#allocation3 + $0x90] sm:$0xf] %v1037_v39  ;;  %v1041_v21 = vsel %vm16115_vm7, %v836_v38, %v1040_v50  ;;  %14428 = vmatprep.mubr.msk.bf16.mxu1 %vm1289_vm6, %v13016_v22 }
  0xb9   : > { %1039 = vst.msk [vmem:[#allocation3 + $0x94] sm:$0xf] %vm574_vm1, %v835_v20  ;;  %1042 = vst [vmem:[#allocation3 + $0x98] sm:$0x1] %v1041_v21 }
  0xba   : > { %vm16472_vm1 = vmand %vm2923_vm11, %vm2924_vm12 }
  0xbb   : > { %vm16486_vm2 = vmor %vm16472_vm1, %vm16466_vm14 }
  0xbe   : > { %13033 = vmatmul.mubr.msk.bf16.gmra.mrb[32].mxu0 %vm1289_vm6, %v13016_v22 }
  0xbf   : > { %14429 = vmatmul.mubr.msk.bf16.gmra.mrb[32].mxu1 %vm1289_vm6, %v13017_v23  ;;  %1470 = vmatprep.mubr.bf16.mxu0 %v16370_v3 }
  0xc0   : > { %14432 = vmatprep.mubr.msk.bf16.mxu1 %vm1289_vm6, %v13018_v40 }
  0xc6   : > { %13034 = vmatmul.mubr.msk.bf16.gmra.mrb[36].mxu0 %vm1289_vm6, %v13017_v23 }
  0xc7   : > { %14433 = vmatmul.mubr.msk.bf16.gmra.mrb[36].mxu1 %vm1289_vm6, %v13019_v28  ;;  %1480 = vmatprep.mubr.bf16.mxu0 %v16370_v3 }
  0xc8   : > { %14436 = vmatprep.mubr.msk.bf16.mxu1 %vm1289_vm6, %v16134_v36  ;;  %v1702_v36 = vld [vmem:[%s20963_s2] sm:$0x7] }
  0xc9   : > { %v16439_v6 = vrot.slane %v1702_v36, %v1706_v43  ;;  %v16478_v50 = vrot.slane %v1702_v36, %v1714_v51 }
  0xce   : > { %13035 = vmatmul.mubr.msk.bf16.gmra.mrb[40].mxu0 %vm1289_vm6, %v13018_v40 }
  0xcf   : > { %14437 = vmatmul.mubr.msk.bf16.gmra.mrb[40].mxu1 %vm1289_vm6, %v16167_v11  ;;  %1490 = vmatprep.mubr.bf16.mxu0 %v16370_v3  ;;  %v1815_v11 = vld [vmem:[%s20964_s3] sm:$0x7] }
  0xd0   : > { %14440 = vmatprep.mubr.msk.bf16.mxu1 %vm1289_vm6, %v16197_v56  ;;  %v16441_v56 = vrot.slane %v1702_v36, %v1710_v60  ;;  %v16443_v15 = vrot.slane %v1815_v11, %v1706_v43  ;;  %v16445_v9 = vrot.slane %v1815_v11, %v1710_v60  ;;  %v16480_v35 = vrot.slane %v1815_v11, %v1714_v51 }
  0xd6   : > { %13036 = vmatmul.mubr.msk.bf16.gmra.mrb[44].mxu0 %vm1289_vm6, %v13019_v28 }
  0xd7   : > { %14441 = vmatmul.mubr.msk.bf16.gmra.mrb[44].mxu1 %vm1289_vm6, %v16240_v52 }
 0x113   : > { %v1382_v52 = vpop.f32.mrb[0].mxu0  ;;  %v1502_v26 = vpop.f32.mrb[0].mxu1 }
 0x114   : > { %v1719_v44 = vmul.f32 %v16439_v6, %v1382_v52  ;;  %v1791_v45 = vmul.f32 %v16439_v6, %v1502_v26  ;;  %v1384_v18 = vpop.f32.mrb[1].mxu0  ;;  %v1504_v37 = vpop.f32.mrb[1].mxu1 }
 0x115   : > { %v1720_v42 = vmul.f32 %v16441_v56, %v1384_v18  ;;  %v1792_v46 = vmul.f32 %v16441_v56, %v1504_v37  ;;  %v1386_v48 = vpop.f32.mrb[2].mxu0  ;;  %v1506_v49 = vpop.f32.mrb[2].mxu1 }
 0x116   : > { %v1832_v53 = vadd.f32 %v16443_v15, %v1719_v44  ;;  %v1904_v54 = vadd.f32 %v16443_v15, %v1791_v45  ;;  %v1722_v55 = vmul.f32 %v16439_v6, %v1386_v48  ;;  %v1794_v57 = vmul.f32 %v16439_v6, %v1506_v49  ;;  %v1388_v58 = vpop.f32.mrb[3].mxu0  ;;  %v1508_v59 = vpop.f32.mrb[3].mxu1 }
 0x117   : > { %v1833_v61 = vadd.f32 %v16445_v9, %v1720_v42  ;;  %v1905_v62 = vadd.f32 %v16445_v9, %v1792_v46  ;;  %v1723_v63 = vmul.f32 %v16441_v56, %v1388_v58  ;;  %v1795_v0 = vmul.f32 %v16441_v56, %v1508_v59 }
 0x118   : > { %v1928_v1 = vmax.f32 %v1832_v53, 0.0  ;;  %v2000_v7 = vmax.f32 %v1904_v54, 0.0  ;;  %v1835_v2 = vadd.f32 %v16443_v15, %v1722_v55  ;;  %v1907_v5 = vadd.f32 %v16443_v15, %v1794_v57 }
 0x119   : > { %v1929_v8 = vmax.f32 %v1833_v61, 0.0  ;;  %v2001_v31 = vmax.f32 %v1905_v62, 0.0  ;;  %v1836_v10 = vadd.f32 %v16445_v9, %v1723_v63  ;;  %v1908_v12 = vadd.f32 %v16445_v9, %v1795_v0  ;;  %v2941_v0 = vld [vmem:[#allocation2 + $0x60] sm:$0x11] }
 0x11a   : > { %v1931_v14 = vmax.f32 %v1835_v2, 0.0  ;;  %v2003_v16 = vmax.f32 %v1907_v5, 0.0 }
 0x11b   : > { %v14036_v47 = vpack.c.bf16 %v1929_v8, %v1928_v1  ;;  %v14084_v29 = vpack.c.bf16 %v2001_v31, %v2000_v7  ;;  %v1932_v19 = vmax.f32 %v1836_v10, 0.0  ;;  %v2004_v24 = vmax.f32 %v1908_v12, 0.0  ;;  %v1392_v4 = vpop.f32.mrb[4].mxu0  ;;  %v3109_v1 = vld [vmem:[#allocation2 + $0x210] sm:$0x11] }
 0x11c   : > { %v1725_v41 = vmul.f32 %v16439_v6, %v1392_v4  ;;  %v1394_v32 = vpop.f32.mrb[5].mxu0 }
 0x11d   : > { %v2281_v38 = vshrl.u32 %v14036_v47, 16  ;;  %v2284_v39 = vshll.u32 %v14036_v47, 16  ;;  %v2689_v20 = vshrl.u32 %v14084_v29, 16  ;;  %v2692_v21 = vshll.u32 %v14084_v29, 16  ;;  %v1396_v33 = vpop.f32.mrb[6].mxu0 }
 0x11e   : > { %v14038_v40 = vpack.c.bf16 %v1932_v19, %v1931_v14  ;;  %v14086_v28 = vpack.c.bf16 %v2004_v24, %v2003_v16  ;;  %v1838_v43 = vadd.f32 %v16443_v15, %v1725_v41  ;;  %v1398_v60 = vpop.f32.mrb[7].mxu0  ;;  %v1726_v45 = vmul.f32 %v16441_v56, %v1394_v32 }
 0x11f   : > { %v2283_v52 = vrot.slane %v2281_v38, 7  ;;  %v2691_v26 = vrot.slane %v2689_v20, 7  ;;  %v1728_v19 = vmul.f32 %v16439_v6, %v1396_v33 }
 0x120   : > { %v2296_v37 = vshrl.u32 %v14038_v40, 16  ;;  %v2299_v42 = vshll.u32 %v14038_v40, 16  ;;  %v2704_v46 = vshrl.u32 %v14086_v28, 16  ;;  %v2707_v48 = vshll.u32 %v14086_v28, 16 }
 0x121   : > { %v2286_v49 = vor.u32 %v2284_v39, %v2283_v52  ;;  %v2294_v51 = vrot.slane %v2283_v52, 4  ;;  %v2694_v53 = vor.u32 %v2692_v21, %v2691_v26  ;;  %v2702_v54 = vrot.slane %v2691_v26, 4 }
 0x122   : > { %v2298_v55 = vrot.slane %v2296_v37, 7  ;;  %v2706_v57 = vrot.slane %v2704_v46, 7  ;;  %v1934_v58 = vmax.f32 %v1838_v43, 0.0  ;;  %v1839_v7 = vadd.f32 %v16445_v9, %v1726_v45 }
 0x123   : > { %v2928_v61 = vsel %vm16486_vm2, %v2286_v49, %v16370_v3  ;;  %v3102_v62 = vsel %vm16486_vm2, %v2694_v53, %v16370_v3  ;;  %v1841_v33 = vadd.f32 %v16443_v15, %v1728_v19  ;;  %v1729_v40 = vmul.f32 %v16441_v56, %v1398_v60 }
 0x124   : > { %2929 = vst [vmem:[#allocation2 + $0x48] sm:$0xff] %v2928_v61  ;;  %3103 = vst [vmem:[#allocation2 + $0x1f8] sm:$0xff] %v3102_v62  ;;  %v2301_v31 = vor.u32 %v2299_v42, %v2298_v55  ;;  %v2312_v10 = vrot.slane %v2298_v55, 4  ;;  %v2709_v12 = vor.u32 %v2707_v48, %v2706_v57  ;;  %v2720_v14 = vrot.slane %v2706_v57, 4 }
 0x125   : > { %v1935_v17 = vmax.f32 %v1839_v7, 0.0  ;;  %v1937_v37 = vmax.f32 %v1841_v33, 0.0  ;;  %v1842_v46 = vadd.f32 %v16445_v9, %v1729_v40 }
 0x126   : > { %v2302_v41 = vsel %vm16122_vm8, %v2294_v51, %v2301_v31  ;;  %v2710_v32 = vsel %vm16122_vm8, %v2702_v54, %v2709_v12 }
 0x127   : > { %2933 = vst [vmem:[#allocation2 + $0x54] sm:$0xff] %v2302_v41  ;;  %3107 = vst [vmem:[#allocation2 + $0x204] sm:$0xff] %v2710_v32  ;;  %v14040_v20 = vpack.c.bf16 %v1935_v17, %v1934_v58  ;;  %v1938_v55 = vmax.f32 %v1842_v46, 0.0 }
 0x129   : > { %v2315_v52 = vshrl.u32 %v14040_v20, 16  ;;  %v2318_v26 = vshll.u32 %v14040_v20, 16  ;;  %v14042_v31 = vpack.c.bf16 %v1938_v55, %v1937_v37 }
 0x12b   : > { %v16538_v49 = vrot.slane %v2315_v52, 7  ;;  %v2330_v41 = vshrl.u32 %v14042_v31, 16  ;;  %v2955_v52 = vld [vmem:[#allocation2 + $0x84] sm:$0x11] }
 0x12d   : > { %v2332_v40 = vrot.slane %v2330_v41, 7 }
 0x158   : > { %v1512_v25 = vpop.f32.mrb[4].mxu1 }
 0x159   : > { %v1797_v30 = vmul.f32 %v16439_v6, %v1512_v25  ;;  %v1514_v34 = vpop.f32.mrb[5].mxu1 }
 0x15a   : > { %v1516_v22 = vpop.f32.mrb[6].mxu1  ;;  %v1798_v18 = vmul.f32 %v16441_v56, %v1514_v34  ;;  %v3110_v34 = vsel %vm16510_vm3, %v2720_v14, %v3109_v1  ;;  %v2328_v1 = vrot.slane %v16538_v49, 4 }
 0x15b   : > { %v1910_v36 = vadd.f32 %v16443_v15, %v1797_v30  ;;  %v1518_v11 = vpop.f32.mrb[7].mxu1  ;;  %v1800_v24 = vmul.f32 %v16439_v6, %v1516_v22  ;;  %v2942_v30 = vsel %vm16510_vm3, %v2312_v10, %v2941_v0  ;;  %3111 = vst [vmem:[#allocation2 + $0x210] sm:$0x11] %v3110_v34  ;;  %v2320_v0 = vor.u32 %v2318_v26, %v16538_v49  ;;  %v3123_v26 = vld [vmem:[#allocation2 + $0x234] sm:$0x11] }
 0x15c   : > { %v1911_v2 = vadd.f32 %v16445_v9, %v1798_v18  ;;  %2943 = vst [vmem:[#allocation2 + $0x60] sm:$0x11] %v2942_v30  ;;  %v1801_v28 = vmul.f32 %v16441_v56, %v1518_v11  ;;  %v2333_v30 = vshll.u32 %v14042_v31, 16 }
 0x15d   : > { %v2006_v59 = vmax.f32 %v1910_v36, 0.0  ;;  %v1913_v22 = vadd.f32 %v16443_v15, %v1800_v24  ;;  %v2948_v17 = vsel %vm16486_vm2, %v2320_v0, %v16370_v3 }
 0x15e   : > { %v2007_v29 = vmax.f32 %v1911_v2, 0.0  ;;  %v1914_v48 = vadd.f32 %v16445_v9, %v1801_v28  ;;  %2949 = vst [vmem:[#allocation2 + $0x6c] sm:$0xff] %v2948_v17 }
 0x15f   : > { %v1402_v5 = vpop.f32.mrb[8].mxu0  ;;  %v2009_v42 = vmax.f32 %v1913_v22, 0.0 }
 0x160   : > { %v1404_v16 = vpop.f32.mrb[9].mxu0  ;;  %v14088_v21 = vpack.c.bf16 %v2007_v29, %v2006_v59  ;;  %v1731_v43 = vmul.f32 %v16439_v6, %v1402_v5  ;;  %v2010_v57 = vmax.f32 %v1914_v48, 0.0  ;;  %v2335_v48 = vor.u32 %v2333_v30, %v2332_v40 }
 0x161   : > { %v16518_v4 = vpop.f32.mrb[10].mxu0  ;;  %v1732_v58 = vmul.f32 %v16441_v56, %v1404_v16 }
 0x162   : > { %v1522_v8 = vpop.f32.mrb[8].mxu1  ;;  %v1408_v38 = vpop.f32.mrb[11].mxu0  ;;  %v2723_v45 = vshrl.u32 %v14088_v21, 16  ;;  %v2726_v18 = vshll.u32 %v14088_v21, 16  ;;  %v1844_v60 = vadd.f32 %v16443_v15, %v1731_v43  ;;  %v14090_v10 = vpack.c.bf16 %v2010_v57, %v2009_v42 }
 0x163   : > { %v1524_v47 = vpop.f32.mrb[9].mxu1  ;;  %v1803_v36 = vmul.f32 %v16439_v6, %v1522_v8  ;;  %v1845_v19 = vadd.f32 %v16445_v9, %v1732_v58  ;;  %v1734_v33 = vmul.f32 %v16439_v6, %v16518_v4  ;;  %v1735_v43 = vmul.f32 %v16441_v56, %v1408_v38 }
 0x164   : > { %v16520_v25 = vpop.f32.mrb[10].mxu1  ;;  %v16540_v51 = vrot.slane %v2723_v45, 7  ;;  %v1804_v59 = vmul.f32 %v16441_v56, %v1524_v47  ;;  %v1940_v12 = vmax.f32 %v1844_v60, 0.0  ;;  %v2738_v32 = vshrl.u32 %v14090_v10, 16 }
 0x165   : > { %v1528_v39 = vpop.f32.mrb[11].mxu1  ;;  %v1916_v11 = vadd.f32 %v16443_v15, %v1803_v36  ;;  %v2741_v34 = vshll.u32 %v14090_v10, 16  ;;  %v1941_v20 = vmax.f32 %v1845_v19, 0.0  ;;  %v1806_v22 = vmul.f32 %v16439_v6, %v16520_v25 }
 0x166   : > { %v2728_v7 = vor.u32 %v2726_v18, %v16540_v51  ;;  %v2736_v2 = vrot.slane %v16540_v51, 4  ;;  %v1917_v24 = vadd.f32 %v16445_v9, %v1804_v59  ;;  %v2740_v28 = vrot.slane %v2738_v32, 7 }
 0x167   : > { %v16544_v53 = vpop.f32.mrb[12].mxu0  ;;  %v2012_v14 = vmax.f32 %v1916_v11, 0.0  ;;  %v1807_v36 = vmul.f32 %v16441_v56, %v1528_v39  ;;  %v14044_v45 = vpack.c.bf16 %v1941_v20, %v1940_v12  ;;  %v1847_v37 = vadd.f32 %v16443_v15, %v1734_v33 }
 0x168   : > { %v16550_v61 = vpop.f32.mrb[13].mxu0  ;;  %v3116_v29 = vsel %vm16486_vm2, %v2728_v7, %v16370_v3  ;;  %v2013_v21 = vmax.f32 %v1917_v24, 0.0  ;;  %v1919_v42 = vadd.f32 %v16443_v15, %v1806_v22  ;;  %v2346_v25 = vrot.slane %v2332_v40, 4 }
 0x169   : > { %v16558_v5 = vpop.f32.mrb[14].mxu0  ;;  %3117 = vst [vmem:[#allocation2 + $0x21c] sm:$0xff] %v3116_v29  ;;  %v2743_v49 = vor.u32 %v2741_v34, %v2740_v28  ;;  %v2754_v51 = vrot.slane %v2740_v28, 4  ;;  %v2349_v39 = vshrl.u32 %v14044_v45, 16  ;;  %v2352_v11 = vshll.u32 %v14044_v45, 16 }
 0x16a   : > { %v16546_v54 = vpop.f32.mrb[12].mxu1  ;;  %v16562_v16 = vpop.f32.mrb[15].mxu0  ;;  %v14092_v18 = vpack.c.bf16 %v2013_v21, %v2012_v14  ;;  %v2336_v0 = vsel %vm16122_vm8, %v2328_v1, %v2335_v48  ;;  %v2956_v7 = vsel %vm16510_vm3, %v2346_v25, %v2955_v52  ;;  %v1943_v29 = vmax.f32 %v1847_v37, 0.0 }
 0x16b   : > { %v16552_v62 = vpop.f32.mrb[13].mxu1  ;;  %v2744_v31 = vsel %vm16122_vm8, %v2736_v2, %v2743_v49  ;;  %v3124_v10 = vsel %vm16510_vm3, %v2754_v51, %v3123_v26  ;;  %2953 = vst [vmem:[#allocation2 + $0x78] sm:$0xff] %v2336_v0  ;;  %2957 = vst [vmem:[#allocation2 + $0x84] sm:$0x11] %v2956_v7  ;;  %v16606_v17 = vrot.slane %v2349_v39, 7  ;;  %v2015_v19 = vmax.f32 %v1919_v42, 0.0 }
 0x16c   : > { %v16560_v8 = vpop.f32.mrb[14].mxu1  ;;  %v2757_v55 = vshrl.u32 %v14092_v18, 16  ;;  %v2760_v57 = vshll.u32 %v14092_v18, 16  ;;  %3121 = vst [vmem:[#allocation2 + $0x228] sm:$0xff] %v2744_v31  ;;  %3125 = vst [vmem:[#allocation2 + $0x234] sm:$0x11] %v3124_v10  ;;  %v1848_v24 = vadd.f32 %v16445_v9, %v1735_v43  ;;  %v1920_v2 = vadd.f32 %v16445_v9, %v1807_v36 }
 0x16d   : > { %v16564_v47 = vpop.f32.mrb[15].mxu1  ;;  %v1737_v41 = vmul.f32 %v16439_v6, %v16544_v53  ;;  %v1809_v30 = vmul.f32 %v16439_v6, %v16546_v54  ;;  %v2354_v32 = vor.u32 %v2352_v11, %v16606_v17  ;;  %v2362_v34 = vrot.slane %v16606_v17, 4 }
 0x16e   : > { %v16608_v1 = vrot.slane %v2757_v55, 7  ;;  %v1944_v33 = vmax.f32 %v1848_v24, 0.0  ;;  %v2016_v22 = vmax.f32 %v1920_v2, 0.0  ;;  %v1738_v43 = vmul.f32 %v16441_v56, %v16550_v61 }
 0x16f   : > { %v16582_v46 = vpop.f32.mrb[16].mxu0  ;;  %v1850_v40 = vadd.f32 %v16443_v15, %v1737_v41  ;;  %v1922_v28 = vadd.f32 %v16443_v15, %v1809_v30  ;;  %v2962_v53 = vsel %vm16486_vm2, %v2354_v32, %v16370_v3  ;;  %v1810_v36 = vmul.f32 %v16441_v56, %v16552_v62  ;;  %v2969_v41 = vld [vmem:[#allocation2 + $0xa8] sm:$0x11]  ;;  %v3137_v30 = vld [vmem:[#allocation2 + $0x258] sm:$0x11] }
 0x170   : > { %v16586_v60 = vpop.f32.mrb[17].mxu0  ;;  %v2762_v20 = vor.u32 %v2760_v57, %v16608_v1  ;;  %v2770_v21 = vrot.slane %v16608_v1, 4  ;;  %2963 = vst [vmem:[#allocation2 + $0x90] sm:$0xff] %v2962_v53  ;;  %v14046_v45 = vpack.c.bf16 %v1944_v33, %v1943_v29  ;;  %v14094_v18 = vpack.c.bf16 %v2016_v22, %v2015_v19 }
 0x171   : > { %v16590_v58 = vpop.f32.mrb[18].mxu0  ;;  %v1946_v37 = vmax.f32 %v1850_v40, 0.0  ;;  %v2018_v42 = vmax.f32 %v1922_v28, 0.0  ;;  %v1851_v49 = vadd.f32 %v16445_v9, %v1738_v43  ;;  %v1923_v61 = vadd.f32 %v16445_v9, %v1810_v36 }
 0x172   : > { %v16584_v4 = vpop.f32.mrb[16].mxu1  ;;  %v16602_v12 = vpop.f32.mrb[19].mxu0  ;;  %v3130_v54 = vsel %vm16486_vm2, %v2762_v20, %v16370_v3  ;;  %v1740_v62 = vmul.f32 %v16439_v6, %v16558_v5  ;;  %v1812_v51 = vmul.f32 %v16439_v6, %v16560_v8  ;;  %v2364_v55 = vshrl.u32 %v14046_v45, 16 }
 0x173   : > { %v16588_v38 = vpop.f32.mrb[17].mxu1  ;;  %3131 = vst [vmem:[#allocation2 + $0x240] sm:$0xff] %v3130_v54  ;;  %v2367_v57 = vshll.u32 %v14046_v45, 16  ;;  %v2772_v0 = vshrl.u32 %v14094_v18, 16  ;;  %v2775_v7 = vshll.u32 %v14094_v18, 16  ;;  %v1947_v17 = vmax.f32 %v1851_v49, 0.0 }
 0x174   : > { %v16592_v59 = vpop.f32.mrb[18].mxu1  ;;  %v2019_v1 = vmax.f32 %v1923_v61, 0.0  ;;  %v1853_v29 = vadd.f32 %v16443_v15, %v1740_v62  ;;  %v1925_v5 = vadd.f32 %v16443_v15, %v1812_v51  ;;  %v2366_v19 = vrot.slane %v2364_v55, 7 }
 0x175   : > { %v16604_v14 = vpop.f32.mrb[19].mxu1  ;;  %v2774_v8 = vrot.slane %v2772_v0, 7  ;;  %v1741_v24 = vmul.f32 %v16441_v56, %v16562_v16  ;;  %v1813_v2 = vmul.f32 %v16441_v56, %v16564_v47  ;;  %v14048_v32 = vpack.c.bf16 %v1947_v17, %v1946_v37 }
 0x176   : > { %v14096_v20 = vpack.c.bf16 %v2019_v1, %v2018_v42  ;;  %v1949_v33 = vmax.f32 %v1853_v29, 0.0  ;;  %v2021_v22 = vmax.f32 %v1925_v5, 0.0  ;;  %v2369_v40 = vor.u32 %v2367_v57, %v2366_v19 }
 0x177   : > { %v2380_v28 = vrot.slane %v2366_v19, 4  ;;  %v2777_v53 = vor.u32 %v2775_v7, %v2774_v8  ;;  %v2788_v54 = vrot.slane %v2774_v8, 4  ;;  %v2383_v43 = vshrl.u32 %v14048_v32, 16 }
 0x178   : > { %v2386_v36 = vshll.u32 %v14048_v32, 16  ;;  %v2791_v45 = vshrl.u32 %v14096_v20, 16  ;;  %v2794_v18 = vshll.u32 %v14096_v20, 16  ;;  %v2370_v47 = vsel %vm16122_vm8, %v2362_v34, %v2369_v40 }
 0x179   : > { %v16632_v52 = vpop.f32.mrb[20].mxu0  ;;  %v2970_v37 = vsel %vm16510_vm3, %v2380_v28, %v2969_v41  ;;  %v2778_v42 = vsel %vm16122_vm8, %v2770_v21, %v2777_v53  ;;  %v3138_v61 = vsel %vm16510_vm3, %v2788_v54, %v3137_v30  ;;  %2967 = vst [vmem:[#allocation2 + $0x9c] sm:$0xff] %v2370_v47  ;;  %v16676_v55 = vrot.slane %v2383_v43, 7 }
 0x17a   : > { %v16634_v26 = vpop.f32.mrb[20].mxu1  ;;  %v16636_v48 = vpop.f32.mrb[21].mxu0  ;;  %2971 = vst [vmem:[#allocation2 + $0xa8] sm:$0x11] %v2970_v37  ;;  %3135 = vst [vmem:[#allocation2 + $0x24c] sm:$0xff] %v2778_v42  ;;  %v16678_v34 = vrot.slane %v2791_v45, 7  ;;  %v1854_v57 = vadd.f32 %v16445_v9, %v1741_v24  ;;  %v1926_v0 = vadd.f32 %v16445_v9, %v1813_v2  ;;  %v1743_v17 = vmul.f32 %v16439_v6, %v16582_v46 }
 0x17b   : > { %v16638_v25 = vpop.f32.mrb[21].mxu1  ;;  %v16646_v39 = vpop.f32.mrb[22].mxu0  ;;  %3139 = vst [vmem:[#allocation2 + $0x258] sm:$0x11] %v3138_v61  ;;  %v1727_v1 = vmul.f32 %v16584_v4, %v16478_v50  ;;  %v1744_v29 = vmul.f32 %v16441_v56, %v16586_v60  ;;  %v1721_v5 = vmul.f32 %v16478_v50, %v16588_v38  ;;  %v2388_v24 = vor.u32 %v2386_v36, %v16676_v55 }
 0x17c   : > { %v16648_v11 = vpop.f32.mrb[22].mxu1  ;;  %v16650_v31 = vpop.f32.mrb[23].mxu0  ;;  %v2396_v2 = vrot.slane %v16676_v55, 4  ;;  %v2796_v41 = vor.u32 %v2794_v18, %v16678_v34  ;;  %v2804_v46 = vrot.slane %v16678_v34, 4  ;;  %v1950_v30 = vmax.f32 %v1854_v57, 0.0 }
 0x17d   : > { %v16652_v10 = vpop.f32.mrb[23].mxu1  ;;  %v2022_v4 = vmax.f32 %v1926_v0, 0.0  ;;  %v1856_v32 = vadd.f32 %v16443_v15, %v1743_v17  ;;  %v1840_v60 = vadd.f32 %v16480_v35, %v1727_v1  ;;  %v2976_v38 = vsel %vm16486_vm2, %v2388_v24, %v16370_v3 }
 0x17e   : > { %v3144_v20 = vsel %vm16486_vm2, %v2796_v41, %v16370_v3  ;;  %v1857_v40 = vadd.f32 %v16445_v9, %v1744_v29  ;;  %v1834_v28 = vadd.f32 %v16480_v35, %v1721_v5  ;;  %2977 = vst [vmem:[#allocation2 + $0xb4] sm:$0xff] %v2976_v38  ;;  %v14050_v53 = vpack.c.bf16 %v1950_v30, %v1949_v33  ;;  %v2983_v41 = vld [vmem:[#allocation2 + $0xcc] sm:$0x11] }
 0x17f   : > { %3145 = vst [vmem:[#allocation2 + $0x264] sm:$0xff] %v3144_v20  ;;  %v14098_v54 = vpack.c.bf16 %v2022_v4, %v2021_v22  ;;  %v1952_v43 = vmax.f32 %v1856_v32, 0.0  ;;  %v1936_v36 = vmax.f32 %v1840_v60, 0.0  ;;  %v1746_v47 = vmul.f32 %v16439_v6, %v16590_v58  ;;  %v3151_v20 = vld [vmem:[#allocation2 + $0x27c] sm:$0x11] }
 0x180   : > { %v1953_v45 = vmax.f32 %v1857_v40, 0.0  ;;  %v1930_v18 = vmax.f32 %v1834_v28, 0.0  ;;  %v1730_v37 = vmul.f32 %v16592_v59, %v16478_v50  ;;  %v2398_v55 = vshrl.u32 %v14050_v53, 16 }
 0x181   : > { %v16660_v49 = vpop.f32.mrb[24].mxu0  ;;  %v2401_v34 = vshll.u32 %v14050_v53, 16  ;;  %v2806_v57 = vshrl.u32 %v14098_v54, 16  ;;  %v2809_v0 = vshll.u32 %v14098_v54, 16  ;;  %v14041_v17 = vpack.c.bf16 %v1936_v36, %v1936_v36 }
 0x182   : > { %v16662_v16 = vpop.f32.mrb[24].mxu1  ;;  %v16672_v62 = vpop.f32.mrb[25].mxu0  ;;  %v14052_v1 = vpack.c.bf16 %v1953_v45, %v1952_v43  ;;  %v14037_v29 = vpack.c.bf16 %v1930_v18, %v1930_v18  ;;  %v16725_v58 = vadd.f32 %v16443_v15, %v1746_v47  ;;  %v2400_v24 = vrot.slane %v2398_v55, 7 }
 0x183   : > { %v16674_v51 = vpop.f32.mrb[25].mxu1  ;;  %v16682_v21 = vpop.f32.mrb[26].mxu0  ;;  %v2808_v30 = vrot.slane %v2806_v57, 7  ;;  %v1843_v4 = vadd.f32 %v16480_v35, %v1730_v37  ;;  %v1747_v32 = vmul.f32 %v16441_v56, %v16602_v12  ;;  %v2322_v40 = vshrl.u32 %v14041_v17, 16 }
 0x184   : > { %v16684_v7 = vpop.f32.mrb[26].mxu1  ;;  %v16694_v19 = vpop.f32.mrb[27].mxu0  ;;  %v2325_v28 = vshll.u32 %v14041_v17, 16  ;;  %v2417_v53 = vshrl.u32 %v14052_v1, 16  ;;  %v2420_v54 = vshll.u32 %v14052_v1, 16  ;;  %v2403_v43 = vor.u32 %v2401_v34, %v2400_v24 }
 0x185   : > { %v16696_v8 = vpop.f32.mrb[27].mxu1  ;;  %v2414_v36 = vrot.slane %v2400_v24, 4  ;;  %v2811_v45 = vor.u32 %v2809_v0, %v2808_v30  ;;  %v2822_v18 = vrot.slane %v2808_v30, 4  ;;  %v16738_v47 = vrot.slane %v2322_v40, 7  ;;  %v2950_v0 = vld [vmem:[#allocation2 + $0x74] sm:$0xf] }
 0x186   : > { %v16740_v55 = vrot.slane %v2417_v53, 7  ;;  %v2288_v37 = vshrl.u32 %v14037_v29, 16  ;;  %v2291_v57 = vshll.u32 %v14037_v29, 16  ;;  %v2404_v12 = vsel %vm16122_vm8, %v2396_v2, %v2403_v43 }
 0x187   : > { %v2812_v17 = vsel %vm16122_vm8, %v2804_v46, %v2811_v45  ;;  %v3152_v34 = vsel %vm16510_vm3, %v2822_v18, %v3151_v20  ;;  %2981 = vst [vmem:[#allocation2 + $0xc0] sm:$0xff] %v2404_v12  ;;  %v2327_v1 = vor.u32 %v2325_v28, %v16738_v47  ;;  %v1955_v20 = vmax.f32 %v16725_v58, 0.0 }
 0x188   : > { %3149 = vst [vmem:[#allocation2 + $0x270] sm:$0xff] %v2812_v17  ;;  %3153 = vst [vmem:[#allocation2 + $0x27c] sm:$0x11] %v3152_v34  ;;  %v2422_v2 = vor.u32 %v2420_v54, %v16740_v55  ;;  %v16758_v46 = vrot.slane %v2288_v37, 7  ;;  %v1939_v40 = vmax.f32 %v1843_v4, 0.0  ;;  %v1724_v45 = vmul.f32 %v16478_v50, %v16604_v14 }
 0x189   : > { %v16716_v42 = vpop.f32.mrb[28].mxu0  ;;  %v2951_v54 = vsel %vm16466_vm14, %v2327_v1, %v2950_v0  ;;  %v1749_v58 = vmul.f32 %v16439_v6, %v16632_v52  ;;  %v1739_v0 = vmul.f32 %v16634_v26, %v16478_v50  ;;  %v1750_v1 = vmul.f32 %v16441_v56, %v16636_v48  ;;  %v2958_v48 = vld [vmem:[#allocation2 + $0x8c] sm:$0x1] }
 0x18a   : > { %v16718_v61 = vpop.f32.mrb[28].mxu1  ;;  %v16720_v33 = vpop.f32.mrb[29].mxu0  ;;  %v2990_v43 = vsel %vm16486_vm2, %v2422_v2, %v16370_v3  ;;  %2952 = vst [vmem:[#allocation2 + $0x74] sm:$0xf] %v2951_v54  ;;  %v2293_v18 = vor.u32 %v2291_v57, %v16758_v46  ;;  %v14043_v12 = vpack.c.bf16 %v1939_v40, %v1939_v40  ;;  %v1837_v14 = vadd.f32 %v16480_v35, %v1724_v45 }
 0x18b   : > { %v16722_v22 = vpop.f32.mrb[29].mxu1  ;;  %v16727_v5 = vpop.f32.mrb[30].mxu0  ;;  %2991 = vst [vmem:[#allocation2 + $0xd8] sm:$0xff] %v2990_v43  ;;  %v1862_v52 = vadd.f32 %v16443_v15, %v1749_v58  ;;  %v1852_v37 = vadd.f32 %v16480_v35, %v1739_v0  ;;  %v1863_v45 = vadd.f32 %v16445_v9, %v1750_v1  ;;  %v1733_v26 = vmul.f32 %v16478_v50, %v16638_v25  ;;  %v2997_v25 = vld [vmem:[#allocation2 + $0xf0] sm:$0x11] }
 0x18c   : > { %v16729_v59 = vpop.f32.mrb[30].mxu1  ;;  %v16734_v60 = vpop.f32.mrb[31].mxu0  ;;  %v2339_v2 = vshrl.u32 %v14043_v12, 16  ;;  %v2342_v40 = vshll.u32 %v14043_v12, 16  ;;  %v1933_v54 = vmax.f32 %v1837_v14, 0.0 }
 0x18d   : > { %v16736_v38 = vpop.f32.mrb[31].mxu1  ;;  %v1958_v43 = vmax.f32 %v1862_v52, 0.0  ;;  %v1846_v0 = vadd.f32 %v16480_v35, %v1733_v26 }
 0x18e   : > { %21047 = vst [vmem:[#allocation16_spill] sm:$0xff] %v16736_v38  ;;  %v2984_v38 = vsel %vm16510_vm3, %v2414_v36, %v2983_v41  ;;  %v2930_v36 = vld [vmem:[#allocation2 + $0x50] sm:$0xf]  ;;  %v2341_v58 = vrot.slane %v2339_v2, 7 }
 0x18f   : > { %2985 = vst [vmem:[#allocation2 + $0xcc] sm:$0x11] %v2984_v38  ;;  %v1860_v38 = vadd.f32 %v16445_v9, %v1747_v32  ;;  %v2931_v57 = vsel %vm16466_vm14, %v2293_v18, %v2930_v36  ;;  %v1959_v36 = vmax.f32 %v1863_v45, 0.0 }
 0x190   : > { %2932 = vst [vmem:[#allocation2 + $0x50] sm:$0xf] %v2931_v57  ;;  %v2347_v14 = vrot.slane %v2341_v58, 4 }
 0x191   : > { %v16754_v41 = vpop.f32.mrb[32].mxu0  ;;  %v1956_v17 = vmax.f32 %v1860_v38, 0.0 }
 0x192   : > { %v16756_v30 = vpop.f32.mrb[32].mxu1  ;;  %v16762_v53 = vpop.f32.mrb[33].mxu0 }
 0x193   : > { %v16764_v28 = vpop.f32.mrb[33].mxu1  ;;  %v16775_v4 = vpop.f32.mrb[34].mxu0  ;;  %v14054_v38 = vpack.c.bf16 %v1956_v17, %v1955_v20  ;;  %v1752_v20 = vmul.f32 %v16439_v6, %v16646_v39  ;;  %v2344_v17 = vor.u32 %v2342_v40, %v2341_v58  ;;  %v2959_v40 = vsel %vm16494_vm4, %v2347_v14, %v2958_v48 }
 0x194   : > { %v16777_v32 = vpop.f32.mrb[34].mxu1  ;;  %v16781_v3 = vpop.f32.mrb[35].mxu0  ;;  %2960 = vst [vmem:[#allocation2 + $0x8c] sm:$0x1] %v2959_v40  ;;  %v1942_v14 = vmax.f32 %v1846_v0, 0.0  ;;  %v21056_v0 = vrot.slane %v16758_v46, 4 }
 0x195   : > { %21048 = vst [vmem:[#allocation17_spill] sm:$0xff] %v16781_v3  ;;  %v16783_v34 = vpop.f32.mrb[35].mxu1  ;;  %v2432_v24 = vshrl.u32 %v14054_v38, 16  ;;  %v2435_v29 = vshll.u32 %v14054_v38, 16  ;;  %v1948_v3 = vmax.f32 %v1852_v37, 0.0 }
 0x196   : > { %21049 = vst [vmem:[#allocation18_spill] sm:$0xff] %v16783_v34  ;;  %v14039_v34 = vpack.c.bf16 %v1933_v54, %v1933_v54  ;;  %v14056_v54 = vpack.c.bf16 %v1959_v36, %v1958_v43 }
 0x197   : > { %v2434_v52 = vrot.slane %v2432_v24, 7  ;;  %v14049_v38 = vpack.c.bf16 %v1948_v3, %v1948_v3 }
 0x198   : > { %v2305_v2 = vshrl.u32 %v14039_v34, 16  ;;  %v2308_v37 = vshll.u32 %v14039_v34, 16  ;;  %v2451_v36 = vshrl.u32 %v14056_v54, 16 }
 0x199   : > { %v16799_v18 = vpop.f32.mrb[36].mxu0  ;;  %v2437_v58 = vor.u32 %v2435_v29, %v2434_v52  ;;  %v2448_v26 = vrot.slane %v2434_v52, 4  ;;  %v2390_v34 = vshrl.u32 %v14049_v38, 16  ;;  %v2393_v43 = vshll.u32 %v14049_v38, 16  ;;  %v2944_v29 = vld [vmem:[#allocation2 + $0x68] sm:$0x1] }
 0x19a   : > { %v16801_v12 = vpop.f32.mrb[36].mxu1  ;;  %v16804_v1 = vpop.f32.mrb[37].mxu0  ;;  %v2307_v3 = vrot.slane %v2305_v2, 7  ;;  %v16830_v2 = vrot.slane %v2451_v36, 7  ;;  %v2978_v38 = vld [vmem:[#allocation2 + $0xbc] sm:$0xf] }
 0x19b   : > { %21050 = vst [vmem:[#allocation19_spill] sm:$0xff] %v16801_v12  ;;  %21051 = vst [vmem:[#allocation20_spill] sm:$0xff] %v16804_v1  ;;  %v16806_v57 = vpop.f32.mrb[37].mxu1  ;;  %v16808_v45 = vpop.f32.mrb[38].mxu0  ;;  %v21053_v12 = vrot.slane %v16738_v47, 4  ;;  %v21055_v47 = vrot.slane %v16740_v55, 4  ;;  %v2998_v48 = vsel %vm16510_vm3, %v2448_v26, %v2997_v25  ;;  %v1865_v55 = vadd.f32 %v16443_v15, %v1752_v20 }
 0x19c   : > { %21052 = vst [vmem:[#allocation21_spill] sm:$0xff] %v16806_v57  ;;  %v16810_v39 = vpop.f32.mrb[38].mxu1  ;;  %v16818_v57 = vpop.f32.mrb[39].mxu0  ;;  %2999 = vst [vmem:[#allocation2 + $0xf0] sm:$0x11] %v2998_v48  ;;  %v2310_v52 = vor.u32 %v2308_v37, %v2307_v3  ;;  %v16828_v40 = vrot.slane %v2390_v34, 7  ;;  %v1753_v25 = vmul.f32 %v16441_v56, %v16650_v31 }
 0x19d   : > { %v2345_v24 = vsel %vm16122_vm8, %v21053_v12, %v2344_v17  ;;  %v16820_v1 = vpop.f32.mrb[39].mxu1  ;;  %v2438_v12 = vsel %vm16122_vm8, %v21055_v47, %v2437_v58  ;;  %v2454_v17 = vshll.u32 %v14056_v54, 16  ;;  %v1742_v58 = vmul.f32 %v16648_v11, %v16478_v50 }
 0x19e   : > { %21054 = vst [vmem:[#allocation22_spill] sm:$0xff] %v16820_v1  ;;  %2954 = vst [vmem:[#allocation2 + $0x80] sm:$0xf] %v2345_v24  ;;  %v2313_v24 = vrot.slane %v2307_v3, 4  ;;  %v14045_v1 = vpack.c.bf16 %v1942_v14, %v1942_v14  ;;  %v2311_v37 = vsel %vm16122_vm8, %v21056_v0, %v2310_v52  ;;  %v2395_v26 = vor.u32 %v2393_v43, %v16828_v40 }
 0x19f   : > { %2995 = vst [vmem:[#allocation2 + $0xe4] sm:$0xff] %v2438_v12  ;;  %2934 = vst [vmem:[#allocation2 + $0x5c] sm:$0xf] %v2311_v37  ;;  %v2456_v11 = vor.u32 %v2454_v17, %v16830_v2  ;;  %v1961_v48 = vmax.f32 %v1865_v55, 0.0  ;;  %v1866_v14 = vadd.f32 %v16445_v9, %v1753_v25  ;;  %v16863_v17 = vld [vmem:[#allocation2] sm:$0xff]  ;;  %v1755_v55 = vmul.f32 %v16439_v6, %v16660_v49 }
 0x1a0   : > { %v2945_v54 = vsel %vm16494_vm4, %v2313_v24, %v2944_v29  ;;  %v2356_v46 = vshrl.u32 %v14045_v1, 16  ;;  %v2359_v36 = vshll.u32 %v14045_v1, 16  ;;  %v2979_v43 = vsel %vm16466_vm14, %v2395_v26, %v2978_v38  ;;  %v2964_v37 = vld [vmem:[#allocation2 + $0x98] sm:$0xf] }
 0x1a1   : > { %v16845_v34 = vpop.f32.mrb[40].mxu0  ;;  %2946 = vst [vmem:[#allocation2 + $0x68] sm:$0x1] %v2945_v54  ;;  %v1855_v29 = vadd.f32 %v16480_v35, %v1742_v58  ;;  %2980 = vst [vmem:[#allocation2 + $0xbc] sm:$0xf] %v2979_v43  ;;  %v3004_v1 = vsel %vm16486_vm2, %v2456_v11, %v16863_v17  ;;  %v1736_v38 = vmul.f32 %v16478_v50, %v16652_v10  ;;  %v1962_v26 = vmax.f32 %v1866_v14, 0.0 }
 0x1a2   : > { %v16847_v20 = vpop.f32.mrb[40].mxu1  ;;  %v16851_v47 = vpop.f32.mrb[41].mxu0  ;;  %v16868_v0 = vrot.slane %v2356_v46, 7  ;;  %3005 = vst [vmem:[#allocation2 + $0xfc] sm:$0xff] %v3004_v1  ;;  %v1751_v43 = vmul.f32 %v16662_v16, %v16478_v50  ;;  %v1756_v11 = vmul.f32 %v16441_v56, %v16672_v62  ;;  %v1868_v31 = vadd.f32 %v16443_v15, %v1755_v55 }
 0x1a3   : > { %21057 = vst [vmem:[#allocation23_spill] sm:$0xff] %v16847_v20  ;;  %21058 = vst [vmem:[#allocation24_spill] sm:$0xff] %v16851_v47  ;;  %v16853_v12 = vpop.f32.mrb[41].mxu1  ;;  %v16859_v52 = vpop.f32.mrb[42].mxu0  ;;  %v1951_v54 = vmax.f32 %v1855_v29, 0.0  ;;  %v1849_v49 = vadd.f32 %v16480_v35, %v1736_v38  ;;  %v1745_v62 = vmul.f32 %v16478_v50, %v16674_v51 }
 0x1a4   : > { %21059 = vst [vmem:[#allocation25_spill] sm:$0xff] %v16853_v12  ;;  %21060 = vst [vmem:[#allocation26_spill] sm:$0xff] %v16859_v52  ;;  %v16861_v24 = vpop.f32.mrb[42].mxu1  ;;  %v16874_v58 = vpop.f32.mrb[43].mxu0  ;;  %v2361_v46 = vor.u32 %v2359_v36, %v16868_v0  ;;  %v1864_v1 = vadd.f32 %v16480_v35, %v1751_v43  ;;  %v1869_v29 = vadd.f32 %v16445_v9, %v1756_v11  ;;  %v2986_v51 = vld [vmem:[#allocation2 + $0xd4] sm:$0x1] }
 0x1a5   : > { %21061 = vst [vmem:[#allocation27_spill] sm:$0xff] %v16861_v24  ;;  %21062 = vst [vmem:[#allocation28_spill] sm:$0xff] %v16874_v58  ;;  %v16876_v25 = vpop.f32.mrb[43].mxu1  ;;  %v14051_v3 = vpack.c.bf16 %v1951_v54, %v1951_v54  ;;  %v1945_v14 = vmax.f32 %v1849_v49, 0.0  ;;  %v1964_v58 = vmax.f32 %v1868_v31, 0.0  ;;  %v1858_v11 = vadd.f32 %v16480_v35, %v1745_v62 }
 0x1a6   : > { %21063 = vst [vmem:[#allocation29_spill] sm:$0xff] %v16876_v25  ;;  %v14058_v25 = vpack.c.bf16 %v1962_v26, %v1961_v48  ;;  %v2965_v16 = vsel %vm16466_vm14, %v2361_v46, %v2964_v37  ;;  %v1960_v26 = vmax.f32 %v1864_v1, 0.0  ;;  %v1965_v43 = vmax.f32 %v1869_v29, 0.0  ;;  %v3011_v1 = vld [vmem:[#allocation2 + $0x114] sm:$0x11] }
 0x1a7   : > { %2966 = vst [vmem:[#allocation2 + $0x98] sm:$0xf] %v2965_v16  ;;  %v2407_v36 = vshrl.u32 %v14051_v3, 16  ;;  %v2410_v10 = vshll.u32 %v14051_v3, 16  ;;  %v14047_v54 = vpack.c.bf16 %v1945_v14, %v1945_v14  ;;  %v1758_v3 = vmul.f32 %v16439_v6, %v16682_v21 }
 0x1a8   : > { %v2466_v38 = vshrl.u32 %v14058_v25, 16  ;;  %v2469_v24 = vshll.u32 %v14058_v25, 16  ;;  %v1754_v25 = vmul.f32 %v16684_v7, %v16478_v50 }
 0x1a9   : > { %v16892_v55 = vpop.f32.mrb[44].mxu0  ;;  %v2409_v46 = vrot.slane %v2407_v36, 7  ;;  %v2373_v29 = vshrl.u32 %v14047_v54, 16  ;;  %v2376_v62 = vshll.u32 %v14047_v54, 16  ;;  %v21071_v54 = vrot.slane %v16830_v2, 4 }
 0x1aa   : > { %21064 = vst [vmem:[#allocation30_spill] sm:$0xff] %v16892_v55  ;;  %v16894_v48 = vpop.f32.mrb[44].mxu1  ;;  %v16897_v37 = vpop.f32.mrb[45].mxu0  ;;  %v2468_v49 = vrot.slane %v2466_v38, 7  ;;  %v1954_v2 = vmax.f32 %v1858_v11, 0.0 }
 0x1ab   : > { %21065 = vst [vmem:[#allocation31_spill] sm:$0xff] %v16894_v48  ;;  %21066 = vst [vmem:[#allocation32_spill] sm:$0xff] %v16897_v37  ;;  %v16899_v31 = vpop.f32.mrb[45].mxu1  ;;  %v16905_v16 = vpop.f32.mrb[46].mxu0  ;;  %v14057_v48 = vpack.c.bf16 %v1960_v26, %v1960_v26  ;;  %v14060_v37 = vpack.c.bf16 %v1965_v43, %v1964_v58  ;;  %v2412_v38 = vor.u32 %v2410_v10, %v2409_v46  ;;  %v2375_v12 = vrot.slane %v2373_v29, 7 }
 0x1ac   : > { %21067 = vst [vmem:[#allocation33_spill] sm:$0xff] %v16899_v31  ;;  %21068 = vst [vmem:[#allocation34_spill] sm:$0xff] %v16905_v16  ;;  %v16907_v14 = vpop.f32.mrb[46].mxu1  ;;  %v16909_v55 = vpop.f32.mrb[47].mxu0  ;;  %v2415_v31 = vrot.slane %v2409_v46, 4  ;;  %v2471_v52 = vor.u32 %v2469_v24, %v2468_v49  ;;  %v2482_v21 = vrot.slane %v2468_v49, 4  ;;  %v1871_v49 = vadd.f32 %v16443_v15, %v1758_v3 }
 0x1ad   : > { %21069 = vst [vmem:[#allocation35_spill] sm:$0xff] %v16907_v14  ;;  %v16911_v36 = vpop.f32.mrb[47].mxu1  ;;  %v2458_v47 = vshrl.u32 %v14057_v48, 16  ;;  %v2461_v7 = vshll.u32 %v14057_v48, 16  ;;  %v2485_v20 = vshrl.u32 %v14060_v37, 16  ;;  %v21070_v16 = vrot.slane %v16828_v40, 4 }
 0x1ae   : > { %v2987_v58 = vsel %vm16494_vm4, %v2415_v31, %v2986_v51  ;;  %v2472_v10 = vsel %vm16122_vm8, %v21071_v54, %v2471_v52  ;;  %v3012_v24 = vsel %vm16510_vm3, %v2482_v21, %v3011_v1  ;;  %v2972_v26 = vld [vmem:[#allocation2 + $0xb0] sm:$0x1]  ;;  %v2378_v40 = vor.u32 %v2376_v62, %v2375_v12  ;;  %v3006_v31 = vld [vmem:[#allocation2 + $0x104] sm:$0xf] }
 0x1af   : > { %v2413_v14 = vsel %vm16122_vm8, %v21070_v16, %v2412_v38  ;;  %2988 = vst [vmem:[#allocation2 + $0xd4] sm:$0x1] %v2987_v58  ;;  %3009 = vst [vmem:[#allocation2 + $0x108] sm:$0xff] %v2472_v10  ;;  %v2381_v48 = vrot.slane %v2375_v12, 4  ;;  %v16925_v43 = vrot.slane %v2458_v47, 7  ;;  %v16927_v46 = vrot.slane %v2485_v20, 7 }
 0x1b0   : > { %2982 = vst [vmem:[#allocation2 + $0xc8] sm:$0xf] %v2413_v14  ;;  %3013 = vst [vmem:[#allocation2 + $0x114] sm:$0x11] %v3012_v24  ;;  %v2488_v51 = vshll.u32 %v14060_v37, 16  ;;  %v1867_v52 = vadd.f32 %v16480_v35, %v1754_v25  ;;  %v21072_v16 = vrot.slane %v16868_v0, 4  ;;  %v14053_v37 = vpack.c.bf16 %v1954_v2, %v1954_v2 }
 0x1b1   : > { %v2973_v1 = vsel %vm16494_vm4, %v2381_v48, %v2972_v26  ;;  %v2463_v47 = vor.u32 %v2461_v7, %v16925_v43  ;;  %v2473_v20 = vrot.slane %v16925_v43, 4  ;;  %v2498_v11 = vrot.slane %v16927_v46, 4  ;;  %v2992_v43 = vld [vmem:[#allocation2 + $0xe0] sm:$0xf] }
 0x1b2   : > { %v2379_v14 = vsel %vm16122_vm8, %v21072_v16, %v2378_v40  ;;  %2974 = vst [vmem:[#allocation2 + $0xb0] sm:$0x1] %v2973_v1  ;;  %v2490_v12 = vor.u32 %v2488_v51, %v16927_v46  ;;  %v1967_v3 = vmax.f32 %v1871_v49, 0.0  ;;  %v1963_v25 = vmax.f32 %v1867_v52, 0.0 }
 0x1b3   : > { %2968 = vst [vmem:[#allocation2 + $0xa4] sm:$0xf] %v2379_v14  ;;  %v3007_v0 = vsel %vm16466_vm14, %v2463_v47, %v3006_v31  ;;  %v1759_v29 = vmul.f32 %v16441_v56, %v16694_v19  ;;  %v1748_v62 = vmul.f32 %v16478_v50, %v16696_v8  ;;  %v2424_v21 = vshrl.u32 %v14053_v37, 16 }
 0x1b4   : > { %3008 = vst [vmem:[#allocation2 + $0x104] sm:$0xf] %v3007_v0  ;;  %v3018_v38 = vsel %vm16486_vm2, %v2490_v12, %v16863_v17  ;;  %v2427_v7 = vshll.u32 %v14053_v37, 16  ;;  %v1761_v58 = vmul.f32 %v16439_v6, %v16716_v42  ;;  %v14059_v54 = vpack.c.bf16 %v1963_v25, %v1963_v25  ;;  %v3014_v37 = vld [vmem:[#allocation2 + $0x11c] sm:$0x1] }
 0x1b5   : > { %3019 = vst [vmem:[#allocation2 + $0x120] sm:$0xff] %v3018_v38  ;;  %v1872_v10 = vadd.f32 %v16445_v9, %v1759_v29  ;;  %v1861_v24 = vadd.f32 %v16480_v35, %v1748_v62  ;;  %v1763_v19 = vmul.f32 %v16718_v61, %v16478_v50  ;;  %v2426_v8 = vrot.slane %v2424_v21, 7 }
 0x1b6   : > { %v1874_v26 = vadd.f32 %v16443_v15, %v1761_v58  ;;  %v1762_v40 = vmul.f32 %v16441_v56, %v16720_v33  ;;  %v1757_v48 = vmul.f32 %v16478_v50, %v16722_v22  ;;  %v2475_v42 = vshrl.u32 %v14059_v54, 16 }
 0x1b7   : > { %v2478_v31 = vshll.u32 %v14059_v54, 16  ;;  %v1968_v51 = vmax.f32 %v1872_v10, 0.0  ;;  %v1957_v2 = vmax.f32 %v1861_v24, 0.0  ;;  %v2429_v49 = vor.u32 %v2427_v7, %v2426_v8 }
 0x1b8   : > { %v2439_v52 = vrot.slane %v2426_v8, 4  ;;  %v1970_v16 = vmax.f32 %v1874_v26, 0.0  ;;  %v1876_v14 = vadd.f32 %v16480_v35, %v1763_v19  ;;  %v2477_v61 = vrot.slane %v2475_v42, 7 }
 0x1b9   : > { %v14062_v1 = vpack.c.bf16 %v1968_v51, %v1967_v3  ;;  %v14055_v47 = vpack.c.bf16 %v1957_v2, %v1957_v2  ;;  %v1875_v12 = vadd.f32 %v16445_v9, %v1762_v40  ;;  %v2993_v33 = vsel %vm16466_vm14, %v2429_v49, %v2992_v43  ;;  %v3000_v51 = vld [vmem:[#allocation2 + $0xf8] sm:$0x1] }
 0x1ba   : > { %v1972_v22 = vmax.f32 %v1876_v14, 0.0  ;;  %v1870_v0 = vadd.f32 %v16480_v35, %v1757_v48  ;;  %v1764_v25 = vmul.f32 %v16439_v6, %v16727_v5  ;;  %2994 = vst [vmem:[#allocation2 + $0xe0] sm:$0xf] %v2993_v33  ;;  %v2480_v29 = vor.u32 %v2478_v31, %v2477_v61  ;;  %v3025_v5 = vld [vmem:[#allocation2 + $0x138] sm:$0x11] }
 0x1bb   : > { %v2483_v62 = vrot.slane %v2477_v61, 4  ;;  %v2500_v38 = vshrl.u32 %v14062_v1, 16  ;;  %v2503_v21 = vshll.u32 %v14062_v1, 16  ;;  %v2441_v7 = vshrl.u32 %v14055_v47, 16 }
 0x1bc   : > { %v2444_v3 = vshll.u32 %v14055_v47, 16  ;;  %v14065_v58 = vpack.c.bf16 %v1972_v22, %v1972_v22  ;;  %v1971_v54 = vmax.f32 %v1875_v12, 0.0  ;;  %v2481_v10 = vsel %vm16122_vm8, %v2473_v20, %v2480_v29 }
 0x1bd   : > { %v3015_v24 = vsel %vm16494_vm4, %v2483_v62, %v3014_v37  ;;  %v2502_v19 = vrot.slane %v2500_v38, 7  ;;  %v1966_v8 = vmax.f32 %v1870_v0, 0.0  ;;  %3010 = vst [vmem:[#allocation2 + $0x110] sm:$0xf] %v2481_v10  ;;  %v2443_v26 = vrot.slane %v2441_v7, 7 }
 0x1be   : > { %3016 = vst [vmem:[#allocation2 + $0x11c] sm:$0x1] %v3015_v24  ;;  %v2526_v40 = vshrl.u32 %v14065_v58, 16  ;;  %v2529_v48 = vshll.u32 %v14065_v58, 16  ;;  %v14064_v43 = vpack.c.bf16 %v1971_v54, %v1970_v16  ;;  %v1877_v49 = vadd.f32 %v16443_v15, %v1764_v25  ;;  %v3034_v16 = vld [vmem:[#allocation2 + $0x14c] sm:$0xf] }
 0x1bf   : > { %v2505_v42 = vor.u32 %v2503_v21, %v2502_v19  ;;  %v2516_v31 = vrot.slane %v2502_v19, 4  ;;  %v14061_v2 = vpack.c.bf16 %v1966_v8, %v1966_v8  ;;  %v2446_v14 = vor.u32 %v2444_v3, %v2443_v26  ;;  %v3020_v7 = vld [vmem:[#allocation2 + $0x128] sm:$0xf]  ;;  %v21073_v58 = vld [vmem:[#allocation16_spill] sm:$0xff] }
 0x1c0   : > { %v2449_v20 = vrot.slane %v2443_v26, 4  ;;  %v16973_v61 = vrot.slane %v2526_v40, 7  ;;  %v2519_v1 = vshrl.u32 %v14064_v43, 16  ;;  %v2522_v33 = vshll.u32 %v14064_v43, 16 }
 0x1c1   : > { %v2506_v47 = vsel %vm16122_vm8, %v2498_v11, %v2505_v42  ;;  %v3026_v12 = vsel %vm16510_vm3, %v2516_v31, %v3025_v5  ;;  %v2492_v37 = vshrl.u32 %v14061_v2, 16  ;;  %v2447_v22 = vsel %vm16122_vm8, %v2439_v52, %v2446_v14 }
 0x1c2   : > { %3023 = vst [vmem:[#allocation2 + $0x12c] sm:$0xff] %v2506_v47  ;;  %3027 = vst [vmem:[#allocation2 + $0x138] sm:$0x11] %v3026_v12  ;;  %v3001_v0 = vsel %vm16494_vm4, %v2449_v20, %v3000_v51  ;;  %v2531_v25 = vor.u32 %v2529_v48, %v16973_v61  ;;  %v2541_v46 = vrot.slane %v16973_v61, 4  ;;  %v16987_v11 = vrot.slane %v2519_v1, 7 }
 0x1c3   : > { %2996 = vst [vmem:[#allocation2 + $0xec] sm:$0xf] %v2447_v22  ;;  %3002 = vst [vmem:[#allocation2 + $0xf8] sm:$0x1] %v3001_v0  ;;  %v16989_v29 = vrot.slane %v2492_v37, 7  ;;  %v2495_v62 = vshll.u32 %v14061_v2, 16  ;;  %v1766_v52 = vmul.f32 %v16729_v59, %v16478_v50  ;;  %v1765_v3 = vmul.f32 %v16441_v56, %v16734_v60 }
 0x1c4   : > { %v1973_v38 = vmax.f32 %v1877_v49, 0.0  ;;  %v3035_v21 = vsel %vm16466_vm14, %v2531_v25, %v3034_v16  ;;  %v1760_v54 = vmul.f32 %v16478_v50, %v21073_v58  ;;  %v2524_v10 = vor.u32 %v2522_v33, %v16987_v11 }
 0x1c5   : > { %3036 = vst [vmem:[#allocation2 + $0x14c] sm:$0xf] %v3035_v21  ;;  %v2532_v24 = vrot.slane %v16987_v11, 4  ;;  %v2497_v19 = vor.u32 %v2495_v62, %v16989_v29  ;;  %v2507_v8 = vrot.slane %v16989_v29, 4  ;;  %v1879_v5 = vadd.f32 %v16480_v35, %v1766_v52 }
 0x1c6   : > { %v1878_v26 = vadd.f32 %v16445_v9, %v1765_v3  ;;  %v1873_v59 = vadd.f32 %v16480_v35, %v1760_v54  ;;  %v1767_v60 = vmul.f32 %v16439_v6, %v16754_v41  ;;  %v3032_v40 = vsel %vm16486_vm2, %v2524_v10, %v16863_v17  ;;  %v3042_v3 = vld [vmem:[#allocation2 + $0x164] sm:$0x1]  ;;  %v3039_v10 = vld [vmem:[#allocation2 + $0x15c] sm:$0x11] }
 0x1c7   : > { %v3021_v48 = vsel %vm16466_vm14, %v2497_v19, %v3020_v7  ;;  %v1775_v43 = vmul.f32 %v16756_v30, %v16478_v50  ;;  %v1768_v42 = vmul.f32 %v16441_v56, %v16762_v53  ;;  %3033 = vst [vmem:[#allocation2 + $0x144] sm:$0xff] %v3032_v40  ;;  %v1975_v31 = vmax.f32 %v1879_v5, 0.0 }
 0x1c8   : > { %3022 = vst [vmem:[#allocation2 + $0x128] sm:$0xf] %v3021_v48  ;;  %v1974_v51 = vmax.f32 %v1878_v26, 0.0  ;;  %v1969_v2 = vmax.f32 %v1873_v59, 0.0  ;;  %v1880_v41 = vadd.f32 %v16443_v15, %v1767_v60  ;;  %v1769_v20 = vmul.f32 %v16478_v50, %v16764_v28 }
 0x1c9   : > { %v1888_v49 = vadd.f32 %v16480_v35, %v1775_v43  ;;  %v1881_v14 = vadd.f32 %v16445_v9, %v1768_v42  ;;  %v1770_v30 = vmul.f32 %v16439_v6, %v16775_v4  ;;  %v14067_v1 = vpack.c.bf16 %v1975_v31, %v1975_v31  ;;  %v3028_v42 = vld [vmem:[#allocation2 + $0x140] sm:$0x1] }
 0x1ca   : > { %v14066_v47 = vpack.c.bf16 %v1974_v51, %v1973_v38  ;;  %v14063_v53 = vpack.c.bf16 %v1969_v2, %v1969_v2  ;;  %v1976_v12 = vmax.f32 %v1880_v41, 0.0  ;;  %v1882_v37 = vadd.f32 %v16480_v35, %v1769_v20 }
 0x1cb   : > { %v1984_v16 = vmax.f32 %v1888_v49, 0.0  ;;  %v1977_v33 = vmax.f32 %v1881_v14, 0.0  ;;  %v17026_v22 = vadd.f32 %v16443_v15, %v1770_v30  ;;  %v2543_v0 = vshrl.u32 %v14067_v1, 16 }
 0x1cc   : > { %v2546_v25 = vshll.u32 %v14067_v1, 16  ;;  %v2534_v11 = vshrl.u32 %v14066_v47, 16  ;;  %v2537_v62 = vshll.u32 %v14066_v47, 16  ;;  %v2509_v21 = vshrl.u32 %v14063_v53, 16  ;;  %v3062_v1 = vld [vmem:[#allocation2 + $0x194] sm:$0xf] }
 0x1cd   : > { %v2512_v28 = vshll.u32 %v14063_v53, 16  ;;  %v14073_v7 = vpack.c.bf16 %v1984_v16, %v1984_v16  ;;  %v14068_v52 = vpack.c.bf16 %v1977_v33, %v1976_v12  ;;  %v2545_v4 = vrot.slane %v2543_v0, 7 }
 0x1ce   : > { %v2536_v38 = vrot.slane %v2534_v11, 7  ;;  %v1978_v58 = vmax.f32 %v1882_v37, 0.0  ;;  %v1979_v54 = vmax.f32 %v17026_v22, 0.0  ;;  %v2511_v19 = vrot.slane %v2509_v21, 7  ;;  %v21075_v22 = vld [vmem:[#allocation18_spill] sm:$0xff] }
 0x1cf   : > { %v2594_v5 = vshrl.u32 %v14073_v7, 16  ;;  %v2597_v26 = vshll.u32 %v14073_v7, 16  ;;  %v2553_v59 = vshrl.u32 %v14068_v52, 16  ;;  %v2548_v60 = vor.u32 %v2546_v25, %v2545_v4 }
 0x1d0   : > { %v2551_v40 = vrot.slane %v2545_v4, 4  ;;  %v2539_v48 = vor.u32 %v2537_v62, %v2536_v38  ;;  %v2550_v43 = vrot.slane %v2536_v38, 4  ;;  %v2514_v31 = vor.u32 %v2512_v28, %v2511_v19  ;;  %v21076_v4 = vld [vmem:[#allocation19_spill] sm:$0xff] }
 0x1d1   : > { %v2517_v51 = vrot.slane %v2511_v19, 4  ;;  %v17029_v2 = vrot.slane %v2594_v5, 7  ;;  %v17031_v41 = vrot.slane %v2553_v59, 7  ;;  %v2549_v49 = vsel %vm16122_vm8, %v2541_v46, %v2548_v60  ;;  %v3048_v5 = vld [vmem:[#allocation2 + $0x170] sm:$0xf] }
 0x1d2   : > { %v3043_v14 = vsel %vm16494_vm4, %v2551_v40, %v3042_v3  ;;  %v2540_v20 = vsel %vm16122_vm8, %v2532_v24, %v2539_v48  ;;  %v3040_v30 = vsel %vm16510_vm3, %v2550_v43, %v3039_v10  ;;  %3038 = vst [vmem:[#allocation2 + $0x158] sm:$0xf] %v2549_v49  ;;  %v2515_v61 = vsel %vm16122_vm8, %v2507_v8, %v2514_v31  ;;  %v21074_v8 = vld [vmem:[#allocation17_spill] sm:$0xff]  ;;  %v21077_v10 = vld [vmem:[#allocation20_spill] sm:$0xff] }
 0x1d3   : > { %3044 = vst [vmem:[#allocation2 + $0x164] sm:$0x1] %v3043_v14  ;;  %3037 = vst [vmem:[#allocation2 + $0x150] sm:$0xff] %v2540_v20  ;;  %v3029_v46 = vsel %vm16494_vm4, %v2517_v51, %v3028_v42  ;;  %v2599_v47 = vor.u32 %v2597_v26, %v17029_v2  ;;  %v2609_v24 = vrot.slane %v17029_v2, 4  ;;  %v2556_v53 = vshll.u32 %v14068_v52, 16  ;;  %v21078_v20 = vld [vmem:[#allocation21_spill] sm:$0xff] }
 0x1d4   : > { %3041 = vst [vmem:[#allocation2 + $0x15c] sm:$0x11] %v3040_v30  ;;  %3024 = vst [vmem:[#allocation2 + $0x134] sm:$0xf] %v2515_v61  ;;  %v2566_v12 = vrot.slane %v17031_v41, 4  ;;  %v14069_v16 = vpack.c.bf16 %v1978_v58, %v1978_v58  ;;  %v1778_v33 = vmul.f32 %v16777_v32, %v16478_v50  ;;  %v1771_v37 = vmul.f32 %v16441_v56, %v21074_v8 }
 0x1d5   : > { %3030 = vst [vmem:[#allocation2 + $0x140] sm:$0x1] %v3029_v46  ;;  %v3063_v29 = vsel %vm16466_vm14, %v2599_v47, %v3062_v1  ;;  %v1772_v0 = vmul.f32 %v16478_v50, %v21075_v22  ;;  %v1773_v25 = vmul.f32 %v16439_v6, %v16799_v18  ;;  %v2558_v11 = vor.u32 %v2556_v53, %v17031_v41 }
 0x1d6   : > { %3064 = vst [vmem:[#allocation2 + $0x194] sm:$0xf] %v3063_v29  ;;  %v2560_v62 = vshrl.u32 %v14069_v16, 16  ;;  %v2563_v21 = vshll.u32 %v14069_v16, 16  ;;  %v1891_v28 = vadd.f32 %v16480_v35, %v1778_v33  ;;  %v1884_v32 = vadd.f32 %v16445_v9, %v1771_v37 }
 0x1d7   : > { %v1885_v7 = vadd.f32 %v16480_v35, %v1772_v0  ;;  %v1886_v52 = vadd.f32 %v16443_v15, %v1773_v25  ;;  %v1787_v3 = vmul.f32 %v21076_v4, %v16478_v50  ;;  %v3046_v18 = vsel %vm16486_vm2, %v2558_v11, %v16863_v17  ;;  %v3070_v0 = vld [vmem:[#allocation2 + $0x1ac] sm:$0x1]  ;;  %v3053_v11 = vld [vmem:[#allocation2 + $0x180] sm:$0x11] }
 0x1d8   : > { %v2562_v38 = vrot.slane %v2560_v62, 7  ;;  %v1987_v58 = vmax.f32 %v1891_v28, 0.0  ;;  %v1774_v19 = vmul.f32 %v16441_v56, %v21077_v10  ;;  %3047 = vst [vmem:[#allocation2 + $0x168] sm:$0xff] %v3046_v18  ;;  %v1980_v26 = vmax.f32 %v1884_v32, 0.0 }
 0x1d9   : > { %v1981_v59 = vmax.f32 %v1885_v7, 0.0  ;;  %v1982_v60 = vmax.f32 %v1886_v52, 0.0  ;;  %v1900_v40 = vadd.f32 %v16480_v35, %v1787_v3  ;;  %v1781_v30 = vmul.f32 %v16478_v50, %v21078_v20  ;;  %v3056_v52 = vld [vmem:[#allocation2 + $0x188] sm:$0x1] }
 0x1da   : > { %v2565_v48 = vor.u32 %v2563_v21, %v2562_v38  ;;  %v2575_v43 = vrot.slane %v2562_v38, 4  ;;  %v14075_v42 = vpack.c.bf16 %v1987_v58, %v1987_v58  ;;  %v1887_v31 = vadd.f32 %v16445_v9, %v1774_v19 }
 0x1db   : > { %v14070_v51 = vpack.c.bf16 %v1980_v26, %v1979_v54  ;;  %v14071_v49 = vpack.c.bf16 %v1981_v59, %v1981_v59  ;;  %v1996_v14 = vmax.f32 %v1900_v40, 0.0  ;;  %v1894_v54 = vadd.f32 %v16480_v35, %v1781_v30  ;;  %v21079_v30 = vld [vmem:[#allocation22_spill] sm:$0xff] }
 0x1dc   : > { %v3049_v1 = vsel %vm16466_vm14, %v2565_v48, %v3048_v5  ;;  %v2611_v61 = vshrl.u32 %v14075_v42, 16  ;;  %v2614_v46 = vshll.u32 %v14075_v42, 16  ;;  %v1983_v47 = vmax.f32 %v1887_v31, 0.0 }
 0x1dd   : > { %3050 = vst [vmem:[#allocation2 + $0x170] sm:$0xf] %v3049_v1  ;;  %v2568_v53 = vshrl.u32 %v14070_v51, 16  ;;  %v2571_v16 = vshll.u32 %v14070_v51, 16  ;;  %v2577_v33 = vshrl.u32 %v14071_v49, 16  ;;  %v2580_v29 = vshll.u32 %v14071_v49, 16 }
 0x1de   : > { %v2613_v8 = vrot.slane %v2611_v61, 7  ;;  %v14081_v37 = vpack.c.bf16 %v1996_v14, %v1996_v14  ;;  %v14072_v22 = vpack.c.bf16 %v1983_v47, %v1982_v60  ;;  %v1776_v21 = vmul.f32 %v16439_v6, %v16808_v45  ;;  %v3090_v60 = vld [vmem:[#allocation2 + $0x1dc] sm:$0xf] }
 0x1df   : > { %v2570_v25 = vrot.slane %v2568_v53, 7  ;;  %v2579_v62 = vrot.slane %v2577_v33, 7  ;;  %v1790_v28 = vmul.f32 %v16810_v39, %v16478_v50  ;;  %v1990_v42 = vmax.f32 %v1894_v54, 0.0 }
 0x1e0   : > { %v2616_v32 = vor.u32 %v2614_v46, %v2613_v8  ;;  %v2619_v7 = vrot.slane %v2613_v8, 4  ;;  %v2662_v4 = vshrl.u32 %v14081_v37, 16  ;;  %v2665_v3 = vshll.u32 %v14081_v37, 16 }
 0x1e1   : > { %v2573_v18 = vor.u32 %v2571_v16, %v2570_v25  ;;  %v2584_v38 = vrot.slane %v2570_v25, 4  ;;  %v2582_v58 = vor.u32 %v2580_v29, %v2579_v62  ;;  %v2585_v10 = vrot.slane %v2579_v62, 4  ;;  %v21080_v29 = vld [vmem:[#allocation23_spill] sm:$0xff] }
 0x1e2   : > { %v2617_v19 = vsel %vm16122_vm8, %v2609_v24, %v2616_v32  ;;  %v3071_v45 = vsel %vm16494_vm4, %v2619_v7, %v3070_v0  ;;  %v17091_v5 = vrot.slane %v2662_v4, 7  ;;  %v2587_v39 = vshrl.u32 %v14072_v22, 16  ;;  %v3076_v4 = vld [vmem:[#allocation2 + $0x1b8] sm:$0xf] }
 0x1e3   : > { %3066 = vst [vmem:[#allocation2 + $0x1a0] sm:$0xf] %v2617_v19  ;;  %3072 = vst [vmem:[#allocation2 + $0x1ac] sm:$0x1] %v3071_v45  ;;  %v2574_v26 = vsel %vm16122_vm8, %v2566_v12, %v2573_v18  ;;  %v3054_v59 = vsel %vm16510_vm3, %v2584_v38, %v3053_v11  ;;  %v2583_v2 = vsel %vm16122_vm8, %v2575_v43, %v2582_v58  ;;  %v2590_v12 = vshll.u32 %v14072_v22, 16 }
 0x1e4   : > { %v3057_v24 = vsel %vm16494_vm4, %v2585_v10, %v3056_v52  ;;  %3051 = vst [vmem:[#allocation2 + $0x174] sm:$0xff] %v2574_v26  ;;  %3055 = vst [vmem:[#allocation2 + $0x180] sm:$0x11] %v3054_v59  ;;  %v2667_v40 = vor.u32 %v2665_v3, %v17091_v5  ;;  %v2677_v41 = vrot.slane %v17091_v5, 4  ;;  %v17105_v48 = vrot.slane %v2587_v39, 7 }
 0x1e5   : > { %3052 = vst [vmem:[#allocation2 + $0x17c] sm:$0xf] %v2583_v2  ;;  %3058 = vst [vmem:[#allocation2 + $0x188] sm:$0x1] %v3057_v24  ;;  %v1889_v31 = vadd.f32 %v16443_v15, %v1776_v21  ;;  %v1903_v43 = vadd.f32 %v16480_v35, %v1790_v28  ;;  %v1777_v51 = vmul.f32 %v16441_v56, %v16818_v57  ;;  %v21081_v21 = vld [vmem:[#allocation24_spill] sm:$0xff] }
 0x1e6   : > { %v3091_v49 = vsel %vm16466_vm14, %v2667_v40, %v3090_v60  ;;  %v2592_v14 = vor.u32 %v2590_v12, %v17105_v48  ;;  %v2600_v20 = vrot.slane %v17105_v48, 4  ;;  %v1784_v1 = vmul.f32 %v16478_v50, %v21079_v30  ;;  %v3098_v39 = vld [vmem:[#allocation2 + $0x1f4] sm:$0x1] }
 0x1e7   : > { %3092 = vst [vmem:[#allocation2 + $0x1dc] sm:$0xf] %v3091_v49  ;;  %v14077_v61 = vpack.c.bf16 %v1990_v42, %v1990_v42  ;;  %v1985_v46 = vmax.f32 %v1889_v31, 0.0  ;;  %v1999_v47 = vmax.f32 %v1903_v43, 0.0  ;;  %v1890_v53 = vadd.f32 %v16445_v9, %v1777_v51  ;;  %v3067_v42 = vld [vmem:[#allocation2 + $0x1a4] sm:$0x11] }
 0x1e8   : > { %v3060_v57 = vsel %vm16486_vm2, %v2592_v14, %v16863_v17  ;;  %v1897_v16 = vadd.f32 %v16480_v35, %v1784_v1  ;;  %v1779_v33 = vmul.f32 %v16439_v6, %v16845_v34  ;;  %v1799_v8 = vmul.f32 %v21080_v29, %v16478_v50 }
 0x1e9   : > { %3061 = vst [vmem:[#allocation2 + $0x18c] sm:$0xff] %v3060_v57  ;;  %v2628_v37 = vshrl.u32 %v14077_v61, 16  ;;  %v2631_v22 = vshll.u32 %v14077_v61, 16  ;;  %v14083_v54 = vpack.c.bf16 %v1999_v47, %v1999_v47  ;;  %v1986_v0 = vmax.f32 %v1890_v53, 0.0 }
 0x1ea   : > { %v1993_v25 = vmax.f32 %v1897_v16, 0.0  ;;  %v1892_v11 = vadd.f32 %v16443_v15, %v1779_v33  ;;  %v1912_v62 = vadd.f32 %v16480_v35, %v1799_v8  ;;  %v1780_v28 = vmul.f32 %v16441_v56, %v21081_v21  ;;  %v21082_v8 = vld [vmem:[#allocation25_spill] sm:$0xff] }
 0x1eb   : > { %v2630_v32 = vrot.slane %v2628_v37, 7  ;;  %v2679_v7 = vshrl.u32 %v14083_v54, 16  ;;  %v2682_v52 = vshll.u32 %v14083_v54, 16  ;;  %v14074_v34 = vpack.c.bf16 %v1986_v0, %v1985_v46  ;;  %v3084_v46 = vld [vmem:[#allocation2 + $0x1d0] sm:$0x1] }
 0x1ec   : > { %v14079_v3 = vpack.c.bf16 %v1993_v25, %v1993_v25  ;;  %v1988_v18 = vmax.f32 %v1892_v11, 0.0  ;;  %v2008_v38 = vmax.f32 %v1912_v62, 0.0  ;;  %v1893_v58 = vadd.f32 %v16445_v9, %v1780_v28 }
 0x1ed   : > { %v2633_v10 = vor.u32 %v2631_v22, %v2630_v32  ;;  %v2643_v19 = vrot.slane %v2630_v32, 4  ;;  %v2681_v45 = vrot.slane %v2679_v7, 7  ;;  %v2602_v5 = vshrl.u32 %v14074_v34, 16  ;;  %v21083_v22 = vld [vmem:[#allocation26_spill] sm:$0xff] }
 0x1ee   : > { %v2605_v26 = vshll.u32 %v14074_v34, 16  ;;  %v2645_v59 = vshrl.u32 %v14079_v3, 16  ;;  %v2648_v2 = vshll.u32 %v14079_v3, 16  ;;  %v14089_v24 = vpack.c.bf16 %v2008_v38, %v2008_v38 }
 0x1ef   : > { %v3077_v60 = vsel %vm16466_vm14, %v2633_v10, %v3076_v4  ;;  %v2684_v40 = vor.u32 %v2682_v52, %v2681_v45  ;;  %v2687_v48 = vrot.slane %v2681_v45, 4  ;;  %v2604_v12 = vrot.slane %v2602_v5, 7  ;;  %v21084_v52 = vld [vmem:[#allocation27_spill] sm:$0xff]  ;;  %v21085_v4 = vld [vmem:[#allocation28_spill] sm:$0xff]  ;;  %v21087_v45 = vld [vmem:[#allocation30_spill] sm:$0xff] }
 0x1f0   : > { %3078 = vst [vmem:[#allocation2 + $0x1b8] sm:$0xf] %v3077_v60  ;;  %v2647_v31 = vrot.slane %v2645_v59, 7  ;;  %v2730_v43 = vshrl.u32 %v14089_v24, 16  ;;  %v2733_v51 = vshll.u32 %v14089_v24, 16  ;;  %v1989_v49 = vmax.f32 %v1893_v58, 0.0 }
 0x1f1   : > { %v2685_v14 = vsel %vm16122_vm8, %v2677_v41, %v2684_v40  ;;  %v3099_v30 = vsel %vm16494_vm4, %v2687_v48, %v3098_v39  ;;  %v2607_v1 = vor.u32 %v2605_v26, %v2604_v12  ;;  %v2618_v61 = vrot.slane %v2604_v12, 4  ;;  %v3118_v41 = vld [vmem:[#allocation2 + $0x224] sm:$0xf] }
 0x1f2   : > { %3094 = vst [vmem:[#allocation2 + $0x1e8] sm:$0xf] %v2685_v14  ;;  %3100 = vst [vmem:[#allocation2 + $0x1f4] sm:$0x1] %v3099_v30  ;;  %v2650_v47 = vor.u32 %v2648_v2, %v2647_v31  ;;  %v2653_v53 = vrot.slane %v2647_v31, 4  ;;  %v17137_v57 = vrot.slane %v2730_v43, 7  ;;  %v14076_v16 = vpack.c.bf16 %v1989_v49, %v1988_v18 }
 0x1f3   : > { %v2608_v33 = vsel %vm16122_vm8, %v2600_v20, %v2607_v1  ;;  %v3068_v29 = vsel %vm16510_vm3, %v2618_v61, %v3067_v42  ;;  %v1793_v37 = vmul.f32 %v16478_v50, %v21082_v8  ;;  %v1782_v54 = vmul.f32 %v16439_v6, %v21083_v22  ;;  %v21086_v18 = vld [vmem:[#allocation29_spill] sm:$0xff]  ;;  %v21088_v2 = vld [vmem:[#allocation31_spill] sm:$0xff] }
 0x1f4   : > { %3065 = vst [vmem:[#allocation2 + $0x198] sm:$0xff] %v2608_v33  ;;  %3069 = vst [vmem:[#allocation2 + $0x1a4] sm:$0x11] %v3068_v29  ;;  %v2651_v0 = vsel %vm16122_vm8, %v2643_v19, %v2650_v47  ;;  %v3085_v25 = vsel %vm16494_vm4, %v2653_v53, %v3084_v46  ;;  %v2735_v20 = vor.u32 %v2733_v51, %v17137_v57  ;;  %v2745_v11 = vrot.slane %v17137_v57, 4  ;;  %v21089_v33 = vld [vmem:[#allocation32_spill] sm:$0xff] }
 0x1f5   : > { %3080 = vst [vmem:[#allocation2 + $0x1c4] sm:$0xf] %v2651_v0  ;;  %3086 = vst [vmem:[#allocation2 + $0x1d0] sm:$0x1] %v3085_v25  ;;  %v2621_v62 = vshrl.u32 %v14076_v16, 16  ;;  %v2624_v21 = vshll.u32 %v14076_v16, 16  ;;  %v1906_v28 = vadd.f32 %v16480_v35, %v1793_v37  ;;  %v1895_v32 = vadd.f32 %v16443_v15, %v1782_v54 }
 0x1f6   : > { %v3119_v7 = vsel %vm16466_vm14, %v2735_v20, %v3118_v41  ;;  %v1802_v34 = vmul.f32 %v21084_v52, %v16478_v50  ;;  %v1783_v3 = vmul.f32 %v16441_v56, %v21085_v4  ;;  %v1796_v38 = vmul.f32 %v16478_v50, %v21086_v18  ;;  %v21090_v41 = vld [vmem:[#allocation33_spill] sm:$0xff]  ;;  %v21091_v37 = vld [vmem:[#allocation34_spill] sm:$0xff]  ;;  %v3126_v18 = vld [vmem:[#allocation2 + $0x23c] sm:$0x1] }
 0x1f7   : > { %3120 = vst [vmem:[#allocation2 + $0x224] sm:$0xf] %v3119_v7  ;;  %v2623_v58 = vrot.slane %v2621_v62, 7  ;;  %v2002_v10 = vmax.f32 %v1906_v28, 0.0  ;;  %v1991_v19 = vmax.f32 %v1895_v32, 0.0  ;;  %v1785_v5 = vmul.f32 %v16439_v6, %v21087_v45 }
 0x1f8   : > { %v1915_v39 = vadd.f32 %v16480_v35, %v1802_v34  ;;  %v1896_v26 = vadd.f32 %v16445_v9, %v1783_v3  ;;  %v1909_v59 = vadd.f32 %v16480_v35, %v1796_v38  ;;  %v1811_v24 = vmul.f32 %v21088_v2, %v16478_v50  ;;  %v3081_v38 = vld [vmem:[#allocation2 + $0x1c8] sm:$0x11] }
 0x1f9   : > { %v2626_v60 = vor.u32 %v2624_v21, %v2623_v58  ;;  %v2634_v40 = vrot.slane %v2623_v58, 4  ;;  %v14085_v48 = vpack.c.bf16 %v2002_v10, %v2002_v10  ;;  %v17171_v12 = vadd.f32 %v16443_v15, %v1785_v5 }
 0x1fa   : > { %v2011_v42 = vmax.f32 %v1915_v39, 0.0  ;;  %v1992_v31 = vmax.f32 %v1896_v26, 0.0  ;;  %v2005_v43 = vmax.f32 %v1909_v59, 0.0  ;;  %v1924_v51 = vadd.f32 %v16480_v35, %v1811_v24  ;;  %v3112_v26 = vld [vmem:[#allocation2 + $0x218] sm:$0x1] }
 0x1fb   : > { %v3074_v49 = vsel %vm16486_vm2, %v2626_v60, %v16863_v17  ;;  %v2696_v14 = vshrl.u32 %v14085_v48, 16  ;;  %v2699_v30 = vshll.u32 %v14085_v48, 16  ;;  %v1994_v1 = vmax.f32 %v17171_v12, 0.0  ;;  %v3104_v17 = vld [vmem:[#allocation2 + $0x200] sm:$0xf] }
 0x1fc   : > { %3075 = vst [vmem:[#allocation2 + $0x1b0] sm:$0xff] %v3074_v49  ;;  %v14091_v61 = vpack.c.bf16 %v2011_v42, %v2011_v42  ;;  %v14078_v46 = vpack.c.bf16 %v1992_v31, %v1991_v19  ;;  %v14087_v47 = vpack.c.bf16 %v2005_v43, %v2005_v43  ;;  %v2020_v53 = vmax.f32 %v1924_v51, 0.0  ;;  %v3146_v51 = vld [vmem:[#allocation2 + $0x26c] sm:$0xf] }
 0x1fd   : > { %v2698_v16 = vrot.slane %v2696_v14, 7  ;;  %v1786_v29 = vmul.f32 %v16441_v56, %v21089_v33  ;;  %v1805_v8 = vmul.f32 %v16478_v50, %v21090_v41  ;;  %v1788_v22 = vmul.f32 %v16439_v6, %v21091_v37 }
 0x1fe   : > { %v2747_v54 = vshrl.u32 %v14091_v61, 16  ;;  %v2750_v0 = vshll.u32 %v14091_v61, 16  ;;  %v2636_v25 = vshrl.u32 %v14078_v46, 16  ;;  %v2639_v20 = vshll.u32 %v14078_v46, 16 }
 0x1ff   : > { %v2701_v62 = vor.u32 %v2699_v30, %v2698_v16  ;;  %v2711_v21 = vrot.slane %v2698_v16, 4  ;;  %v2713_v28 = vshrl.u32 %v14087_v47, 16  ;;  %v2716_v32 = vshll.u32 %v14087_v47, 16 }
 0x200   : > { %v2749_v7 = vrot.slane %v2747_v54, 7  ;;  %v2638_v52 = vrot.slane %v2636_v25, 7  ;;  %v14097_v34 = vpack.c.bf16 %v2020_v53, %v2020_v53  ;;  %v1899_v4 = vadd.f32 %v16445_v9, %v1786_v29 }
 0x201   : > { %v3105_v3 = vsel %vm16466_vm14, %v2701_v62, %v3104_v17  ;;  %v2715_v6 = vrot.slane %v2713_v28, 7  ;;  %v1918_v58 = vadd.f32 %v16480_v35, %v1805_v8  ;;  %v1901_v10 = vadd.f32 %v16443_v15, %v1788_v22  ;;  %v3132_v62 = vld [vmem:[#allocation2 + $0x248] sm:$0xf] }
 0x202   : > { %3106 = vst [vmem:[#allocation2 + $0x200] sm:$0xf] %v3105_v3  ;;  %v2752_v19 = vor.u32 %v2750_v0, %v2749_v7  ;;  %v2755_v45 = vrot.slane %v2749_v7, 4  ;;  %v2641_v5 = vor.u32 %v2639_v20, %v2638_v52  ;;  %v2652_v39 = vrot.slane %v2638_v52, 4 }
 0x203   : > { %v2718_v59 = vor.u32 %v2716_v32, %v2715_v6  ;;  %v2721_v2 = vrot.slane %v2715_v6, 4  ;;  %v2798_v24 = vshrl.u32 %v14097_v34, 16  ;;  %v2801_v60 = vshll.u32 %v14097_v34, 16  ;;  %v15513_v32 = vld [vmem:[#allocation2] sm:$0xff] }
 0x204   : > { %v2753_v48 = vsel %vm16122_vm8, %v2745_v11, %v2752_v19  ;;  %v3127_v12 = vsel %vm16494_vm4, %v2755_v45, %v3126_v18  ;;  %v2642_v15 = vsel %vm16122_vm8, %v2634_v40, %v2641_v5  ;;  %v3082_v42 = vsel %vm16510_vm3, %v2652_v39, %v3081_v38  ;;  %v21092_v40 = vld [vmem:[#allocation35_spill] sm:$0xff]  ;;  %v3154_v38 = vld [vmem:[#allocation2 + $0x284] sm:$0x1] }
 0x205   : > { %3122 = vst [vmem:[#allocation2 + $0x230] sm:$0xf] %v2753_v48  ;;  %3128 = vst [vmem:[#allocation2 + $0x23c] sm:$0x1] %v3127_v12  ;;  %v2719_v31 = vsel %vm16122_vm8, %v2711_v21, %v2718_v59  ;;  %v3113_v57 = vsel %vm16494_vm4, %v2721_v2, %v3112_v26  ;;  %v2800_v11 = vrot.slane %v2798_v24, 7  ;;  %v1995_v43 = vmax.f32 %v1899_v4, 0.0 }
 0x206   : > { %3079 = vst [vmem:[#allocation2 + $0x1bc] sm:$0xff] %v2642_v15  ;;  %3083 = vst [vmem:[#allocation2 + $0x1c8] sm:$0x11] %v3082_v42  ;;  %v2014_v49 = vmax.f32 %v1918_v58, 0.0  ;;  %v1814_v14 = vmul.f32 %v21092_v40, %v16478_v50  ;;  %v1789_v30 = vmul.f32 %v16441_v56, %v16909_v55  ;;  %v1808_v47 = vmul.f32 %v16478_v50, %v16911_v36  ;;  %v3140_v59 = vld [vmem:[#allocation2 + $0x260] sm:$0x1] }
 0x207   : > { %3108 = vst [vmem:[#allocation2 + $0x20c] sm:$0xf] %v2719_v31  ;;  %3114 = vst [vmem:[#allocation2 + $0x218] sm:$0x1] %v3113_v57  ;;  %v2803_v61 = vor.u32 %v2801_v60, %v2800_v11  ;;  %v14080_v46 = vpack.c.bf16 %v1995_v43, %v1994_v1  ;;  %v1997_v16 = vmax.f32 %v1901_v10, 0.0  ;;  %v2813_v34 = vrot.slane %v2800_v11, 4 }
 0x208   : > { %v14093_v53 = vpack.c.bf16 %v2014_v49, %v2014_v49  ;;  %v1927_v33 = vadd.f32 %v16480_v35, %v1814_v14  ;;  %v1902_v29 = vadd.f32 %v16445_v9, %v1789_v30  ;;  %v1921_v37 = vadd.f32 %v16480_v35, %v1808_v47  ;;  %v3095_v10 = vld [vmem:[#allocation2 + $0x1ec] sm:$0x11] }
 0x209   : > { %v3147_v41 = vsel %vm16466_vm14, %v2803_v61, %v3146_v51  ;;  %v2655_v8 = vshrl.u32 %v14080_v46, 16  ;;  %v2658_v17 = vshll.u32 %v14080_v46, 16 }
 0x20a   : > { %3148 = vst [vmem:[#allocation2 + $0x26c] sm:$0xf] %v3147_v41  ;;  %v2764_v22 = vshrl.u32 %v14093_v53, 16  ;;  %v2023_v56 = vmax.f32 %v1927_v33, 0.0  ;;  %v1998_v55 = vmax.f32 %v1902_v29, 0.0  ;;  %v2017_v54 = vmax.f32 %v1921_v37, 0.0 }
 0x20b   : > { %v2657_v1 = vrot.slane %v2655_v8, 7  ;;  %v2767_v36 = vshll.u32 %v14093_v53, 16 }
 0x20c   : > { %v2766_v50 = vrot.slane %v2764_v22, 7  ;;  %v14099_v0 = vpack.c.bf16 %v2023_v56, %v2023_v56  ;;  %v14082_v25 = vpack.c.bf16 %v1998_v55, %v1997_v16  ;;  %v14095_v9 = vpack.c.bf16 %v2017_v54, %v2017_v54 }
 0x20d   : > { %v2660_v20 = vor.u32 %v2658_v17, %v2657_v1  ;;  %v2668_v5 = vrot.slane %v2657_v1, 4 }
 0x20e   : > { %v2769_v21 = vor.u32 %v2767_v36, %v2766_v50  ;;  %v2815_v28 = vshrl.u32 %v14099_v0, 16  ;;  %v2670_v7 = vshrl.u32 %v14082_v25, 16  ;;  %v2781_v52 = vshrl.u32 %v14095_v9, 16 }
 0x20f   : > { %v3088_v35 = vsel %vm16486_vm2, %v2660_v20, %v15513_v32  ;;  %v2818_v18 = vshll.u32 %v14099_v0, 16  ;;  %v2673_v58 = vshll.u32 %v14082_v25, 16  ;;  %v2784_v45 = vshll.u32 %v14095_v9, 16 }
 0x210   : > { %3089 = vst [vmem:[#allocation2 + $0x1d4] sm:$0xff] %v3088_v35  ;;  %v3133_v4 = vsel %vm16466_vm14, %v2769_v21, %v3132_v62  ;;  %v2817_v3 = vrot.slane %v2815_v28, 7  ;;  %v2672_v6 = vrot.slane %v2670_v7, 7  ;;  %v2783_v19 = vrot.slane %v2781_v52, 7 }
 0x211   : > { %3134 = vst [vmem:[#allocation2 + $0x248] sm:$0xf] %v3133_v4  ;;  %v2779_v39 = vrot.slane %v2766_v50, 4 }
 0x212   : > { %v2820_v23 = vor.u32 %v2818_v18, %v2817_v3  ;;  %v2823_v26 = vrot.slane %v2817_v3, 4  ;;  %v2675_v2 = vor.u32 %v2673_v58, %v2672_v6  ;;  %v2686_v24 = vrot.slane %v2672_v6, 4 }
 0x213   : > { %v2786_v60 = vor.u32 %v2784_v45, %v2783_v19  ;;  %v2789_v48 = vrot.slane %v2783_v19, 4 }
 0x214   : > { %v2821_v13 = vsel %vm16122_vm8, %v2813_v34, %v2820_v23  ;;  %v3155_v12 = vsel %vm16494_vm4, %v2823_v26, %v3154_v38  ;;  %v2676_v15 = vsel %vm16122_vm8, %v2668_v5, %v2675_v2  ;;  %v3096_v42 = vsel %vm16510_vm3, %v2686_v24, %v3095_v10 }
 0x215   : > { %3150 = vst [vmem:[#allocation2 + $0x278] sm:$0xf] %v2821_v13  ;;  %3156 = vst [vmem:[#allocation2 + $0x284] sm:$0x1] %v3155_v12  ;;  %v2787_v31 = vsel %vm16122_vm8, %v2779_v39, %v2786_v60  ;;  %v3141_v57 = vsel %vm16494_vm4, %v2789_v48, %v3140_v59 }
 0x216   : > { %3093 = vst [vmem:[#allocation2 + $0x1e0] sm:$0xff] %v2676_v15  ;;  %3097 = vst [vmem:[#allocation2 + $0x1ec] sm:$0x11] %v3096_v42 }
 0x217   : > { %3136 = vst [vmem:[#allocation2 + $0x254] sm:$0xf] %v2787_v31  ;;  %3142 = vst [vmem:[#allocation2 + $0x260] sm:$0x1] %v3141_v57 }
 0x218 PF: > { %vm21003_vm6 = vcmask 1041408   ;;  %v13255_v11 = vld [vmem:[%s20965_s4 + $0x6] sm:$0x3]  ;;  %s13122_s18 = smul.u32 288, %s15678_s24  ;;  %vm21002_vm7 = vcmask 31744   ;;  %vm3803_vm11 = vcmask 1042432  }
 0x219   : > { %15406 = vmatprep.subr.msk.bf16.mxu0 %vm21003_vm6, %v13255_v11  ;;  %v4111_v27 = vsel %vm21003_vm6, %v13255_v11, 0  ;;  %v13173_v44 = vld [vmem:[%s20965_s4 + $0x2] sm:$0x3]  ;;  %vm3268_vm8 = vsmask.f32 3328  ;;  %vm3804_vm12 = vcmask 1046532  }
 0x21a   : > { %14499 = vmatpush3.bf16.msra.mxu0 %v4111_v27  ;;  %15403 = vmatprep.subr.msk.bf16.mxu1 %vm21003_vm6, %v13173_v44  ;;  %v3516_v63 = vsel %vm21003_vm6, %v13173_v44, 0  ;;  %vm3269_vm9 = vsmask.f32 7440  ;;  %v3259_v43 = vld [vmem:[%s20965_s4] sm:$0x3]  ;;  %s17244_s28 = scalar_lea.vmem [#allocation2], %s13122_s18  ;;  %vm17595_vm13 = vmor %vm3803_vm11, %vm3804_vm12 }
 0x21b   : > { %14445 = vmatpush3.bf16.msra.mxu1 %v3516_v63  ;;  %vm17285_vm10 = vmor %vm3268_vm8, %vm3269_vm9  ;;  %v3680_v10 = vsel %vm21003_vm6, %v3259_v43, 0  ;;  %vm21001_vm14 = vcmask 1040384   ;;  %s15699_s20 = smov 4   ;;  %s13799_s27 = sadd.s32 4294967295, %s13006_s21  ;;  %vm9154_vm2 = vcmask 27648  }
 0x21c   : > { %15404 = vmatprep.subr.msk.bf16.mxu1 %vm21003_vm6, %v3259_v43  ;;  %vm9155_vm4 = vsmask.f32 7938  ;;  %vm8951_vm11 = vsmask.f32 256  ;;  %vm8952_vm12 = vsmask.f32 4368 }
 0x21d   : > { %s14121_s29 = smul.u32 96, %s15678_s24  ;;  %s21284_s21 = sld [smem:[#allocation48_spill]] }
 0x21e   : > { %v15514_v51 = vld [vmem:[%s17244_s28 + $0x4c] ss:$12 sps:$4 sm:$0xff]   ;;  %v15515_v49 = vld [vmem:[%s17244_s28 + $0x70] ss:$12 sps:$4 sm:$0xff]   ;;  %v15516_v40 = vld [vmem:[%s17244_s28 + $0x94] ss:$12 sps:$4 sm:$0xff]  }
 0x21f   : > { %14500 = vmatprep.mubr.msk.bf16.mxu0 %vm21002_vm7, %v15514_v51  ;;  %v17253_v14 = vld [vmem:[%s17244_s28 + $0x28] sm:$0xf]  ;;  %v17256_v30 = vld [vmem:[%s17244_s28 + $0x34] sm:$0xf]  ;;  %v17259_v61 = vld [vmem:[%s17244_s28 + $0x40] sm:$0x1] }
 0x220   : > { %14501 = vmatmul.mubr.msk.bf16.vlgmr.msra.gmra.mrb[0].mxu0 %vm21002_vm7, %v15515_v49  ;;  %v3272_v46 = vshrl.u32 %v17253_v14, 16  ;;  %v3275_v47 = vshll.u32 %v17253_v14, 16  ;;  %v3281_v53 = vshll.u32 %v17256_v30, 16  ;;  %v3285_v16 = vshrl.u32 %v17256_v30, 16  ;;  %v15517_v41 = vld [vmem:[%s17244_s28 + $0xb8] ss:$12 sps:$4 sm:$0xff]  }
 0x221   : > { %14504 = vmatprep.mubr.msk.bf16.mxu0 %vm21002_vm7, %v15516_v40  ;;  %v3291_v33 = vshll.u32 %v17259_v61, 16  ;;  %v17270_v55 = vld [vmem:[%s17244_s28 + $0x4c] sm:$0xf]  ;;  %v17273_v17 = vld [vmem:[%s17244_s28 + $0x58] sm:$0xf]  ;;  %v13190_v36 = vcombine.low %v17253_v14, %v17256_v30  ;;  %s19843_s16 = scalar_lea.vmem [#allocation3], %s14121_s29 }
 0x222   : > { %v3274_v8 = vrot.slane %v3272_v46, 4  ;;  %v3277_v37 = vrot.slane %v3275_v47, 5  ;;  %v3283_v22 = vrot.slane %v3281_v53, 5  ;;  %v3287_v56 = vrot.slane %v3285_v16, 4  ;;  %v17276_v54 = vld [vmem:[%s17244_s28 + $0x64] sm:$0x1] }
 0x223   : > { %v3293_v1 = vrot.slane %v3291_v33, 5  ;;  %v3296_v50 = vshrl.u32 %v17270_v55, 16  ;;  %v3299_v20 = vshll.u32 %v17270_v55, 16  ;;  %v3305_v62 = vshll.u32 %v17273_v17, 16  ;;  %v15518_v7 = vld [vmem:[%s17244_s28 + $0xdc] ss:$12 sps:$4 sm:$0xff]  }
 0x224   : > { %v3278_v0 = vor.u32 %v3277_v37, %v3274_v8  ;;  %v3288_v25 = vor.u32 %v3287_v56, %v3283_v22  ;;  %v3309_v28 = vshrl.u32 %v17273_v17, 16  ;;  %v3315_v32 = vshll.u32 %v17276_v54, 16  ;;  %v17294_v18 = vld [vmem:[%s17244_s28 + $0x70] sm:$0xf]  ;;  %v17300_v19 = vld [vmem:[%s17244_s28 + $0x7c] sm:$0xf] }
 0x225   : > { %v3298_v21 = vrot.slane %v3296_v50, 4  ;;  %v3301_v4 = vrot.slane %v3299_v20, 5  ;;  %v3307_v3 = vrot.slane %v3305_v62, 5  ;;  %v17308_v23 = vld [vmem:[%s17244_s28 + $0x88] sm:$0x1]  ;;  %v3320_v26 = vshrl.u32 %v17294_v18, 16 }
 0x226   : > { %v3279_v52 = vrot.slane %v3278_v0, 4  ;;  %v3289_v34 = vrot.slane %v3288_v25, 4  ;;  %v3311_v38 = vrot.slane %v3309_v28, 4  ;;  %v3317_v6 = vrot.slane %v3315_v32, 5  ;;  %v15519_v48 = vld [vmem:[%s17244_s28 + $0x100] ss:$12 sps:$4 sm:$0xff]  }
 0x227   : > { %v3302_v39 = vor.u32 %v3301_v4, %v3298_v21  ;;  %v3323_v24 = vshll.u32 %v17294_v18, 16  ;;  %v3329_v60 = vshll.u32 %v17300_v19, 16  ;;  %v3322_v12 = vrot.slane %v3320_v26, 4  ;;  %v17317_v31 = vld [vmem:[%s17244_s28 + $0x94] sm:$0xf]  ;;  %s15701_s29 = smov 12  }
 0x228   : > { %14505 = vmatmul.mubr.msk.bf16.gmra.mrb[4].mxu0 %vm21002_vm7, %v15517_v41  ;;  %v3284_v45 = vsel %vm17285_vm10, %v3279_v52, %v3283_v22  ;;  %v3294_v5 = vsel %vm17285_vm10, %v3289_v34, %v3293_v1  ;;  %v3312_v2 = vor.u32 %v3311_v38, %v3307_v3  ;;  %v3333_v15 = vshrl.u32 %v17300_v19, 16  ;;  %v17321_v44 = vld [vmem:[%s17244_s28 + $0xa0] sm:$0xf]  ;;  %v17327_v40 = vld [vmem:[%s17244_s28 + $0xac] sm:$0x1]  ;;  %s14031_s26 = sshll.u32 %s15682_s25, 5 }
 0x229   : > { %14508 = vmatprep.mubr.msk.bf16.mxu0 %vm21002_vm7, %v15518_v7  ;;  %v13174_v59 = vcombine.low %v3284_v45, %v3294_v5  ;;  %v3303_v13 = vrot.slane %v3302_v39, 4  ;;  %v3339_v42 = vshll.u32 %v17308_v23, 16  ;;  %v3325_v11 = vrot.slane %v3323_v24, 5  ;;  %v15520_v56 = vld [vmem:[%s17244_s28 + $0x124] ss:$12 sps:$4 sm:$0xff]   ;;  %s21316_s17 = sld [smem:[#allocation49_spill]] }
 0x22a   : > { %v3313_v57 = vrot.slane %v3312_v2, 4  ;;  %v3331_v27 = vrot.slane %v3329_v60, 5  ;;  %v3344_v63 = vshrl.u32 %v17317_v31, 16  ;;  %v3335_v51 = vrot.slane %v3333_v15, 4  ;;  %v17336_v1 = vld [vmem:[%s17244_s28 + $0xb8] sm:$0xf] }
 0x22b   : > { %14446 = vmatprep.mubr.msk.bf16.mxu1 %vm21002_vm7, %v13174_v59  ;;  %v3308_v43 = vsel %vm17285_vm10, %v3303_v13, %v3307_v3  ;;  %v3341_v49 = vrot.slane %v3339_v42, 5  ;;  %v3347_v46 = vshll.u32 %v17317_v31, 16  ;;  %v3326_v53 = vor.u32 %v3325_v11, %v3322_v12  ;;  %v17341_v20 = vld [vmem:[%s17244_s28 + $0xc4] sm:$0xf]  ;;  %v17347_v7 = vld [vmem:[%s17244_s28 + $0xd0] sm:$0x1] }
 0x22c   : > { %v3318_v47 = vsel %vm17285_vm10, %v3313_v57, %v3317_v6  ;;  %v3346_v16 = vrot.slane %v3344_v63, 4  ;;  %v3353_v33 = vshll.u32 %v17321_v44, 16  ;;  %v3336_v8 = vor.u32 %v3335_v51, %v3331_v27  ;;  %v15521_v26 = vld [vmem:[%s17244_s28 + $0x148] ss:$12 sps:$4 sm:$0xff]   ;;  %v17359_v60 = vld [vmem:[%s17244_s28 + $0xdc] sm:$0xf] }
 0x22d   : > { %v13175_v41 = vcombine.low %v3308_v43, %v3318_v47  ;;  %v3349_v37 = vrot.slane %v3347_v46, 5  ;;  %v3357_v22 = vshrl.u32 %v17321_v44, 16  ;;  %v3327_v50 = vrot.slane %v3326_v53, 4  ;;  %v17364_v15 = vld [vmem:[%s17244_s28 + $0xe8] sm:$0xf]  ;;  %s20909_s18 = scalar_lea.sflag [#allocation6], %s526_s30 }
 0x22e   : > { %v3355_v0 = vrot.slane %v3353_v33, 5  ;;  %v3363_v25 = vshll.u32 %v17327_v40, 16  ;;  %v3368_v62 = vshrl.u32 %v17336_v1, 16  ;;  %v3337_v21 = vrot.slane %v3336_v8, 4  ;;  %v17367_v42 = vld [vmem:[%s17244_s28 + $0xf4] sm:$0x1] }
 0x22f   : > { %14447 = vmatmul.mubr.msk.bf16.vlgmr.msra.gmra.mrb[0].mxu1 %vm21002_vm7, %v13175_v41  ;;  %v3350_v28 = vor.u32 %v3349_v37, %v3346_v16  ;;  %v3359_v32 = vrot.slane %v3357_v22, 4  ;;  %v3371_v52 = vshll.u32 %v17336_v1, 16  ;;  %v3332_v34 = vsel %vm17285_vm10, %v3327_v50, %v3331_v27  ;;  %v13296_v51 = vld [vmem:[%s20965_s4 + $0x8] sm:$0x3]  ;;  %v13272_v16 = vld [vmem:[%s17244_s28 + $0x4c] sm:$0xf] }
 0x230   : > { %14509 = vmatmul.mubr.msk.bf16.gmra.mrb[8].mxu0 %vm21002_vm7, %v15519_v48  ;;  %14463 = vmatpush3.bf16.msra.mxu1 %v3680_v10  ;;  %v3365_v4 = vrot.slane %v3363_v25, 5  ;;  %v3370_v3 = vrot.slane %v3368_v62, 4  ;;  %v3377_v38 = vshll.u32 %v17341_v20, 16  ;;  %v3342_v6 = vsel %vm17285_vm10, %v3337_v21, %v3341_v49  ;;  %v17383_v22 = vld [vmem:[%s17244_s28 + $0x58] sm:$0xf] }
 0x231   : > { %14512 = vmatprep.mubr.msk.bf16.mxu0 %vm21002_vm7, %v15520_v56  ;;  %v3351_v45 = vrot.slane %v3350_v28, 4  ;;  %v3360_v5 = vor.u32 %v3359_v32, %v3355_v0  ;;  %v3373_v39 = vrot.slane %v3371_v52, 5  ;;  %v13176_v59 = vcombine.low %v3332_v34, %v3342_v6  ;;  %15407 = vmatprep.subr.msk.bf16.mxu0 %vm21003_vm6, %v13296_v51  ;;  %v17391_v28 = vld [vmem:[%s17244_s28 + $0x64] sm:$0x1]  ;;  %v17396_v6 = vld [vmem:[%s17244_s28 + $0x100] sm:$0xf] }
 0x232   : > { %v3379_v2 = vrot.slane %v3377_v38, 5  ;;  %v3381_v10 = vshrl.u32 %v17341_v20, 16  ;;  %v3387_v24 = vshll.u32 %v17347_v7, 16  ;;  %v3392_v57 = vshrl.u32 %v17359_v60, 16 }
 0x233   : > { %v3356_v48 = vsel %vm17285_vm10, %v3351_v45, %v3355_v0  ;;  %v3361_v13 = vrot.slane %v3360_v5, 4  ;;  %v3374_v12 = vor.u32 %v3373_v39, %v3370_v3  ;;  %14450 = vmatprep.mubr.msk.bf16.mxu1 %vm21002_vm7, %v13176_v59  ;;  %v3395_v63 = vshll.u32 %v17359_v60, 16  ;;  %v17401_v59 = vld [vmem:[%s17244_s28 + $0x10c] sm:$0xf] }
 0x234   : > { %v3383_v11 = vrot.slane %v3381_v10, 4  ;;  %v3389_v27 = vrot.slane %v3387_v24, 5  ;;  %v3401_v43 = vshll.u32 %v17364_v15, 16  ;;  %v3394_v47 = vrot.slane %v3392_v57, 4 }
 0x235   : > { %v3366_v49 = vsel %vm17285_vm10, %v3361_v13, %v3365_v4  ;;  %v3375_v46 = vrot.slane %v3374_v12, 4  ;;  %v3405_v53 = vshrl.u32 %v17364_v15, 16  ;;  %v3397_v8 = vrot.slane %v3395_v63, 5 }
 0x236   : > { %v13177_v33 = vcombine.low %v3356_v48, %v3366_v49  ;;  %v3384_v41 = vor.u32 %v3383_v11, %v3379_v2  ;;  %v3403_v37 = vrot.slane %v3401_v43, 5  ;;  %v3411_v0 = vshll.u32 %v17367_v42, 16  ;;  %v17411_v43 = vld [vmem:[%s17244_s28 + $0x118] sm:$0x1] }
 0x237   : > { %v3380_v56 = vsel %vm17285_vm10, %v3375_v46, %v3379_v2  ;;  %v3407_v50 = vrot.slane %v3405_v53, 4  ;;  %v4493_v25 = vsel %vm21003_vm6, %v13296_v51, 0  ;;  %v3398_v21 = vor.u32 %v3397_v8, %v3394_v47  ;;  %v13275_v46 = vld [vmem:[%s17244_s28 + $0x70] sm:$0xf] }
 0x238   : > { %14513 = vmatmul.mubr.msk.bf16.gmra.mrb[12].mxu0 %vm21002_vm7, %v15521_v26  ;;  %14451 = vmatmul.mubr.msk.bf16.gmra.mrb[4].mxu1 %vm21002_vm7, %v13177_v33  ;;  %v3385_v62 = vrot.slane %v3384_v41, 4  ;;  %v4251_v32 = vshrl.u32 %v13272_v16, 16  ;;  %v4254_v52 = vshll.u32 %v13272_v16, 16  ;;  %v3413_v4 = vrot.slane %v3411_v0, 5  ;;  %v17417_v41 = vld [vmem:[%s17244_s28 + $0x7c] sm:$0xf] }
 0x239   : > { %14517 = vmatpush3.bf16.msra.mxu0 %v4493_v25  ;;  %v3408_v34 = vor.u32 %v3407_v50, %v3403_v37  ;;  %v4260_v3 = vshll.u32 %v17383_v22, 16  ;;  %v4264_v38 = vshrl.u32 %v17383_v22, 16  ;;  %v3399_v5 = vrot.slane %v3398_v21, 4 }
 0x23a   : > { %v3390_v45 = vsel %vm17285_vm10, %v3385_v62, %v3389_v27  ;;  %v4253_v39 = vrot.slane %v4251_v32, 4  ;;  %v4256_v26 = vrot.slane %v4254_v52, 5  ;;  %v4270_v57 = vshll.u32 %v17391_v28, 16  ;;  %v17425_v62 = vld [vmem:[%s17244_s28 + $0x88] sm:$0x1] }
 0x23b   : > { %v13178_v2 = vcombine.low %v3380_v56, %v3390_v45  ;;  %v3409_v10 = vrot.slane %v3408_v34, 4  ;;  %v4262_v24 = vrot.slane %v4260_v3, 5  ;;  %v4266_v48 = vrot.slane %v4264_v38, 4  ;;  %v17431_v38 = vld [vmem:[%s17244_s28 + $0x124] sm:$0xf] }
 0x23c   : > { %v3404_v13 = vsel %vm17285_vm10, %v3399_v5, %v3403_v37  ;;  %v4257_v12 = vor.u32 %v4256_v26, %v4253_v39  ;;  %v3416_v11 = vshrl.u32 %v17396_v6, 16  ;;  %v3419_v51 = vshll.u32 %v17396_v6, 16  ;;  %v17436_v45 = vld [vmem:[%s20965_s4 + $0x4] sm:$0x3] }
 0x23d   : > { %14454 = vmatprep.mubr.msk.bf16.mxu1 %vm21002_vm7, %v13178_v2  ;;  %v3414_v27 = vsel %vm17285_vm10, %v3409_v10, %v3413_v4  ;;  %v4267_v63 = vor.u32 %v4266_v48, %v4262_v24  ;;  %v3425_v49 = vshll.u32 %v17401_v59, 16  ;;  %v4272_v16 = vrot.slane %v4270_v57, 5  ;;  %v17439_v10 = vld [vmem:[%s17244_s28 + $0x130] sm:$0xf]  ;;  %15405 = vmatprep.subr.msk.bf16.mxu1 %vm21003_vm6, %v17436_v45 }
 0x23e   : > { %v13179_v47 = vcombine.low %v3404_v13, %v3414_v27  ;;  %v4258_v53 = vrot.slane %v4257_v12, 4  ;;  %v3418_v33 = vrot.slane %v3416_v11, 4  ;;  %v3421_v37 = vrot.slane %v3419_v51, 5 }
 0x23f   : > { %v4268_v8 = vrot.slane %v4267_v63, 4  ;;  %v3427_v56 = vrot.slane %v3425_v49, 5  ;;  %v3429_v50 = vshrl.u32 %v17401_v59, 16  ;;  %v3435_v25 = vshll.u32 %v17411_v43, 16 }
 0x240   : > { %14455 = vmatmul.mubr.msk.bf16.gmra.mrb[8].mxu1 %vm21002_vm7, %v13179_v47  ;;  %v4263_v0 = vsel %vm17285_vm10, %v4258_v53, %v4262_v24  ;;  %v4275_v21 = vshrl.u32 %v13275_v46, 16  ;;  %v4278_v32 = vshll.u32 %v13275_v46, 16  ;;  %v3422_v34 = vor.u32 %v3421_v37, %v3418_v33  ;;  %v17451_v47 = vld [vmem:[%s17244_s28 + $0x13c] sm:$0x1] }
 0x241   : > { %v4273_v52 = vsel %vm17285_vm10, %v4268_v8, %v4272_v16  ;;  %v3431_v4 = vrot.slane %v3429_v50, 4  ;;  %v4284_v3 = vshll.u32 %v17417_v41, 16  ;;  %v3437_v39 = vrot.slane %v3435_v25, 5  ;;  %v13278_v50 = vld [vmem:[%s17244_s28 + $0x94] sm:$0xf] }
 0x242   : > { %v13297_v5 = vcombine.low %v4263_v0, %v4273_v52  ;;  %v4277_v26 = vrot.slane %v4275_v21, 4  ;;  %v4280_v2 = vrot.slane %v4278_v32, 5  ;;  %v3423_v24 = vrot.slane %v3422_v34, 4 }
 0x243   : > { %v3432_v48 = vor.u32 %v3431_v4, %v3427_v56  ;;  %v4286_v13 = vrot.slane %v4284_v3, 5  ;;  %v4288_v12 = vshrl.u32 %v17417_v41, 16  ;;  %v4294_v11 = vshll.u32 %v17425_v62, 16 }
 0x244   : > { %14518 = vmatprep.mubr.msk.bf16.mxu0 %vm21002_vm7, %v13297_v5  ;;  %v4281_v57 = vor.u32 %v4280_v2, %v4277_v26  ;;  %v3440_v27 = vshrl.u32 %v17431_v38, 16  ;;  %v3443_v63 = vshll.u32 %v17431_v38, 16  ;;  %v3428_v51 = vsel %vm17285_vm10, %v3423_v24, %v3427_v56  ;;  %v17459_v56 = vld [vmem:[%s17244_s28 + $0xa0] sm:$0xf]  ;;  %v17465_v2 = vld [vmem:[%s17244_s28 + $0xac] sm:$0x1] }
 0x245   : > { %v3433_v49 = vrot.slane %v3432_v48, 4  ;;  %v4290_v46 = vrot.slane %v4288_v12, 4  ;;  %v3449_v53 = vshll.u32 %v17439_v10, 16  ;;  %v4296_v33 = vrot.slane %v4294_v11, 5 }
 0x246   : > { %v4282_v16 = vrot.slane %v4281_v57, 4  ;;  %v3442_v8 = vrot.slane %v3440_v27, 4  ;;  %v3445_v37 = vrot.slane %v3443_v63, 5  ;;  %v3453_v32 = vshrl.u32 %v17439_v10, 16  ;;  %v13281_v27 = vld [vmem:[%s17244_s28 + $0xb8] sm:$0xf] }
 0x247   : > { %v3438_v0 = vsel %vm17285_vm10, %v3433_v49, %v3437_v39  ;;  %v4291_v25 = vor.u32 %v4290_v46, %v4286_v13  ;;  %v3451_v21 = vrot.slane %v3449_v53, 5  ;;  %v3459_v3 = vshll.u32 %v17451_v47, 16  ;;  %v17474_v46 = vld [vmem:[%s17244_s28 + $0xc4] sm:$0xf] }
 0x248   : > { %v13180_v52 = vcombine.low %v3428_v51, %v3438_v0  ;;  %v4287_v34 = vsel %vm17285_vm10, %v4282_v16, %v4286_v13  ;;  %v3446_v4 = vor.u32 %v3445_v37, %v3442_v8  ;;  %v3455_v26 = vrot.slane %v3453_v32, 4 }
 0x249   : > { %v4292_v5 = vrot.slane %v4291_v25, 4  ;;  %v4299_v39 = vshrl.u32 %v13278_v50, 16  ;;  %v4302_v24 = vshll.u32 %v13278_v50, 16  ;;  %v3461_v12 = vrot.slane %v3459_v3, 5  ;;  %v17481_v50 = vld [vmem:[%s20965_s4 + $0xa] sm:$0x3] }
 0x24a   : > { %14458 = vmatprep.mubr.msk.bf16.mxu1 %vm21002_vm7, %v13180_v52  ;;  %v3447_v48 = vrot.slane %v3446_v4, 4  ;;  %v4308_v57 = vshll.u32 %v17459_v56, 16  ;;  %v4312_v11 = vshrl.u32 %v17459_v56, 16  ;;  %v3456_v63 = vor.u32 %v3455_v26, %v3451_v21  ;;  %15408 = vmatprep.subr.msk.bf16.mxu0 %vm21003_vm6, %v17481_v50 }
 0x24b   : > { %v4297_v13 = vsel %vm17285_vm10, %v4292_v5, %v4296_v33  ;;  %v4301_v51 = vrot.slane %v4299_v39, 4  ;;  %v4304_v49 = vrot.slane %v4302_v24, 5  ;;  %v4318_v25 = vshll.u32 %v17465_v2, 16 }
 0x24c   : > { %v13298_v53 = vcombine.low %v4287_v34, %v4297_v13  ;;  %v3452_v16 = vsel %vm17285_vm10, %v3447_v48, %v3451_v21  ;;  %v4310_v8 = vrot.slane %v4308_v57, 5  ;;  %v4314_v37 = vrot.slane %v4312_v11, 4  ;;  %v17488_v21 = vld [vmem:[%s17244_s28 + $0xd0] sm:$0x1]  ;;  %v13284_v48 = vld [vmem:[%s17244_s28 + $0xdc] sm:$0xf] }
 0x24d   : > { %v3457_v0 = vrot.slane %v3456_v63, 4  ;;  %v4305_v33 = vor.u32 %v4304_v49, %v4301_v51  ;;  %v4323_v32 = vshrl.u32 %v13281_v27, 16  ;;  %v4326_v34 = vshll.u32 %v13281_v27, 16 }
 0x24e   : > { %14519 = vmatmul.mubr.msk.bf16.vlgmr.msra.gmra.mrb[0].mxu0 %vm21002_vm7, %v13298_v53  ;;  %v4315_v52 = vor.u32 %v4314_v37, %v4310_v8  ;;  %v4332_v4 = vshll.u32 %v17474_v46, 16  ;;  %v4336_v3 = vshrl.u32 %v17474_v46, 16  ;;  %v4320_v39 = vrot.slane %v4318_v25, 5 }
 0x24f   : > { %v3462_v5 = vsel %vm17285_vm10, %v3457_v0, %v3461_v12  ;;  %v4306_v26 = vrot.slane %v4305_v33, 4  ;;  %v4325_v24 = vrot.slane %v4323_v32, 4  ;;  %v4328_v13 = vrot.slane %v4326_v34, 5  ;;  %v17501_v12 = vld [vmem:[%s17244_s28 + $0xe8] sm:$0xf] }
 0x250   : > { %v13181_v57 = vcombine.low %v3452_v16, %v3462_v5  ;;  %v4316_v11 = vrot.slane %v4315_v52, 4  ;;  %v4334_v63 = vrot.slane %v4332_v4, 5  ;;  %v4338_v51 = vrot.slane %v4336_v3, 4  ;;  %v17509_v33 = vld [vmem:[%s17244_s28 + $0xf4] sm:$0x1] }
 0x251   : > { %v4311_v27 = vsel %vm17285_vm10, %v4306_v26, %v4310_v8  ;;  %v4342_v49 = vshll.u32 %v17488_v21, 16  ;;  %v13191_v53 = vcombine.low %v17270_v55, %v17273_v17  ;;  %v4329_v37 = vor.u32 %v4328_v13, %v4325_v24  ;;  %v13287_v34 = vld [vmem:[%s17244_s28 + $0x100] sm:$0xf]  ;;  %v17523_v24 = vld [vmem:[%s17244_s28 + $0x10c] sm:$0xf] }
 0x252   : > { %14459 = vmatmul.mubr.msk.bf16.gmra.mrb[12].mxu1 %vm21002_vm7, %v13181_v57  ;;  %v4321_v16 = vsel %vm17285_vm10, %v4316_v11, %v4320_v39  ;;  %v3913_v0 = vsel %vm21003_vm6, %v17436_v45, 0  ;;  %v4347_v8 = vshrl.u32 %v13284_v48, 16  ;;  %v4339_v55 = vor.u32 %v4338_v51, %v4334_v63  ;;  %v17528_v13 = vld [vmem:[%s17244_s28 + $0x118] sm:$0x1] }
 0x253   : > { %v13299_v25 = vcombine.low %v4311_v27, %v4321_v16  ;;  %14464 = vmatprep.mubr.msk.bf16.mxu1 %vm21002_vm7, %v13190_v36  ;;  %v4344_v32 = vrot.slane %v4342_v49, 5  ;;  %v4350_v52 = vshll.u32 %v13284_v48, 16  ;;  %v4330_v4 = vrot.slane %v4329_v37, 4 }
 0x254   : > { %v4349_v3 = vrot.slane %v4347_v8, 4  ;;  %v4356_v5 = vshll.u32 %v17501_v12, 16  ;;  %v4360_v45 = vshrl.u32 %v17501_v12, 16  ;;  %v4340_v26 = vrot.slane %v4339_v55, 4  ;;  %v13290_v8 = vld [vmem:[%s17244_s28 + $0x124] sm:$0xf] }
 0x255   : > { %14522 = vmatprep.mubr.msk.bf16.mxu0 %vm21002_vm7, %v13299_v25  ;;  %v4352_v39 = vrot.slane %v4350_v52, 5  ;;  %v4366_v14 = vshll.u32 %v17509_v33, 16  ;;  %v13192_v36 = vcombine.low %v17294_v18, %v17300_v19  ;;  %v4335_v48 = vsel %vm17285_vm10, %v4330_v4, %v4334_v63  ;;  %v17534_v25 = vld [vmem:[%s17244_s28 + $0x130] sm:$0xf]  ;;  %v17540_v4 = vld [vmem:[%s20968_s7 + $0x2] sm:$0x3] }
 0x256   : > { %v4358_v57 = vrot.slane %v4356_v5, 5  ;;  %v4362_v11 = vrot.slane %v4360_v45, 4  ;;  %v4371_v27 = vshrl.u32 %v13287_v34, 16  ;;  %v4345_v51 = vsel %vm17285_vm10, %v4340_v26, %v4344_v32 }
 0x257   : > { %v4353_v49 = vor.u32 %v4352_v39, %v4349_v3  ;;  %v4368_v16 = vrot.slane %v4366_v14, 5  ;;  %v4374_v37 = vshll.u32 %v13287_v34, 16  ;;  %v13300_v18 = vcombine.low %v4335_v48, %v4345_v51  ;;  %v17549_v14 = vld [vmem:[%s17244_s28 + $0x13c] sm:$0x1] }
 0x258   : > { %v4363_v55 = vor.u32 %v4362_v11, %v4358_v57  ;;  %v4373_v52 = vrot.slane %v4371_v27, 4  ;;  %v4380_v63 = vshll.u32 %v17523_v24, 16  ;;  %v4384_v32 = vshrl.u32 %v17523_v24, 16 }
 0x259   : > { %v4354_v5 = vrot.slane %v4353_v49, 4  ;;  %v4376_v45 = vrot.slane %v4374_v37, 5  ;;  %v4390_v34 = vshll.u32 %v17528_v13, 16  ;;  %14523 = vmatmul.mubr.msk.bf16.gmra.mrb[4].mxu0 %vm21002_vm7, %v13300_v18  ;;  %v13193_v39 = vcombine.low %v17317_v31, %v17321_v44 }
 0x25a   : > { %14465 = vmatmul.mubr.msk.bf16.vlgmr.msra.gmra.mrb[0].mxu1 %vm21002_vm7, %v13191_v53  ;;  %v4364_v3 = vrot.slane %v4363_v55, 4  ;;  %v4382_v26 = vrot.slane %v4380_v63, 5  ;;  %v4395_v48 = vshrl.u32 %v13290_v8, 16  ;;  %v4386_v51 = vrot.slane %v4384_v32, 4  ;;  %v13293_v53 = vld [vmem:[%s17244_s28 + $0x148] sm:$0xf] }
 0x25b   : > { %14481 = vmatpush3.bf16.msra.mxu1 %v3913_v0  ;;  %v4359_v11 = vsel %vm17285_vm10, %v4354_v5, %v4358_v57  ;;  %14468 = vmatprep.mubr.msk.bf16.mxu1 %vm21002_vm7, %v13192_v36  ;;  %v4377_v27 = vor.u32 %v4376_v45, %v4373_v52  ;;  %v4392_v49 = vrot.slane %v4390_v34, 5  ;;  %v4398_v31 = vshll.u32 %v13290_v8, 16  ;;  %v17562_v52 = vld [vmem:[%s17244_s28 + $0x154] sm:$0xf]  ;;  %v17568_v8 = vld [vmem:[%s17244_s28 + $0x160] sm:$0x1] }
 0x25c   : > { %v4369_v37 = vsel %vm17285_vm10, %v4364_v3, %v4368_v16  ;;  %v4397_v18 = vrot.slane %v4395_v48, 4  ;;  %v4404_v55 = vshll.u32 %v17534_v25, 16  ;;  %15412 = vmatprep.subr.msk.bf16.mxu1 %vm21003_vm6, %v17540_v4  ;;  %v4387_v57 = vor.u32 %v4386_v51, %v4382_v26 }
 0x25d   : > { %v13301_v0 = vcombine.low %v4359_v11, %v4369_v37  ;;  %v4378_v63 = vrot.slane %v4377_v27, 4  ;;  %v4408_v36 = vshrl.u32 %v17534_v25, 16  ;;  %v4400_v5 = vrot.slane %v4398_v31, 5 }
 0x25e   : > { %v4406_v45 = vrot.slane %v4404_v55, 5  ;;  %v4414_v32 = vshll.u32 %v17549_v14, 16  ;;  %v13194_v16 = vcombine.low %v17336_v1, %v17341_v20  ;;  %v4388_v3 = vrot.slane %v4387_v57, 4  ;;  %v13313_v55 = vld [vmem:[%s17244_s28 + $0x4c] sm:$0xe] }
 0x25f   : > { %14526 = vmatprep.mubr.msk.bf16.mxu0 %vm21002_vm7, %v13301_v0  ;;  %v4383_v34 = vsel %vm17285_vm10, %v4378_v63, %v4382_v26  ;;  %v4410_v48 = vrot.slane %v4408_v36, 4  ;;  %v4419_v11 = vshrl.u32 %v13293_v53, 16  ;;  %v4401_v27 = vor.u32 %v4400_v5, %v4397_v18  ;;  %v17586_v5 = vld [vmem:[%s20965_s4 + $0xc] sm:$0x3] }
 0x260   : > { %v4416_v51 = vrot.slane %v4414_v32, 5  ;;  %v4422_v37 = vshll.u32 %v13293_v53, 16  ;;  %v4428_v31 = vshll.u32 %v17562_v52, 16  ;;  %v4393_v58 = vsel %vm17285_vm10, %v4388_v3, %v4392_v49 }
 0x261   : > { %v4411_v1 = vor.u32 %v4410_v48, %v4406_v45  ;;  %v4421_v29 = vrot.slane %v4419_v11, 4  ;;  %v4432_v35 = vshrl.u32 %v17562_v52, 16  ;;  %v13302_v0 = vcombine.low %v4383_v34, %v4393_v58 }
 0x262   : > { %14469 = vmatmul.mubr.msk.bf16.gmra.mrb[4].mxu1 %vm21002_vm7, %v13193_v39  ;;  %v4402_v26 = vrot.slane %v4401_v27, 4  ;;  %v4424_v63 = vrot.slane %v4422_v37, 5  ;;  %v4430_v57 = vrot.slane %v4428_v31, 5  ;;  %v4438_v36 = vshll.u32 %v17568_v8, 16  ;;  %v13315_v37 = vld [vmem:[%s17244_s28 + $0x94] sm:$0xe] }
 0x263   : > { %v4412_v18 = vrot.slane %v4411_v1, 4  ;;  %14472 = vmatprep.mubr.msk.bf16.mxu1 %vm21002_vm7, %v13194_v16  ;;  %v4434_v53 = vrot.slane %v4432_v35, 4  ;;  %v13195_v49 = vcombine.low %v17359_v60, %v17364_v15  ;;  %14527 = vmatmul.mubr.msk.bf16.gmra.mrb[8].mxu0 %vm21002_vm7, %v13302_v0  ;;  %v4747_v35 = vsel %vm21003_vm6, %v17481_v50, 0  ;;  %v13314_v16 = vld [vmem:[%s17244_s28 + $0x70] sm:$0xe] }
 0x264   : > { %v4407_v58 = vsel %vm17285_vm10, %v4402_v26, %v4406_v45  ;;  %v4425_v39 = vor.u32 %v4424_v63, %v4421_v29  ;;  %v13321_v32 = vrot.slane %v13313_v55, 9  ;;  %v4440_v48 = vrot.slane %v4438_v36, 5  ;;  %14535 = vmatpush3.bf16.msra.mxu0 %v4747_v35  ;;  %v13206_v31 = vld [vmem:[%s17244_s28 + $0x28] sm:$0xe]  ;;  %v13316_v63 = vld [vmem:[%s17244_s28 + $0xb8] sm:$0xe] }
 0x265   : > { %v4417_v34 = vsel %vm17285_vm10, %v4412_v18, %v4416_v51  ;;  %v4435_v3 = vor.u32 %v4434_v53, %v4430_v57  ;;  %v4642_v45 = vrot.slane %v17383_v22, 5  ;;  %v4645_v50 = vrot.slane %v17391_v28, 5  ;;  %15409 = vmatprep.subr.msk.bf16.mxu0 %vm21003_vm6, %v17586_v5  ;;  %v13207_v35 = vld [vmem:[%s17244_s28 + $0x4c] sm:$0xe] }
 0x266   : > { %v13303_v29 = vcombine.low %v4407_v58, %v4417_v34  ;;  %v4426_v11 = vrot.slane %v4425_v39, 4  ;;  %v13196_v27 = vcombine.low %v17396_v6, %v17401_v59  ;;  %v13322_v0 = vrot.slane %v13314_v16, 9 }
 0x267   : > { %v4436_v55 = vrot.slane %v4435_v3, 4  ;;  %v4643_v51 = vsel %vm17595_vm13, %v13321_v32, %v4642_v45  ;;  %v4644_v1 = vrot.slane %v4642_v45, 4  ;;  %v4649_v28 = vrot.slane %v17417_v41, 5 }
 0x268   : > { %14530 = vmatprep.mubr.msk.bf16.mxu0 %vm21002_vm7, %v13303_v29  ;;  %v4431_v22 = vsel %vm17285_vm10, %v4426_v11, %v4430_v57  ;;  %v4652_v6 = vrot.slane %v17425_v62, 5  ;;  %v13197_v26 = vcombine.low %v17431_v38, %v17439_v10  ;;  %v13323_v36 = vrot.slane %v13315_v37, 9 }
 0x269   : > { %v4441_v18 = vsel %vm17285_vm10, %v4436_v55, %v4440_v48  ;;  %v4646_v53 = vsel %vm17595_vm13, %v4644_v1, %v4645_v50  ;;  %v4656_v58 = vrot.slane %v17459_v56, 5  ;;  %v4650_v41 = vsel %vm17595_vm13, %v13322_v0, %v4649_v28  ;;  %v13317_v50 = vld [vmem:[%s17244_s28 + $0xdc] sm:$0xe]  ;;  %v13318_v55 = vld [vmem:[%s17244_s28 + $0x100] sm:$0xe] }
 0x26a   : > { %v13304_v39 = vcombine.low %v4431_v22, %v4441_v18  ;;  %14473 = vmatmul.mubr.msk.bf16.gmra.mrb[8].mxu1 %vm21002_vm7, %v13195_v49  ;;  %v13330_v57 = vcombine.low %v4643_v51, %v4646_v53  ;;  %v4651_v62 = vrot.slane %v4649_v28, 4  ;;  %v4659_v16 = vrot.slane %v17465_v2, 5 }
 0x26b   : > { %14476 = vmatprep.mubr.msk.bf16.mxu1 %vm21002_vm7, %v13196_v27  ;;  %v4657_v38 = vsel %vm17595_vm13, %v13323_v36, %v4656_v58  ;;  %v4658_v32 = vrot.slane %v4656_v58, 4  ;;  %v13214_v56 = vrot.slane %v13206_v31, 9  ;;  %v3808_v34 = vrot.slane %v17256_v30, 5  ;;  %v13208_v27 = vld [vmem:[%s17244_s28 + $0x70] sm:$0xe] }
 0x26c   : > { %14531 = vmatmul.mubr.msk.bf16.gmra.mrb[12].mxu0 %vm21002_vm7, %v13304_v39  ;;  %v4653_v49 = vsel %vm17595_vm13, %v4651_v62, %v4652_v6  ;;  %v13324_v3 = vrot.slane %v13316_v63, 9  ;;  %v4663_v48 = vrot.slane %v17474_v46, 5  ;;  %v4666_v2 = vrot.slane %v17488_v21, 5  ;;  %v13209_v58 = vld [vmem:[%s17244_s28 + $0x94] sm:$0xe] }
 0x26d   : > { %14536 = vmatprep.mubr.msk.bf16.mxu0 %vm21002_vm7, %v13330_v57  ;;  %v13331_v45 = vcombine.low %v4650_v41, %v4653_v49  ;;  %v4660_v29 = vsel %vm17595_vm13, %v4658_v32, %v4659_v16  ;;  %v13215_v11 = vrot.slane %v13207_v35, 9  ;;  %v3809_v31 = vsel %vm17595_vm13, %v13214_v56, %v3808_v34 }
 0x26e   : > { %v13332_v37 = vcombine.low %v4657_v38, %v4660_v29  ;;  %v3810_v30 = vrot.slane %v3808_v34, 4  ;;  %v17648_v46 = vsel %vm17595_vm13, %v13324_v3, %v4663_v48  ;;  %v4665_v51 = vrot.slane %v4663_v48, 4  ;;  %v13319_v34 = vld [vmem:[%s17244_s28 + $0x124] sm:$0xe]  ;;  %v13210_v48 = vld [vmem:[%s17244_s28 + $0xb8] sm:$0xe] }
 0x26f   : > { %v21097_v1 = vrot.slane %v17273_v17, 5  ;;  %v6099_v28 = vsel %vm21003_vm6, %v17540_v4, 0  ;;  %v21099_v6 = vrot.slane %v17259_v61, 5  ;;  %v13325_v18 = vrot.slane %v13317_v50, 9 }
 0x270   : > { %v4670_v53 = vrot.slane %v17501_v12, 5  ;;  %v4673_v36 = vrot.slane %v17509_v33, 5  ;;  %v4667_v57 = vsel %vm17595_vm13, %v4665_v51, %v4666_v2  ;;  %v21100_v17 = vrot.slane %v17276_v54, 5  ;;  %v13211_v51 = vld [vmem:[%s17244_s28 + $0xdc] sm:$0xe] }
 0x271   : > { %v3816_v21 = vsel %vm17595_vm13, %v13215_v11, %v21097_v1  ;;  %v21098_v0 = vmov %v21097_v1  ;;  %v3812_v63 = vsel %vm17595_vm13, %v3810_v30, %v21099_v6  ;;  %v13216_v41 = vrot.slane %v13208_v27, 9 }
 0x272   : > { %v3817_v22 = vrot.slane %v21098_v0, 4  ;;  %v13223_v39 = vcombine.low %v3809_v31, %v3812_v63  ;;  %14477 = vmatmul.mubr.msk.bf16.gmra.mrb[12].mxu1 %vm21002_vm7, %v13197_v26  ;;  %v13333_v61 = vcombine.low %v17648_v46, %v4667_v57  ;;  %v4671_v12 = vsel %vm17595_vm13, %v13325_v18, %v4670_v53  ;;  %v13213_v57 = vld [vmem:[%s17244_s28 + $0x124] sm:$0xe] }
 0x273   : > { %v4672_v33 = vrot.slane %v4670_v53, 4  ;;  %v3822_v35 = vrot.slane %v17300_v19, 5  ;;  %v3825_v54 = vrot.slane %v17308_v23, 5  ;;  %v13326_v38 = vrot.slane %v13318_v55, 9 }
 0x274   : > { %v3819_v4 = vsel %vm17595_vm13, %v3817_v22, %v21100_v17  ;;  %14482 = vmatprep.mubr.msk.bf16.mxu1 %vm21002_vm7, %v13223_v39  ;;  %v4677_v32 = vrot.slane %v17523_v24, 5  ;;  %14537 = vmatmul.mubr.msk.bf16.vlgmr.msra.gmra.mrb[0].mxu0 %vm21002_vm7, %v13331_v45  ;;  %v4680_v16 = vrot.slane %v17528_v13, 5  ;;  %v13217_v56 = vrot.slane %v13209_v58, 9  ;;  %v13212_v39 = vld [vmem:[%s17244_s28 + $0x100] sm:$0xe] }
 0x275   : > { %v13224_v62 = vcombine.low %v3816_v21, %v3819_v4  ;;  %v4674_v26 = vsel %vm17595_vm13, %v4672_v33, %v4673_v36  ;;  %v3829_v49 = vrot.slane %v17321_v44, 5  ;;  %14540 = vmatprep.mubr.msk.bf16.mxu0 %vm21002_vm7, %v13332_v37  ;;  %v3823_v23 = vsel %vm17595_vm13, %v13216_v41, %v3822_v35  ;;  %v13320_v37 = vld [vmem:[%s17244_s28 + $0x148] sm:$0xe]  ;;  %v17721_v21 = vld [vmem:[%s20968_s7] sm:$0x3] }
 0x276   : > { %v13334_v19 = vcombine.low %v4671_v12, %v4674_v26  ;;  %v3824_v3 = vrot.slane %v3822_v35, 4  ;;  %v17691_v24 = vsel %vm17595_vm13, %v13326_v38, %v4677_v32  ;;  %v4679_v45 = vrot.slane %v4677_v32, 4  ;;  %v17753_v41 = vld [vmem:[%s20965_s4 + $0xe] sm:$0x3]  ;;  %v17761_v35 = vld [vmem:[%s17244_s28 + $0x8] sm:$0xf] }
 0x277   : > { %v17696_v13 = vsel %vm17595_vm13, %v13217_v56, %v3829_v49  ;;  %v3831_v44 = vrot.slane %v3829_v49, 4  ;;  %v3832_v29 = vrot.slane %v17327_v40, 5  ;;  %v13327_v11 = vrot.slane %v13319_v34, 9  ;;  %v17771_v26 = vld [vmem:[%s17244_s28 + $0x14] sm:$0xf] }
 0x278   : > { %v3826_v2 = vsel %vm17595_vm13, %v3824_v3, %v3825_v54  ;;  %v4684_v50 = vrot.slane %v17534_v25, 5  ;;  %v4687_v27 = vrot.slane %v17549_v14, 5  ;;  %v17706_v30 = vsel %vm17595_vm13, %v4679_v45, %v4680_v16  ;;  %v5786_v49 = vld [vmem:[%s17244_s28 + $0x20] sm:$0x1]  ;;  %v17785_v3 = vld [vmem:[%s17244_s28 + $0x2c] sm:$0xf] }
 0x279   : > { %v13225_v31 = vcombine.low %v3823_v23, %v3826_v2  ;;  %v3833_v46 = vsel %vm17595_vm13, %v3831_v44, %v3832_v29  ;;  %v13218_v55 = vrot.slane %v13210_v48, 9  ;;  %v13335_v40 = vcombine.low %v17691_v24, %v17706_v30  ;;  %v17794_v29 = vld [vmem:[%s17244_s28 + $0x38] sm:$0xf] }
 0x27a   : > { %v13226_v1 = vcombine.low %v17696_v13, %v3833_v46  ;;  %v17716_v25 = vsel %vm17595_vm13, %v13327_v11, %v4684_v50  ;;  %v4686_v14 = vrot.slane %v4684_v50, 4  ;;  %14483 = vmatmul.mubr.msk.bf16.vlgmr.msra.gmra.mrb[0].mxu1 %vm21002_vm7, %v13224_v62  ;;  %v3836_v0 = vrot.slane %v17341_v20, 5 }
 0x27b   : > { %v3839_v22 = vrot.slane %v17347_v7, 5  ;;  %v13328_v6 = vrot.slane %v13320_v37, 9  ;;  %v4691_v63 = vrot.slane %v17562_v52, 5  ;;  %14607 = vmatpush3.bf16.msra.mxu1 %v6099_v28  ;;  %14486 = vmatprep.mubr.msk.bf16.mxu1 %vm21002_vm7, %v13225_v31  ;;  %v4694_v53 = vrot.slane %v17568_v8, 5 }
 0x27c   : > { %v4688_v18 = vsel %vm17595_vm13, %v4686_v14, %v4687_v27  ;;  %v13219_v36 = vrot.slane %v13211_v51, 9  ;;  %v3843_v58 = vrot.slane %v17364_v15, 5  ;;  %14541 = vmatmul.mubr.msk.bf16.gmra.mrb[4].mxu0 %vm21002_vm7, %v13333_v61  ;;  %v3837_v7 = vsel %vm17595_vm13, %v13218_v55, %v3836_v0  ;;  %15413 = vmatprep.subr.msk.bf16.mxu1 %vm21003_vm6, %v17721_v21  ;;  %v5787_v55 = vld [vmem:[%s17244_s28 + $0x44] sm:$0x1] }
 0x27d   : > { %v13336_v20 = vcombine.low %v17716_v25, %v4688_v18  ;;  %v3838_v52 = vrot.slane %v3836_v0, 4  ;;  %v17739_v28 = vsel %vm17595_vm13, %v13328_v6, %v4691_v63  ;;  %14544 = vmatprep.mubr.msk.bf16.mxu0 %vm21002_vm7, %v13334_v19  ;;  %v4693_v15 = vrot.slane %v4691_v63, 4  ;;  %v17817_v0 = vld [vmem:[%s17244_s28 + $0x50] sm:$0xf] }
 0x27e   : > { %v17747_v8 = vsel %vm17595_vm13, %v13219_v36, %v3843_v58  ;;  %v3845_v17 = vrot.slane %v3843_v58, 4  ;;  %v3846_v4 = vrot.slane %v17367_v42, 5  ;;  %v4949_v62 = vsel %vm21003_vm6, %v17586_v5, 0  ;;  %v15530_v36 = vld [vmem:[%s17244_s28 + $0x70] ss:$12 sps:$4 sm:$0xff]  }
 0x27f   : > { %v3840_v61 = vsel %vm17595_vm13, %v3838_v52, %v3839_v22  ;;  %v13220_v12 = vrot.slane %v13212_v39, 9  ;;  %v3850_v33 = vrot.slane %v17401_v59, 5  ;;  %v17765_v42 = vsel %vm17595_vm13, %v4693_v15, %v4694_v53  ;;  %14553 = vmatpush3.bf16.msra.mxu0 %v4949_v62  ;;  %v17821_v53 = vld [vmem:[%s17244_s28 + $0x5c] sm:$0xf]  ;;  %v5788_v15 = vld [vmem:[%s17244_s28 + $0x68] sm:$0x1] }
 0x280   : > { %v13227_v54 = vcombine.low %v3837_v7, %v3840_v61  ;;  %v3847_v38 = vsel %vm17595_vm13, %v3845_v17, %v3846_v4  ;;  %v3853_v32 = vrot.slane %v17411_v43, 5  ;;  %v13337_v5 = vcombine.low %v17739_v28, %v17765_v42  ;;  %15410 = vmatprep.subr.msk.bf16.mxu0 %vm21003_vm6, %v17753_v41 }
 0x281   : > { %v13228_v59 = vcombine.low %v17747_v8, %v3847_v38  ;;  %v3851_v16 = vsel %vm17595_vm13, %v13220_v12, %v3850_v33  ;;  %v3852_v56 = vrot.slane %v3850_v33, 4  ;;  %v13221_v34 = vrot.slane %v13213_v57, 9  ;;  %v17838_v12 = vld [vmem:[%s17244_s28 + $0x74] sm:$0xf] }
 0x282   : > { %v3857_v19 = vrot.slane %v17439_v10, 5  ;;  %v3860_v43 = vrot.slane %v17451_v47, 5  ;;  %v5797_v23 = vshrl.u32 %v17761_v35, 16  ;;  %14487 = vmatmul.mubr.msk.bf16.gmra.mrb[4].mxu1 %vm21002_vm7, %v13226_v1  ;;  %v5800_v45 = vshll.u32 %v17761_v35, 16 }
 0x283   : > { %v3854_v48 = vsel %vm17595_vm13, %v3852_v56, %v3853_v32  ;;  %v5806_v13 = vshll.u32 %v17771_v26, 16  ;;  %v5810_v44 = vshrl.u32 %v17771_v26, 16  ;;  %14490 = vmatprep.mubr.msk.bf16.mxu1 %vm21002_vm7, %v13227_v54  ;;  %v5816_v31 = vshll.u32 %v5786_v49, 16 }
 0x284   : > { %v13229_v10 = vcombine.low %v3851_v16, %v3854_v48  ;;  %v17799_v47 = vsel %vm17595_vm13, %v13221_v34, %v3857_v19  ;;  %v3859_v2 = vrot.slane %v3857_v19, 4  ;;  %v5799_v11 = vrot.slane %v5797_v23, 4  ;;  %14545 = vmatmul.mubr.msk.bf16.gmra.mrb[8].mxu0 %vm21002_vm7, %v13335_v40  ;;  %v17842_v16 = vld [vmem:[%s17244_s28 + $0x80] sm:$0xf]  ;;  %v5789_v23 = vld [vmem:[%s17244_s28 + $0x8c] sm:$0x1] }
 0x285   : > { %v5802_v50 = vrot.slane %v5800_v45, 5  ;;  %v5808_v27 = vrot.slane %v5806_v13, 5  ;;  %v5812_v37 = vrot.slane %v5810_v44, 4  ;;  %14548 = vmatprep.mubr.msk.bf16.mxu0 %vm21002_vm7, %v13336_v20  ;;  %v5821_v51 = vshrl.u32 %v17785_v3, 16  ;;  %v17857_v44 = vld [vmem:[%s17244_s28 + $0x98] sm:$0xf] }
 0x286   : > { %v17808_v46 = vsel %vm17595_vm13, %v3859_v2, %v3860_v43  ;;  %v5824_v24 = vshll.u32 %v17785_v3, 16  ;;  %v5830_v30 = vshll.u32 %v17794_v29, 16  ;;  %v5818_v14 = vrot.slane %v5816_v31, 5 }
 0x287   : > { %v13230_v40 = vcombine.low %v17799_v47, %v17808_v46  ;;  %v5803_v1 = vor.u32 %v5802_v50, %v5799_v11  ;;  %v5813_v25 = vor.u32 %v5812_v37, %v5808_v27  ;;  %v5823_v22 = vrot.slane %v5821_v51, 4  ;;  %v15531_v37 = vld [vmem:[%s17244_s28 + $0x94] ss:$12 sps:$4 sm:$0xff]   ;;  %v17881_v46 = vld [vmem:[%s17244_s28 + $0xbc] sm:$0xf] }
 0x288   : > { %v5826_v6 = vrot.slane %v5824_v24, 5  ;;  %v5832_v63 = vrot.slane %v5830_v30, 5  ;;  %v5834_v18 = vshrl.u32 %v17794_v29, 16  ;;  %v5840_v20 = vshll.u32 %v5787_v55, 16  ;;  %v15532_v30 = vld [vmem:[%s17244_s28 + $0xb8] ss:$12 sps:$4 sm:$0xff]  }
 0x289   : > { %v5804_v58 = vrot.slane %v5803_v1, 4  ;;  %v5814_v39 = vrot.slane %v5813_v25, 4  ;;  %v17826_v7 = vsel %vm21003_vm6, %v17721_v21, 0  ;;  %v5845_v8 = vshrl.u32 %v17817_v0, 16 }
 0x28a   : > { %v5827_v52 = vor.u32 %v5826_v6, %v5823_v22  ;;  %v5836_v57 = vrot.slane %v5834_v18, 4  ;;  %v5848_v17 = vshll.u32 %v17817_v0, 16  ;;  %14491 = vmatmul.mubr.msk.bf16.gmra.mrb[8].mxu1 %vm21002_vm7, %v13228_v59  ;;  %v5842_v62 = vrot.slane %v5840_v20, 5  ;;  %v17875_v18 = vld [vmem:[%s17244_s28 + $0xb0] sm:$0x1] }
 0x28b   : > { %v5809_v4 = vsel %vm17285_vm10, %v5804_v58, %v5808_v27  ;;  %v5819_v61 = vsel %vm17285_vm10, %v5814_v39, %v5818_v14  ;;  %v5854_v21 = vshll.u32 %v17821_v53, 16  ;;  %14494 = vmatprep.mubr.msk.bf16.mxu1 %vm21002_vm7, %v13229_v10  ;;  %v5847_v32 = vrot.slane %v5845_v8, 4  ;;  %v17863_v27 = vld [vmem:[%s17244_s28 + $0xa4] sm:$0xf]  ;;  %21101 = vst [vmem:[#allocation36_spill] sm:$0xff] %v17875_v18 }
 0x28c   : > { %v13460_v33 = vcombine.low %v5809_v4, %v5819_v61  ;;  %v5828_v54 = vrot.slane %v5827_v52, 4  ;;  %v5837_v38 = vor.u32 %v5836_v57, %v5832_v63  ;;  %14549 = vmatmul.mubr.msk.bf16.gmra.mrb[12].mxu0 %vm21002_vm7, %v13337_v5  ;;  %v5850_v59 = vrot.slane %v5848_v17, 5  ;;  %v17888_v17 = vld [vmem:[%s17244_s28 + $0xc8] sm:$0xf] }
 0x28d   : > { %v5856_v56 = vrot.slane %v5854_v21, 5  ;;  %v5858_v49 = vshrl.u32 %v17821_v53, 16  ;;  %v5864_v34 = vshll.u32 %v5788_v15, 16  ;;  %14554 = vmatprep.mubr.msk.bf16.mxu0 %vm21002_vm7, %v15530_v36  ;;  %v5869_v48 = vshrl.u32 %v17838_v12, 16 }
 0x28e   : > { %v5833_v19 = vsel %vm17285_vm10, %v5828_v54, %v5832_v63  ;;  %v5838_v43 = vrot.slane %v5837_v38, 4  ;;  %v5872_v28 = vshll.u32 %v17838_v12, 16  ;;  %v5851_v42 = vor.u32 %v5850_v59, %v5847_v32  ;;  %v17896_v32 = vld [vmem:[%s17244_s28 + $0xd4] sm:$0x1] }
 0x28f   : > { %v5860_v5 = vrot.slane %v5858_v49, 4  ;;  %v5866_v45 = vrot.slane %v5864_v34, 5  ;;  %v5878_v13 = vshll.u32 %v17842_v16, 16  ;;  %v5871_v2 = vrot.slane %v5869_v48, 4  ;;  %21102 = vst [vmem:[#allocation37_spill] sm:$0xff] %v17896_v32 }
 0x290   : > { %v5843_v10 = vsel %vm17285_vm10, %v5838_v43, %v5842_v62  ;;  %v5874_v11 = vrot.slane %v5872_v28, 5  ;;  %v5882_v50 = vshrl.u32 %v17842_v16, 16  ;;  %v5852_v55 = vrot.slane %v5851_v42, 4  ;;  %v15534_v48 = vld [vmem:[%s17244_s28 + $0x100] ss:$12 sps:$4 sm:$0xff]  }
 0x291   : > { %v13461_v31 = vcombine.low %v5833_v19, %v5843_v10  ;;  %v5861_v51 = vor.u32 %v5860_v5, %v5856_v56  ;;  %v5880_v24 = vrot.slane %v5878_v13, 5  ;;  %v5888_v14 = vshll.u32 %v5789_v23, 16  ;;  %v13381_v23 = vld [vmem:[%s17244_s28 + $0x70] sm:$0xf]  ;;  %v17907_v13 = vld [vmem:[%s17244_s28 + $0x7c] sm:$0xf] }
 0x292   : > { %v5875_v1 = vor.u32 %v5874_v11, %v5871_v2  ;;  %v5884_v25 = vrot.slane %v5882_v50, 4  ;;  %v5893_v22 = vshrl.u32 %v17857_v44, 16  ;;  %14495 = vmatmul.mubr.msk.bf16.gmra.mrb[12].mxu1 %vm21002_vm7, %v13230_v40  ;;  %v5857_v6 = vsel %vm17285_vm10, %v5852_v55, %v5856_v56 }
 0x293   : > { %v5862_v63 = vrot.slane %v5861_v51, 4  ;;  %v5896_v36 = vshll.u32 %v17857_v44, 16  ;;  %v5902_v58 = vshll.u32 %v17863_v27, 16  ;;  %14608 = vmatprep.mubr.msk.bf16.mxu1 %vm21002_vm7, %v13460_v33  ;;  %v5890_v52 = vrot.slane %v5888_v14, 5  ;;  %v15533_v33 = vld [vmem:[%s17244_s28 + $0xdc] ss:$12 sps:$4 sm:$0xff]  }
 0x294   : > { %v5876_v39 = vrot.slane %v5875_v1, 4  ;;  %v5885_v20 = vor.u32 %v5884_v25, %v5880_v24  ;;  %v5895_v47 = vrot.slane %v5893_v22, 4  ;;  %14555 = vmatmul.mubr.msk.bf16.vlgmr.msra.gmra.mrb[0].mxu0 %vm21002_vm7, %v15531_v37  ;;  %v5906_v8 = vshrl.u32 %v17863_v27, 16  ;;  %v17913_v37 = vld [vmem:[%s20968_s7 + $0x4] sm:$0x3] }
 0x295   : > { %v5867_v40 = vsel %vm17285_vm10, %v5862_v63, %v5866_v45  ;;  %v5898_v57 = vrot.slane %v5896_v36, 5  ;;  %v5904_v15 = vrot.slane %v5902_v58, 5  ;;  %14558 = vmatprep.mubr.msk.bf16.mxu0 %vm21002_vm7, %v15532_v30  ;;  %v5912_v21 = vshll.u32 %v17875_v18, 16  ;;  %v17921_v30 = vld [vmem:[%s17244_s28 + $0x88] sm:$0x1] }
 0x296   : > { %v13462_v4 = vcombine.low %v5857_v6, %v5867_v40  ;;  %v5881_v61 = vsel %vm17285_vm10, %v5876_v39, %v5880_v24  ;;  %v5886_v62 = vrot.slane %v5885_v20, 4  ;;  %v5908_v38 = vrot.slane %v5906_v8, 4  ;;  %v17929_v63 = vld [vmem:[%s20965_s4 + $0x10] sm:$0x3] }
 0x297   : > { %v5899_v54 = vor.u32 %v5898_v57, %v5895_v47  ;;  %v5917_v59 = vshrl.u32 %v17881_v46, 16  ;;  %v5920_v56 = vshll.u32 %v17881_v46, 16  ;;  %v5914_v34 = vrot.slane %v5912_v21, 5  ;;  %v15535_v40 = vld [vmem:[%s17244_s28 + $0x124] ss:$12 sps:$4 sm:$0xff]  }
 0x298   : > { %v5891_v49 = vsel %vm17285_vm10, %v5886_v62, %v5890_v52  ;;  %v5926_v19 = vshll.u32 %v17888_v17, 16  ;;  %v5930_v43 = vshrl.u32 %v17888_v17, 16  ;;  %v5909_v5 = vor.u32 %v5908_v38, %v5904_v15 }
 0x299   : > { %v13463_v28 = vcombine.low %v5881_v61, %v5891_v49  ;;  %v5900_v42 = vrot.slane %v5899_v54, 4  ;;  %v5919_v45 = vrot.slane %v5917_v59, 4  ;;  %v5922_v10 = vrot.slane %v5920_v56, 5  ;;  %v17951_v54 = vld [vmem:[%s17244_s28 + $0xac] sm:$0x1] }
 0x29a   : > { %v5928_v2 = vrot.slane %v5926_v19, 5  ;;  %v5932_v11 = vrot.slane %v5930_v43, 4  ;;  %v5936_v50 = vshll.u32 %v17896_v32, 16  ;;  %14609 = vmatmul.mubr.msk.bf16.vlgmr.msra.gmra.mrb[16].mxu1 %vm21002_vm7, %v13461_v31  ;;  %v5910_v51 = vrot.slane %v5909_v5, 4  ;;  %v13384_v31 = vld [vmem:[%s17244_s28 + $0x94] sm:$0xf] }
 0x29b   : > { %v5905_v55 = vsel %vm17285_vm10, %v5900_v42, %v5904_v15  ;;  %v5331_v24 = vsel %vm21003_vm6, %v17753_v41, 0  ;;  %v5089_v1 = vshrl.u32 %v13381_v23, 16  ;;  %14629 = vmatpush3.bf16.msra.mxu1 %v17826_v7  ;;  %14612 = vmatprep.mubr.msk.bf16.mxu1 %vm21002_vm7, %v13462_v4  ;;  %v5923_v25 = vor.u32 %v5922_v10, %v5919_v45  ;;  %v17942_v4 = vld [vmem:[%s17244_s28 + $0xa0] sm:$0xf]  ;;  %v15536_v56 = vld [vmem:[%s17244_s28 + $0x148] ss:$12 sps:$4 sm:$0xff]  }
 0x29c   : > { %v5933_v14 = vor.u32 %v5932_v11, %v5928_v2  ;;  %v5938_v22 = vrot.slane %v5936_v50, 5  ;;  %v5092_v6 = vshll.u32 %v13381_v23, 16  ;;  %14559 = vmatmul.mubr.msk.bf16.gmra.mrb[4].mxu0 %vm21002_vm7, %v15533_v33  ;;  %v5915_v41 = vsel %vm17285_vm10, %v5910_v51, %v5914_v34  ;;  %15414 = vmatprep.subr.msk.bf16.mxu1 %vm21003_vm6, %v17913_v37  ;;  %v17954_v59 = vld [vmem:[%s17244_s28 + $0xe0] sm:$0xf]  ;;  %v17958_v23 = vld [vmem:[%s17244_s28 + $0xec] sm:$0xf] }
 0x29d   : > { %v5091_v7 = vrot.slane %v5089_v1, 4  ;;  %v5098_v36 = vshll.u32 %v17907_v13, 16  ;;  %v5102_v58 = vshrl.u32 %v17907_v13, 16  ;;  %14562 = vmatprep.mubr.msk.bf16.mxu0 %vm21002_vm7, %v15534_v48  ;;  %v13464_v39 = vcombine.low %v5905_v55, %v5915_v41  ;;  %14571 = vmatpush3.bf16.msra.mxu0 %v5331_v24  ;;  %v17963_v10 = vld [vmem:[%s17244_s28 + $0xf8] sm:$0x1] }
 0x29e   : > { %v5924_v20 = vrot.slane %v5923_v25, 4  ;;  %v5934_v52 = vrot.slane %v5933_v14, 4  ;;  %v5094_v47 = vrot.slane %v5092_v6, 5  ;;  %v5108_v8 = vshll.u32 %v17921_v30, 16  ;;  %15411 = vmatprep.subr.msk.bf16.mxu0 %vm21003_vm6, %v17929_v63  ;;  %21103 = vst [vmem:[#allocation38_spill] sm:$0xff] %v17963_v10 }
 0x29f   : > { %v5100_v57 = vrot.slane %v5098_v36, 5  ;;  %v5104_v15 = vrot.slane %v5102_v58, 4  ;;  %v5113_v61 = vshrl.u32 %v13384_v31, 16  ;;  %v5116_v38 = vshll.u32 %v13384_v31, 16  ;;  %v17973_v14 = vld [vmem:[%s17244_s28 + $0x104] sm:$0xf] }
 0x2a0   : > { %v5929_v62 = vsel %vm17285_vm10, %v5924_v20, %v5928_v2  ;;  %v5939_v21 = vsel %vm17285_vm10, %v5934_v52, %v5938_v22  ;;  %v5095_v33 = vor.u32 %v5094_v47, %v5091_v7  ;;  %v5110_v19 = vrot.slane %v5108_v8, 5  ;;  %v17979_v41 = vld [vmem:[%s17244_s28 + $0x110] sm:$0xf]  ;;  %v17984_v20 = vld [vmem:[%s17244_s28 + $0x11c] sm:$0x1] }
 0x2a1   : > { %v13465_v49 = vcombine.low %v5929_v62, %v5939_v21  ;;  %v5105_v34 = vor.u32 %v5104_v15, %v5100_v57  ;;  %v5115_v43 = vrot.slane %v5113_v61, 4  ;;  %v5118_v42 = vrot.slane %v5116_v38, 5  ;;  %21104 = vst [vmem:[#allocation39_spill] sm:$0xff] %v17984_v20  ;;  %v15537_v52 = vld [vmem:[%s17244_s28 + $0x16c] ss:$12 sps:$4 sm:$0xff]  }
 0x2a2   : > { %v5096_v48 = vrot.slane %v5095_v33, 4  ;;  %v5122_v5 = vshll.u32 %v17942_v4, 16  ;;  %v5126_v45 = vshrl.u32 %v17942_v4, 16  ;;  %14613 = vmatmul.mubr.msk.bf16.gmra.mrb[20].mxu1 %vm21002_vm7, %v13463_v28  ;;  %v5132_v11 = vshll.u32 %v17951_v54, 16  ;;  %v13387_v8 = vld [vmem:[%s17244_s28 + $0xb8] sm:$0xf] }
 0x2a3   : > { %v5106_v2 = vrot.slane %v5105_v34, 4  ;;  %v5941_v50 = vshrl.u32 %v17954_v59, 16  ;;  %v5944_v55 = vshll.u32 %v17954_v59, 16  ;;  %14616 = vmatprep.mubr.msk.bf16.mxu1 %vm21002_vm7, %v13464_v39  ;;  %v5119_v24 = vor.u32 %v5118_v42, %v5115_v43  ;;  %v17995_v38 = vld [vmem:[%s17244_s28 + $0xc4] sm:$0xf] }
 0x2a4   : > { %v5101_v51 = vsel %vm17285_vm10, %v5096_v48, %v5100_v57  ;;  %v5124_v1 = vrot.slane %v5122_v5, 5  ;;  %v5128_v25 = vrot.slane %v5126_v45, 4  ;;  %14563 = vmatmul.mubr.msk.bf16.gmra.mrb[8].mxu0 %vm21002_vm7, %v15535_v40  ;;  %v5134_v22 = vrot.slane %v5132_v11, 5 }
 0x2a5   : > { %v5111_v28 = vsel %vm17285_vm10, %v5106_v2, %v5110_v19  ;;  %v5943_v6 = vrot.slane %v5941_v50, 4  ;;  %v5946_v31 = vrot.slane %v5944_v55, 5  ;;  %14566 = vmatprep.mubr.msk.bf16.mxu0 %vm21002_vm7, %v15536_v56  ;;  %v5120_v36 = vrot.slane %v5119_v24, 4  ;;  %v18002_v2 = vld [vmem:[%s17244_s28 + $0xd0] sm:$0x1] }
 0x2a6   : > { %v13406_v7 = vcombine.low %v5101_v51, %v5111_v28  ;;  %v5129_v58 = vor.u32 %v5128_v25, %v5124_v1  ;;  %v5950_v39 = vshll.u32 %v17958_v23, 16  ;;  %v5954_v40 = vshrl.u32 %v17958_v23, 16 }
 0x2a7   : > { %v5947_v47 = vor.u32 %v5946_v31, %v5943_v6  ;;  %v5960_v57 = vshll.u32 %v17963_v10, 16  ;;  %v5965_v15 = vshrl.u32 %v17973_v14, 16  ;;  %v5125_v61 = vsel %vm17285_vm10, %v5120_v36, %v5124_v1 }
 0x2a8   : > { %v5130_v62 = vrot.slane %v5129_v58, 4  ;;  %v5952_v21 = vrot.slane %v5950_v39, 5  ;;  %v5968_v33 = vshll.u32 %v17973_v14, 16  ;;  %v5956_v34 = vrot.slane %v5954_v40, 4  ;;  %v18012_v58 = vld [vmem:[%s17244_s28 + $0xe8] sm:$0xf] }
 0x2a9   : > { %v5948_v56 = vrot.slane %v5947_v47, 4  ;;  %v5962_v19 = vrot.slane %v5960_v57, 5  ;;  %v5967_v43 = vrot.slane %v5965_v15, 4  ;;  %v5974_v5 = vshll.u32 %v17979_v41, 16 }
 0x2aa   : > { %v5135_v48 = vsel %vm17285_vm10, %v5130_v62, %v5134_v22  ;;  %v5970_v42 = vrot.slane %v5968_v33, 5  ;;  %v5978_v45 = vshrl.u32 %v17979_v41, 16  ;;  %14617 = vmatmul.mubr.msk.bf16.gmra.mrb[24].mxu1 %vm21002_vm7, %v13465_v49  ;;  %v5957_v55 = vor.u32 %v5956_v34, %v5952_v21  ;;  %v13390_v22 = vld [vmem:[%s17244_s28 + $0xdc] sm:$0xf]  ;;  %v18020_v62 = vld [vmem:[%s17244_s28 + $0xf4] sm:$0x1] }
 0x2ab   : > { %v13407_v11 = vcombine.low %v5125_v61, %v5135_v48  ;;  %v5953_v50 = vsel %vm17285_vm10, %v5948_v56, %v5952_v21  ;;  %v5984_v51 = vshll.u32 %v17984_v20, 16  ;;  %v5976_v1 = vrot.slane %v5974_v5, 5  ;;  %v18025_v34 = vld [vmem:[%s17244_s28 + $0x128] sm:$0xf] }
 0x2ac   : > { %v5971_v24 = vor.u32 %v5970_v42, %v5967_v43  ;;  %v5980_v25 = vrot.slane %v5978_v45, 4  ;;  %v5137_v28 = vshrl.u32 %v13387_v8, 16  ;;  %14567 = vmatmul.mubr.msk.bf16.gmra.mrb[12].mxu0 %vm21002_vm7, %v15537_v52  ;;  %v5958_v6 = vrot.slane %v5957_v55, 4 }
 0x2ad   : > { %v5986_v31 = vrot.slane %v5984_v51, 5  ;;  %v5140_v36 = vshll.u32 %v13387_v8, 16  ;;  %v5146_v49 = vshll.u32 %v17995_v38, 16  ;;  %14572 = vmatprep.mubr.msk.bf16.mxu0 %vm21002_vm7, %v13406_v7  ;;  %v5150_v57 = vshrl.u32 %v17995_v38, 16 }
 0x2ae   : > { %v5972_v39 = vrot.slane %v5971_v24, 4  ;;  %v5981_v47 = vor.u32 %v5980_v25, %v5976_v1  ;;  %v5139_v40 = vrot.slane %v5137_v28, 4  ;;  %v5963_v15 = vsel %vm17285_vm10, %v5958_v6, %v5962_v19  ;;  %v18028_v19 = vld [vmem:[%s17244_s28 + $0x134] sm:$0xf]  ;;  %v18036_v6 = vld [vmem:[%s17244_s28 + $0x140] sm:$0x1] }
 0x2af   : > { %v5142_v52 = vrot.slane %v5140_v36, 5  ;;  %v5148_v61 = vrot.slane %v5146_v49, 5  ;;  %v5156_v8 = vshll.u32 %v18002_v2, 16  ;;  %v13466_v21 = vcombine.low %v5953_v50, %v5963_v15 }
 0x2b0   : > { %v5977_v33 = vsel %vm17285_vm10, %v5972_v39, %v5976_v1  ;;  %v5982_v7 = vrot.slane %v5981_v47, 4  ;;  %v5152_v56 = vrot.slane %v5150_v57, 4  ;;  %v5161_v42 = vshrl.u32 %v13390_v22, 16  ;;  %v18040_v47 = vld [vmem:[%s17244_s28 + $0x14c] sm:$0xf] }
 0x2b1   : > { %v5143_v43 = vor.u32 %v5142_v52, %v5139_v40  ;;  %v5158_v48 = vrot.slane %v5156_v8, 5  ;;  %v5164_v5 = vshll.u32 %v13390_v22, 16  ;;  %14620 = vmatprep.mubr.msk.bf16.mxu1 %vm21002_vm7, %v13466_v21  ;;  %v5170_v55 = vshll.u32 %v18012_v58, 16  ;;  %v18049_v52 = vld [vmem:[%s17244_s28 + $0x158] sm:$0xf] }
 0x2b2   : > { %v5987_v45 = vsel %vm17285_vm10, %v5982_v7, %v5986_v31  ;;  %v5153_v50 = vor.u32 %v5152_v56, %v5148_v61  ;;  %v5174_v51 = vshrl.u32 %v18012_v58, 16  ;;  %v5163_v25 = vrot.slane %v5161_v42, 4  ;;  %v18055_v42 = vld [vmem:[%s17244_s28 + $0x164] sm:$0x1] }
 0x2b3   : > { %v13467_v24 = vcombine.low %v5977_v33, %v5987_v45  ;;  %v5144_v1 = vrot.slane %v5143_v43, 4  ;;  %v5166_v28 = vrot.slane %v5164_v5, 5  ;;  %v5172_v36 = vrot.slane %v5170_v55, 5 }
 0x2b4   : > { %v5154_v22 = vrot.slane %v5153_v50, 4  ;;  %v5176_v49 = vrot.slane %v5174_v51, 4  ;;  %v5180_v39 = vshll.u32 %v18020_v62, 16  ;;  %14573 = vmatmul.mubr.msk.bf16.vlgmr.msra.gmra.mrb[0].mxu0 %vm21002_vm7, %v13407_v11  ;;  %v5989_v57 = vshrl.u32 %v18025_v34, 16  ;;  %v13393_v51 = vld [vmem:[%s17244_s28 + $0x100] sm:$0xf] }
 0x2b5   : > { %14621 = vmatmul.mubr.msk.bf16.gmra.mrb[28].mxu1 %vm21002_vm7, %v13467_v24  ;;  %v5149_v31 = vsel %vm17285_vm10, %v5144_v1, %v5148_v61  ;;  %v5167_v40 = vor.u32 %v5166_v28, %v5163_v25  ;;  %v5992_v15 = vshll.u32 %v18025_v34, 16  ;;  %v5998_v11 = vshll.u32 %v18028_v19, 16  ;;  %v18066_v28 = vld [vmem:[%s17244_s28 + $0x10c] sm:$0xf] }
 0x2b6   : > { %v5159_v8 = vsel %vm17285_vm10, %v5154_v22, %v5158_v48  ;;  %v5177_v21 = vor.u32 %v5176_v49, %v5172_v36  ;;  %v5182_v33 = vrot.slane %v5180_v39, 5  ;;  %v5991_v43 = vrot.slane %v5989_v57, 4 }
 0x2b7   : > { %v13408_v7 = vcombine.low %v5149_v31, %v5159_v8  ;;  %v5168_v56 = vrot.slane %v5167_v40, 4  ;;  %v5994_v61 = vrot.slane %v5992_v15, 5  ;;  %v6000_v45 = vrot.slane %v5998_v11, 5 }
 0x2b8   : > { %v5178_v5 = vrot.slane %v5177_v21, 4  ;;  %v6002_v50 = vshrl.u32 %v18028_v19, 16  ;;  %v6008_v55 = vshll.u32 %v18036_v6, 16  ;;  %v6013_v1 = vshrl.u32 %v18040_v47, 16 }
 0x2b9   : > { %14576 = vmatprep.mubr.msk.bf16.mxu0 %vm21002_vm7, %v13408_v7  ;;  %v5173_v48 = vsel %vm17285_vm10, %v5168_v56, %v5172_v36  ;;  %v5995_v24 = vor.u32 %v5994_v61, %v5991_v43  ;;  %v6016_v25 = vshll.u32 %v18040_v47, 16  ;;  %v6022_v31 = vshll.u32 %v18049_v52, 16  ;;  %v18077_v43 = vld [vmem:[%s17244_s28 + $0x118] sm:$0x1] }
 0x2ba   : > { %v5183_v22 = vsel %vm17285_vm10, %v5178_v5, %v5182_v33  ;;  %v6004_v49 = vrot.slane %v6002_v50, 4  ;;  %v6010_v39 = vrot.slane %v6008_v55, 5  ;;  %v6015_v15 = vrot.slane %v6013_v1, 4 }
 0x2bb   : > { %v13409_v40 = vcombine.low %v5173_v48, %v5183_v22  ;;  %v5996_v57 = vrot.slane %v5995_v24, 4  ;;  %v6018_v8 = vrot.slane %v6016_v25, 5  ;;  %v6024_v21 = vrot.slane %v6022_v31, 5  ;;  %v13396_v31 = vld [vmem:[%s17244_s28 + $0x124] sm:$0xf] }
 0x2bc   : > { %v6005_v36 = vor.u32 %v6004_v49, %v6000_v45  ;;  %v6026_v11 = vshrl.u32 %v18049_v52, 16  ;;  %v6032_v7 = vshll.u32 %v18055_v42, 16  ;;  %v5185_v61 = vshrl.u32 %v13393_v51, 16 }
 0x2bd   : > { %14577 = vmatmul.mubr.msk.bf16.gmra.mrb[4].mxu0 %vm21002_vm7, %v13409_v40  ;;  %v6001_v33 = vsel %vm17285_vm10, %v5996_v57, %v6000_v45  ;;  %v6019_v56 = vor.u32 %v6018_v8, %v6015_v15  ;;  %v5188_v5 = vshll.u32 %v13393_v51, 16  ;;  %v5194_v24 = vshll.u32 %v18066_v28, 16  ;;  %v18086_v15 = vld [vmem:[%s17244_s28 + $0x130] sm:$0xf] }
 0x2be   : > { %v6006_v50 = vrot.slane %v6005_v36, 4  ;;  %v6028_v55 = vrot.slane %v6026_v11, 4  ;;  %v6034_v48 = vrot.slane %v6032_v7, 5  ;;  %v5187_v25 = vrot.slane %v5185_v61, 4 }
 0x2bf   : > { %v6020_v1 = vrot.slane %v6019_v56, 4  ;;  %v5190_v22 = vrot.slane %v5188_v5, 5  ;;  %v5198_v49 = vshrl.u32 %v18066_v28, 16  ;;  %v5196_v57 = vrot.slane %v5194_v24, 5  ;;  %v18091_v56 = vld [vmem:[%s17244_s28 + $0x13c] sm:$0x1] }
 0x2c0   : > { %v6011_v45 = vsel %vm17285_vm10, %v6006_v50, %v6010_v39  ;;  %v6029_v40 = vor.u32 %v6028_v55, %v6024_v21  ;;  %v5204_v51 = vshll.u32 %v18077_v43, 16  ;;  %v5209_v20 = vshrl.u32 %v13396_v31, 16  ;;  %v13399_v39 = vld [vmem:[%s17244_s28 + $0x148] sm:$0xf] }
 0x2c1   : > { %v13468_v8 = vcombine.low %v6001_v33, %v6011_v45  ;;  %v6025_v36 = vsel %vm17285_vm10, %v6020_v1, %v6024_v21  ;;  %v5191_v11 = vor.u32 %v5190_v22, %v5187_v25  ;;  %v5200_v7 = vrot.slane %v5198_v49, 4 }
 0x2c2   : > { %v6030_v61 = vrot.slane %v6029_v40, 4  ;;  %v5206_v5 = vrot.slane %v5204_v51, 5  ;;  %v5212_v10 = vshll.u32 %v13396_v31, 16  ;;  %v5218_v33 = vshll.u32 %v18086_v15, 16  ;;  %v18103_v51 = vld [vmem:[%s17244_s28 + $0x154] sm:$0xf] }
 0x2c3   : > { %14624 = vmatprep.mubr.msk.bf16.mxu1 %vm21002_vm7, %v13468_v8  ;;  %v5192_v50 = vrot.slane %v5191_v11, 4  ;;  %v5201_v55 = vor.u32 %v5200_v7, %v5196_v57  ;;  %v5222_v21 = vshrl.u32 %v18086_v15, 16  ;;  %v5211_v1 = vrot.slane %v5209_v20, 4 }
 0x2c4   : > { %v6035_v24 = vsel %vm17285_vm10, %v6030_v61, %v6034_v48  ;;  %v5214_v25 = vrot.slane %v5212_v10, 5  ;;  %v5228_v22 = vshll.u32 %v18091_v56, 16  ;;  %v5220_v40 = vrot.slane %v5218_v33, 5  ;;  %v18108_v48 = vld [vmem:[%s17244_s28 + $0x160] sm:$0x1] }
 0x2c5   : > { %v13469_v49 = vcombine.low %v6025_v36, %v6035_v24  ;;  %v5197_v31 = vsel %vm17285_vm10, %v5192_v50, %v5196_v57  ;;  %v5202_v45 = vrot.slane %v5201_v55, 4  ;;  %v5224_v11 = vrot.slane %v5222_v21, 4  ;;  %v13402_v10 = vld [vmem:[%s17244_s28 + $0x16c] sm:$0xf] }
 0x2c6   : > { %v5215_v8 = vor.u32 %v5214_v25, %v5211_v1  ;;  %v5230_v7 = vrot.slane %v5228_v22, 5  ;;  %v13480_v32 = vcombine.low %v17761_v35, %v17771_v26  ;;  %v13481_v57 = vcombine.low %v17785_v3, %v17794_v29  ;;  %v18120_v26 = vld [vmem:[%s17244_s28 + $0x178] sm:$0xf]  ;;  %v18126_v3 = vld [vmem:[%s17244_s28 + $0x184] sm:$0x1] }
 0x2c7   : > { %14625 = vmatmul.mubr.msk.bf16.gmra.mrb[32].mxu1 %vm21002_vm7, %v13469_v49  ;;  %v5207_v20 = vsel %vm17285_vm10, %v5202_v45, %v5206_v5  ;;  %v6573_v36 = vsel %vm21003_vm6, %v17913_v37, 0  ;;  %v5233_v61 = vshrl.u32 %v13399_v39, 16  ;;  %v5225_v33 = vor.u32 %v5224_v11, %v5220_v40 }
 0x2c8   : > { %v13410_v50 = vcombine.low %v5197_v31, %v5207_v20  ;;  %v5216_v55 = vrot.slane %v5215_v8, 4  ;;  %14630 = vmatprep.mubr.msk.bf16.mxu1 %vm21002_vm7, %v13480_v32  ;;  %v5236_v35 = vshll.u32 %v13399_v39, 16  ;;  %v5242_v24 = vshll.u32 %v18103_v51, 16 }
 0x2c9   : > { %v5235_v21 = vrot.slane %v5233_v61, 4  ;;  %v5246_v5 = vshrl.u32 %v18103_v51, 16  ;;  %v5252_v1 = vshll.u32 %v18108_v48, 16  ;;  %v5226_v37 = vrot.slane %v5225_v33, 4 }
 0x2ca   : > { %14580 = vmatprep.mubr.msk.bf16.mxu0 %vm21002_vm7, %v13410_v50  ;;  %v5221_v29 = vsel %vm17285_vm10, %v5216_v55, %v5220_v40  ;;  %v5238_v32 = vrot.slane %v5236_v35, 5  ;;  %v5257_v39 = vshrl.u32 %v13402_v10, 16  ;;  %v5244_v25 = vrot.slane %v5242_v24, 5  ;;  %v13422_v55 = vld [vmem:[%s17244_s28 + $0x70] sm:$0xe] }
 0x2cb   : > { %v5248_v22 = vrot.slane %v5246_v5, 4  ;;  %v5254_v49 = vrot.slane %v5252_v1, 5  ;;  %v5260_v31 = vshll.u32 %v13402_v10, 16  ;;  %v5231_v45 = vsel %vm17285_vm10, %v5226_v37, %v5230_v7  ;;  %v18142_v7 = vld [vmem:[%s20968_s7 + $0x6] sm:$0x3] }
 0x2cc   : > { %v5239_v8 = vor.u32 %v5238_v32, %v5235_v21  ;;  %v5259_v11 = vrot.slane %v5257_v39, 4  ;;  %v5266_v20 = vshll.u32 %v18120_v26, 16  ;;  %v13411_v61 = vcombine.low %v5221_v29, %v5231_v45  ;;  %v13423_v32 = vld [vmem:[%s17244_s28 + $0x94] sm:$0xe]  ;;  %v13424_v45 = vld [vmem:[%s17244_s28 + $0xb8] sm:$0xe] }
 0x2cd   : > { %v5249_v50 = vor.u32 %v5248_v22, %v5244_v25  ;;  %v5262_v18 = vrot.slane %v5260_v31, 5  ;;  %v5270_v40 = vshrl.u32 %v18120_v26, 16  ;;  %v5276_v24 = vshll.u32 %v18126_v3, 16 }
 0x2ce   : > { %v5240_v33 = vrot.slane %v5239_v8, 4  ;;  %v5268_v35 = vrot.slane %v5266_v20, 5  ;;  %v13482_v10 = vcombine.low %v17817_v0, %v17821_v53  ;;  %14581 = vmatmul.mubr.msk.bf16.gmra.mrb[8].mxu0 %vm21002_vm7, %v13411_v61  ;;  %v5585_v0 = vsel %vm21003_vm6, %v17929_v63, 0 }
 0x2cf   : > { %14631 = vmatmul.mubr.msk.bf16.vlgmr.msra.gmra.mrb[16].mxu1 %vm21002_vm7, %v13481_v57  ;;  %v5250_v21 = vrot.slane %v5249_v50, 4  ;;  %v5263_v5 = vor.u32 %v5262_v18, %v5259_v11  ;;  %v5272_v1 = vrot.slane %v5270_v40, 4  ;;  %v5278_v37 = vrot.slane %v5276_v24, 5  ;;  %14589 = vmatpush3.bf16.msra.mxu0 %v5585_v0 }
 0x2d0   : > { %14651 = vmatpush3.bf16.msra.mxu1 %v6573_v36  ;;  %v5245_v29 = vsel %vm17285_vm10, %v5240_v33, %v5244_v25  ;;  %14634 = vmatprep.mubr.msk.bf16.mxu1 %vm21002_vm7, %v13482_v10  ;;  %v13430_v53 = vrot.slane %v13422_v55, 9  ;;  %v5480_v18 = vrot.slane %v17907_v13, 5  ;;  %v13483_v25 = vcombine.low %v17838_v12, %v17842_v16 }
 0x2d1   : > { %v5255_v39 = vsel %vm17285_vm10, %v5250_v21, %v5254_v49  ;;  %v5264_v57 = vrot.slane %v5263_v5, 4  ;;  %v5273_v22 = vor.u32 %v5272_v1, %v5268_v35  ;;  %15415 = vmatprep.subr.msk.bf16.mxu1 %vm21003_vm6, %v18142_v7  ;;  %v5483_v31 = vrot.slane %v17921_v30, 5  ;;  %v13425_v21 = vld [vmem:[%s17244_s28 + $0xdc] sm:$0xe] }
 0x2d2   : > { %v13412_v36 = vcombine.low %v5245_v29, %v5255_v39  ;;  %v5487_v63 = vrot.slane %v17942_v4, 5  ;;  %v5481_v11 = vsel %vm17595_vm13, %v13430_v53, %v5480_v18  ;;  %v5482_v13 = vrot.slane %v5480_v18, 4  ;;  %v13426_v29 = vld [vmem:[%s17244_s28 + $0x100] sm:$0xe] }
 0x2d3   : > { %v5269_v49 = vsel %vm17285_vm10, %v5264_v57, %v5268_v35  ;;  %v5274_v8 = vrot.slane %v5273_v22, 4  ;;  %v13431_v20 = vrot.slane %v13423_v32, 9  ;;  %v13484_v61 = vcombine.low %v17857_v44, %v17863_v27 }
 0x2d4   : > { %14584 = vmatprep.mubr.msk.bf16.mxu0 %vm21002_vm7, %v13412_v36  ;;  %v5484_v16 = vsel %vm17595_vm13, %v5482_v13, %v5483_v31  ;;  %v5489_v30 = vrot.slane %v5487_v63, 4  ;;  %v5490_v4 = vrot.slane %v17951_v54, 5  ;;  %v13432_v55 = vrot.slane %v13424_v45, 9 }
 0x2d5   : > { %v5279_v12 = vsel %vm17285_vm10, %v5274_v8, %v5278_v37  ;;  %v13439_v40 = vcombine.low %v5481_v11, %v5484_v16  ;;  %v5494_v33 = vrot.slane %v17995_v38, 5  ;;  %v5497_v44 = vrot.slane %v18002_v2, 5  ;;  %v13428_v8 = vld [vmem:[%s17244_s28 + $0x148] sm:$0xe]  ;;  %v13429_v16 = vld [vmem:[%s17244_s28 + $0x16c] sm:$0xe] }
 0x2d6   : > { %v13413_v50 = vcombine.low %v5269_v49, %v5279_v12  ;;  %v5488_v54 = vsel %vm17595_vm13, %v13431_v20, %v5487_v63  ;;  %v5491_v24 = vsel %vm17595_vm13, %v5489_v30, %v5490_v4  ;;  %v5501_v10 = vrot.slane %v18012_v58, 5  ;;  %v6410_v63 = vld [vmem:[%s17244_s28 + $0x8] sm:$0xe] }
 0x2d7   : > { %14635 = vmatmul.mubr.msk.bf16.gmra.mrb[20].mxu1 %vm21002_vm7, %v13483_v25  ;;  %v5496_v35 = vrot.slane %v5494_v33, 4  ;;  %v5495_v38 = vsel %vm17595_vm13, %v13432_v55, %v5494_v33  ;;  %v5508_v5 = vrot.slane %v18066_v28, 5  ;;  %v13485_v1 = vcombine.low %v17881_v46, %v17888_v17  ;;  %v13427_v46 = vld [vmem:[%s17244_s28 + $0x124] sm:$0xe] }
 0x2d8   : > { %14585 = vmatmul.mubr.msk.bf16.gmra.mrb[12].mxu0 %vm21002_vm7, %v13413_v50  ;;  %14638 = vmatprep.mubr.msk.bf16.mxu1 %vm21002_vm7, %v13484_v61  ;;  %v13440_v37 = vcombine.low %v5488_v54, %v5491_v24  ;;  %v13486_v0 = vcombine.low %v17954_v59, %v17958_v23  ;;  %v13433_v53 = vrot.slane %v13425_v21, 9  ;;  %v5503_v32 = vrot.slane %v5501_v10, 4  ;;  %v15593_v50 = vld [vmem:[%s17244_s28 + $0x20] sm:$0x1] }
 0x2d9   : > { %14590 = vmatprep.mubr.msk.bf16.mxu0 %vm21002_vm7, %v13439_v40  ;;  %v5498_v2 = vsel %vm17595_vm13, %v5496_v35, %v5497_v44  ;;  %v5504_v39 = vrot.slane %v18020_v62, 5  ;;  %v13434_v57 = vrot.slane %v13426_v29, 9  ;;  %v5510_v22 = vrot.slane %v5508_v5, 4  ;;  %v6411_v35 = vld [vmem:[%s17244_s28 + $0x2c] sm:$0xe] }
 0x2da   : > { %v13441_v58 = vcombine.low %v5495_v38, %v5498_v2  ;;  %v5511_v18 = vrot.slane %v18077_v43, 5  ;;  %v5515_v59 = vrot.slane %v18086_v15, 5  ;;  %v5502_v62 = vsel %vm17595_vm13, %v13433_v53, %v5501_v10  ;;  %v15592_v43 = vld [vmem:[%s17244_s28 + $0x14] sm:$0xf]  ;;  %v15595_v29 = vld [vmem:[%s17244_s28 + $0x5c] sm:$0xf] }
 0x2db   : > { %v5505_v28 = vsel %vm17595_vm13, %v5503_v32, %v5504_v39  ;;  %v6442_v36 = vrot.slane %v15592_v43, 5  ;;  %v5509_v25 = vsel %vm17595_vm13, %v13434_v57, %v5508_v5  ;;  %v5522_v15 = vrot.slane %v18103_v51, 5  ;;  %v15596_v53 = vld [vmem:[%s17244_s28 + $0x44] sm:$0x1] }
 0x2dc   : > { %v5512_v31 = vsel %vm17595_vm13, %v5510_v22, %v5511_v18  ;;  %v13487_v45 = vcombine.low %v17973_v14, %v17979_v41  ;;  %v13435_v49 = vrot.slane %v13427_v46, 9  ;;  %v5529_v11 = vrot.slane %v18120_v26, 5  ;;  %v6418_v22 = vld [vmem:[%s17244_s28 + $0x128] sm:$0xe] }
 0x2dd   : > { %v13442_v13 = vcombine.low %v5502_v62, %v5505_v28  ;;  %v5517_v20 = vrot.slane %v5515_v59, 4  ;;  %v5518_v61 = vrot.slane %v18091_v56, 5  ;;  %v13488_v12 = vcombine.low %v18025_v34, %v18028_v19  ;;  %v15594_v34 = vld [vmem:[%s17244_s28 + $0x38] sm:$0xf] }
 0x2de   : > { %v13443_v30 = vcombine.low %v5509_v25, %v5512_v31  ;;  %v13500_v51 = vrot.slane %v6410_v63, 9  ;;  %v6444_v4 = vrot.slane %v6442_v36, 4  ;;  %v6445_v40 = vrot.slane %v15593_v50, 5 }
 0x2df   : > { %14639 = vmatmul.mubr.msk.bf16.gmra.mrb[24].mxu1 %vm21002_vm7, %v13485_v1  ;;  %v13436_v14 = vrot.slane %v13428_v8, 9  ;;  %v5524_v55 = vrot.slane %v5522_v15, 4  ;;  %v5525_v33 = vrot.slane %v18108_v48, 5  ;;  %v13437_v26 = vrot.slane %v13429_v16, 9  ;;  %v6412_v1 = vld [vmem:[%s17244_s28 + $0x50] sm:$0xe] }
 0x2e0   : > { %14591 = vmatmul.mubr.msk.bf16.vlgmr.msra.gmra.mrb[0].mxu0 %vm21002_vm7, %v13440_v37  ;;  %14642 = vmatprep.mubr.msk.bf16.mxu1 %vm21002_vm7, %v13486_v0  ;;  %v5531_v44 = vrot.slane %v5529_v11, 4  ;;  %v5532_v56 = vrot.slane %v18126_v3, 5  ;;  %v6449_v54 = vrot.slane %v15594_v34, 5  ;;  %v5516_v24 = vsel %vm17595_vm13, %v13435_v49, %v5515_v59  ;;  %v6419_v59 = vld [vmem:[%s17244_s28 + $0x14c] sm:$0xe] }
 0x2e1   : > { %14594 = vmatprep.mubr.msk.bf16.mxu0 %vm21002_vm7, %v13441_v58  ;;  %v5519_v48 = vsel %vm17595_vm13, %v5517_v20, %v5518_v61  ;;  %v13489_v3 = vcombine.low %v18040_v47, %v18049_v52  ;;  %v6443_v10 = vsel %vm17595_vm13, %v13500_v51, %v6442_v36  ;;  %v6446_v38 = vsel %vm17595_vm13, %v6444_v4, %v6445_v40  ;;  %v15597_v36 = vld [vmem:[%s17244_s28 + $0x68] sm:$0x1]  ;;  %v6413_v49 = vld [vmem:[%s17244_s28 + $0x74] sm:$0xe]  ;;  %v15598_v8 = vld [vmem:[%s17244_s28 + $0x80] sm:$0xf] }
 0x2e2   : > { %v5523_v2 = vsel %vm17595_vm13, %v13436_v14, %v5522_v15  ;;  %v5526_v21 = vsel %vm17595_vm13, %v5524_v55, %v5525_v33  ;;  %v13501_v5 = vrot.slane %v6411_v35, 9  ;;  %v6456_v37 = vrot.slane %v15595_v29, 5  ;;  %v15599_v14 = vld [vmem:[%s17244_s28 + $0x8c] sm:$0x1]  ;;  %v6416_v29 = vld [vmem:[%s17244_s28 + $0xe0] sm:$0xe] }
 0x2e3   : > { %v5530_v47 = vsel %vm17595_vm13, %v13437_v26, %v5529_v11  ;;  %v5533_v0 = vsel %vm17595_vm13, %v5531_v44, %v5532_v56  ;;  %v6451_v58 = vrot.slane %v6449_v54, 4  ;;  %v6452_v32 = vrot.slane %v15596_v53, 5 }
 0x2e4   : > { %v13444_v39 = vcombine.low %v5516_v24, %v5519_v48  ;;  %v13511_v57 = vcombine.low %v6443_v10, %v6446_v38  ;;  %v13445_v18 = vcombine.low %v5523_v2, %v5526_v21  ;;  %v13502_v46 = vrot.slane %v6412_v1, 9  ;;  %v13602_v48 = vld [vmem:[%s20968_s7 + $0x8] sm:$0x3] }
 0x2e5   : > { %v13446_v62 = vcombine.low %v5530_v47, %v5533_v0  ;;  %v6450_v28 = vsel %vm17595_vm13, %v13501_v5, %v6449_v54  ;;  %v6458_v43 = vrot.slane %v6456_v37, 4  ;;  %v6459_v25 = vrot.slane %v15597_v36, 5  ;;  %v21105_v54 = vld [vmem:[#allocation36_spill] sm:$0xff]  ;;  %v6415_v5 = vld [vmem:[%s17244_s28 + $0xbc] sm:$0xe] }
 0x2e6   : > { %v6453_v31 = vsel %vm17595_vm13, %v6451_v58, %v6452_v32  ;;  %v6811_v15 = vsel %vm21003_vm6, %v18142_v7, 0  ;;  %v13508_v63 = vrot.slane %v6418_v22, 9  ;;  %v6463_v11 = vrot.slane %v15598_v8, 5  ;;  %v15548_v8 = vld [vmem:[%s17244_s28 + $0x2c] ss:$12 sps:$4 sm:$0xff]  }
 0x2e7   : > { %14643 = vmatmul.mubr.msk.bf16.gmra.mrb[28].mxu1 %vm21002_vm7, %v13487_v45  ;;  %v6498_v45 = vrot.slane %v18028_v19, 5  ;;  %v13509_v20 = vrot.slane %v6419_v59, 9  ;;  %v6505_v61 = vrot.slane %v18049_v52, 5  ;;  %v6457_v7 = vsel %vm17595_vm13, %v13502_v46, %v6456_v37 }
 0x2e8   : > { %14595 = vmatmul.mubr.msk.bf16.gmra.mrb[4].mxu0 %vm21002_vm7, %v13442_v13  ;;  %14646 = vmatprep.mubr.msk.bf16.mxu1 %vm21002_vm7, %v13488_v12  ;;  %v6501_v13 = vrot.slane %v18036_v6, 5  ;;  %v6414_v12 = vld [vmem:[%s17244_s28 + $0x98] sm:$0xe]  ;;  %v6470_v19 = vrot.slane %v17863_v27, 5  ;;  %v6460_v51 = vsel %vm17595_vm13, %v6458_v43, %v6459_v25  ;;  %v6508_v52 = vrot.slane %v18055_v42, 5 }
 0x2e9   : > { %14598 = vmatprep.mubr.msk.bf16.mxu0 %vm21002_vm7, %v13443_v30  ;;  %v6499_v16 = vsel %vm17595_vm13, %v13508_v63, %v6498_v45  ;;  %v6500_v30 = vrot.slane %v6498_v45, 4  ;;  %v6506_v6 = vsel %vm17595_vm13, %v13509_v20, %v6505_v61  ;;  %v6507_v4 = vrot.slane %v6505_v61, 4  ;;  %v18339_v61 = vld [vmem:[%s20968_s7 + $0xa] sm:$0x3] }
 0x2ea   : > { %v13512_v50 = vcombine.low %v6450_v28, %v6453_v31  ;;  %v13503_v40 = vrot.slane %v6413_v49, 9  ;;  %v6466_v55 = vrot.slane %v15599_v14, 5  ;;  %v6465_v33 = vrot.slane %v6463_v11, 4  ;;  %v6417_v28 = vld [vmem:[%s17244_s28 + $0x104] sm:$0xe] }
 0x2eb   : > { %v6502_v27 = vsel %vm17595_vm13, %v6500_v30, %v6501_v13  ;;  %v13504_v26 = vrot.slane %v6414_v12, 9  ;;  %v6509_v56 = vsel %vm17595_vm13, %v6507_v4, %v6508_v52  ;;  %v13513_v35 = vcombine.low %v6457_v7, %v6460_v51  ;;  %v15550_v13 = vld [vmem:[%s17244_s28 + $0x74] ss:$12 sps:$4 sm:$0xff]   ;;  %v13572_v7 = vld [vmem:[%s17244_s28 + $0x2c] sm:$0xf] }
 0x2ec   : > { %v13519_v44 = vcombine.low %v6499_v16, %v6502_v27  ;;  %v6472_v34 = vrot.slane %v6470_v19, 4  ;;  %v6473_v24 = vrot.slane %v21105_v54, 5  ;;  %v13520_v42 = vcombine.low %v6506_v6, %v6509_v56  ;;  %v18347_v12 = vld [vmem:[%s17244_s28 + $0x38] sm:$0xf]  ;;  %v15552_v16 = vld [vmem:[%s17244_s28 + $0xbc] ss:$12 sps:$4 sm:$0xff]  }
 0x2ed   : > { %v6467_v10 = vsel %vm17595_vm13, %v6465_v33, %v6466_v55  ;;  %v6477_v38 = vrot.slane %v17888_v17, 5  ;;  %v6471_v2 = vsel %vm17595_vm13, %v13504_v26, %v6470_v19  ;;  %v6484_v1 = vrot.slane %v17958_v23, 5  ;;  %v21106_v17 = vld [vmem:[#allocation37_spill] sm:$0xff]  ;;  %v15551_v19 = vld [vmem:[%s17244_s28 + $0x98] ss:$12 sps:$4 sm:$0xff]  }
 0x2ee   : > { %v6474_v21 = vsel %vm17595_vm13, %v6472_v34, %v6473_v24  ;;  %v13505_v0 = vrot.slane %v6415_v5, 9  ;;  %v6480_v53 = vrot.slane %v21106_v17, 5  ;;  %v13506_v32 = vrot.slane %v6416_v29, 9  ;;  %v13575_v52 = vld [vmem:[%s17244_s28 + $0x50] sm:$0xf] }
 0x2ef   : > { %14647 = vmatmul.mubr.msk.bf16.gmra.mrb[32].mxu1 %vm21002_vm7, %v13489_v3  ;;  %v6464_v3 = vsel %vm17595_vm13, %v13503_v40, %v6463_v11  ;;  %v13515_v47 = vcombine.low %v6471_v2, %v6474_v21  ;;  %v6479_v58 = vrot.slane %v6477_v38, 4  ;;  %v6491_v46 = vrot.slane %v17979_v41, 5  ;;  %v15549_v11 = vld [vmem:[%s17244_s28 + $0x50] ss:$12 sps:$4 sm:$0xff]   ;;  %v18357_v14 = vld [vmem:[%s17244_s28 + $0x44] sm:$0x1] }
 0x2f0   : > { %14599 = vmatmul.mubr.msk.bf16.gmra.mrb[8].mxu0 %vm21002_vm7, %v13444_v39  ;;  %14652 = vmatprep.mubr.msk.bf16.mxu1 %vm21002_vm7, %v13511_v57  ;;  %v13514_v37 = vcombine.low %v6464_v3, %v6467_v10  ;;  %v6486_v39 = vrot.slane %v6484_v1, 4  ;;  %v21107_v57 = vld [vmem:[#allocation38_spill] sm:$0xff]  ;;  %v6478_v23 = vsel %vm17595_vm13, %v13505_v0, %v6477_v38  ;;  %v6485_v59 = vsel %vm17595_vm13, %v13506_v32, %v6484_v1  ;;  %v18362_v33 = vld [vmem:[%s17244_s28 + $0x5c] sm:$0xf]  ;;  %v15553_v56 = vld [vmem:[%s17244_s28 + $0xe0] ss:$12 sps:$4 sm:$0xff]  }
 0x2f1   : > { %14602 = vmatprep.mubr.msk.bf16.mxu0 %vm21002_vm7, %v13445_v18  ;;  %v6487_v22 = vrot.slane %v21107_v57, 5  ;;  %v6481_v18 = vsel %vm17595_vm13, %v6479_v58, %v6480_v53  ;;  %v13507_v25 = vrot.slane %v6417_v28, 9  ;;  %v6493_v31 = vrot.slane %v6491_v46, 4  ;;  %v13578_v34 = vld [vmem:[%s17244_s28 + $0x74] sm:$0xf] }
 0x2f2   : > { %v13516_v43 = vcombine.low %v6478_v23, %v6481_v18  ;;  %v7279_v20 = vsel %vm21003_vm6, %v13602_v48, 0  ;;  %v6977_v30 = vshrl.u32 %v13572_v7, 16  ;;  %v6980_v51 = vshll.u32 %v13572_v7, 16  ;;  %v18371_v3 = vld [vmem:[%s17244_s28 + $0x80] sm:$0xf] }
 0x2f3   : > { %v6492_v41 = vsel %vm17595_vm13, %v13507_v25, %v6491_v46  ;;  %v6986_v6 = vshll.u32 %v18347_v12, 16  ;;  %v6990_v4 = vshrl.u32 %v18347_v12, 16  ;;  %v7001_v26 = vshrl.u32 %v13575_v52, 16  ;;  %v13581_v38 = vld [vmem:[%s17244_s28 + $0x98] sm:$0xf] }
 0x2f4   : > { %v6982_v40 = vrot.slane %v6980_v51, 5  ;;  %v6996_v24 = vshll.u32 %v18357_v14, 16  ;;  %v7025_v5 = vshrl.u32 %v13578_v34, 16  ;;  %v7028_v1 = vshll.u32 %v13578_v34, 16  ;;  %v18376_v29 = vld [vmem:[%s17244_s28 + $0xa4] sm:$0xf] }
 0x2f5   : > { %v18359_v55 = vrot.slane %v6986_v6, 5  ;;  %v6992_v27 = vrot.slane %v6990_v4, 4  ;;  %v7003_v2 = vrot.slane %v7001_v26, 4  ;;  %v18385_v32 = vld [vmem:[%s17244_s28 + $0x68] sm:$0x1]  ;;  %v7052_v57 = vshll.u32 %v13581_v38, 16 }
 0x2f6   : > { %v6998_v58 = vrot.slane %v6996_v24, 5  ;;  %v7062_v23 = vshrl.u32 %v18376_v29, 16  ;;  %v15555_v18 = vld [vmem:[%s17244_s28 + $0x128] ss:$12 sps:$4 sm:$0xff]   ;;  %v7030_v28 = vrot.slane %v7028_v1, 5 }
 0x2f7   : > { %14653 = vmatmul.mubr.msk.bf16.vlgmr.msra.gmra.mrb[16].mxu1 %vm21002_vm7, %v13512_v50  ;;  %v6979_v50 = vrot.slane %v6977_v30, 4  ;;  %v6993_v10 = vor.u32 %v6992_v27, %v18359_v55  ;;  %v18408_v7 = vld [vmem:[%s17244_s28 + $0xc8] sm:$0xf]  ;;  %v15557_v27 = vld [vmem:[%s17244_s28 + $0x170] ss:$12 sps:$4 sm:$0xff]  }
 0x2f8   : > { %14603 = vmatmul.mubr.msk.bf16.gmra.mrb[12].mxu0 %vm21002_vm7, %v13446_v62  ;;  %14673 = vmatpush3.bf16.msra.mxu1 %v6811_v15  ;;  %v6488_v62 = vsel %vm17595_vm13, %v6486_v39, %v6487_v22  ;;  %v21108_v15 = vld [vmem:[#allocation39_spill] sm:$0xff]  ;;  %v7049_v39 = vshrl.u32 %v13581_v38, 16  ;;  %v7058_v22 = vshll.u32 %v18376_v29, 16  ;;  %v13587_v34 = vld [vmem:[%s17244_s28 + $0xe0] sm:$0xf] }
 0x2f9   : > { %14656 = vmatprep.mubr.msk.bf16.mxu1 %vm21002_vm7, %v13513_v35  ;;  %15416 = vmatprep.subr.msk.bf16.mxu1 %vm21003_vm6, %v13602_v48  ;;  %v13517_v36 = vcombine.low %v6485_v59, %v6488_v62  ;;  %v6494_v63 = vrot.slane %v21108_v15, 5  ;;  %v15554_v35 = vld [vmem:[%s17244_s28 + $0x104] ss:$12 sps:$4 sm:$0xff]   ;;  %v6983_v54 = vor.u32 %v6982_v40, %v6979_v50  ;;  %v7014_v48 = vshrl.u32 %v18362_v33, 16 }
 0x2fa   : > { %v6994_v46 = vrot.slane %v6993_v10, 4  ;;  %v7027_v62 = vrot.slane %v7025_v5, 4  ;;  %v7082_v40 = vshll.u32 %v18408_v7, 16  ;;  %v13590_v38 = vld [vmem:[%s17244_s28 + $0x104] sm:$0xf] }
 0x2fb   : > { %v6495_v45 = vsel %vm17595_vm13, %v6493_v31, %v6494_v63  ;;  %v6984_v0 = vrot.slane %v6983_v54, 4  ;;  %v7016_v53 = vrot.slane %v7014_v48, 4  ;;  %v18423_v54 = vld [vmem:[%s17244_s28 + $0xec] sm:$0xf] }
 0x2fc   : > { %v13518_v49 = vcombine.low %v6492_v41, %v6495_v45  ;;  %v7020_v41 = vshll.u32 %v18385_v32, 16  ;;  %v18402_v45 = vld [vmem:[%s17244_s28 + $0xb0] sm:$0x1]  ;;  %v7031_v30 = vor.u32 %v7030_v28, %v7027_v62 }
 0x2fd   : > { %v6989_v15 = vsel %vm17285_vm10, %v6984_v0, %v18359_v55  ;;  %v7068_v4 = vshll.u32 %v18402_v45, 16  ;;  %v7086_v55 = vshrl.u32 %v18408_v7, 16 }
 0x2fe   : > { %v7032_v48 = vrot.slane %v7031_v30, 4 }
 0x2ff   : > { %14657 = vmatmul.mubr.msk.bf16.gmra.mrb[20].mxu1 %vm21002_vm7, %v13514_v37  ;;  %v7034_v37 = vshll.u32 %v18371_v3, 16  ;;  %v7088_v0 = vrot.slane %v7086_v55, 4  ;;  %v13593_v55 = vld [vmem:[%s17244_s28 + $0x128] sm:$0xf] }
 0x300   : > { %14660 = vmatprep.mubr.msk.bf16.mxu1 %vm21002_vm7, %v13515_v47  ;;  %v7038_v47 = vshrl.u32 %v18371_v3, 16 }
 0x301   : > { %v18394_v25 = vrot.slane %v7034_v37, 5  ;;  %v18430_v37 = vld [vmem:[%s17244_s28 + $0x110] sm:$0xf] }
 0x302   : > { %v7040_v31 = vrot.slane %v7038_v47, 4  ;;  %v18432_v47 = vrot.slane %v7082_v40, 5  ;;  %v7134_v62 = vshrl.u32 %v18430_v37, 16 }
 0x304   : > { %v7041_v6 = vor.u32 %v7040_v31, %v18394_v25 }
 0x307   : > { %14661 = vmatmul.mubr.msk.bf16.gmra.mrb[24].mxu1 %vm21002_vm7, %v13516_v43  ;;  %v15556_v43 = vld [vmem:[%s17244_s28 + $0x14c] ss:$12 sps:$4 sm:$0xff]  }
 0x308   : > { %14664 = vmatprep.mubr.msk.bf16.mxu1 %vm21002_vm7, %v13517_v36  ;;  %v18392_v36 = vld [vmem:[%s17244_s28 + $0x8c] sm:$0x1] }
 0x309   : > { %v7044_v51 = vshll.u32 %v18392_v36, 16 }
 0x30b   : > { %v7046_v10 = vrot.slane %v7044_v51, 5 }
 0x30f   : > { %14665 = vmatmul.mubr.msk.bf16.gmra.mrb[28].mxu1 %vm21002_vm7, %v13518_v49  ;;  %v13584_v49 = vld [vmem:[%s17244_s28 + $0xbc] sm:$0xf] }
 0x310   : > { %14668 = vmatprep.mubr.msk.bf16.mxu1 %vm21002_vm7, %v13519_v44  ;;  %v7004_v44 = vshll.u32 %v13575_v52, 16  ;;  %v7073_v52 = vshrl.u32 %v13584_v49, 16  ;;  %v7076_v50 = vshll.u32 %v13584_v49, 16 }
 0x312   : > { %v7006_v21 = vrot.slane %v7004_v44, 5  ;;  %v7022_v44 = vrot.slane %v7020_v41, 5  ;;  %v7075_v5 = vrot.slane %v7073_v52, 4  ;;  %v7078_v1 = vrot.slane %v7076_v50, 5 }
 0x314   : > { %v7007_v59 = vor.u32 %v7006_v21, %v7003_v2  ;;  %v7042_v2 = vrot.slane %v7041_v6, 4  ;;  %v7070_v21 = vrot.slane %v7068_v4, 5  ;;  %v7136_v4 = vrot.slane %v7134_v62, 4 }
 0x316   : > { %v7047_v31 = vsel %vm17285_vm10, %v7042_v2, %v7046_v10 }
 0x317   : > { %14669 = vmatmul.mubr.msk.bf16.gmra.mrb[32].mxu1 %vm21002_vm7, %v13520_v42  ;;  %v7010_v42 = vshll.u32 %v18362_v33, 16 }
 0x318   : > { %14674 = vmatprep.mubr.msk.bf16.mxu1 %vm21002_vm7, %v15548_v8  ;;  %v7051_v8 = vrot.slane %v7049_v39, 4 }
 0x319   : > { %v18382_v17 = vrot.slane %v7010_v42, 5 }
 0x31b   : > { %v7017_v63 = vor.u32 %v7016_v53, %v18382_v17  ;;  %v7100_v53 = vshll.u32 %v13587_v34, 16 }
 0x31d   : > { %v7018_v42 = vrot.slane %v7017_v63, 4  ;;  %v7089_v63 = vor.u32 %v7088_v0, %v18432_v47 }
 0x31f   : > { %14675 = vmatmul.mubr.msk.bf16.vlgmr.msra.gmra.mrb[16].mxu1 %vm21002_vm7, %v15549_v11  ;;  %v7054_v11 = vrot.slane %v7052_v57, 5  ;;  %v7023_v28 = vsel %vm17285_vm10, %v7018_v42, %v7022_v44 }
 0x320   : > { %14695 = vmatpush3.bf16.msra.mxu1 %v7279_v20  ;;  %14678 = vmatprep.mubr.msk.bf16.mxu1 %vm21002_vm7, %v15550_v13  ;;  %v18405_v13 = vrot.slane %v7058_v22, 5  ;;  %v7064_v20 = vrot.slane %v7062_v23, 4  ;;  %v18435_v22 = vld [vmem:[%s17244_s28 + $0xd4] sm:$0x1]  ;;  %v7110_v23 = vshrl.u32 %v18423_v54, 16 }
 0x321   : > { %15417 = vmatprep.subr.msk.bf16.mxu1 %vm21003_vm6, %v18339_v61  ;;  %v7092_v41 = vshll.u32 %v18435_v22, 16 }
 0x327   : > { %14679 = vmatmul.mubr.msk.bf16.gmra.mrb[20].mxu1 %vm21002_vm7, %v15551_v19  ;;  %v6999_v19 = vsel %vm17285_vm10, %v6994_v46, %v6998_v58  ;;  %v7097_v58 = vshrl.u32 %v13587_v34, 16  ;;  %v7124_v46 = vshll.u32 %v13590_v38, 16  ;;  %v7587_v34 = vsel %vm21003_vm6, %v18339_v61, 0 }
 0x328   : > { %14682 = vmatprep.mubr.msk.bf16.mxu1 %vm21002_vm7, %v15552_v16  ;;  %v7008_v16 = vrot.slane %v7007_v59, 4  ;;  %v13603_v26 = vcombine.low %v6989_v15, %v6999_v19  ;;  %v7130_v59 = vshll.u32 %v18430_v37, 16  ;;  %v7079_v15 = vor.u32 %v7078_v1, %v7075_v5  ;;  %v18484_v5 = vld [vmem:[%s20968_s7 + $0xc] sm:$0x3] }
 0x329   : > { %v7099_v49 = vrot.slane %v7097_v58, 4  ;;  %v7126_v51 = vrot.slane %v7124_v46, 5  ;;  %v7145_v1 = vshrl.u32 %v13593_v55, 16  ;;  %v7148_v61 = vshll.u32 %v13593_v55, 16 }
 0x32a   : > { %v7013_v24 = vsel %vm17285_vm10, %v7008_v16, %v18382_v17  ;;  %v7106_v17 = vshll.u32 %v18423_v54, 16  ;;  %v7112_v16 = vrot.slane %v7110_v23, 4  ;;  %v18462_v6 = vrot.slane %v7130_v59, 5 }
 0x32b   : > { %v13604_v52 = vcombine.low %v7013_v24, %v7023_v28  ;;  %v7080_v40 = vrot.slane %v7079_v15, 4  ;;  %v7150_v15 = vrot.slane %v7148_v61, 5 }
 0x32c   : > { %v18460_v19 = vrot.slane %v7106_v17, 5 }
 0x32e   : > { %v7113_v24 = vor.u32 %v7112_v16, %v18460_v19 }
 0x32f   : > { %14683 = vmatmul.mubr.msk.bf16.gmra.mrb[24].mxu1 %vm21002_vm7, %v15553_v56  ;;  %v7055_v56 = vor.u32 %v7054_v11, %v7051_v8  ;;  %v7102_v8 = vrot.slane %v7100_v53, 5  ;;  %v7085_v53 = vsel %vm17285_vm10, %v7080_v40, %v18432_v47 }
 0x330   : > { %14686 = vmatprep.mubr.msk.bf16.mxu1 %vm21002_vm7, %v15554_v35  ;;  %v7065_v35 = vor.u32 %v7064_v20, %v18405_v13  ;;  %v18458_v20 = vld [vmem:[%s17244_s28 + $0xf8] sm:$0x1]  ;;  %v7114_v62 = vrot.slane %v7113_v24, 4 }
 0x331   : > { %v7056_v39 = vrot.slane %v7055_v56, 4  ;;  %v7103_v44 = vor.u32 %v7102_v8, %v7099_v49  ;;  %v7116_v56 = vshll.u32 %v18458_v20, 16  ;;  %v18500_v8 = vld [vmem:[%s17244_s28 + $0x140] sm:$0x1] }
 0x332   : > { %v7066_v57 = vrot.slane %v7065_v35, 4  ;;  %v18470_v35 = vld [vmem:[%s17244_s28 + $0x134] sm:$0xf] }
 0x333   : > { %v7061_v11 = vsel %vm17285_vm10, %v7056_v39, %v18405_v13  ;;  %v18465_v13 = vld [vmem:[%s17244_s28 + $0x11c] sm:$0x1]  ;;  %v7154_v0 = vshll.u32 %v18470_v35, 16  ;;  %v7158_v58 = vshrl.u32 %v18470_v35, 16  ;;  %v7118_v17 = vrot.slane %v7116_v56, 5 }
 0x334   : > { %v7140_v2 = vshll.u32 %v18465_v13, 16 }
 0x337   : > { %14687 = vmatmul.mubr.msk.bf16.gmra.mrb[28].mxu1 %vm21002_vm7, %v15555_v18  ;;  %v7121_v18 = vshrl.u32 %v13590_v38, 16  ;;  %v7137_v38 = vor.u32 %v7136_v4, %v18462_v6  ;;  %v18504_v4 = vld [vmem:[%s17244_s28 + $0x17c] sm:$0xf] }
 0x338   : > { %14690 = vmatprep.mubr.msk.bf16.mxu1 %vm21002_vm7, %v15556_v43  ;;  %v7037_v43 = vsel %vm17285_vm10, %v7032_v48, %v18394_v25  ;;  %v7071_v25 = vsel %vm17285_vm10, %v7066_v57, %v7070_v21  ;;  %v13596_v48 = vld [vmem:[%s17244_s28 + $0x14c] sm:$0xf]  ;;  %v18479_v21 = vld [vmem:[%s17244_s28 + $0x158] sm:$0xf]  ;;  %v7104_v57 = vrot.slane %v7103_v44, 4 }
 0x339   : > { %v7123_v30 = vrot.slane %v7121_v18, 4  ;;  %v13605_v50 = vcombine.low %v7037_v43, %v7047_v31  ;;  %v13606_v42 = vcombine.low %v7061_v11, %v7071_v25  ;;  %v7169_v23 = vshrl.u32 %v13596_v48, 16  ;;  %v13599_v11 = vld [vmem:[%s17244_s28 + $0x170] sm:$0xf] }
 0x33a   : > { %v7172_v18 = vshll.u32 %v13596_v48, 16  ;;  %v7178_v46 = vshll.u32 %v18479_v21, 16  ;;  %v7182_v59 = vshrl.u32 %v18479_v21, 16  ;;  %v7138_v47 = vrot.slane %v7137_v38, 4 }
 0x33b   : > { %v7127_v10 = vor.u32 %v7126_v51, %v7123_v30  ;;  %v7142_v43 = vrot.slane %v7140_v2, 5  ;;  %v7147_v31 = vrot.slane %v7145_v1, 4  ;;  %v7171_v25 = vrot.slane %v7169_v23, 4 }
 0x33c   : > { %v7174_v16 = vrot.slane %v7172_v18, 5  ;;  %v7180_v30 = vrot.slane %v7178_v46, 5  ;;  %v7184_v51 = vrot.slane %v7182_v59, 4  ;;  %v7193_v24 = vshrl.u32 %v13599_v11, 16 }
 0x33d   : > { %v7128_v28 = vrot.slane %v7127_v10, 4  ;;  %v7143_v44 = vsel %vm17285_vm10, %v7138_v47, %v7142_v43  ;;  %v7151_v56 = vor.u32 %v7150_v15, %v7147_v31  ;;  %v7196_v10 = vshll.u32 %v13599_v11, 16  ;;  %v18534_v47 = vld [vmem:[%s17244_s28 + $0x188] sm:$0x1] }
 0x33e   : > { %v7206_v38 = vshrl.u32 %v18504_v4, 16  ;;  %v7175_v2 = vor.u32 %v7174_v16, %v7171_v25  ;;  %v7185_v1 = vor.u32 %v7184_v51, %v7180_v30  ;;  %v7212_v16 = vshll.u32 %v18534_v47, 16 }
 0x33f   : > { %14691 = vmatmul.mubr.msk.bf16.gmra.mrb[32].mxu1 %vm21002_vm7, %v15557_v27  ;;  %v7090_v27 = vrot.slane %v7089_v63, 4  ;;  %v7156_v63 = vrot.slane %v7154_v0, 5  ;;  %v7133_v55 = vsel %vm17285_vm10, %v7128_v28, %v18462_v6  ;;  %v7202_v6 = vshll.u32 %v18504_v4, 16 }
 0x340   : > { %14696 = vmatprep.mubr.msk.bf16.mxu1 %vm21002_vm7, %v13603_v26  ;;  %v7094_v26 = vrot.slane %v7092_v41, 5  ;;  %v7160_v41 = vrot.slane %v7158_v58, 4  ;;  %v13609_v58 = vcombine.low %v7133_v55, %v7143_v44  ;;  %v7198_v23 = vrot.slane %v7196_v10, 5  ;;  %v13623_v55 = vld [vmem:[%s17244_s28 + $0x2c] sm:$0xe] }
 0x341   : > { %v7204_v18 = vrot.slane %v7202_v6, 5  ;;  %v7208_v46 = vrot.slane %v7206_v38, 4  ;;  %v7176_v59 = vrot.slane %v7175_v2, 4  ;;  %v13633_v10 = vrot.slane %v13623_v55, 9 }
 0x342   : > { %v7095_v39 = vsel %vm17285_vm10, %v7090_v27, %v7094_v26  ;;  %v18517_v27 = vld [vmem:[%s17244_s28 + $0x164] sm:$0x1]  ;;  %v7459_v38 = vrot.slane %v18357_v14, 5  ;;  %v7484_v55 = vrot.slane %v18408_v7, 5  ;;  %v18611_v7 = vld [vmem:[%s20968_s7 + $0xe] sm:$0x3] }
 0x343   : > { %v13607_v49 = vcombine.low %v7085_v53, %v7095_v39  ;;  %v7188_v61 = vshll.u32 %v18517_v27, 16  ;;  %v7152_v53 = vrot.slane %v7151_v56, 4  ;;  %v7209_v25 = vor.u32 %v7208_v46, %v7204_v18 }
 0x345   : > { %v7190_v28 = vrot.slane %v7188_v61, 5  ;;  %v7157_v31 = vsel %vm17285_vm10, %v7152_v53, %v7156_v63 }
 0x347   : > { %14697 = vmatmul.mubr.msk.bf16.vlgmr.msra.gmra.mrb[16].mxu1 %vm21002_vm7, %v13604_v52  ;;  %v7109_v52 = vsel %vm17285_vm10, %v7104_v57, %v18460_v19  ;;  %v7161_v19 = vor.u32 %v7160_v41, %v7156_v63 }
 0x348   : > { %14717 = vmatpush3.bf16.msra.mxu1 %v7587_v34  ;;  %14700 = vmatprep.mubr.msk.bf16.mxu1 %vm21002_vm7, %v13605_v50  ;;  %v7119_v50 = vsel %vm17285_vm10, %v7114_v62, %v7118_v17  ;;  %v7164_v34 = vshll.u32 %v18500_v8, 16  ;;  %v7195_v17 = vrot.slane %v7193_v24, 4  ;;  %v7186_v62 = vrot.slane %v7185_v1, 4 }
 0x349   : > { %15418 = vmatprep.subr.msk.bf16.mxu1 %vm21003_vm6, %v18484_v5  ;;  %v13608_v0 = vcombine.low %v7109_v52, %v7119_v50  ;;  %v7162_v39 = vrot.slane %v7161_v19, 4  ;;  %v7181_v52 = vsel %vm17285_vm10, %v7176_v59, %v7180_v30  ;;  %v7456_v50 = vrot.slane %v18347_v12, 5 }
 0x34a   : > { %v7166_v57 = vrot.slane %v7164_v34, 5  ;;  %v7199_v11 = vor.u32 %v7198_v23, %v7195_v17  ;;  %v7191_v63 = vsel %vm17285_vm10, %v7186_v62, %v7190_v28  ;;  %v7210_v34 = vrot.slane %v7209_v25, 4  ;;  %v13625_v17 = vld [vmem:[%s17244_s28 + $0x74] sm:$0xe] }
 0x34b   : > { %v13611_v56 = vcombine.low %v7181_v52, %v7191_v63  ;;  %v7214_v24 = vrot.slane %v7212_v16, 5  ;;  %v7458_v6 = vrot.slane %v7456_v50, 4  ;;  %v7457_v14 = vsel %vm17595_vm13, %v13633_v10, %v7456_v50  ;;  %v13626_v50 = vld [vmem:[%s17244_s28 + $0x98] sm:$0xe] }
 0x34c   : > { %v7167_v41 = vsel %vm17285_vm10, %v7162_v39, %v7166_v57  ;;  %v7200_v19 = vrot.slane %v7199_v11, 4  ;;  %v13624_v39 = vld [vmem:[%s17244_s28 + $0x50] sm:$0xe]  ;;  %v7470_v57 = vrot.slane %v18371_v3, 5  ;;  %v7466_v62 = vrot.slane %v18385_v32, 5 }
 0x34d   : > { %v18511_v40 = vpop.f32.mrb[0].mxu1  ;;  %v13610_v44 = vcombine.low %v7157_v31, %v7167_v41  ;;  %v7215_v1 = vsel %vm17285_vm10, %v7210_v34, %v7214_v24  ;;  %v7460_v53 = vsel %vm17595_vm13, %v7458_v6, %v7459_v38  ;;  %v13634_v46 = vrot.slane %v13624_v39, 9  ;;  %v13629_v39 = vld [vmem:[%s17244_s28 + $0x104] sm:$0xe] }
 0x34e   : > { %v18520_v26 = vpop.f32.mrb[1].mxu1  ;;  %v7205_v12 = vsel %vm17285_vm10, %v7200_v19, %v7204_v18  ;;  %v13644_v18 = vcombine.low %v7457_v14, %v7460_v53  ;;  %v7472_v28 = vrot.slane %v7470_v57, 4  ;;  %v7473_v31 = vrot.slane %v18392_v36, 5  ;;  %v13628_v14 = vld [vmem:[%s17244_s28 + $0xe0] sm:$0xe] }
 0x34f   : > { %14701 = vmatmul.mubr.msk.bf16.gmra.mrb[20].mxu1 %vm21002_vm7, %v13606_v42  ;;  %v18526_v48 = vpop.f32.mrb[2].mxu1  ;;  %v13612_v23 = vcombine.low %v7205_v12, %v7215_v1  ;;  %v7477_v16 = vrot.slane %v18376_v29, 5  ;;  %v13636_v34 = vrot.slane %v13626_v50, 9  ;;  %v7480_v10 = vrot.slane %v18402_v45, 5 }
 0x350   : > { %14704 = vmatprep.mubr.msk.bf16.mxu1 %vm21002_vm7, %v13607_v49  ;;  %v18530_v42 = vpop.f32.mrb[3].mxu1  ;;  %v7474_v63 = vsel %vm17595_vm13, %v7472_v28, %v7473_v31  ;;  %v7825_v29 = vsel %vm21003_vm6, %v18484_v5, 0  ;;  %v7486_v38 = vrot.slane %v7484_v55, 4  ;;  %v7487_v12 = vrot.slane %v18435_v22, 5 }
 0x351   : > { %v7479_v24 = vrot.slane %v7477_v16, 4  ;;  %v7478_v45 = vsel %vm17595_vm13, %v13636_v34, %v7477_v16  ;;  %v7491_v1 = vrot.slane %v18423_v54, 5  ;;  %v7498_v53 = vrot.slane %v18430_v37, 5 }
 0x352   : > { %v7494_v54 = vrot.slane %v18458_v20, 5  ;;  %v7505_v28 = vrot.slane %v18470_v35, 5  ;;  %v7515_v35 = vrot.slane %v18517_v27, 5  ;;  %v7519_v34 = vrot.slane %v18504_v4, 5 }
 0x353   : > { %v7481_v5 = vsel %vm17595_vm13, %v7479_v24, %v7480_v10  ;;  %v13632_v24 = vld [vmem:[%s17244_s28 + $0x170] sm:$0xe] }
 0x354   : > { %v7507_v50 = vrot.slane %v7505_v28, 4 }
 0x355   : > { %v18536_v43 = vpop.f32.mrb[4].mxu1 }
 0x356   : > { %v18541_v15 = vpop.f32.mrb[5].mxu1 }
 0x357   : > { %14705 = vmatmul.mubr.msk.bf16.gmra.mrb[24].mxu1 %vm21002_vm7, %v13608_v0  ;;  %v18546_v49 = vpop.f32.mrb[6].mxu1  ;;  %v7463_v0 = vrot.slane %v18362_v33, 5  ;;  %v13635_v33 = vrot.slane %v13625_v17, 9 }
 0x358   : > { %14708 = vmatprep.mubr.msk.bf16.mxu1 %vm21002_vm7, %v13609_v58  ;;  %v18549_v51 = vpop.f32.mrb[7].mxu1 }
 0x359   : > { %v7465_v59 = vrot.slane %v7463_v0, 4  ;;  %v7464_v3 = vsel %vm17595_vm13, %v13634_v46, %v7463_v0  ;;  %v7471_v36 = vsel %vm17595_vm13, %v13635_v33, %v7470_v57  ;;  %v7488_v0 = vsel %vm17595_vm13, %v7486_v38, %v7487_v12 }
 0x35a   : > { %v13646_v19 = vcombine.low %v7471_v36, %v7474_v63  ;;  %v13647_v57 = vcombine.low %v7478_v45, %v7481_v5  ;;  %v13639_v46 = vrot.slane %v13629_v39, 9  ;;  %v7521_v38 = vrot.slane %v7519_v34, 4  ;;  %v13705_v5 = vld [vmem:[%s17244_s28 + $0x50] sm:$0xf] }
 0x35b   : > { %v7467_v25 = vsel %vm17595_vm13, %v7465_v59, %v7466_v62  ;;  %v7500_v59 = vrot.slane %v7498_v53, 4  ;;  %v7501_v62 = vrot.slane %v18465_v13, 5  ;;  %v7512_v13 = vrot.slane %v18479_v21, 5 }
 0x35c   : > { %v7499_v31 = vsel %vm17595_vm13, %v13639_v46, %v7498_v53  ;;  %v7522_v12 = vrot.slane %v18534_v47, 5  ;;  %v7994_v47 = vshll.u32 %v13705_v5, 16  ;;  %v13708_v53 = vld [vmem:[%s17244_s28 + $0x74] sm:$0xf] }
 0x35d   : > { %v18558_v2 = vpop.f32.mrb[8].mxu1  ;;  %v7502_v20 = vsel %vm17595_vm13, %v7500_v59, %v7501_v62  ;;  %v8018_v46 = vshll.u32 %v13708_v53, 16  ;;  %v15559_v59 = vld [vmem:[%s17244_s28 + $0x74] ss:$12 sps:$4 sm:$0xff]  }
 0x35e   : > { %v18561_v30 = vpop.f32.mrb[9].mxu1  ;;  %v13650_v36 = vcombine.low %v7499_v31, %v7502_v20  ;;  %v7523_v45 = vsel %vm17595_vm13, %v7521_v38, %v7522_v12  ;;  %v18686_v31 = vld [vmem:[%s17244_s28 + $0x68] sm:$0x1] }
 0x35f   : > { %14709 = vmatmul.mubr.msk.bf16.gmra.mrb[28].mxu1 %vm21002_vm7, %v13610_v44  ;;  %v18568_v61 = vpop.f32.mrb[10].mxu1  ;;  %v13627_v44 = vld [vmem:[%s17244_s28 + $0xbc] sm:$0xe] }
 0x360   : > { %14712 = vmatprep.mubr.msk.bf16.mxu1 %vm21002_vm7, %v13611_v56  ;;  %v18571_v58 = vpop.f32.mrb[11].mxu1  ;;  %v13645_v56 = vcombine.low %v7464_v3, %v7467_v25  ;;  %v13637_v6 = vrot.slane %v13627_v44, 9  ;;  %v13630_v3 = vld [vmem:[%s17244_s28 + $0x128] sm:$0xe]  ;;  %v13631_v25 = vld [vmem:[%s17244_s28 + $0x14c] sm:$0xe] }
 0x361   : > { %v13640_v63 = vrot.slane %v13630_v3, 9  ;;  %v13641_v44 = vrot.slane %v13631_v25, 9 }
 0x362   : > { %v7485_v22 = vsel %vm17595_vm13, %v13637_v6, %v7484_v55  ;;  %v7508_v55 = vrot.slane %v18500_v8, 5  ;;  %v13642_v6 = vrot.slane %v13632_v24, 9 }
 0x363   : > { %v13648_v17 = vcombine.low %v7485_v22, %v7488_v0  ;;  %v7506_v21 = vsel %vm17595_vm13, %v13640_v63, %v7505_v28  ;;  %v7513_v8 = vsel %vm17595_vm13, %v13641_v44, %v7512_v13  ;;  %v15558_v22 = vld [vmem:[%s17244_s28 + $0x50] ss:$12 sps:$4 sm:$0xff]   ;;  %v15560_v28 = vld [vmem:[%s17244_s28 + $0x98] ss:$12 sps:$4 sm:$0xff]   ;;  %v8010_v44 = vshll.u32 %v18686_v31, 16 }
 0x364   : > { %v7520_v4 = vsel %vm17595_vm13, %v13642_v6, %v7519_v34  ;;  %v18669_v0 = vld [vmem:[%s17244_s28 + $0x5c] sm:$0xf]  ;;  %v18696_v63 = vld [vmem:[%s20968_s7 + $0x10] sm:$0x3]  ;;  %v15562_v6 = vld [vmem:[%s17244_s28 + $0xe0] ss:$12 sps:$4 sm:$0xff]  }
 0x365   : > { %v18582_v41 = vpop.f32.mrb[12].mxu1  ;;  %v8000_v39 = vshll.u32 %v18669_v0, 16 }
 0x366   : > { %v18585_v11 = vpop.f32.mrb[13].mxu1 }
 0x367   : > { %14713 = vmatmul.mubr.msk.bf16.gmra.mrb[32].mxu1 %vm21002_vm7, %v13612_v23  ;;  %v18592_v32 = vpop.f32.mrb[14].mxu1  ;;  %v13638_v23 = vrot.slane %v13628_v14, 9  ;;  %v7991_v14 = vshrl.u32 %v13705_v5, 16  ;;  %v18680_v62 = vrot.slane %v8000_v39, 5  ;;  %v18725_v5 = vld [vmem:[%s17244_s28 + $0xb0] sm:$0x1] }
 0x368   : > { %14718 = vmatprep.mubr.msk.bf16.mxu1 %vm21002_vm7, %v13644_v18  ;;  %v18595_v52 = vpop.f32.mrb[15].mxu1  ;;  %v7493_v18 = vrot.slane %v7491_v1, 4  ;;  %21111 = vst [vmem:[#allocation38_spill] sm:$0xff] %v18725_v5  ;;  %v13717_v39 = vld [vmem:[%s17244_s28 + $0xe0] sm:$0xf] }
 0x369   : > { %v7492_v37 = vsel %vm17595_vm13, %v13638_v23, %v7491_v1  ;;  %v13653_v1 = vcombine.low %v7520_v4, %v7523_v45  ;;  %v7996_v23 = vrot.slane %v7994_v47, 5  ;;  %v18720_v4 = vrot.slane %v8010_v44, 5 }
 0x36a   : > { %v7495_v33 = vsel %vm17595_vm13, %v7493_v18, %v7494_v54  ;;  %v18677_v18 = vld [vmem:[%s17244_s28 + $0x80] sm:$0xf]  ;;  %v8015_v54 = vshrl.u32 %v13708_v53, 16 }
 0x36b   : > { %v13649_v16 = vcombine.low %v7492_v37, %v7495_v33  ;;  %v8293_v33 = vsel %vm21003_vm6, %v18611_v7, 0  ;;  %v8024_v20 = vshll.u32 %v18677_v18, 16 }
 0x36c   : > { %v8017_v25 = vrot.slane %v8015_v54, 4 }
 0x36f   : > { %14719 = vmatmul.mubr.msk.bf16.vlgmr.msra.gmra.mrb[16].mxu1 %vm21002_vm7, %v13645_v56  ;;  %v7514_v56 = vrot.slane %v7512_v13, 4  ;;  %v18690_v13 = vld [vmem:[%s17244_s28 + $0x8c] sm:$0x1] }
 0x370   : > { %14739 = vmatpush3.bf16.msra.mxu1 %v7825_v29  ;;  %14722 = vmatprep.mubr.msk.bf16.mxu1 %vm21002_vm7, %v13646_v19  ;;  %v7509_v19 = vsel %vm17595_vm13, %v7507_v50, %v7508_v55  ;;  %21109 = vst [vmem:[#allocation36_spill] sm:$0xff] %v18690_v13  ;;  %v13711_v50 = vld [vmem:[%s17244_s28 + $0x98] sm:$0xf]  ;;  %v18702_v55 = vld [vmem:[%s17244_s28 + $0xa4] sm:$0xf] }
 0x371   : > { %15419 = vmatprep.subr.msk.bf16.mxu1 %vm21003_vm6, %v18611_v7  ;;  %v7516_v27 = vsel %vm17595_vm13, %v7514_v56, %v7515_v35  ;;  %v13651_v10 = vcombine.low %v7506_v21, %v7509_v19  ;;  %21110 = vst [vmem:[#allocation37_spill] sm:$0xff] %v18702_v55  ;;  %v8034_v56 = vshll.u32 %v18690_v13, 16  ;;  %v18711_v19 = vrot.slane %v8024_v20, 5 }
 0x372   : > { %v13652_v29 = vcombine.low %v7513_v8, %v7516_v27  ;;  %v8039_v8 = vshrl.u32 %v13711_v50, 16  ;;  %v8042_v27 = vshll.u32 %v13711_v50, 16  ;;  %v8048_v24 = vshll.u32 %v18702_v55, 16  ;;  %v15563_v50 = vld [vmem:[%s17244_s28 + $0x104] ss:$12 sps:$4 sm:$0xff]  }
 0x373   : > { %v8052_v12 = vshrl.u32 %v18702_v55, 16  ;;  %v18722_v45 = vrot.slane %v8034_v56, 5 }
 0x374   : > { %v18741_v54 = vrot.slane %v8048_v24, 5 }
 0x377   : > { %14723 = vmatmul.mubr.msk.bf16.gmra.mrb[20].mxu1 %vm21002_vm7, %v13647_v57  ;;  %v8004_v57 = vshrl.u32 %v18669_v0, 16 }
 0x378   : > { %14726 = vmatprep.mubr.msk.bf16.mxu1 %vm21002_vm7, %v13648_v17  ;;  %v7993_v17 = vrot.slane %v7991_v14, 4 }
 0x379   : > { %v8006_v37 = vrot.slane %v8004_v57, 4  ;;  %v18739_v57 = vld [vmem:[%s17244_s28 + $0xec] sm:$0xf] }
 0x37a   : > { %v7997_v3 = vor.u32 %v7996_v23, %v7993_v17  ;;  %21113 = vst [vmem:[#allocation40_spill] sm:$0xff] %v18739_v57  ;;  %v8041_v17 = vrot.slane %v8039_v8, 4  ;;  %v8044_v23 = vrot.slane %v8042_v27, 5  ;;  %v15564_v8 = vld [vmem:[%s17244_s28 + $0x128] ss:$12 sps:$4 sm:$0xff]  }
 0x37b   : > { %v8007_v7 = vor.u32 %v8006_v37, %v18680_v62  ;;  %v8054_v37 = vrot.slane %v8052_v12, 4 }
 0x37c   : > { %v18707_v35 = vrot.slane %v7997_v3, 4  ;;  %v18749_v3 = vld [vmem:[%s17244_s28 + $0x110] sm:$0xf]  ;;  %v8045_v27 = vor.u32 %v8044_v23, %v8041_v17 }
 0x37d   : > { %v18717_v38 = vrot.slane %v8007_v7, 4  ;;  %21114 = vst [vmem:[#allocation41_spill] sm:$0xff] %v18749_v3  ;;  %v8100_v7 = vshrl.u32 %v18739_v57, 16 }
 0x37f   : > { %14727 = vmatmul.mubr.msk.bf16.gmra.mrb[24].mxu1 %vm21002_vm7, %v13649_v16  ;;  %v8020_v16 = vrot.slane %v8018_v46, 5 }
 0x380   : > { %14730 = vmatprep.mubr.msk.bf16.mxu1 %vm21002_vm7, %v13650_v36  ;;  %v8028_v36 = vshrl.u32 %v18677_v18, 16 }
 0x381   : > { %v8021_v21 = vor.u32 %v8020_v16, %v8017_v25  ;;  %v8087_v25 = vshrl.u32 %v13717_v39, 16  ;;  %v8090_v16 = vshll.u32 %v13717_v39, 16 }
 0x382   : > { %v8030_v34 = vrot.slane %v8028_v36, 4  ;;  %v8096_v36 = vshll.u32 %v18739_v57, 16 }
 0x383   : > { %v18734_v14 = vrot.slane %v8021_v21, 4  ;;  %v8092_v17 = vrot.slane %v8090_v16, 5 }
 0x384   : > { %v8031_v47 = vor.u32 %v8030_v34, %v18711_v19  ;;  %v18769_v23 = vrot.slane %v8096_v36, 5 }
 0x386   : > { %v18755_v44 = vrot.slane %v8031_v47, 4 }
 0x387   : > { %14731 = vmatmul.mubr.msk.bf16.gmra.mrb[28].mxu1 %vm21002_vm7, %v13651_v10  ;;  %v13714_v10 = vld [vmem:[%s17244_s28 + $0xbc] sm:$0xf] }
 0x388   : > { %14734 = vmatprep.mubr.msk.bf16.mxu1 %vm21002_vm7, %v13652_v29  ;;  %v15561_v29 = vld [vmem:[%s17244_s28 + $0xbc] ss:$12 sps:$4 sm:$0xff]   ;;  %v8063_v53 = vshrl.u32 %v13714_v10, 16  ;;  %v8066_v46 = vshll.u32 %v13714_v10, 16  ;;  %v8120_v10 = vshll.u32 %v18749_v3, 16 }
 0x38a   : > { %v8065_v56 = vrot.slane %v8063_v53, 4  ;;  %v8068_v24 = vrot.slane %v8066_v46, 5  ;;  %v13723_v53 = vld [vmem:[%s17244_s28 + $0x128] sm:$0xf]  ;;  %v8102_v46 = vrot.slane %v8100_v7, 4  ;;  %v18785_v16 = vrot.slane %v8120_v10, 5 }
 0x38b   : > { %v18788_v7 = vld [vmem:[%s17244_s28 + $0x134] sm:$0xf]  ;;  %v8135_v57 = vshrl.u32 %v13723_v53, 16 }
 0x38c   : > { %21118 = vst [vmem:[#allocation45_spill] sm:$0xff] %v18788_v7 }
 0x38f   : > { %14735 = vmatmul.mubr.msk.bf16.gmra.mrb[32].mxu1 %vm21002_vm7, %v13653_v1  ;;  %v18728_v1 = vld [vmem:[%s17244_s28 + $0xc8] sm:$0xf] }
 0x390   : > { %14740 = vmatprep.mubr.msk.bf16.mxu1 %vm21002_vm7, %v15558_v22  ;;  %21112 = vst [vmem:[#allocation39_spill] sm:$0xff] %v18728_v1  ;;  %v8076_v20 = vshrl.u32 %v18728_v1, 16  ;;  %v18767_v22 = vld [vmem:[%s17244_s28 + $0xd4] sm:$0x1] }
 0x391   : > { %21115 = vst [vmem:[#allocation42_spill] sm:$0xff] %v18767_v22 }
 0x392   : > { %v8078_v47 = vrot.slane %v8076_v20, 4 }
 0x397   : > { %14741 = vmatmul.mubr.msk.bf16.vlgmr.msra.gmra.mrb[16].mxu1 %vm21002_vm7, %v15559_v59  ;;  %v13720_v59 = vld [vmem:[%s17244_s28 + $0x104] sm:$0xf] }
 0x398   : > { %14761 = vmatpush3.bf16.msra.mxu1 %v8293_v33  ;;  %14744 = vmatprep.mubr.msk.bf16.mxu1 %vm21002_vm7, %v15560_v28  ;;  %v8058_v33 = vshll.u32 %v18725_v5, 16  ;;  %v8072_v28 = vshll.u32 %v18728_v1, 16  ;;  %v8111_v21 = vshrl.u32 %v13720_v59, 16  ;;  %v8114_v34 = vshll.u32 %v13720_v59, 16 }
 0x399   : > { %15420 = vmatprep.subr.msk.bf16.mxu1 %vm21003_vm6, %v18696_v63  ;;  %v8089_v59 = vrot.slane %v8087_v25, 4  ;;  %v8138_v1 = vshll.u32 %v13723_v53, 16  ;;  %v8069_v5 = vor.u32 %v8068_v24, %v8065_v56  ;;  %v8148_v56 = vshrl.u32 %v18788_v7, 16  ;;  %v15565_v53 = vld [vmem:[%s17244_s28 + $0x14c] ss:$12 sps:$4 sm:$0xff]  }
 0x39a   : > { %v18761_v12 = vrot.slane %v8058_v33, 5  ;;  %v18763_v39 = vrot.slane %v8072_v28, 5  ;;  %v18780_v33 = vld [vmem:[%s17244_s28 + $0xf8] sm:$0x1]  ;;  %v18783_v28 = vld [vmem:[%s17244_s28 + $0x11c] sm:$0x1] }
 0x39b   : > { %21116 = vst [vmem:[#allocation43_spill] sm:$0xff] %v18780_v33  ;;  %21117 = vst [vmem:[#allocation44_spill] sm:$0xff] %v18783_v28  ;;  %v8113_v20 = vrot.slane %v8111_v21, 4  ;;  %v8116_v25 = vrot.slane %v8114_v34, 5  ;;  %v8093_v21 = vor.u32 %v8092_v17, %v8089_v59  ;;  %v8103_v34 = vor.u32 %v8102_v46, %v18769_v23 }
 0x39c   : > { %v8106_v10 = vshll.u32 %v18780_v33, 16  ;;  %v8070_v46 = vrot.slane %v8069_v5, 4 }
 0x39f   : > { %14745 = vmatmul.mubr.msk.bf16.gmra.mrb[20].mxu1 %vm21002_vm7, %v15561_v29  ;;  %v8124_v29 = vshrl.u32 %v18749_v3, 16  ;;  %v8013_v3 = vsel %vm17285_vm10, %v18717_v38, %v18720_v4  ;;  %v8046_v38 = vrot.slane %v8045_v27, 4  ;;  %v8144_v27 = vshll.u32 %v18788_v7, 16 }
 0x3a0   : > { %14748 = vmatprep.mubr.msk.bf16.mxu1 %vm21002_vm7, %v15562_v6  ;;  %v8055_v6 = vor.u32 %v8054_v37, %v18741_v54  ;;  %v8027_v37 = vsel %vm17285_vm10, %v18734_v14, %v18711_v19  ;;  %v8082_v19 = vshll.u32 %v18767_v22, 16  ;;  %v8079_v14 = vor.u32 %v8078_v47, %v18763_v39 }
 0x3a1   : > { %v8126_v36 = vrot.slane %v8124_v29, 4  ;;  %v8117_v29 = vor.u32 %v8116_v25, %v8113_v20  ;;  %v8140_v47 = vrot.slane %v8138_v1, 5  ;;  %v8051_v59 = vsel %vm17285_vm10, %v8046_v38, %v18741_v54  ;;  %v13726_v25 = vld [vmem:[%s17244_s28 + $0x14c] sm:$0xf]  ;;  %v18814_v1 = vld [vmem:[%s17244_s28 + $0x140] sm:$0x1] }
 0x3a2   : > { %v8056_v4 = vrot.slane %v8055_v6, 4  ;;  %v8137_v6 = vrot.slane %v8135_v57, 4  ;;  %v8084_v20 = vrot.slane %v8082_v19, 5  ;;  %v8080_v7 = vrot.slane %v8079_v14, 4 }
 0x3a3   : > { %v8127_v24 = vor.u32 %v8126_v36, %v18785_v16  ;;  %v8108_v36 = vrot.slane %v8106_v10, 5  ;;  %v8118_v33 = vrot.slane %v8117_v29, 4  ;;  %v18816_v22 = vrot.slane %v8144_v27, 5  ;;  %v13729_v10 = vld [vmem:[%s17244_s28 + $0x170] sm:$0xf] }
 0x3a4   : > { %v8061_v17 = vsel %vm17285_vm10, %v8056_v4, %v18761_v12  ;;  %v8150_v54 = vrot.slane %v8148_v56, 4  ;;  %v8141_v13 = vor.u32 %v8140_v47, %v8137_v6  ;;  %v8159_v55 = vshrl.u32 %v13726_v25, 16  ;;  %v18858_v29 = vld [vmem:[%s20966_s5] ss:$0 sm:$0xff] }
 0x3a5   : > { %v8128_v38 = vrot.slane %v8127_v24, 4  ;;  %v8162_v5 = vshll.u32 %v13726_v25, 16  ;;  %v21119_v12 = vsel %vm17285_vm10, %v18707_v35, %v18680_v62  ;;  %v8075_v14 = vsel %vm17285_vm10, %v8070_v46, %v18763_v39  ;;  %v15567_v24 = vld [vmem:[%s17244_s28 + $0x194] ss:$12 sps:$4 sm:$0xff]  }
 0x3a6   : > { %v13736_v4 = vcombine.low %v21119_v12, %v8013_v3  ;;  %v8154_v35 = vshll.u32 %v18814_v1, 16  ;;  %v18839_v3 = vld [vmem:[%s17244_s28 + $0x158] sm:$0xf]  ;;  %v18843_v39 = vsel %vm21003_vm6, %v18696_v63, 0  ;;  %v8161_v27 = vrot.slane %v8159_v55, 4 }
 0x3a7   : > { %14749 = vmatmul.mubr.msk.bf16.gmra.mrb[24].mxu1 %vm21002_vm7, %v15563_v50  ;;  %v8130_v50 = vshll.u32 %v18783_v28, 16  ;;  %v15566_v28 = vld [vmem:[%s17244_s28 + $0x170] ss:$12 sps:$4 sm:$0xff]   ;;  %v8164_v56 = vrot.slane %v8162_v5, 5  ;;  %v8172_v47 = vshrl.u32 %v18839_v3, 16 }
 0x3a8   : > { %14752 = vmatprep.mubr.msk.bf16.mxu1 %vm21002_vm7, %v15564_v8  ;;  %v8037_v8 = vsel %vm17285_vm10, %v18755_v44, %v18722_v45  ;;  %v8094_v45 = vrot.slane %v8093_v21, 4  ;;  %v8104_v44 = vrot.slane %v8103_v34, 4  ;;  %v8085_v21 = vsel %vm17285_vm10, %v8080_v7, %v8084_v20  ;;  %v18852_v7 = vld [vmem:[%s17244_s28 + $0x164] sm:$0x1]  ;;  %v18875_v25 = vld [vmem:[%s20967_s6] ss:$0 sm:$0xff] }
 0x3a9   : > { %v8132_v57 = vrot.slane %v8130_v50, 5  ;;  %v18824_v19 = vcombine.low %v8027_v37, %v8037_v8  ;;  %v18845_v37 = vcombine.low %v8051_v59, %v8061_v17  ;;  %v8142_v50 = vrot.slane %v8141_v13, 4 }
 0x3aa   : > { %v8099_v34 = vsel %vm17285_vm10, %v8094_v45, %v18769_v23  ;;  %v8109_v62 = vsel %vm17285_vm10, %v8104_v44, %v8108_v36  ;;  %v8151_v23 = vor.u32 %v8150_v54, %v18816_v22  ;;  %v18863_v6 = vcombine.low %v8075_v14, %v8085_v21 }
 0x3ab   : > { %v8133_v63 = vsel %vm17285_vm10, %v8128_v38, %v8132_v57  ;;  %v8156_v17 = vrot.slane %v8154_v35, 5  ;;  %v8178_v46 = vshll.u32 %v18852_v7, 16  ;;  %v8183_v20 = vshrl.u32 %v13729_v10, 16 }
 0x3ac   : > { %v8152_v44 = vrot.slane %v8151_v23, 4  ;;  %v8186_v36 = vshll.u32 %v13729_v10, 16  ;;  %v8165_v38 = vor.u32 %v8164_v56, %v8161_v27  ;;  %v8174_v21 = vrot.slane %v8172_v47, 4 }
 0x3ad   : > { %v18895_v35 = vrot.slane %v8178_v46, 5 }
 0x3ae   : > { %v8157_v23 = vsel %vm17285_vm10, %v8152_v44, %v8156_v17  ;;  %v8188_v10 = vrot.slane %v8186_v36, 5  ;;  %v18902_v27 = vrot.slane %v8165_v38, 4 }
 0x3af   : > { %14753 = vmatmul.mubr.msk.bf16.gmra.mrb[28].mxu1 %vm21002_vm7, %v15565_v53 }
 0x3b0   : > { %14756 = vmatprep.mubr.msk.bf16.mxu1 %vm21002_vm7, %v15566_v28  ;;  %v8123_v28 = vsel %vm17285_vm10, %v8118_v33, %v18785_v16  ;;  %v18865_v33 = vcombine.low %v8099_v34, %v8109_v62  ;;  %v8168_v16 = vshll.u32 %v18839_v3, 16  ;;  %v18890_v34 = vld [vmem:[%s17244_s28 + $0x17c] sm:$0xf] }
 0x3b1   : > { %v18877_v45 = vcombine.low %v8123_v28, %v8133_v63  ;;  %v8192_v56 = vshll.u32 %v18890_v34, 16  ;;  %v8196_v47 = vshrl.u32 %v18890_v34, 16 }
 0x3b2   : > { %v18887_v14 = vrot.slane %v8168_v16, 5 }
 0x3b3   : > { %v14592_v8 = vpop.f32.mrb[0].mxu0 }
 0x3b4   : > { %v14986_v53 = vadd.f32 %v14592_v8, %v18511_v40  ;;  %v5621_v59 = vpop.f32.mrb[1].mxu0  ;;  %v8175_v16 = vor.u32 %v8174_v21, %v18887_v14 }
 0x3b5   : > { %v14987_v13 = vadd.f32 %v5621_v59, %v18520_v26  ;;  %v14593_v55 = vpop.f32.mrb[2].mxu0  ;;  %v8147_v26 = vsel %vm17285_vm10, %v8142_v50, %v18816_v22  ;;  %v8185_v22 = vrot.slane %v8183_v20, 4 }
 0x3b6   : > { %v5709_v40 = vmul.f32 %v14986_v53, %v18858_v29  ;;  %v14988_v57 = vadd.f32 %v14593_v55, %v18526_v48  ;;  %v5624_v54 = vpop.f32.mrb[3].mxu0  ;;  %v18909_v20 = vcombine.low %v8147_v26, %v8157_v23  ;;  %v13732_v26 = vld [vmem:[%s17244_s28 + $0x194] sm:$0xf] }
 0x3b7   : > { %v5707_v5 = vmul.f32 %v14987_v13, %v18858_v29  ;;  %v14989_v12 = vadd.f32 %v5624_v54, %v18530_v42  ;;  %14757 = vmatmul.mubr.msk.bf16.gmra.mrb[32].mxu1 %vm21002_vm7, %v15567_v24  ;;  %v18912_v13 = vld [vmem:[%s17244_s28 + $0x188] sm:$0x1] }
 0x3b8   : > { %v5710_v62 = vmul.f32 %v14988_v57, %v18858_v29  ;;  %v5732_v48 = vadd.f32 %v18875_v25, %v5709_v40  ;;  %14762 = vmatprep.mubr.msk.bf16.mxu1 %vm21002_vm7, %v13736_v4  ;;  %v8189_v57 = vor.u32 %v8188_v10, %v8185_v22  ;;  %v18937_v10 = vld [vmem:[%s17244_s28 + $0x1a0] sm:$0xf] }
 0x3b9   : > { %v5708_v28 = vmul.f32 %v14989_v12, %v18858_v29  ;;  %v5730_v42 = vadd.f32 %v18875_v25, %v5707_v5  ;;  %v18918_v12 = vrot.slane %v8192_v56, 5  ;;  %v18941_v56 = vrot.slane %v8175_v16, 4 }
 0x3ba   : > { %v5733_v63 = vadd.f32 %v18875_v25, %v5710_v62  ;;  %v5748_v50 = vmax.f32 %v5732_v48, 0.0  ;;  %v8216_v16 = vshll.u32 %v18937_v10, 16 }
 0x3bb   : > { %v5731_v4 = vadd.f32 %v18875_v25, %v5708_v28  ;;  %v14596_v8 = vpop.f32.mrb[4].mxu0  ;;  %v5746_v24 = vmax.f32 %v5730_v42, 0.0 }
 0x3bc   : > { %v14990_v53 = vadd.f32 %v14596_v8, %v18536_v43  ;;  %v5637_v59 = vpop.f32.mrb[5].mxu0  ;;  %v12471_v17 = vrot.slane %v5748_v50, 7  ;;  %v5749_v46 = vmax.f32 %v5733_v63, 0.0  ;;  %v8207_v63 = vshrl.u32 %v13732_v26, 16 }
 0x3bd   : > { %v14991_v55 = vadd.f32 %v5637_v59, %v18541_v15  ;;  %v14597_v44 = vpop.f32.mrb[6].mxu0  ;;  %v12468_v36 = vrot.slane %v5746_v24, 7  ;;  %v5747_v40 = vmax.f32 %v5731_v4, 0.0  ;;  %v18943_v4 = vrot.slane %v8189_v57, 4 }
 0x3be   : > { %v5713_v54 = vmul.f32 %v14990_v53, %v18858_v29  ;;  %v14992_v38 = vadd.f32 %v14597_v44, %v18546_v49  ;;  %v5640_v5 = vpop.f32.mrb[7].mxu0  ;;  %12498 = vrot.lane.b32.xlu1 %v12471_v17, %s15699_s20  ;;  %v12472_v43 = vrot.slane %v5749_v46, 7  ;;  %v8202_v49 = vshll.u32 %v18912_v13, 16 }
 0x3bf   : > { %v5711_v21 = vmul.f32 %v14991_v55, %v18858_v29  ;;  %v14993_v15 = vadd.f32 %v5640_v5, %v18549_v51  ;;  %12492 = vrot.lane.b32.xlu0 %v12468_v36, %s15699_s20  ;;  %14763 = vmatmul.mubr.msk.bf16.vlgmr.msra.gmra.mrb[16].mxu1 %vm21002_vm7, %v18824_v19  ;;  %v12469_v62 = vrot.slane %v5747_v40, 7  ;;  %v8198_v51 = vrot.slane %v8196_v47, 4 }
 0x3c0   : > { %v5736_v48 = vadd.f32 %v18875_v25, %v5713_v54  ;;  %v5714_v22 = vmul.f32 %v14992_v38, %v18858_v29  ;;  %14783 = vmatpush3.bf16.msra.mxu1 %v18843_v39  ;;  %v12473_v28 = vsel %vm21001_vm14, %v12471_v17, %v12472_v43  ;;  %14766 = vmatprep.mubr.msk.bf16.mxu1 %vm21002_vm7, %v18845_v37  ;;  %v18947_v47 = vrot.slane %v8202_v49, 5 }
 0x3c1   : > { %v5734_v42 = vadd.f32 %v18875_v25, %v5711_v21  ;;  %v5712_v23 = vmul.f32 %v14993_v15, %v18858_v29  ;;  %v12470_v19 = vsel %vm21001_vm14, %v12468_v36, %v12469_v62  ;;  %v8210_v53 = vshll.u32 %v13732_v26, 16 }
 0x3c2   : > { %v5737_v50 = vadd.f32 %v18875_v25, %v5714_v22  ;;  %12502 = vrot.lane.b32.xlu1 %v12472_v43, %s15699_s20  ;;  %v5752_v39 = vmax.f32 %v5736_v48, 0.0  ;;  %v8199_v55 = vor.u32 %v8198_v51, %v18918_v12  ;;  %v18953_v57 = vrot.slane %v8207_v63, 4 }
 0x3c3   : > { %v5735_v37 = vadd.f32 %v18875_v25, %v5712_v23  ;;  %v14600_v8 = vpop.f32.mrb[8].mxu0  ;;  %12500 = vrot.lane.b32.xlu0 %v12473_v28, %s15699_s20  ;;  %v5750_v24 = vmax.f32 %v5734_v42, 0.0  ;;  %v8220_v54 = vshrl.u32 %v18937_v10, 16  ;;  %v8212_v22 = vrot.slane %v8210_v53, 5 }
 0x3c4   : > { %v14994_v59 = vadd.f32 %v14600_v8, %v18558_v2  ;;  %v5653_v17 = vpop.f32.mrb[9].mxu0  ;;  %v5753_v46 = vmax.f32 %v5737_v50, 0.0  ;;  %v12477_v2 = vrot.slane %v5752_v39, 7  ;;  %v8200_v42 = vrot.slane %v8199_v55, 4 }
 0x3c5   : > { %v14995_v44 = vadd.f32 %v5653_v17, %v18561_v30  ;;  %v14601_v36 = vpop.f32.mrb[10].mxu0  ;;  %v5751_v40 = vmax.f32 %v5735_v37, 0.0  ;;  %v12474_v15 = vrot.slane %v5750_v24, 7  ;;  %v8181_v63 = vsel %vm17285_vm10, %v18941_v56, %v18895_v35 }
 0x3c6   : > { %v5717_v38 = vmul.f32 %v14994_v59, %v18858_v29  ;;  %v14996_v5 = vadd.f32 %v14601_v36, %v18568_v61  ;;  %v5656_v43 = vpop.f32.mrb[11].mxu0  ;;  %12496 = vrot.lane.b32.xlu1 %v12469_v62, %s15699_s20  ;;  %v12478_v26 = vrot.slane %v5753_v46, 7  ;;  %v8195_v8 = vsel %vm17285_vm10, %v18943_v4, %v18918_v12 }
 0x3c7   : > { %v5715_v21 = vmul.f32 %v14995_v44, %v18858_v29  ;;  %v14997_v30 = vadd.f32 %v5656_v43, %v18571_v58  ;;  %12494 = vrot.lane.b32.xlu0 %v12470_v19, %s15699_s20  ;;  %14767 = vmatmul.mubr.msk.bf16.gmra.mrb[20].mxu1 %vm21002_vm7, %v18863_v6  ;;  %v12475_v49 = vrot.slane %v5751_v40, 7  ;;  %v18973_v6 = vld [vmem:[%s17244_s28 + $0x1ac] sm:$0x1]  ;;  %v18991_v24 = vrot.slane %v8216_v16, 5 }
 0x3c8   : > { %v5740_v48 = vadd.f32 %v18875_v25, %v5717_v38  ;;  %v5718_v61 = vmul.f32 %v14996_v5, %v18858_v29  ;;  %14770 = vmatprep.mubr.msk.bf16.mxu1 %vm21002_vm7, %v18865_v33  ;;  %v12479_v62 = vsel %vm21001_vm14, %v12477_v2, %v12478_v26  ;;  %v8171_v33 = vsel %vm17285_vm10, %v18902_v27, %v18887_v14 }
 0x3c9   : > { %v5738_v28 = vadd.f32 %v18875_v25, %v5715_v21  ;;  %v5716_v58 = vmul.f32 %v14997_v30, %v18858_v29  ;;  %v12476_v51 = vsel %vm21001_vm14, %v12474_v15, %v12475_v49  ;;  %v8222_v59 = vrot.slane %v8220_v54, 4  ;;  %v13756_v30 = vld [vmem:[%s17244_s28 + $0x50] sm:$0xe] }
 0x3ca   : > { %v5741_v23 = vadd.f32 %v18875_v25, %v5718_v61  ;;  %12510 = vrot.lane.b32.xlu1 %v12477_v2, %s15699_s20  ;;  %v5756_v19 = vmax.f32 %v5740_v48, 0.0  ;;  %v8226_v35 = vshll.u32 %v18973_v6, 16  ;;  %v8205_v55 = vsel %vm17285_vm10, %v8200_v42, %v18947_v47 }
 0x3cb   : > { %v5739_v50 = vadd.f32 %v18875_v25, %v5716_v58  ;;  %v14604_v39 = vpop.f32.mrb[12].mxu0  ;;  %12504 = vrot.lane.b32.xlu0 %v12474_v15, %s15699_s20  ;;  %v5754_v37 = vmax.f32 %v5738_v28, 0.0  ;;  %v8213_v44 = vor.u32 %v8212_v22, %v18953_v57  ;;  %v8223_v5 = vor.u32 %v8222_v59, %v18991_v24 }
 0x3cc   : > { %v14998_v14 = vadd.f32 %v14604_v39, %v18582_v41  ;;  %v5669_v27 = vpop.f32.mrb[13].mxu0  ;;  %v5757_v53 = vmax.f32 %v5741_v23, 0.0  ;;  %v12483_v16 = vrot.slane %v5756_v19, 7  ;;  %v13743_v15 = vcombine.low %v8171_v33, %v8181_v63 }
 0x3cd   : > { %v14999_v56 = vadd.f32 %v5669_v27, %v18585_v11  ;;  %v14605_v17 = vpop.f32.mrb[14].mxu0  ;;  %v5755_v46 = vmax.f32 %v5739_v50, 0.0  ;;  %v12480_v47 = vrot.slane %v5754_v37, 7  ;;  %v13744_v61 = vcombine.low %v8195_v8, %v8205_v55  ;;  %v13757_v8 = vld [vmem:[%s17244_s28 + $0x74] sm:$0xe]  ;;  %v21120_v27 = vld [vmem:[#allocation37_spill] sm:$0xff] }
 0x3ce   : > { %v5721_v12 = vmul.f32 %v14998_v14, %v18858_v29  ;;  %v15000_v4 = vadd.f32 %v14605_v17, %v18592_v32  ;;  %v5672_v41 = vpop.f32.mrb[15].mxu0  ;;  %12514 = vrot.lane.b32.xlu1 %v12478_v26, %s15699_s20  ;;  %v12484_v36 = vrot.slane %v5757_v53, 7  ;;  %v8214_v22 = vrot.slane %v8213_v44, 4  ;;  %v21121_v17 = vld [vmem:[#allocation36_spill] sm:$0xff] }
 0x3cf   : > { %v5719_v40 = vmul.f32 %v14999_v56, %v18858_v29  ;;  %v15001_v11 = vadd.f32 %v5672_v41, %v18595_v52  ;;  %12508 = vrot.lane.b32.xlu0 %v12475_v49, %s15699_s20  ;;  %14771 = vmatmul.mubr.msk.bf16.gmra.mrb[24].mxu1 %vm21002_vm7, %v18877_v45  ;;  %v12481_v57 = vrot.slane %v5755_v46, 7  ;;  %v8470_v45 = vrot.slane %v18669_v0, 5 }
 0x3d0   : > { %v5744_v54 = vadd.f32 %v18875_v25, %v5721_v12  ;;  %v5722_v32 = vmul.f32 %v15000_v4, %v18858_v29  ;;  %14774 = vmatprep.mubr.msk.bf16.mxu1 %vm21002_vm7, %v18909_v20  ;;  %v12485_v38 = vsel %vm21001_vm14, %v12483_v16, %v12484_v36  ;;  %v8228_v49 = vrot.slane %v8226_v35, 5  ;;  %v21122_v12 = vld [vmem:[#allocation38_spill] sm:$0xff] }
 0x3d1   : > { %v5742_v52 = vadd.f32 %v18875_v25, %v5719_v40  ;;  %v5720_v43 = vmul.f32 %v15001_v11, %v18858_v29  ;;  %v12482_v2 = vsel %vm21001_vm14, %v12480_v47, %v12481_v57  ;;  %v8224_v29 = vrot.slane %v8223_v5, 4 }
 0x3d2   : > { %v5745_v26 = vadd.f32 %v18875_v25, %v5722_v32  ;;  %12506 = vrot.lane.b32.xlu1 %v12476_v51, %s15699_s20  ;;  %v5760_v21 = vmax.f32 %v5744_v54, 0.0  ;;  %v13766_v42 = vrot.slane %v13756_v30, 9  ;;  %v8472_v0 = vrot.slane %v8470_v45, 4  ;;  %v21124_v54 = vld [vmem:[#allocation40_spill] sm:$0xff] }
 0x3d3   : > { %v5743_v20 = vadd.f32 %v18875_v25, %v5720_v43  ;;  %12512 = vrot.lane.b32.xlu0 %v12479_v62, %s15699_s20  ;;  %v5758_v48 = vmax.f32 %v5742_v52, 0.0  ;;  %v8473_v23 = vrot.slane %v18686_v31, 5  ;;  %v8219_v33 = vsel %vm17285_vm10, %v8214_v22, %v18991_v24  ;;  %v13758_v24 = vld [vmem:[%s17244_s28 + $0x98] sm:$0xe] }
 0x3d4   : > { %v5761_v28 = vmax.f32 %v5745_v26, 0.0  ;;  %v12489_v51 = vrot.slane %v5760_v21, 7  ;;  %v8229_v31 = vsel %vm17285_vm10, %v8224_v29, %v8228_v49  ;;  %v8477_v63 = vrot.slane %v18677_v18, 5 }
 0x3d5   : > { %v5759_v58 = vmax.f32 %v5743_v20, 0.0  ;;  %v12486_v25 = vrot.slane %v5758_v48, 7  ;;  %v8471_v39 = vsel %vm17595_vm13, %v13766_v42, %v8470_v45  ;;  %v8474_v37 = vsel %vm17595_vm13, %v8472_v0, %v8473_v23  ;;  %v21125_v45 = vld [vmem:[#allocation42_spill] sm:$0xff]  ;;  %v21126_v20 = vld [vmem:[#allocation43_spill] sm:$0xff]  ;;  %v21128_v42 = vld [vmem:[#allocation45_spill] sm:$0xff] }
 0x3d6   : > { %12522 = vrot.lane.b32.xlu1 %v12483_v16, %s15699_s20  ;;  %v12490_v19 = vrot.slane %v5761_v28, 7  ;;  %v8484_v53 = vrot.slane %v21120_v27, 5  ;;  %v13745_v59 = vcombine.low %v8219_v33, %v8229_v31  ;;  %v13777_v18 = vcombine.low %v8471_v39, %v8474_v37  ;;  %v13762_v23 = vld [vmem:[%s17244_s28 + $0x128] sm:$0xe]  ;;  %v21129_v33 = vld [vmem:[#allocation44_spill] sm:$0xff] }
 0x3d7   : > { %12516 = vrot.lane.b32.xlu0 %v12480_v47, %s15699_s20  ;;  %14775 = vmatmul.mubr.msk.bf16.gmra.mrb[28].mxu1 %vm21002_vm7, %v13743_v15  ;;  %v12487_v62 = vrot.slane %v5759_v58, 7  ;;  %v13767_v35 = vrot.slane %v13757_v8, 9  ;;  %v8479_v56 = vrot.slane %v8477_v63, 4  ;;  %v8480_v46 = vrot.slane %v21121_v17, 5  ;;  %v13761_v58 = vld [vmem:[%s17244_s28 + $0x104] sm:$0xe] }
 0x3d8   : > { %14778 = vmatprep.mubr.msk.bf16.mxu1 %vm21002_vm7, %v13744_v61  ;;  %v12491_v50 = vsel %vm21001_vm14, %v12489_v51, %v12490_v19  ;;  %v13768_v55 = vrot.slane %v13758_v24, 9  ;;  %v8486_v44 = vrot.slane %v8484_v53, 4  ;;  %v8487_v4 = vrot.slane %v21122_v12, 5  ;;  %v21127_v61 = vld [vmem:[#allocation41_spill] sm:$0xff] }
 0x3d9   : > { %v12488_v14 = vsel %vm21001_vm14, %v12486_v25, %v12487_v62  ;;  %v8478_v41 = vsel %vm17595_vm13, %v13767_v35, %v8477_v63  ;;  %v8481_v16 = vsel %vm17595_vm13, %v8479_v56, %v8480_v46  ;;  %v8498_v32 = vrot.slane %v21124_v54, 5  ;;  %v13763_v24 = vld [vmem:[%s17244_s28 + $0x14c] sm:$0xe] }
 0x3da   : > { %12526 = vrot.lane.b32.xlu1 %v12484_v36, %s15699_s20  ;;  %v21123_v36 = vld [vmem:[#allocation39_spill] sm:$0xff]  ;;  %v8485_v11 = vsel %vm17595_vm13, %v13768_v55, %v8484_v53  ;;  %v8488_v47 = vsel %vm17595_vm13, %v8486_v44, %v8487_v4  ;;  %v13778_v5 = vcombine.low %v8478_v41, %v8481_v16  ;;  %v8494_v26 = vrot.slane %v21125_v45, 5  ;;  %v13765_v16 = vld [vmem:[%s17244_s28 + $0x194] sm:$0xe] }
 0x3db   : > { %12520 = vrot.lane.b32.xlu0 %v12481_v57, %s15699_s20  ;;  %v8491_v40 = vrot.slane %v21123_v36, 5  ;;  %v13759_v57 = vld [vmem:[%s17244_s28 + $0xbc] sm:$0xe]  ;;  %v13779_v52 = vcombine.low %v8485_v11, %v8488_v47  ;;  %v8500_v30 = vrot.slane %v8498_v32, 4  ;;  %v8501_v15 = vrot.slane %v21126_v20, 5 }
 0x3dc   : > { %v13769_v43 = vrot.slane %v13759_v57, 9  ;;  %v8505_v22 = vrot.slane %v21127_v61, 5  ;;  %v8512_v0 = vrot.slane %v21128_v42, 5  ;;  %v8508_v31 = vrot.slane %v21129_v33, 5 }
 0x3dd   : > { %v8502_v28 = vsel %vm17595_vm13, %v8500_v30, %v8501_v15  ;;  %v13772_v63 = vrot.slane %v13762_v23, 9  ;;  %v8515_v37 = vrot.slane %v18814_v1, 5  ;;  %v8526_v1 = vrot.slane %v18890_v34, 5 }
 0x3de   : > { %12518 = vrot.lane.b32.xlu1 %v12482_v2, %s15699_s20  ;;  %v8493_v2 = vrot.slane %v8491_v40, 4  ;;  %v8492_v49 = vsel %vm17595_vm13, %v13769_v43, %v8491_v40  ;;  %v8514_v39 = vrot.slane %v8512_v0, 4  ;;  %v13773_v56 = vrot.slane %v13763_v24, 9  ;;  %v19137_v43 = vld [vmem:[%s20969_s8] ss:$0 sm:$0xff] }
 0x3df   : > { %12524 = vrot.lane.b32.xlu0 %v12485_v38, %s15699_s20  ;;  %14779 = vmatmul.mubr.msk.bf16.gmra.mrb[32].mxu1 %vm21002_vm7, %v13745_v59  ;;  %v13760_v38 = vld [vmem:[%s17244_s28 + $0xe0] sm:$0xe]  ;;  %v8513_v27 = vsel %vm17595_vm13, %v13772_v63, %v8512_v0  ;;  %v13764_v59 = vld [vmem:[%s17244_s28 + $0x170] sm:$0xe]  ;;  %v8522_v46 = vrot.slane %v18852_v7, 5  ;;  %v8528_v44 = vrot.slane %v8526_v1, 4 }
 0x3e0   : > { %14784 = vmatprep.mubr.msk.bf16.mxu1 %vm21002_vm7, %v13777_v18  ;;  %v13770_v21 = vrot.slane %v13760_v38, 9  ;;  %v8495_v48 = vsel %vm17595_vm13, %v8493_v2, %v8494_v26  ;;  %v8516_v53 = vsel %vm17595_vm13, %v8514_v39, %v8515_v37  ;;  %v13774_v55 = vrot.slane %v13764_v59, 9  ;;  %v9246_v38 = vld [vmem:[%s20971_s10] sm:$0x3] }
 0x3e1   : > { %v13783_v35 = vcombine.low %v8513_v27, %v8516_v53  ;;  %v8533_v4 = vrot.slane %v18937_v10, 5  ;;  %v13775_v40 = vrot.slane %v13765_v16, 9  ;;  %v8536_v47 = vrot.slane %v18973_v6, 5  ;;  %v19142_v26 = vld [vmem:[%s20970_s9] ss:$0 sm:$0xff] }
 0x3e2   : > { %12534 = vrot.lane.b32.xlu1 %v12489_v51, %s15699_s20  ;;  %v8499_v29 = vsel %vm17595_vm13, %v13770_v21, %v8498_v32  ;;  %v13780_v51 = vcombine.low %v8492_v49, %v8495_v48  ;;  %v8527_v41 = vsel %vm17595_vm13, %v13774_v55, %v8526_v1  ;;  %v13820_v32 = vld [vmem:[%s20971_s10 + $0x2] sm:$0x3] }
 0x3e3   : > { %12528 = vrot.lane.b32.xlu0 %v12486_v25, %s15699_s20  ;;  %v13771_v25 = vrot.slane %v13761_v58, 9  ;;  %v8535_v11 = vrot.slane %v8533_v4, 4  ;;  %v8534_v10 = vsel %vm17595_vm13, %v13775_v40, %v8533_v4  ;;  %15421 = vmatprep.subr.msk.bf16.mxu0 %vm21003_vm6, %v13820_v32  ;;  %v9498_v6 = vsel %vm21003_vm6, %v13820_v32, 0 }
 0x3e4   : > { %14805 = vmatpush3.bf16.msra.mxu0 %v9498_v6 }
 0x3e5   : > { %v8506_v8 = vsel %vm17595_vm13, %v13771_v25, %v8505_v22  ;;  %v8537_v57 = vsel %vm17595_vm13, %v8535_v11, %v8536_v47  ;;  %15422 = vmatprep.subr.msk.bf16.mxu0 %vm21003_vm6, %v9246_v38  ;;  %v9167_v47 = vld [vmem:[#allocation4 + $0xc] sm:$0xf] }
 0x3e6   : > { %12538 = vrot.lane.b32.xlu1 %v12490_v19, %s15699_s20  ;;  %v13781_v19 = vcombine.low %v8499_v29, %v8502_v28  ;;  %v13786_v54 = vcombine.low %v8534_v10, %v8537_v57 }
 0x3e7   : > { %12532 = vrot.lane.b32.xlu0 %v12487_v62, %s15699_s20  ;;  %14785 = vmatmul.mubr.msk.bf16.vlgmr.msra.gmra.mrb[16].mxu1 %vm21002_vm7, %v13778_v5  ;;  %v8507_v62 = vrot.slane %v8505_v22, 4  ;;  %v8811_v5 = vstv %s13799_s27  ;;  %s15700_s27 = smov 16  }
 0x3e8   : > { %14788 = vmatprep.mubr.msk.bf16.mxu1 %vm21002_vm7, %v13779_v52  ;;  %v8812_v52 = vadd.s32 1, %v8811_v5  ;;  %v8814_v2 = vadd.s32 3, %v8811_v5  ;;  %vm8821_vm1 = vcmp.ge.s32.totalorder %v8811_v5, 0  ;;  %v19145_v20 = vadd.s32 2, %v8811_v5 }
 0x3e9   : > { %vm8831_vm5 = vcmp.lt.s32.totalorder %v8811_v5, 16  ;;  %v19170_v33 = vadd.s32 7, %v8811_v5  ;;  %v19174_v39 = vadd.s32 6, %v8811_v5  ;;  %v19176_v37 = vadd.s32 9, %v8811_v5 }
 0x3ea   : > { %12530 = vrot.lane.b32.xlu1 %v12488_v14, %s15699_s20  ;;  %v8519_v14 = vrot.slane %v18839_v3, 5  ;;  %v8529_v3 = vrot.slane %v18912_v13, 5  ;;  %vm8822_vm15 = vcmp.ge.s32.totalorder %v8812_v52, 0  ;;  %vm8832_vm0 = vcmp.lt.s32.totalorder %v8812_v52, 16  ;;  %vm19158_vm14 = vmand %vm8821_vm1, %vm8831_vm5 }
 0x3eb   : > { %12536 = vrot.lane.b32.xlu0 %v12491_v50, %s15699_s20  ;;  %v8509_v50 = vsel %vm17595_vm13, %v8507_v62, %v8508_v31  ;;  %vm8824_vm3 = vcmp.ge.s32.totalorder %v8814_v2, 0  ;;  %vm8834_vm8 = vcmp.lt.s32.totalorder %v8814_v2, 16  ;;  %vm19151_vm9 = vmand %vm8822_vm15, %vm8832_vm0  ;;  %vm8823_vm15 = vcmp.ge.s32.totalorder %v19145_v20, 0 }
 0x3ec   : > { %v13782_v18 = vcombine.low %v8506_v8, %v8509_v50  ;;  %v8521_v17 = vrot.slane %v8519_v14, 4  ;;  %v8520_v12 = vsel %vm17595_vm13, %v13773_v56, %v8519_v14  ;;  %v8530_v7 = vsel %vm17595_vm13, %v8528_v44, %v8529_v3  ;;  %vm19193_vm1 = vmand %vm8824_vm3, %vm8834_vm8 }
 0x3ed   : > { %v13785_v36 = vcombine.low %v8527_v41, %v8530_v7  ;;  %vm8833_vm0 = vcmp.lt.s32.totalorder %v19145_v20, 16  ;;  %v19168_v62 = vadd.s32 4, %v8811_v5  ;;  %v19180_v53 = vadd.s32 8, %v8811_v5 }
 0x3ee   : > { %v8523_v34 = vsel %vm17595_vm13, %v8521_v17, %v8522_v46 }
 0x3ef   : > { %14789 = vmatmul.mubr.msk.bf16.gmra.mrb[20].mxu1 %vm21002_vm7, %v13780_v51  ;;  %v13784_v13 = vcombine.low %v8520_v12, %v8523_v34  ;;  %v19165_v51 = vadd.s32 5, %v8811_v5  ;;  %vm8825_vm3 = vcmp.ge.s32.totalorder %v19168_v62, 0  ;;  %vm8835_vm8 = vcmp.lt.s32.totalorder %v19168_v62, 16  ;;  %v9157_v5 = vld [vmem:[#allocation4] sm:$0xf] }
 0x3f0   : > { %14792 = vmatprep.mubr.msk.bf16.mxu1 %vm21002_vm7, %v13781_v19 }
 0x3f1   : > { %vm8836_vm5 = vcmp.lt.s32.totalorder %v19165_v51, 16 }
 0x3f7   : > { %14793 = vmatmul.mubr.msk.bf16.gmra.mrb[24].mxu1 %vm21002_vm7, %v13782_v18 }
 0x3f8   : > { %14796 = vmatprep.mubr.msk.bf16.mxu1 %vm21002_vm7, %v13783_v35  ;;  %v19186_v35 = vsel %vm21003_vm6, %v9246_v38, 0  ;;  %vm19210_vm6 = vmor %vm8951_vm11, %vm8952_vm12 }
 0x3f9   : > { %vm19277_vm12 = vmand %vm8825_vm3, %vm8835_vm8  ;;  %vm8840_vm3 = vcmp.lt.s32.totalorder %v19176_v37, 16  ;;  %vm8829_vm8 = vcmp.ge.s32.totalorder %v19180_v53, 0 }
 0x3ff   : > { %14797 = vmatmul.mubr.msk.bf16.gmra.mrb[28].mxu1 %vm21002_vm7, %v13784_v13 }
 0x400   : > { %14800 = vmatprep.mubr.msk.bf16.mxu1 %vm21002_vm7, %v13785_v36 }
 0x407   : > { %14801 = vmatmul.mubr.msk.bf16.gmra.mrb[32].mxu1 %vm21002_vm7, %v13786_v54  ;;  %vm9162_vm7 = vcmask 24576  }
 0x4ba   : > { %v14786_v45 = vpop.f32.mrb[16].mxu1 }
 0x4bb   : > { %v8745_v21 = vmul.f32 %v14786_v45, %v19137_v43  ;;  %v8637_v30 = vpop.f32.mrb[17].mxu1 }
 0x4bc   : > { %v8743_v15 = vmul.f32 %v19137_v43, %v8637_v30  ;;  %v14787_v49 = vpop.f32.mrb[18].mxu1 }
 0x4bd   : > { %v8772_v48 = vadd.f32 %v19142_v26, %v8745_v21  ;;  %v8746_v61 = vmul.f32 %v14787_v49, %v19137_v43  ;;  %v8640_v22 = vpop.f32.mrb[19].mxu1  ;;  %v9171_v49 = vld [vmem:[#allocation4 + $0x14] sm:$0x1] }
 0x4be   : > { %v8770_v28 = vadd.f32 %v19142_v26, %v8743_v15  ;;  %v8744_v58 = vmul.f32 %v19137_v43, %v8640_v22 }
 0x4bf   : > { %v8792_v42 = vmax.f32 %v8772_v48, 0.0  ;;  %v8773_v23 = vadd.f32 %v19142_v26, %v8746_v61 }
 0x4c0   : > { %v8790_v19 = vmax.f32 %v8770_v28, 0.0  ;;  %v8771_v25 = vadd.f32 %v19142_v26, %v8744_v58  ;;  %v9164_v58 = vld [vmem:[#allocation4 + $0x8] sm:$0x1] }
 0x4c1   : > { %v8873_v31 = vsel %vm19151_vm9, %v8792_v42, 0.0  ;;  %v8793_v63 = vmax.f32 %v8773_v23, 0.0 }
 0x4c2   : > { %v14103_v8 = vpack.c.bf16 %v8873_v31, %v8873_v31  ;;  %v8871_v50 = vsel %vm19158_vm14, %v8790_v19, 0.0  ;;  %v8791_v14 = vmax.f32 %v8771_v25, 0.0  ;;  %v14790_v27 = vpop.f32.mrb[20].mxu1 }
 0x4c3   : > { %v14101_v24 = vpack.c.bf16 %v8871_v50, %v8871_v50  ;;  %v8874_v1 = vsel %vm19151_vm9, %v8793_v63, 0.0  ;;  %v8749_v59 = vmul.f32 %v14790_v27, %v19137_v43  ;;  %v8653_v18 = vpop.f32.mrb[21].mxu1  ;;  %vm19202_vm9 = vmand %vm9154_vm2, %vm9155_vm4 }
 0x4c4   : > { %v8972_v56 = vshrl.u32 %v14103_v8, 16  ;;  %v8975_v17 = vshll.u32 %v14103_v8, 16  ;;  %v14104_v46 = vpack.c.bf16 %v8874_v1, %v8874_v1  ;;  %v8872_v55 = vsel %vm19158_vm14, %v8791_v14, 0.0  ;;  %v14791_v44 = vpop.f32.mrb[22].mxu1  ;;  %vm19217_vm4 = vmand %vm9162_vm7, %vm8951_vm11 }
 0x4c5   : > { %v8955_v3 = vshrl.u32 %v14101_v24, 16  ;;  %v8958_v12 = vshll.u32 %v14101_v24, 16  ;;  %v14102_v34 = vpack.c.bf16 %v8872_v55, %v8872_v55  ;;  %v8776_v4 = vadd.f32 %v19142_v26, %v8749_v59  ;;  %v8656_v41 = vpop.f32.mrb[23].mxu1  ;;  %vm19229_vm7 = vmand %vm8823_vm15, %vm8833_vm0 }
 0x4c6   : > { %v8974_v7 = vrot.slane %v8972_v56, 7  ;;  %v8980_v16 = vshrl.u32 %v14104_v46, 16  ;;  %v8983_v13 = vshll.u32 %v14104_v46, 16  ;;  %v8747_v40 = vmul.f32 %v19137_v43, %v8653_v18 }
 0x4c7   : > { %vm8826_vm14 = vcmp.ge.s32.totalorder %v19165_v51, 0  ;;  %v8957_v10 = vrot.slane %v8955_v3, 7  ;;  %v8963_v57 = vshrl.u32 %v14102_v34, 16  ;;  %v8966_v54 = vshll.u32 %v14102_v34, 16  ;;  %v9181_v34 = vld [vmem:[#allocation4 + $0x24] sm:$0xf] }
 0x4c8   : > { %v8796_v32 = vmax.f32 %v8776_v4, 0.0  ;;  %v8977_v6 = vor.u32 %v8975_v17, %v8974_v7  ;;  %v8978_v38 = vrot.slane %v8974_v7, 4  ;;  %v8982_v2 = vrot.slane %v8980_v16, 7  ;;  %vm19264_vm11 = vmand %vm8826_vm14, %vm8836_vm5 }
 0x4c9   : > { %v8774_v45 = vadd.f32 %v19142_v26, %v8747_v40  ;;  %v8960_v21 = vor.u32 %v8958_v12, %v8957_v10  ;;  %v8961_v30 = vrot.slane %v8957_v10, 4  ;;  %v8965_v48 = vrot.slane %v8963_v57, 7 }
 0x4ca   : > { %v8877_v61 = vsel %vm19193_vm1, %v8796_v32, 0.0  ;;  %v9168_v22 = vsel %vm19202_vm9, %v8977_v6, %v9167_v47  ;;  %v8985_v29 = vor.u32 %v8983_v13, %v8982_v2  ;;  %v8987_v28 = vrot.slane %v8982_v2, 4  ;;  %v14794_v23 = vpop.f32.mrb[24].mxu1  ;;  %v9174_v2 = vld [vmem:[#allocation4 + $0x18] sm:$0xf] }
 0x4cb   : > { %v14107_v42 = vpack.c.bf16 %v8877_v61, %v8877_v61  ;;  %9169 = vst [vmem:[#allocation4 + $0xc] sm:$0xf] %v9168_v22  ;;  %v9158_v19 = vsel %vm19202_vm9, %v8960_v21, %v9157_v5  ;;  %v8968_v25 = vor.u32 %v8966_v54, %v8965_v48  ;;  %v8970_v31 = vrot.slane %v8965_v48, 4  ;;  %v8669_v8 = vpop.f32.mrb[25].mxu1  ;;  %v9188_v32 = vld [vmem:[#allocation4 + $0x30] sm:$0xf] }
 0x4cc   : > { %v8794_v63 = vmax.f32 %v8774_v45, 0.0  ;;  %9159 = vst [vmem:[#allocation4] sm:$0xf] %v9158_v19  ;;  %v8986_v50 = vsel %vm19210_vm6, %v8978_v38, %v8985_v29  ;;  %v9172_v20 = vsel %vm19217_vm4, %v8987_v28, %v9171_v49  ;;  %v14795_v24 = vpop.f32.mrb[26].mxu1  ;;  %v8750_v56 = vmul.f32 %v14791_v44, %v19137_v43 }
 0x4cd   : > { %v9006_v14 = vshrl.u32 %v14107_v42, 16  ;;  %v9009_v27 = vshll.u32 %v14107_v42, 16  ;;  %9170 = vst.msk [vmem:[#allocation4 + $0x10] sm:$0xf] %vm9154_vm2, %v8986_v50  ;;  %9173 = vst [vmem:[#allocation4 + $0x14] sm:$0x1] %v9172_v20  ;;  %v8969_v1 = vsel %vm19210_vm6, %v8961_v30, %v8968_v25  ;;  %v9165_v59 = vsel %vm19217_vm4, %v8970_v31, %v9164_v58 }
 0x4ce   : > { %v8875_v18 = vsel %vm19229_vm7, %v8794_v63, 0.0  ;;  %v8672_v17 = vpop.f32.mrb[27].mxu1  ;;  %9161 = vst.msk [vmem:[#allocation4 + $0x4] sm:$0xf] %vm9154_vm2, %v8969_v1  ;;  %9166 = vst [vmem:[#allocation4 + $0x8] sm:$0x1] %v9165_v59  ;;  %v8748_v3 = vmul.f32 %v19137_v43, %v8656_v41  ;;  %v8753_v12 = vmul.f32 %v14794_v23, %v19137_v43  ;;  %v8777_v4 = vadd.f32 %v19142_v26, %v8750_v56 }
 0x4cf   : > { %v19248_v46 = vrot.slane %v9006_v14, 7  ;;  %v14105_v55 = vpack.c.bf16 %v8875_v18, %v8875_v18  ;;  %v8751_v7 = vmul.f32 %v19137_v43, %v8669_v8  ;;  %v8754_v16 = vmul.f32 %v14795_v24, %v19137_v43  ;;  %v9185_v18 = vld [vmem:[#allocation4 + $0x2c] sm:$0x1] }
 0x4d0   : > { %v8752_v44 = vmul.f32 %v19137_v43, %v8672_v17  ;;  %v8797_v57 = vmax.f32 %v8777_v4, 0.0  ;;  %v8775_v41 = vadd.f32 %v19142_v26, %v8748_v3  ;;  %v8780_v54 = vadd.f32 %v19142_v26, %v8753_v12  ;;  %v9178_v3 = vld [vmem:[#allocation4 + $0x20] sm:$0x1] }
 0x4d1   : > { %v9011_v13 = vor.u32 %v9009_v27, %v19248_v46  ;;  %v9012_v40 = vrot.slane %v19248_v46, 4  ;;  %v8989_v47 = vshrl.u32 %v14105_v55, 16  ;;  %v8992_v10 = vshll.u32 %v14105_v55, 16 }
 0x4d2   : > { %v8778_v6 = vadd.f32 %v19142_v26, %v8751_v7  ;;  %v8781_v51 = vadd.f32 %v19142_v26, %v8754_v16  ;;  %v8779_v21 = vadd.f32 %v19142_v26, %v8752_v44  ;;  %v19283_v30 = vpop.f32.mrb[28].mxu1  ;;  %v8878_v49 = vsel %vm19193_vm1, %v8797_v57, 0.0 }
 0x4d3   : > { %v9182_v38 = vsel %vm19202_vm9, %v9011_v13, %v9181_v34  ;;  %v19271_v5 = vrot.slane %v8989_v47, 7  ;;  %v8795_v48 = vmax.f32 %v8775_v41, 0.0  ;;  %v8800_v61 = vmax.f32 %v8780_v54, 0.0  ;;  %v19287_v29 = vpop.f32.mrb[29].mxu1  ;;  %v9195_v47 = vld [vmem:[#allocation4 + $0x3c] sm:$0xf] }
 0x4d4   : > { %9183 = vst [vmem:[#allocation4 + $0x24] sm:$0xf] %v9182_v38  ;;  %v8798_v22 = vmax.f32 %v8778_v6, 0.0  ;;  %v14108_v58 = vpack.c.bf16 %v8878_v49, %v8878_v49  ;;  %v8801_v42 = vmax.f32 %v8781_v51, 0.0  ;;  %v19291_v23 = vpop.f32.mrb[30].mxu1  ;;  %v8799_v31 = vmax.f32 %v8779_v21, 0.0 }
 0x4d5   : > { %v8994_v62 = vor.u32 %v8992_v10, %v19271_v5  ;;  %v8995_v28 = vrot.slane %v19271_v5, 4  ;;  %v8876_v19 = vsel %vm19229_vm7, %v8795_v48, 0.0  ;;  %v8881_v36 = vsel %vm19264_vm11, %v8800_v61, 0.0  ;;  %v19299_v63 = vpop.f32.mrb[31].mxu1 }
 0x4d6   : > { %v8879_v25 = vsel %vm19277_vm12, %v8798_v22, 0.0  ;;  %v9014_v50 = vshrl.u32 %v14108_v58, 16  ;;  %v9017_v20 = vshll.u32 %v14108_v58, 16  ;;  %v14106_v14 = vpack.c.bf16 %v8876_v19, %v8876_v19 }
 0x4d7   : > { %v9175_v8 = vsel %vm19202_vm9, %v8994_v62, %v9174_v2  ;;  %v14111_v27 = vpack.c.bf16 %v8881_v36, %v8881_v36  ;;  %v14109_v24 = vpack.c.bf16 %v8879_v25, %v8879_v25  ;;  %v8882_v0 = vsel %vm19264_vm11, %v8801_v42, 0.0 }
 0x4d8   : > { %9176 = vst [vmem:[#allocation4 + $0x18] sm:$0xf] %v9175_v8  ;;  %v8880_v1 = vsel %vm19277_vm12, %v8799_v31, 0.0  ;;  %vm8828_vm15 = vcmp.ge.s32.totalorder %v19170_v33, 0  ;;  %vm8838_vm0 = vcmp.lt.s32.totalorder %v19170_v33, 16  ;;  %v9016_v59 = vrot.slane %v9014_v50, 7 }
 0x4d9   : > { %v8997_v56 = vshrl.u32 %v14106_v14, 16  ;;  %v9000_v17 = vshll.u32 %v14106_v14, 16  ;;  %v14112_v55 = vpack.c.bf16 %v8882_v0, %v8882_v0  ;;  %v9040_v12 = vshrl.u32 %v14111_v27, 16  ;;  %v9199_v31 = vld [vmem:[#allocation4 + $0x44] sm:$0x1]  ;;  %vm19349_vm11 = vmand %vm8828_vm15, %vm8838_vm0 }
 0x4da   : > { %v9043_v34 = vshll.u32 %v14111_v27, 16  ;;  %v9023_v4 = vshrl.u32 %v14109_v24, 16  ;;  %v9026_v7 = vshll.u32 %v14109_v24, 16  ;;  %vm8827_vm1 = vcmp.ge.s32.totalorder %v19174_v39, 0  ;;  %v14802_v57 = vpop.f32.mrb[32].mxu1 }
 0x4db   : > { %vm8837_vm14 = vcmp.lt.s32.totalorder %v19174_v39, 16  ;;  %v9019_v16 = vor.u32 %v9017_v20, %v9016_v59  ;;  %v9021_v44 = vrot.slane %v9016_v59, 4  ;;  %v8999_v13 = vrot.slane %v8997_v56, 7  ;;  %v8701_v5 = vpop.f32.mrb[33].mxu1  ;;  %v9192_v24 = vld [vmem:[#allocation4 + $0x38] sm:$0x1] }
 0x4dc   : > { %v9048_v10 = vshrl.u32 %v14112_v55, 16  ;;  %v9042_v41 = vrot.slane %v9040_v12, 7  ;;  %v9025_v54 = vrot.slane %v9023_v4, 7  ;;  %v9051_v6 = vshll.u32 %v14112_v55, 16  ;;  %v14803_v49 = vpop.f32.mrb[34].mxu1  ;;  %vm19365_vm12 = vmand %vm8827_vm1, %vm8837_vm14 }
 0x4dd   : > { %v14110_v38 = vpack.c.bf16 %v8880_v1, %v8880_v1  ;;  %vm8830_vm5 = vcmp.ge.s32.totalorder %v19176_v37, 0  ;;  %v9020_v2 = vsel %vm19210_vm6, %v9012_v40, %v9019_v16  ;;  %v9186_v45 = vsel %vm19217_vm4, %v9021_v44, %v9185_v18  ;;  %v8704_v58 = vpop.f32.mrb[35].mxu1 }
 0x4de   : > { %v9002_v51 = vor.u32 %v9000_v17, %v8999_v13  ;;  %v9004_v21 = vrot.slane %v8999_v13, 4  ;;  %9184 = vst.msk [vmem:[#allocation4 + $0x28] sm:$0xf] %vm9154_vm2, %v9020_v2  ;;  %9187 = vst [vmem:[#allocation4 + $0x2c] sm:$0x1] %v9186_v45  ;;  %v9045_v48 = vor.u32 %v9043_v34, %v9042_v41  ;;  %v9046_v61 = vrot.slane %v9042_v41, 4 }
 0x4df   : > { %v9028_v22 = vor.u32 %v9026_v7, %v9025_v54  ;;  %v9029_v62 = vrot.slane %v9025_v54, 4  ;;  %v9050_v42 = vrot.slane %v9048_v10, 7  ;;  %v9031_v19 = vshrl.u32 %v14110_v38, 16  ;;  %vm19378_vm15 = vmand %vm8830_vm5, %vm8840_vm3  ;;  %v19453_v11 = vld [vmem:[#allocation4 + $0x18] sm:$0xf] }
 0x4e0   : > { %v9003_v46 = vsel %vm19210_vm6, %v8995_v28, %v9002_v51  ;;  %v9179_v40 = vsel %vm19217_vm4, %v9004_v21, %v9178_v3  ;;  %v9196_v36 = vsel %vm19202_vm9, %v9045_v48, %v9195_v47  ;;  %v9034_v8 = vshll.u32 %v14110_v38, 16 }
 0x4e1   : > { %9177 = vst.msk [vmem:[#allocation4 + $0x1c] sm:$0xf] %vm9154_vm2, %v9003_v46  ;;  %9180 = vst [vmem:[#allocation4 + $0x20] sm:$0x1] %v9179_v40  ;;  %v9189_v25 = vsel %vm19202_vm9, %v9028_v22, %v9188_v32  ;;  %v8757_v50 = vmul.f32 %v19283_v30, %v19137_v43  ;;  %vm8839_vm7 = vcmp.lt.s32.totalorder %v19180_v53, 16  ;;  %v9053_v28 = vor.u32 %v9051_v6, %v9050_v42 }
 0x4e2   : > { %9197 = vst [vmem:[#allocation4 + $0x3c] sm:$0xf] %v9196_v36  ;;  %9190 = vst [vmem:[#allocation4 + $0x30] sm:$0xf] %v9189_v25  ;;  %v9055_v20 = vrot.slane %v9050_v42, 4  ;;  %v9033_v14 = vrot.slane %v9031_v19, 7  ;;  %v8755_v27 = vmul.f32 %v19137_v43, %v19287_v29  ;;  %v8758_v1 = vmul.f32 %v19291_v23, %v19137_v43 }
 0x4e3   : > { %v8784_v0 = vadd.f32 %v19142_v26, %v8757_v50  ;;  %v8756_v30 = vmul.f32 %v19137_v43, %v19299_v63  ;;  %v8761_v59 = vmul.f32 %v14802_v57, %v19137_v43  ;;  %v9054_v18 = vsel %vm19210_vm6, %v9046_v61, %v9053_v28  ;;  %v9209_v46 = vld [vmem:[#allocation4 + $0x54] sm:$0xf]  ;;  %vm19398_vm0 = vmand %vm8829_vm8, %vm8839_vm7 }
 0x4e4   : > { %v9200_v56 = vsel %vm19217_vm4, %v9055_v20, %v9199_v31  ;;  %v9036_v17 = vor.u32 %v9034_v8, %v9033_v14  ;;  %v9038_v55 = vrot.slane %v9033_v14, 4  ;;  %9198 = vst.msk [vmem:[#allocation4 + $0x40] sm:$0xf] %vm9154_vm2, %v9054_v18  ;;  %v8782_v63 = vadd.f32 %v19142_v26, %v8755_v27  ;;  %v9213_v27 = vld [vmem:[#allocation4 + $0x5c] sm:$0x1] }
 0x4e5   : > { %9201 = vst [vmem:[#allocation4 + $0x44] sm:$0x1] %v9200_v56  ;;  %v8804_v23 = vmax.f32 %v8784_v0, 0.0  ;;  %v8785_v3 = vadd.f32 %v19142_v26, %v8758_v1  ;;  %v8783_v12 = vadd.f32 %v19142_v26, %v8756_v30  ;;  %v8788_v7 = vadd.f32 %v19142_v26, %v8761_v59  ;;  %v9206_v0 = vld [vmem:[#allocation4 + $0x50] sm:$0x1] }
 0x4e6   : > { %v9037_v34 = vsel %vm19210_vm6, %v9029_v62, %v9036_v17  ;;  %v9193_v33 = vsel %vm19217_vm4, %v9038_v55, %v9192_v24  ;;  %v8759_v16 = vmul.f32 %v19137_v43, %v8701_v5  ;;  %v8802_v13 = vmax.f32 %v8782_v63, 0.0  ;;  %v9223_v55 = vld [vmem:[#allocation4 + $0x6c] sm:$0xf]  ;;  %v19485_v52 = vld [vmem:[#allocation4 + $0x28] sm:$0xf] }
 0x4e7   : > { %9191 = vst.msk [vmem:[#allocation4 + $0x34] sm:$0xf] %vm9154_vm2, %v9037_v34  ;;  %9194 = vst [vmem:[#allocation4 + $0x38] sm:$0x1] %v9193_v33  ;;  %v8885_v44 = vsel %vm19349_vm11, %v8804_v23, 0.0  ;;  %v8805_v47 = vmax.f32 %v8785_v3, 0.0  ;;  %v8762_v32 = vmul.f32 %v14803_v49, %v19137_v43  ;;  %v8760_v2 = vmul.f32 %v19137_v43, %v8704_v58 }
 0x4e8   : > { %v8803_v10 = vmax.f32 %v8783_v12, 0.0  ;;  %v14115_v57 = vpack.c.bf16 %v8885_v44, %v8885_v44  ;;  %v8808_v41 = vmax.f32 %v8788_v7, 0.0  ;;  %v8786_v54 = vadd.f32 %v19142_v26, %v8759_v16  ;;  %v9202_v58 = vld [vmem:[#allocation4 + $0x48] sm:$0xf]  ;;  %v19412_v7 = vld [vmem:[#allocation4] sm:$0xf] }
 0x4e9   : > { %v8883_v6 = vsel %vm19365_vm12, %v8802_v13, 0.0  ;;  %v8886_v38 = vsel %vm19349_vm11, %v8805_v47, 0.0  ;;  %v8789_v22 = vadd.f32 %v19142_v26, %v8762_v32  ;;  %v19451_v43 = vld [vmem:[#allocation4 + $0x14] sm:$0x1] }
 0x4ea   : > { %v8884_v5 = vsel %vm19365_vm12, %v8803_v10, 0.0  ;;  %v9074_v37 = vshrl.u32 %v14115_v57, 16  ;;  %v9077_v45 = vshll.u32 %v14115_v57, 16  ;;  %v14113_v51 = vpack.c.bf16 %v8883_v6, %v8883_v6  ;;  %v19422_v10 = vld [vmem:[#allocation4 + $0x4] sm:$0xf] }
 0x4eb   : > { %v14116_v21 = vpack.c.bf16 %v8886_v38, %v8886_v38  ;;  %v14114_v48 = vpack.c.bf16 %v8884_v5, %v8884_v5  ;;  %v8889_v61 = vsel %vm19378_vm15, %v8808_v41, 0.0  ;;  %v8806_v49 = vmax.f32 %v8786_v54, 0.0  ;;  %v9216_v38 = vld [vmem:[#allocation4 + $0x60] sm:$0xf] }
 0x4ec   : > { %v9076_v62 = vrot.slane %v9074_v37, 7  ;;  %v9057_v40 = vshrl.u32 %v14113_v51, 16  ;;  %v9060_v42 = vshll.u32 %v14113_v51, 16  ;;  %v14119_v8 = vpack.c.bf16 %v8889_v61, %v8889_v61 }
 0x4ed   : > { %v9082_v19 = vshrl.u32 %v14116_v21, 16  ;;  %v9085_v36 = vshll.u32 %v14116_v21, 16  ;;  %v9065_v25 = vshrl.u32 %v14114_v48, 16  ;;  %v9068_v31 = vshll.u32 %v14114_v48, 16  ;;  %v19434_v21 = vld [vmem:[#allocation4 + $0x8] sm:$0x1] }
 0x4ee   : > { %v9079_v50 = vor.u32 %v9077_v45, %v9076_v62  ;;  %v9080_v28 = vrot.slane %v9076_v62, 4  ;;  %v9059_v20 = vrot.slane %v9057_v40, 7  ;;  %v9108_v1 = vshrl.u32 %v14119_v8, 16  ;;  %v19439_v40 = vld [vmem:[#allocation4 + $0xc] sm:$0xf] }
 0x4ef   : > { %v9084_v14 = vrot.slane %v9082_v19, 7  ;;  %v9067_v24 = vrot.slane %v9065_v25, 7  ;;  %v9111_v30 = vshll.u32 %v14119_v8, 16  ;;  %v8887_v53 = vsel %vm19398_vm0, %v8806_v49, 0.0 }
 0x4f0   : > { %v9210_v59 = vsel %vm19202_vm9, %v9079_v50, %v9209_v46  ;;  %v9062_v18 = vor.u32 %v9060_v42, %v9059_v20  ;;  %v9063_v56 = vrot.slane %v9059_v20, 4  ;;  %v19406_v3 = vrot.slane %v9108_v1, 7  ;;  %v9227_v50 = vld [vmem:[#allocation4 + $0x74] sm:$0x1] }
 0x4f1   : > { %v9087_v17 = vor.u32 %v9085_v36, %v9084_v14  ;;  %9211 = vst [vmem:[#allocation4 + $0x54] sm:$0xf] %v9210_v59  ;;  %v9089_v29 = vrot.slane %v9084_v14, 4  ;;  %v9070_v23 = vor.u32 %v9068_v31, %v9067_v24  ;;  %v9072_v63 = vrot.slane %v9067_v24, 4 }
 0x4f2   : > { %v9203_v12 = vsel %vm19202_vm9, %v9062_v18, %v9202_v58  ;;  %v14117_v33 = vpack.c.bf16 %v8887_v53, %v8887_v53  ;;  %v8809_v4 = vmax.f32 %v8789_v22, 0.0  ;;  %v9113_v47 = vor.u32 %v9111_v30, %v19406_v3  ;;  %v19449_v30 = vld [vmem:[#allocation4 + $0x10] sm:$0xf] }
 0x4f3   : > { %v9088_v34 = vsel %vm19210_vm6, %v9080_v28, %v9087_v17  ;;  %9204 = vst [vmem:[#allocation4 + $0x48] sm:$0xf] %v9203_v12  ;;  %v9214_v16 = vsel %vm19217_vm4, %v9089_v29, %v9213_v27  ;;  %v9071_v44 = vsel %vm19210_vm6, %v9063_v56, %v9070_v23  ;;  %v9207_v13 = vsel %vm19217_vm4, %v9072_v63, %v9206_v0  ;;  %v9220_v29 = vld [vmem:[#allocation4 + $0x68] sm:$0x1] }
 0x4f4   : > { %9212 = vst.msk [vmem:[#allocation4 + $0x58] sm:$0xf] %vm9154_vm2, %v9088_v34  ;;  %9215 = vst [vmem:[#allocation4 + $0x5c] sm:$0x1] %v9214_v16  ;;  %v9114_v57 = vrot.slane %v19406_v3, 4  ;;  %v9091_v41 = vshrl.u32 %v14117_v33, 16  ;;  %v9224_v6 = vsel %vm19202_vm9, %v9113_v47, %v9223_v55  ;;  %v8787_v37 = vadd.f32 %v19142_v26, %v8760_v2 }
 0x4f5   : > { %9205 = vst.msk [vmem:[#allocation4 + $0x4c] sm:$0xf] %vm9154_vm2, %v9071_v44  ;;  %9208 = vst [vmem:[#allocation4 + $0x50] sm:$0x1] %v9207_v13  ;;  %v9094_v54 = vshll.u32 %v14117_v33, 16  ;;  %v8890_v32 = vsel %vm19378_vm15, %v8809_v4, 0.0 }
 0x4f6   : > { %v14120_v5 = vpack.c.bf16 %v8890_v32, %v8890_v32  ;;  %v9256_v45 = vshrl.u32 %v19412_v7, 16  ;;  %9225 = vst [vmem:[#allocation4 + $0x6c] sm:$0xf] %v9224_v6  ;;  %v19432_v51 = vrot.slane %v9091_v41, 7  ;;  %v9259_v48 = vshll.u32 %v19412_v7, 16 }
 0x4f7   : > { %v9265_v61 = vshll.u32 %v19422_v10, 16  ;;  %v9269_v39 = vshrl.u32 %v19422_v10, 16  ;;  %v8807_v62 = vmax.f32 %v8787_v37, 0.0  ;;  %v9275_v31 = vshll.u32 %v19434_v21, 16  ;;  %v19460_v3 = vld [vmem:[#allocation4 + $0x1c] sm:$0xf] }
 0x4f8   : > { %v9116_v49 = vshrl.u32 %v14120_v5, 16  ;;  %v9119_v22 = vshll.u32 %v14120_v5, 16  ;;  %v9258_v46 = vrot.slane %v9256_v45, 4  ;;  %v9096_v26 = vor.u32 %v9094_v54, %v19432_v51  ;;  %v19471_v6 = vld [vmem:[#allocation4 + $0x20] sm:$0x1] }
 0x4f9   : > { %v9097_v2 = vrot.slane %v19432_v51, 4  ;;  %v9261_v42 = vrot.slane %v9259_v48, 5  ;;  %v9267_v19 = vrot.slane %v9265_v61, 5  ;;  %v8888_v36 = vsel %vm19398_vm0, %v8807_v62, 0.0  ;;  %v19473_v51 = vld [vmem:[#allocation4 + $0x24] sm:$0xf] }
 0x4fa   : > { %v9118_v58 = vrot.slane %v9116_v49, 7  ;;  %v9271_v25 = vrot.slane %v9269_v39, 4  ;;  %v9217_v8 = vsel %vm19202_vm9, %v9096_v26, %v9216_v38  ;;  %v14118_v28 = vpack.c.bf16 %v8888_v36, %v8888_v36 }
 0x4fb   : > { %v9262_v20 = vor.u32 %v9261_v42, %v9258_v46  ;;  %v9280_v14 = vshrl.u32 %v19439_v40, 16  ;;  %9218 = vst [vmem:[#allocation4 + $0x60] sm:$0xf] %v9217_v8  ;;  %v9277_v1 = vrot.slane %v9275_v31, 5  ;;  %v9283_v63 = vshll.u32 %v19439_v40, 16 }
 0x4fc   : > { %v9121_v27 = vor.u32 %v9119_v22, %v9118_v58  ;;  %v9123_v24 = vrot.slane %v9118_v58, 4  ;;  %v9272_v0 = vor.u32 %v9271_v25, %v9267_v19  ;;  %v9099_v53 = vshrl.u32 %v14118_v28, 16  ;;  %v19487_v42 = vld [vmem:[#allocation4 + $0x2c] sm:$0x1] }
 0x4fd   : > { %v9102_v59 = vshll.u32 %v14118_v28, 16  ;;  %v9263_v18 = vrot.slane %v9262_v20, 4  ;;  %v9282_v56 = vrot.slane %v9280_v14, 4  ;;  %v9289_v33 = vshll.u32 %v19449_v30, 16 }
 0x4fe   : > { %v9122_v17 = vsel %vm19210_vm6, %v9114_v57, %v9121_v27  ;;  %v9228_v55 = vsel %vm19217_vm4, %v9123_v24, %v9227_v50  ;;  %v9273_v23 = vrot.slane %v9272_v0, 4  ;;  %v9101_v12 = vrot.slane %v9099_v53, 7  ;;  %v19494_v27 = vld [vmem:[#allocation4 + $0x30] sm:$0xf] }
 0x4ff   : > { %9226 = vst.msk [vmem:[#allocation4 + $0x70] sm:$0xf] %vm9154_vm2, %v9122_v17  ;;  %9229 = vst [vmem:[#allocation4 + $0x74] sm:$0x1] %v9228_v55  ;;  %v9268_v34 = vsel %vm17285_vm10, %v9263_v18, %v9267_v19  ;;  %v9293_v4 = vshrl.u32 %v19449_v30, 16  ;;  %v9285_v44 = vrot.slane %v9283_v63, 5 }
 0x500   : > { %v9278_v16 = vsel %vm17285_vm10, %v9273_v23, %v9277_v1  ;;  %v9299_v13 = vshll.u32 %v19451_v43, 16  ;;  %v9304_v47 = vshrl.u32 %v19453_v11, 16  ;;  %v9104_v57 = vor.u32 %v9102_v59, %v9101_v12  ;;  %v19500_v59 = vld [vmem:[#allocation4 + $0x34] sm:$0xf]  ;;  %v19507_v23 = vld [vmem:[%s20971_s10 + $0x4] sm:$0x3] }
 0x501   : > { %v9106_v41 = vrot.slane %v9101_v12, 4  ;;  %v13821_v54 = vcombine.low %v9268_v34, %v9278_v16  ;;  %v9291_v32 = vrot.slane %v9289_v33, 5  ;;  %v9286_v38 = vor.u32 %v9285_v44, %v9282_v56  ;;  %v19509_v33 = vld [vmem:[#allocation4 + $0x38] sm:$0x1] }
 0x502   : > { %v9295_v5 = vrot.slane %v9293_v4, 4  ;;  %v9301_v37 = vrot.slane %v9299_v13, 5  ;;  %v9306_v45 = vrot.slane %v9304_v47, 4  ;;  %v9105_v48 = vsel %vm19210_vm6, %v9097_v2, %v9104_v57 }
 0x503   : > { %v9221_v61 = vsel %vm19217_vm4, %v9106_v41, %v9220_v29  ;;  %vm21156_vm9 = vcmask 31744   ;;  %v9307_v39 = vshll.u32 %v19453_v11, 16  ;;  %v9313_v49 = vshll.u32 %v19460_v3, 16  ;;  %9219 = vst.msk [vmem:[#allocation4 + $0x64] sm:$0xf] %vm9154_vm2, %v9105_v48 }
 0x504   : > { %14806 = vmatprep.mubr.msk.bf16.mxu0 %vm21156_vm9, %v13821_v54  ;;  %9222 = vst [vmem:[#allocation4 + $0x68] sm:$0x1] %v9221_v61  ;;  %v9287_v22 = vrot.slane %v9286_v38, 4  ;;  %v9296_v62 = vor.u32 %v9295_v5, %v9291_v32  ;;  %v9317_v46 = vshrl.u32 %v19460_v3, 16  ;;  %v9323_v26 = vshll.u32 %v19471_v6, 16  ;;  %vm21157_vm6 = vmmov %vm21156_vm9 }
 0x505   : > { %v9309_v2 = vrot.slane %v9307_v39, 5  ;;  %v9315_v15 = vrot.slane %v9313_v49, 5  ;;  %v9328_v19 = vshrl.u32 %v19473_v51, 16  ;;  %v9331_v58 = vshll.u32 %v19473_v51, 16  ;;  %v19502_v29 = vld [vmem:[#allocation4 + $0x3c] sm:$0xf]  ;;  %vm21159_vm4 = vmmov %vm21157_vm6 }
 0x506   : > { %v9292_v36 = vsel %vm17285_vm10, %v9287_v22, %v9291_v32  ;;  %v9297_v25 = vrot.slane %v9296_v62, 4  ;;  %v9319_v31 = vrot.slane %v9317_v46, 4  ;;  %v9325_v8 = vrot.slane %v9323_v26, 5  ;;  %v19521_v38 = vld [vmem:[#allocation4 + $0x40] sm:$0xf]  ;;  %vm21160_vm1 = vmmov %vm21159_vm4 }
 0x507   : > { %v9310_v50 = vor.u32 %v9309_v2, %v9306_v45  ;;  %v9330_v28 = vrot.slane %v9328_v19, 4  ;;  %v9333_v20 = vrot.slane %v9331_v58, 5  ;;  %v9337_v14 = vshll.u32 %v19485_v52, 16  ;;  %v19525_v61 = vld [vmem:[#allocation4 + $0x44] sm:$0x1]  ;;  %vm21161_vm14 = vmmov %vm21160_vm1 }
 0x508   : > { %v9302_v24 = vsel %vm17285_vm10, %v9297_v25, %v9301_v37  ;;  %v9320_v0 = vor.u32 %v9319_v31, %v9315_v15  ;;  %v9341_v1 = vshrl.u32 %v19485_v52, 16  ;;  %v9347_v53 = vshll.u32 %v19487_v42, 16  ;;  %v19527_v39 = vld [vmem:[#allocation4 + $0x48] sm:$0xf]  ;;  %v19533_v46 = vld [vmem:[#allocation4 + $0x4c] sm:$0xf]  ;;  %vm21162_vm5 = vmmov %vm21160_vm1 }
 0x509   : > { %v13822_v18 = vcombine.low %v9292_v36, %v9302_v24  ;;  %v9311_v56 = vrot.slane %v9310_v50, 4  ;;  %v9334_v17 = vor.u32 %v9333_v20, %v9330_v28  ;;  %v9339_v55 = vrot.slane %v9337_v14, 5  ;;  %v19541_v14 = vld [vmem:[#allocation4 + $0x50] sm:$0x1]  ;;  %v19543_v24 = vld [vmem:[#allocation4 + $0x54] sm:$0xf]  ;;  %vm21163_vm3 = vmmov %vm21160_vm1 }
 0x50a   : > { %v9321_v63 = vrot.slane %v9320_v0, 4  ;;  %v9343_v12 = vrot.slane %v9341_v1, 4  ;;  %v9349_v34 = vrot.slane %v9347_v53, 5  ;;  %v9352_v4 = vshrl.u32 %v19494_v27, 16  ;;  %vm21164_vm8 = vmmov %vm21160_vm1 }
 0x50b   : > { %14807 = vmatmul.mubr.msk.bf16.vlgmr.msra.gmra.mrb[16].mxu0 %vm21157_vm6, %v13822_v18  ;;  %v9316_v16 = vsel %vm17285_vm10, %v9311_v56, %v9315_v15  ;;  %v9335_v44 = vrot.slane %v9334_v17, 4  ;;  %v9355_v13 = vshll.u32 %v19494_v27, 16  ;;  %v9361_v47 = vshll.u32 %v19500_v59, 16  ;;  %v19547_v56 = vld [vmem:[#allocation4 + $0x58] sm:$0xf]  ;;  %vm21165_vm7 = vmmov %vm21160_vm1 }
 0x50c   : > { %14823 = vmatpush3.bf16.msra.mxu0 %v19186_v35  ;;  %v9326_v57 = vsel %vm17285_vm10, %v9321_v63, %v9325_v8  ;;  %v9344_v41 = vor.u32 %v9343_v12, %v9339_v55  ;;  %v9354_v54 = vrot.slane %v9352_v4, 4  ;;  %v9365_v32 = vshrl.u32 %v19500_v59, 16  ;;  %vm21167_vm12 = vmmov %vm21160_vm1 }
 0x50d   : > { %v13823_v5 = vcombine.low %v9316_v16, %v9326_v57  ;;  %v9340_v37 = vsel %vm17285_vm10, %v9335_v44, %v9339_v55  ;;  %v9357_v45 = vrot.slane %v9355_v13, 5  ;;  %v9363_v48 = vrot.slane %v9361_v47, 5  ;;  %vm21168_vm15 = vmmov %vm21160_vm1 }
 0x50e   : > { %vm21158_vm2 = vcmask 1041408   ;;  %v9345_v35 = vrot.slane %v9344_v41, 4  ;;  %v9367_v49 = vrot.slane %v9365_v32, 4  ;;  %v9371_v22 = vshll.u32 %v19509_v33, 16  ;;  %vm21170_vm9 = vmmov %vm21160_vm1 }
 0x50f   : > { %15423 = vmatprep.subr.msk.bf16.mxu0 %vm21158_vm2, %v19507_v23  ;;  %v9376_v62 = vshrl.u32 %v19502_v29, 16  ;;  %14810 = vmatprep.mubr.msk.bf16.mxu0 %vm21159_vm4, %v13823_v5  ;;  %v9358_v26 = vor.u32 %v9357_v45, %v9354_v54  ;;  %v9379_v2 = vshll.u32 %v19502_v29, 16  ;;  %v9385_v15 = vshll.u32 %v19521_v38, 16  ;;  %vm21166_vm11 = vmmov %vm21158_vm2 }
 0x510   : > { %v9389_v19 = vshrl.u32 %v19521_v38, 16  ;;  %v9350_v58 = vsel %vm17285_vm10, %v9345_v35, %v9349_v34  ;;  %v9368_v36 = vor.u32 %v9367_v49, %v9363_v48  ;;  %v9373_v25 = vrot.slane %v9371_v22, 5  ;;  %vm21169_vm0 = vmmov %vm21158_vm2 }
 0x511   : > { %v9378_v31 = vrot.slane %v9376_v62, 4  ;;  %v13824_v8 = vcombine.low %v9340_v37, %v9350_v58  ;;  %v9359_v50 = vrot.slane %v9358_v26, 4  ;;  %v9381_v28 = vrot.slane %v9379_v2, 5  ;;  %v19566_v26 = vld [vmem:[#allocation4 + $0x5c] sm:$0x1]  ;;  %vm21171_vm6 = vmmov %vm21160_vm1 }
 0x512   : > { %v9387_v20 = vrot.slane %v9385_v15, 5  ;;  %v9369_v0 = vrot.slane %v9368_v36, 4  ;;  %v9391_v1 = vrot.slane %v9389_v19, 4  ;;  %v9395_v53 = vshll.u32 %v19525_v61, 16  ;;  %vm21172_vm2 = vmmov %vm21169_vm0 }
 0x513   : > { %v9400_v18 = vshrl.u32 %v19527_v39, 16  ;;  %14811 = vmatmul.mubr.msk.bf16.gmra.mrb[20].mxu0 %vm21160_vm1, %v13824_v8  ;;  %v9364_v17 = vsel %vm17285_vm10, %v9359_v50, %v9363_v48  ;;  %v9382_v55 = vor.u32 %v9381_v28, %v9378_v31  ;;  %v9403_v63 = vshll.u32 %v19527_v39, 16  ;;  %vm21173_vm4 = vmmov %vm21160_vm1 }
 0x514   : > { %v9409_v12 = vshll.u32 %v19533_v46, 16  ;;  %v9374_v34 = vsel %vm17285_vm10, %v9369_v0, %v9373_v25  ;;  %v9392_v4 = vor.u32 %v9391_v1, %v9387_v20  ;;  %v9397_v16 = vrot.slane %v9395_v53, 5  ;;  %v9761_v53 = vld [vmem:[#allocation4] sm:$0xe] }
 0x515   : > { %v9402_v44 = vrot.slane %v9400_v18, 4  ;;  %v13825_v13 = vcombine.low %v9364_v17, %v9374_v34  ;;  %v9383_v47 = vrot.slane %v9382_v55, 4  ;;  %v9405_v57 = vrot.slane %v9403_v63, 5  ;;  %v9762_v63 = vld [vmem:[#allocation4 + $0xc] sm:$0xe] }
 0x516   : > { %v9411_v41 = vrot.slane %v9409_v12, 5  ;;  %v9393_v54 = vrot.slane %v9392_v4, 4  ;;  %v9413_v32 = vshrl.u32 %v19533_v46, 16  ;;  %v9419_v5 = vshll.u32 %v19541_v14, 16 }
 0x517   : > { %v9424_v37 = vshrl.u32 %v19543_v24, 16  ;;  %14814 = vmatprep.mubr.msk.bf16.mxu0 %vm21161_vm14, %v13825_v13  ;;  %v9406_v45 = vor.u32 %v9405_v57, %v9402_v44  ;;  %v9427_v48 = vshll.u32 %v19543_v24, 16  ;;  %v9433_v35 = vshll.u32 %v19547_v56, 16  ;;  %vm21175_vm14 = vmmov %vm21160_vm1 }
 0x518   : > { %v9388_v49 = vsel %vm17285_vm10, %v9383_v47, %v9387_v20  ;;  %v9398_v22 = vsel %vm17285_vm10, %v9393_v54, %v9397_v16  ;;  %v9415_v62 = vrot.slane %v9413_v32, 4  ;;  %v9437_v31 = vshrl.u32 %v19547_v56, 16 }
 0x519   : > { %v9426_v2 = vrot.slane %v9424_v37, 4  ;;  %v13826_v15 = vcombine.low %v9388_v49, %v9398_v22  ;;  %v9429_v19 = vrot.slane %v9427_v48, 5  ;;  %v9407_v58 = vrot.slane %v9406_v45, 4  ;;  %v9764_v22 = vld [vmem:[#allocation4 + $0x24] sm:$0xe] }
 0x51a   : > { %v9416_v36 = vor.u32 %v9415_v62, %v9411_v41  ;;  %v9435_v25 = vrot.slane %v9433_v35, 5  ;;  %v9443_v50 = vshll.u32 %v19566_v26, 16  ;;  %v9421_v20 = vrot.slane %v9419_v5, 5 }
 0x51b   : > { %14815 = vmatmul.mubr.msk.bf16.gmra.mrb[24].mxu0 %vm21162_vm5, %v13826_v15  ;;  %v9430_v8 = vor.u32 %v9429_v19, %v9426_v2  ;;  %v9439_v0 = vrot.slane %v9437_v31, 4  ;;  %v9412_v18 = vsel %vm17285_vm10, %v9407_v58, %v9411_v41  ;;  %v13837_v4 = vcombine.low %v19412_v7, %v19422_v10  ;;  %v9763_v41 = vld [vmem:[#allocation4 + $0x18] sm:$0xe]  ;;  %v9766_v31 = vld [vmem:[#allocation4 + $0x3c] sm:$0xe]  ;;  %vm21177_vm5 = vmmov %vm21160_vm1 }
 0x51c   : > { %v9417_v28 = vrot.slane %v9416_v36, 4  ;;  %v9445_v34 = vrot.slane %v9443_v50, 5  ;;  %v9787_v16 = vrot.slane %v19422_v10, 5  ;;  %v13853_v47 = vrot.slane %v9761_v53, 9 }
 0x51d   : > { %v9431_v1 = vrot.slane %v9430_v8, 4  ;;  %v9440_v55 = vor.u32 %v9439_v0, %v9435_v25  ;;  %v9794_v57 = vrot.slane %v19449_v30, 5  ;;  %v9790_v32 = vrot.slane %v19434_v21, 5 }
 0x51e   : > { %v9422_v17 = vsel %vm17285_vm10, %v9417_v28, %v9421_v20  ;;  %v9789_v54 = vrot.slane %v9787_v16, 4  ;;  %v13854_v5 = vrot.slane %v9762_v63, 9  ;;  %v9797_v37 = vrot.slane %v19451_v43, 5 }
 0x51f   : > { %v13827_v12 = vcombine.low %v9412_v18, %v9422_v17  ;;  %v9436_v44 = vsel %vm17285_vm10, %v9431_v1, %v9435_v25  ;;  %v9441_v13 = vrot.slane %v9440_v55, 4  ;;  %v19588_v10 = vsel %vm17595_vm13, %v13853_v47, %v9787_v16  ;;  %v9765_v25 = vld [vmem:[#allocation4 + $0x30] sm:$0xe] }
 0x520   : > { %v9796_v45 = vrot.slane %v9794_v57, 4  ;;  %v9801_v48 = vrot.slane %v19460_v3, 5  ;;  %v19593_v49 = vsel %vm17595_vm13, %v9789_v54, %v9790_v32  ;;  %v19597_v21 = vsel %vm17595_vm13, %v13854_v5, %v9794_v57  ;;  %v13878_v32 = vld [vmem:[%s20971_s10 + $0x6] sm:$0x3] }
 0x521   : > { %14818 = vmatprep.mubr.msk.bf16.mxu0 %vm21163_vm3, %v13827_v12  ;;  %v9446_v7 = vsel %vm17285_vm10, %v9441_v13, %v9445_v34  ;;  %v13855_v43 = vrot.slane %v9763_v41, 9  ;;  %v13862_v62 = vcombine.low %v19588_v10, %v19593_v49  ;;  %v9804_v19 = vrot.slane %v19471_v6, 5  ;;  %v9768_v41 = vld [vmem:[#allocation4 + $0x54] sm:$0xe]  ;;  %vm21180_vm3 = vmmov %vm21169_vm0 }
 0x522   : > { %v13828_v35 = vcombine.low %v9436_v44, %v9446_v7  ;;  %v19603_v2 = vsel %vm17595_vm13, %v9796_v45, %v9797_v37  ;;  %v9803_v15 = vrot.slane %v9801_v48, 4  ;;  %v9808_v36 = vrot.slane %v19485_v52, 5 }
 0x523   : > { %v13863_v58 = vcombine.low %v19597_v21, %v19603_v2  ;;  %v19613_v8 = vsel %vm17595_vm13, %v13855_v43, %v9801_v48  ;;  %v13856_v6 = vrot.slane %v9764_v22, 9  ;;  %v9815_v28 = vrot.slane %v19500_v59, 5 }
 0x524   : > { %14819 = vmatmul.mubr.msk.bf16.gmra.mrb[28].mxu0 %vm21164_vm8, %v13828_v35  ;;  %v19617_v50 = vsel %vm17595_vm13, %v9803_v15, %v9804_v19  ;;  %v9810_v0 = vrot.slane %v9808_v36, 4  ;;  %v9811_v1 = vrot.slane %v19487_v42, 5  ;;  %v9822_v53 = vrot.slane %v19521_v38, 5  ;;  %vm21182_vm8 = vmmov %vm21160_vm1 }
 0x525   : > { %14824 = vmatprep.mubr.msk.bf16.mxu0 %vm21165_vm7, %v13837_v4  ;;  %v13864_v20 = vcombine.low %v19613_v8, %v19617_v50  ;;  %v13857_v18 = vrot.slane %v9765_v25, 9  ;;  %v9817_v17 = vrot.slane %v9815_v28, 4  ;;  %v9818_v55 = vrot.slane %v19509_v33, 5  ;;  %vm21184_vm7 = vmmov %vm21160_vm1 }
 0x526   : > { %v13858_v63 = vrot.slane %v9766_v31, 9  ;;  %v19627_v12 = vsel %vm17595_vm13, %v13856_v6, %v9808_v36  ;;  %v19631_v34 = vsel %vm17595_vm13, %v9810_v0, %v9811_v1  ;;  %v9824_v4 = vrot.slane %v9822_v53, 4  ;;  %v10209_v36 = vld [vmem:[#allocation4 + $0x18] sm:$0xf]  ;;  %v19707_v31 = vld [vmem:[#allocation4 + $0x1c] sm:$0xf] }
 0x527   : > { %v9825_v16 = vrot.slane %v19525_v61, 5  ;;  %v9892_v42 = vsel %vm21166_vm11, %v19507_v23, 0  ;;  %v13865_v44 = vcombine.low %v19627_v12, %v19631_v34  ;;  %v19640_v33 = vsel %vm17595_vm13, %v13857_v18, %v9815_v28  ;;  %21176 = vst [vmem:[#allocation36_spill] sm:$0xff] %v19707_v31  ;;  %vm21185_vm11 = vmmov %vm21169_vm0 }
 0x528   : > { %v19644_v13 = vsel %vm17595_vm13, %v9817_v17, %v9818_v55  ;;  %v13838_v47 = vcombine.low %v19439_v40, %v19449_v30  ;;  %v19652_v23 = vsel %vm17595_vm13, %v13858_v63, %v9822_v53  ;;  %v13839_v54 = vcombine.low %v19453_v11, %v19460_v3  ;;  %v19715_v53 = vld [vmem:[#allocation4 + $0x28] sm:$0xf]  ;;  %v10212_v63 = vld [vmem:[#allocation4 + $0x24] sm:$0xf] }
 0x529   : > { %v13866_v61 = vcombine.low %v19640_v33, %v19644_v13  ;;  %v19656_v57 = vsel %vm17595_vm13, %v9824_v4, %v9825_v16  ;;  %v9836_v30 = vrot.slane %v19547_v56, 5  ;;  %v13860_v5 = vrot.slane %v9768_v41, 9  ;;  %21178 = vst [vmem:[#allocation38_spill] sm:$0xff] %v19715_v53  ;;  %v19720_v4 = vld [vmem:[#allocation4 + $0x14] sm:$0x1] }
 0x52a   : > { %v13867_v40 = vcombine.low %v19652_v23, %v19656_v57  ;;  %v9839_v7 = vrot.slane %v19566_v26, 5  ;;  %v13840_v48 = vcombine.low %v19473_v51, %v19485_v52  ;;  %v13841_v35 = vcombine.low %v19494_v27, %v19500_v59  ;;  %v19689_v26 = vld [vmem:[%s20974_s13] sm:$0x3]  ;;  %v10206_v52 = vld [vmem:[#allocation4 + $0xc] sm:$0xf]  ;;  %21179 = vst [vmem:[#allocation39_spill] sm:$0xff] %v19720_v4 }
 0x52b   : > { %v9838_v37 = vrot.slane %v9836_v30, 4  ;;  %v19672_v11 = vsel %vm17595_vm13, %v13860_v5, %v9836_v30  ;;  %15430 = vmatprep.subr.msk.bf16.mxu1 %vm21172_vm2, %v19689_v26  ;;  %v13842_v43 = vcombine.low %v19502_v29, %v19521_v38  ;;  %v13843_v51 = vcombine.low %v19527_v39, %v19533_v46  ;;  %v19699_v27 = vld [vmem:[#allocation4 + $0x10] sm:$0xf]  ;;  %v19733_v30 = vld [vmem:[#allocation4 + $0x20] sm:$0x1] }
 0x52c   : > { %14825 = vmatmul.mubr.msk.bf16.vlgmr.msra.gmra.mrb[16].mxu0 %vm21167_vm12, %v13838_v47  ;;  %21174 = vst [vmem:[#allocation37_spill] sm:$0xff] %v19699_v27  ;;  %v10231_v59 = vshrl.u32 %v10206_v52, 16  ;;  %v10234_v22 = vshll.u32 %v10206_v52, 16  ;;  %v10240_v15 = vshll.u32 %v19699_v27, 16  ;;  %v10244_v19 = vshrl.u32 %v19699_v27, 16  ;;  %21181 = vst [vmem:[#allocation40_spill] sm:$0xff] %v19733_v30 }
 0x52d   : > { %14841 = vmatpush3.bf16.msra.mxu0 %v9892_v42  ;;  %14828 = vmatprep.mubr.msk.bf16.mxu0 %vm21168_vm15, %v13839_v54  ;;  %v19676_v3 = vsel %vm17595_vm13, %v9838_v37, %v9839_v7  ;;  %v13844_v29 = vcombine.low %v19543_v24, %v19547_v56  ;;  %v9829_v38 = vrot.slane %v19533_v46, 5  ;;  %v10255_v6 = vshrl.u32 %v10209_v36, 16  ;;  %v9767_v24 = vld [vmem:[#allocation4 + $0x48] sm:$0xe]  ;;  %v13895_v47 = vld [vmem:[%s20971_s10 + $0x8] sm:$0x3]  ;;  %vm21186_vm12 = vmmov %vm21169_vm0 }
 0x52e   : > { %15424 = vmatprep.subr.msk.bf16.mxu0 %vm21169_vm0, %v13878_v32  ;;  %v13869_v45 = vcombine.low %v19672_v11, %v19676_v3  ;;  %v10233_v39 = vrot.slane %v10231_v59, 4  ;;  %v10236_v25 = vrot.slane %v10234_v22, 5  ;;  %v10258_v28 = vshll.u32 %v10209_v36, 16  ;;  %vm21189_vm15 = vmmov %vm21169_vm0  ;;  %v19925_v11 = vld [vmem:[%s19843_s16 + $0x28] sm:$0xf] }
 0x52f   : > { %v19713_v0 = vrot.slane %v10240_v15, 5  ;;  %v10246_v1 = vrot.slane %v10244_v19, 4  ;;  %v9831_v46 = vrot.slane %v9829_v38, 4  ;;  %v9832_v56 = vrot.slane %v19541_v14, 5  ;;  %v19748_v15 = vld [vmem:[#allocation4 + $0x34] sm:$0xf]  ;;  %vm21191_vm0 = vmmov %vm21160_vm1 }
 0x530   : > { %v10237_v18 = vor.u32 %v10236_v25, %v10233_v39  ;;  %v10264_v17 = vshll.u32 %v19707_v31, 16  ;;  %v10268_v55 = vshrl.u32 %v19707_v31, 16  ;;  %v10257_v10 = vrot.slane %v10255_v6, 4  ;;  %21183 = vst [vmem:[#allocation42_spill] sm:$0xff] %v19748_v15  ;;  %v19769_v6 = vld [vmem:[#allocation4 + $0x2c] sm:$0x1] }
 0x531   : > { %v10260_v49 = vrot.slane %v10258_v28, 5  ;;  %v10292_v16 = vshrl.u32 %v19715_v53, 16  ;;  %v13859_v42 = vrot.slane %v9767_v24, 9  ;;  %v10247_v14 = vor.u32 %v10246_v1, %v19713_v0  ;;  %21188 = vst [vmem:[#allocation41_spill] sm:$0xff] %v19769_v6 }
 0x532   : > { %v10091_v41 = vsel %vm21180_vm3, %v13878_v32, 0  ;;  %v19731_v54 = vsel %vm17595_vm13, %v9831_v46, %v9832_v56  ;;  %v10279_v5 = vshrl.u32 %v10212_v63, 16  ;;  %v10282_v37 = vshll.u32 %v10212_v63, 16  ;;  %vm21201_vm3 = vmmov %vm21191_vm0 }
 0x533   : > { %v19737_v7 = vsel %vm17595_vm13, %v13859_v42, %v9829_v38  ;;  %v10238_v32 = vrot.slane %v10237_v18, 4  ;;  %v10261_v52 = vor.u32 %v10260_v49, %v10257_v10  ;;  %v10294_v22 = vrot.slane %v10292_v16, 4  ;;  %v19766_v38 = vld [vmem:[#allocation4 + $0x40] sm:$0xf] }
 0x534   : > { %14829 = vmatmul.mubr.msk.bf16.gmra.mrb[20].mxu0 %vm21170_vm9, %v13840_v48  ;;  %v10250_v48 = vshll.u32 %v19720_v4, 16  ;;  %v13868_v19 = vcombine.low %v19737_v7, %v19731_v54  ;;  %v19757_v21 = vsel %vm21185_vm11, %v13895_v47, 0  ;;  %v10248_v2 = vrot.slane %v10247_v14, 4  ;;  %21187 = vst [vmem:[#allocation43_spill] sm:$0xff] %v19766_v38  ;;  %vm21194_vm9 = vmmov %vm21191_vm0 }
 0x535   : > { %14832 = vmatprep.mubr.msk.bf16.mxu0 %vm21171_vm6, %v13841_v35  ;;  %v19740_v35 = vrot.slane %v10264_v17, 5  ;;  %v10274_v36 = vshll.u32 %v19733_v30, 16  ;;  %v10284_v8 = vrot.slane %v10282_v37, 5  ;;  %v10312_v28 = vshll.u32 %v19748_v15, 16  ;;  %v10218_v17 = vld [vmem:[#allocation4 + $0x3c] sm:$0xf]  ;;  %vm21195_vm6 = vmmov %vm21172_vm2 }
 0x536   : > { %v10252_v39 = vrot.slane %v10250_v48, 5  ;;  %v10316_v1 = vshrl.u32 %v19748_v15, 16  ;;  %v10243_v24 = vsel %vm17285_vm10, %v10238_v32, %v19713_v0  ;;  %v10262_v46 = vrot.slane %v10261_v52, 4  ;;  %v19799_v52 = vld [vmem:[#allocation4 + $0x44] sm:$0x1]  ;;  %vm21196_vm2 = vmmov %vm21191_vm0 }
 0x537   : > { %v10276_v63 = vrot.slane %v10274_v36, 5  ;;  %v10336_v10 = vshll.u32 %v19766_v38, 16  ;;  %v10340_v49 = vshrl.u32 %v19766_v38, 16  ;;  %v10298_v16 = vshll.u32 %v19769_v6, 16  ;;  %21192 = vst [vmem:[#allocation44_spill] sm:$0xff] %v19799_v52  ;;  %vm21204_vm11 = vmmov %vm21191_vm0 }
 0x538   : > { %v10318_v37 = vrot.slane %v10316_v1, 4  ;;  %v10327_v48 = vshrl.u32 %v10218_v17, 16  ;;  %v12290_v33 = vsel %vm21195_vm6, %v19689_v26, 0  ;;  %v11858_v4 = vshrl.u32 %v19925_v11, 16 }
 0x539   : > { %v19807_v12 = vrot.slane %v10336_v10, 5  ;;  %v10342_v34 = vrot.slane %v10340_v49, 4  ;;  %14967 = vmatpush3.bf16.msra.mxu1 %v12290_v33 }
 0x53c   : > { %14833 = vmatmul.mubr.msk.bf16.gmra.mrb[24].mxu0 %vm21173_vm4, %v13842_v43  ;;  %v10270_v43 = vrot.slane %v10268_v55, 4  ;;  %v10253_v55 = vsel %vm17285_vm10, %v10248_v2, %v10252_v39  ;;  %v19801_v2 = vld [vmem:[#allocation4 + $0x4c] sm:$0xf]  ;;  %vm21197_vm4 = vmmov %vm21191_vm0 }
 0x53d   : > { %14836 = vmatprep.mubr.msk.bf16.mxu0 %vm21160_vm1, %v13843_v51  ;;  %v10215_v51 = vld [vmem:[#allocation4 + $0x30] sm:$0xf]  ;;  %21193 = vst [vmem:[#allocation46_spill] sm:$0xff] %v19801_v2  ;;  %v10360_v1 = vshll.u32 %v19801_v2, 16  ;;  %v10364_v26 = vshrl.u32 %v19801_v2, 16  ;;  %vm21198_vm1 = vmmov %vm21191_vm0 }
 0x53e   : > { %v10303_v50 = vshrl.u32 %v10215_v51, 16  ;;  %v10271_v25 = vor.u32 %v10270_v43, %v19740_v35  ;;  %v19794_v43 = vcombine.low %v10243_v24, %v10253_v55  ;;  %v10224_v24 = vld [vmem:[#allocation4 + $0x54] sm:$0xf] }
 0x540   : > { %v10305_v0 = vrot.slane %v10303_v50, 4  ;;  %v10272_v14 = vrot.slane %v10271_v25, 4  ;;  %v19814_v25 = vrot.slane %v10327_v48, 4 }
 0x544   : > { %14837 = vmatmul.mubr.msk.bf16.gmra.mrb[28].mxu0 %vm21175_vm14, %v13844_v29  ;;  %v10281_v29 = vrot.slane %v10279_v5, 4  ;;  %v19788_v5 = vrot.slane %v10312_v28, 5  ;;  %v10346_v28 = vshll.u32 %v19799_v52, 16  ;;  %v19916_v52 = vld [vmem:[%s19843_s16 + $0x20] sm:$0x1]  ;;  %vm21199_vm14 = vmmov %vm21191_vm0 }
 0x545   : > { %14842 = vmatprep.mubr.msk.bf16.mxu0 %vm21177_vm5, %v13862_v62  ;;  %v10288_v62 = vshll.u32 %v19715_v53, 16  ;;  %vm21200_vm5 = vmmov %vm21191_vm0 }
 0x546   : > { %v10319_v39 = vor.u32 %v10318_v37, %v19788_v5  ;;  %v19853_v37 = vld [vmem:[%s19843_s16 + $0x4] sm:$0xf] }
 0x547   : > { %v19746_v59 = vrot.slane %v10288_v62, 5  ;;  %v10285_v62 = vor.u32 %v10284_v8, %v10281_v29  ;;  %v10300_v8 = vrot.slane %v10298_v16, 5  ;;  %v19841_v16 = vld [vmem:[#allocation4 + $0x58] sm:$0xf]  ;;  %v11782_v7 = vshll.u32 %v19853_v37, 16 }
 0x549   : > { %v10295_v18 = vor.u32 %v10294_v22, %v19746_v59  ;;  %v10330_v22 = vshll.u32 %v10218_v17, 16  ;;  %v10286_v29 = vrot.slane %v10285_v62, 4 }
 0x54b   : > { %v10296_v32 = vrot.slane %v10295_v18, 4  ;;  %v19825_v18 = vld [vmem:[#allocation4 + $0x50] sm:$0x1]  ;;  %v10291_v10 = vsel %vm17285_vm10, %v10286_v29, %v19746_v59  ;;  %v10378_v59 = vshll.u32 %v10224_v24, 16 }
 0x54c   : > { %14843 = vmatmul.mubr.msk.bf16.vlgmr.msra.gmra.mrb[16].mxu0 %vm21182_vm8, %v13863_v58  ;;  %v19762_v58 = vld [vmem:[%s20971_s10 + $0xa] sm:$0x3]  ;;  %vm21202_vm8 = vmmov %vm21195_vm6 }
 0x54d   : > { %14859 = vmatpush3.bf16.msra.mxu0 %v10091_v41  ;;  %14846 = vmatprep.mubr.msk.bf16.mxu0 %vm21184_vm7, %v13864_v20  ;;  %v10306_v20 = vshll.u32 %v10215_v51, 16  ;;  %v19778_v56 = vsel %vm21189_vm15, %v19762_v58, 0  ;;  %v19786_v41 = vld [vmem:[#allocation4 + $0x38] sm:$0x1]  ;;  %v10267_v51 = vsel %vm17285_vm10, %v10262_v46, %v19740_v35  ;;  %v10301_v13 = vsel %vm17285_vm10, %v10296_v32, %v10300_v8  ;;  %v19885_v8 = vld [vmem:[%s19843_s16 + $0x10] sm:$0xf]  ;;  %vm21203_vm7 = vmmov %vm21191_vm0 }
 0x54e   : > { %15425 = vmatprep.subr.msk.bf16.mxu0 %vm21186_vm12, %v13895_v47  ;;  %v10221_v47 = vld [vmem:[#allocation4 + $0x48] sm:$0xf]  ;;  %21190 = vst [vmem:[#allocation45_spill] sm:$0xff] %v19786_v41  ;;  %v10322_v50 = vshll.u32 %v19786_v41, 16  ;;  %v10343_v46 = vor.u32 %v10342_v34, %v19807_v12  ;;  %v19863_v32 = vrot.slane %v10360_v1, 5  ;;  %v11810_v48 = vshrl.u32 %v19885_v8, 16  ;;  %vm21205_vm12 = vmmov %vm21191_vm0 }
 0x54f   : > { %v10308_v42 = vrot.slane %v10306_v20, 5  ;;  %v10354_v36 = vshll.u32 %v10221_v47, 16  ;;  %v10277_v20 = vsel %vm17285_vm10, %v10272_v14, %v10276_v63  ;;  %v10375_v14 = vshrl.u32 %v10224_v24, 16  ;;  %v19867_v34 = vld [vmem:[%s19843_s16 + $0x8] sm:$0x1]  ;;  %vm21206_vm15 = vmmov %vm21191_vm0 }
 0x550   : > { %v19832_v63 = vcombine.low %v10267_v51, %v10277_v20  ;;  %v19839_v62 = vrot.slane %v10322_v50, 5  ;;  %v19861_v51 = vrot.slane %v10346_v28, 5  ;;  %v19873_v23 = vrot.slane %v10343_v46, 4  ;;  %v19895_v20 = vld [vmem:[%s19843_s16 + $0x14] sm:$0x1]  ;;  %vm21208_vm6 = vmmov %vm21191_vm0 }
 0x551   : > { %v10309_v35 = vor.u32 %v10308_v42, %v10305_v0  ;;  %v19829_v55 = vrot.slane %v10354_v36, 5  ;;  %v19846_v0 = vld [vmem:[%s19843_s16] sm:$0xf]  ;;  %v19848_v42 = vcombine.low %v10291_v10, %v10301_v13  ;;  %v19892_v50 = vrot.slane %v10378_v59, 5  ;;  %v19900_v28 = vld [vmem:[%s19843_s16 + $0x18] sm:$0xf] }
 0x552   : > { %v11773_v36 = vshrl.u32 %v19846_v0, 16  ;;  %v11776_v54 = vshll.u32 %v19846_v0, 16  ;;  %v11792_v33 = vshll.u32 %v19867_v34, 16  ;;  %v11784_v24 = vrot.slane %v11782_v7, 5 }
 0x553   : > { %v19837_v49 = vrot.slane %v10309_v35, 4  ;;  %v19890_v35 = vrot.slane %v10375_v14, 4  ;;  %v11806_v59 = vshll.u32 %v19885_v8, 16  ;;  %v11816_v13 = vshll.u32 %v19895_v20, 16 }
 0x554   : > { %14847 = vmatmul.mubr.msk.bf16.gmra.mrb[20].mxu0 %vm21191_vm0, %v13865_v44  ;;  %v10351_v44 = vshrl.u32 %v10221_v47, 16  ;;  %v19850_v47 = vrot.slane %v10319_v39, 4  ;;  %v11775_v39 = vrot.slane %v11773_v36, 4  ;;  %v11778_v1 = vrot.slane %v11776_v54, 5  ;;  %v15576_v54 = vld [vmem:[#allocation4 + $0xc] sm:$0xff]  }
 0x555   : > { %14850 = vmatprep.mubr.msk.bf16.mxu0 %vm21194_vm9, %v13866_v61  ;;  %v19820_v61 = vrot.slane %v10330_v22, 5  ;;  %v19906_v22 = vld [vmem:[%s19843_s16 + $0x1c] sm:$0xf]  ;;  %v11821_v29 = vshrl.u32 %v19900_v28, 16  ;;  %v11818_v2 = vrot.slane %v11816_v13, 5  ;;  %v11824_v41 = vshll.u32 %v19900_v28, 16  ;;  %vm21207_vm9 = vmmov %vm21191_vm0 }
 0x556   : > { %v19827_v17 = vrot.slane %v10351_v44, 4  ;;  %v19880_v44 = vld [vmem:[%s19843_s16 + $0xc] sm:$0xf]  ;;  %v11779_v36 = vor.u32 %v11778_v1, %v11775_v39  ;;  %v11830_v38 = vshll.u32 %v19906_v22, 16 }
 0x557   : > { %v11797_v10 = vshrl.u32 %v19880_v44, 16  ;;  %v11800_v14 = vshll.u32 %v19880_v44, 16 }
 0x558   : > { %v11780_v39 = vrot.slane %v11779_v36, 4  ;;  %v11826_v36 = vrot.slane %v11824_v41, 5 }
 0x559   : > { %v11799_v7 = vrot.slane %v11797_v10, 4  ;;  %v19920_v10 = vld [vmem:[%s19843_s16 + $0x24] sm:$0xf] }
 0x55a   : > { %v11785_v3 = vsel %vm17285_vm10, %v11780_v39, %v11784_v24  ;;  %v11845_v6 = vshrl.u32 %v19920_v10, 16  ;;  %v11848_v30 = vshll.u32 %v19920_v10, 16 }
 0x55c   : > { %14851 = vmatmul.mubr.msk.bf16.gmra.mrb[24].mxu0 %vm21196_vm2, %v13867_v40  ;;  %v19877_v40 = vrot.slane %v10364_v26, 4  ;;  %v11794_v26 = vrot.slane %v11792_v33, 5  ;;  %v11808_v33 = vrot.slane %v11806_v59, 5  ;;  %v11823_v59 = vrot.slane %v11821_v29, 4  ;;  %vm21209_vm2 = vmmov %vm21191_vm0 }
 0x55d   : > { %14854 = vmatprep.mubr.msk.bf16.mxu0 %vm21197_vm4, %v13868_v19  ;;  %v11786_v19 = vshrl.u32 %v19853_v37, 16  ;;  %v11840_v29 = vshll.u32 %v19916_v52, 16  ;;  %v11850_v53 = vrot.slane %v11848_v30, 5  ;;  %vm21212_vm4 = vmmov %vm21191_vm0 }
 0x55f   : > { %v11788_v46 = vrot.slane %v11786_v19, 4  ;;  %v11802_v19 = vrot.slane %v11800_v14, 5  ;;  %v11842_v39 = vrot.slane %v11840_v29, 5 }
 0x561   : > { %v11789_v57 = vor.u32 %v11788_v46, %v11784_v24  ;;  %v11812_v46 = vrot.slane %v11810_v48, 4  ;;  %v11803_v14 = vor.u32 %v11802_v19, %v11799_v7  ;;  %v19934_v7 = vld [vmem:[%s19843_s16 + $0x2c] sm:$0x1] }
 0x562   : > { %v11864_v27 = vshll.u32 %v19934_v7, 16 }
 0x563   : > { %v11790_v1 = vrot.slane %v11789_v57, 4  ;;  %v11813_v48 = vor.u32 %v11812_v46, %v11808_v33  ;;  %v11834_v57 = vshrl.u32 %v19906_v22, 16  ;;  %v11804_v13 = vrot.slane %v11803_v14, 4  ;;  %v15577_v46 = vld [vmem:[#allocation4 + $0x18] sm:$0xff]  }
 0x564   : > { %14855 = vmatmul.mubr.msk.bf16.gmra.mrb[28].mxu0 %vm21198_vm1, %v13869_v45  ;;  %v11847_v14 = vrot.slane %v11845_v6, 4  ;;  %v11866_v6 = vrot.slane %v11864_v27, 5  ;;  %v12084_v27 = vrot.slane %v19853_v37, 5  ;;  %vm21213_vm1 = vmmov %vm21191_vm0 }
 0x565   : > { %14860 = vmatprep.mubr.msk.bf16.mxu0 %vm21199_vm14, %v15576_v54  ;;  %v11795_v45 = vsel %vm17285_vm10, %v11790_v1, %v11794_v26  ;;  %v11832_v54 = vrot.slane %v11830_v38, 5  ;;  %v11814_v19 = vrot.slane %v11813_v48, 4  ;;  %v11836_v15 = vrot.slane %v11834_v57, 4  ;;  %v15578_v48 = vld [vmem:[#allocation4 + $0x24] sm:$0xff]   ;;  %vm21214_vm14 = vmmov %vm21191_vm0 }
 0x566   : > { %v11809_v24 = vsel %vm17285_vm10, %v11804_v13, %v11808_v33  ;;  %v11827_v26 = vor.u32 %v11826_v36, %v11823_v59  ;;  %v11854_v1 = vshll.u32 %v19925_v11, 16  ;;  %v11851_v59 = vor.u32 %v11850_v53, %v11847_v14 }
 0x567   : > { %v11819_v38 = vsel %vm17285_vm10, %v11814_v19, %v11818_v2  ;;  %v11837_v41 = vor.u32 %v11836_v15, %v11832_v54  ;;  %v12032_v13 = vmax.bf16 %v11785_v3, %v19846_v0  ;;  %v12033_v36 = vmax.bf16 %v11795_v45, %v19853_v37 }
 0x568   : > { %v11828_v57 = vrot.slane %v11827_v26, 4  ;;  %v11856_v31 = vrot.slane %v11854_v1, 5  ;;  %v11860_v15 = vrot.slane %v11858_v4, 4  ;;  %v12034_v2 = vmax.bf16 %v11809_v24, %v19880_v44 }
 0x569   : > { %v11838_v33 = vrot.slane %v11837_v41, 4  ;;  %v11852_v3 = vrot.slane %v11851_v59, 4  ;;  %v12035_v45 = vmax.bf16 %v11819_v38, %v19885_v8  ;;  %v14001_v24 = vrot.slane %v19880_v44, 9  ;;  %v15579_v41 = vld [vmem:[#allocation4 + $0x30] sm:$0xff]   ;;  %v15580_v44 = vld [vmem:[#allocation4 + $0x3c] sm:$0xff]  }
 0x56a   : > { %v11833_v30 = vsel %vm17285_vm10, %v11828_v57, %v11832_v54  ;;  %v11861_v29 = vor.u32 %v11860_v15, %v11856_v31  ;;  %v14000_v54 = vrot.slane %v19846_v0, 9  ;;  %v12091_v26 = vrot.slane %v19885_v8, 5 }
 0x56b   : > { %v11843_v53 = vsel %vm17285_vm10, %v11838_v33, %v11842_v39  ;;  %v11857_v4 = vsel %vm17285_vm10, %v11852_v3, %v11856_v31  ;;  %v12086_v38 = vrot.slane %v12084_v27, 4  ;;  %v12094_v31 = vrot.slane %v19895_v20, 5 }
 0x56c   : > { %14861 = vmatmul.mubr.msk.bf16.vlgmr.msra.gmra.mrb[16].mxu0 %vm21200_vm5, %v15577_v46  ;;  %v12037_v19 = vmax.bf16 %v11843_v53, %v19906_v22  ;;  %v11862_v39 = vrot.slane %v11861_v29, 4  ;;  %v12038_v1 = vmax.bf16 %v11857_v4, %v19920_v10  ;;  %v12085_v46 = vsel %vm17595_vm13, %v14000_v54, %v12084_v27  ;;  %vm21218_vm5 = vmmov %vm21202_vm8 }
 0x56d   : > { %14877 = vmatpush3.bf16.msra.mxu0 %v19757_v21  ;;  %14864 = vmatprep.mubr.msk.bf16.mxu0 %vm21201_vm3, %v15578_v48  ;;  %v12036_v21 = vmax.bf16 %v11833_v30, %v19900_v28  ;;  %v12092_v0 = vsel %vm17595_vm13, %v14001_v24, %v12091_v26  ;;  %v12093_v37 = vrot.slane %v12091_v26, 4  ;;  %v12098_v48 = vrot.slane %v19906_v22, 5  ;;  %vm21220_vm3 = vmmov %vm21191_vm0 }
 0x56e   : > { %15426 = vmatprep.subr.msk.bf16.mxu0 %vm21202_vm8, %v19762_v58  ;;  %v12087_v58 = vrot.slane %v19867_v34, 5  ;;  %v14002_v34 = vrot.slane %v19900_v28, 9  ;;  %v11867_v8 = vsel %vm17285_vm10, %v11862_v39, %v11866_v6  ;;  %v12101_v57 = vrot.slane %v19916_v52, 5  ;;  %v11754_v6 = vld [vmem:[%s19843_s16 + $0x30] sm:$0xf]  ;;  %vm21221_vm8 = vmmov %vm21191_vm0 }
 0x56f   : > { %v12039_v33 = vmax.bf16 %v11867_v8, %v19925_v11  ;;  %v12095_v20 = vsel %vm17595_vm13, %v12093_v37, %v12094_v31  ;;  %v14003_v28 = vrot.slane %v19920_v10, 9  ;;  %v12105_v59 = vrot.slane %v19925_v11, 5  ;;  %v15582_v37 = vld [vmem:[#allocation4 + $0x54] sm:$0xff]  }
 0x570   : > { %v12088_v14 = vsel %vm17595_vm13, %v12086_v38, %v12087_v58  ;;  %v12099_v30 = vsel %vm17595_vm13, %v14002_v34, %v12098_v48  ;;  %v12100_v22 = vrot.slane %v12098_v48, 4  ;;  %v12108_v52 = vrot.slane %v19934_v7, 5  ;;  %v11755_v58 = vld [vmem:[%s19843_s16 + $0x34] sm:$0xf] }
 0x571   : > { %v12172_v15 = vmax.bf16 %v12085_v46, %v12032_v13  ;;  %v12106_v53 = vsel %vm17595_vm13, %v14003_v28, %v12105_v59  ;;  %v12107_v3 = vrot.slane %v12105_v59, 4  ;;  %v12173_v29 = vmax.bf16 %v12088_v14, %v12033_v36  ;;  %v11756_v46 = vld [vmem:[%s19843_s16 + $0x38] sm:$0x1] }
 0x572   : > { %v12174_v10 = vmax.bf16 %v12092_v0, %v12034_v2  ;;  %v12102_v11 = vsel %vm17595_vm13, %v12100_v22, %v12101_v57  ;;  %v12175_v54 = vmax.bf16 %v12095_v20, %v12035_v45  ;;  %v19995_v27 = vmax.bf16 %v12099_v30, %v12036_v21  ;;  %v15581_v45 = vld [vmem:[#allocation4 + $0x48] sm:$0xff]   ;;  %v11757_v30 = vld [vmem:[%s19843_s16 + $0x3c] sm:$0xf]  ;;  %v11758_v22 = vld [vmem:[%s19843_s16 + $0x40] sm:$0xf] }
 0x573   : > { %v19997_v4 = vmax.bf16 %v12106_v53, %v12038_v1  ;;  %v12109_v7 = vsel %vm17595_vm13, %v12107_v3, %v12108_v52  ;;  %v20002_v13 = vmax.bf16 %v12102_v11, %v12037_v19  ;;  %v11869_v26 = vshrl.u32 %v11754_v6, 16 }
 0x574   : > { %14865 = vmatmul.mubr.msk.bf16.gmra.mrb[20].mxu0 %vm21203_vm7, %v15579_v41  ;;  %v12192_v24 = vmax.bf16 %v12174_v10, %v12172_v15  ;;  %v20004_v39 = vmax.bf16 %v12109_v7, %v12039_v33  ;;  %v12193_v36 = vmax.bf16 %v12175_v54, %v12173_v29  ;;  %v12194_v2 = vmax.bf16 %v19995_v27, %v12174_v10  ;;  %vm21222_vm7 = vmmov %vm21191_vm0 }
 0x575   : > { %14868 = vmatprep.mubr.msk.bf16.mxu0 %vm21204_vm11, %v15580_v44  ;;  %v11872_v38 = vshll.u32 %v11754_v6, 16  ;;  %v12195_v21 = vmax.bf16 %v20002_v13, %v12175_v54  ;;  %v11871_v41 = vrot.slane %v11869_v26, 4  ;;  %v11878_v0 = vshll.u32 %v11755_v58, 16  ;;  %vm21226_vm11 = vmmov %vm21191_vm0 }
 0x576   : > { %v12208_v1 = vmax.bf16 %v12192_v24, %v19995_v27  ;;  %v12209_v19 = vmax.bf16 %v12193_v36, %v20002_v13  ;;  %v12210_v31 = vmax.bf16 %v12194_v2, %v19997_v4  ;;  %v11882_v44 = vshrl.u32 %v11755_v58, 16  ;;  %v11759_v24 = vld [vmem:[%s19843_s16 + $0x44] sm:$0x1] }
 0x577   : > { %v11874_v34 = vrot.slane %v11872_v38, 5  ;;  %v12211_v8 = vmax.bf16 %v12195_v21, %v20004_v39  ;;  %v11880_v14 = vrot.slane %v11878_v0, 5  ;;  %v11888_v48 = vshll.u32 %v11756_v46, 16  ;;  %v15583_v21 = vld [vmem:[#allocation4 + $0x60] sm:$0xff]  }
 0x578   : > { %v14004_v57 = vrot.slane %v11754_v6, 9  ;;  %v14010_v33 = vcombine.low %v12208_v1, %v12209_v19  ;;  %v11884_v28 = vrot.slane %v11882_v44, 4  ;;  %v12112_v59 = vrot.slane %v11755_v58, 5  ;;  %v10227_v44 = vld [vmem:[#allocation4 + $0x60] sm:$0xf] }
 0x579   : > { %v11875_v20 = vor.u32 %v11874_v34, %v11871_v41  ;;  %v14011_v52 = vcombine.low %v12210_v31, %v12211_v8  ;;  %v11890_v15 = vrot.slane %v11888_v48, 5  ;;  %v12115_v53 = vrot.slane %v11756_v46, 5 }
 0x57a   : > { %v12196_v3 = vmax.bf16 %v19997_v4, %v19995_v27  ;;  %14968 = vmatprep.mubr.msk.bf16.mxu1 %vm21191_vm0, %v14010_v33  ;;  %v11885_v10 = vor.u32 %v11884_v28, %v11880_v14  ;;  %v12113_v11 = vsel %vm17595_vm13, %v14004_v57, %v12112_v59  ;;  %v12114_v54 = vrot.slane %v12112_v59, 4 }
 0x57b   : > { %v11876_v29 = vrot.slane %v11875_v20, 4  ;;  %14969 = vmatmul.mubr.msk.bf16.vlgmr.msra.gmra.mrb[36].mxu1 %vm21207_vm9, %v14011_v52  ;;  %v12197_v7 = vmax.bf16 %v20004_v39, %v20002_v13  ;;  %v11893_v26 = vshrl.u32 %v11757_v30, 16  ;;  %v11896_v36 = vshll.u32 %v11757_v30, 16  ;;  %vm21232_vm9 = vmmov %vm21191_vm0 }
 0x57c   : > { %14869 = vmatmul.mubr.msk.bf16.gmra.mrb[24].mxu0 %vm21205_vm12, %v15581_v45  ;;  %v11902_v2 = vshll.u32 %v11758_v22, 16  ;;  %v11886_v46 = vrot.slane %v11885_v10, 4  ;;  %v12116_v38 = vsel %vm17595_vm13, %v12114_v54, %v12115_v53  ;;  %v11906_v45 = vshrl.u32 %v11758_v22, 16  ;;  %vm21227_vm12 = vmmov %vm21191_vm0 }
 0x57d   : > { %14872 = vmatprep.mubr.msk.bf16.mxu0 %vm21206_vm15, %v15582_v37  ;;  %v11881_v27 = vsel %vm17285_vm10, %v11876_v29, %v11880_v14  ;;  %v11895_v41 = vrot.slane %v11893_v26, 4  ;;  %v11898_v0 = vrot.slane %v11896_v36, 5  ;;  %v11912_v31 = vshll.u32 %v11759_v24, 16  ;;  %v20048_v26 = vld [vmem:[#allocation4 + $0x64] sm:$0xf]  ;;  %vm21228_vm15 = vmmov %vm21191_vm0 }
 0x57e   : > { %v12040_v1 = vmax.bf16 %v11881_v27, %v11754_v6  ;;  %v11904_v37 = vrot.slane %v11902_v2, 5  ;;  %v11891_v13 = vsel %vm17285_vm10, %v11886_v46, %v11890_v15  ;;  %v11908_v19 = vrot.slane %v11906_v45, 4  ;;  %v20061_v45 = vld [vmem:[#allocation4 + $0x5c] sm:$0x1] }
 0x57f   : > { %v14005_v34 = vrot.slane %v11757_v30, 9  ;;  %v12041_v8 = vmax.bf16 %v11891_v13, %v11755_v58  ;;  %v11899_v48 = vor.u32 %v11898_v0, %v11895_v41  ;;  %v12119_v57 = vrot.slane %v11758_v22, 5 }
 0x580   : > { %v20033_v14 = vmax.bf16 %v12113_v11, %v12040_v1  ;;  %v10367_v6 = vor.u32 %v19877_v40, %v19863_v32  ;;  %v11909_v33 = vor.u32 %v11908_v19, %v11904_v37  ;;  %v11914_v20 = vrot.slane %v11912_v31, 5 }
 0x581   : > { %v12122_v28 = vrot.slane %v11759_v24, 5  ;;  %v21210_v59 = vshll.u32 %v19841_v16, 16  ;;  %v20043_v15 = vmax.bf16 %v12116_v38, %v12041_v8  ;;  %v11900_v53 = vrot.slane %v11899_v48, 4 }
 0x582   : > { %v12212_v58 = vmax.bf16 %v12196_v3, %v20033_v14  ;;  %v21211_v29 = vshrl.u32 %v19841_v16, 16  ;;  %v10399_v11 = vshrl.u32 %v10227_v44, 16  ;;  %v12121_v54 = vrot.slane %v12119_v57, 4 }
 0x583   : > { %v20041_v52 = vrot.slane %v21210_v59, 5  ;;  %v10402_v40 = vshll.u32 %v10227_v44, 16  ;;  %v12213_v24 = vmax.bf16 %v12197_v7, %v20043_v15  ;;  %v11905_v36 = vsel %vm17285_vm10, %v11900_v53, %v11904_v37  ;;  %v20093_v44 = vld [vmem:[#allocation4 + $0x68] sm:$0x1]  ;;  %v10588_v59 = vld [vmem:[#allocation4 + $0xc] sm:$0xe] }
 0x584   : > { %14873 = vmatmul.mubr.msk.bf16.gmra.mrb[28].mxu0 %vm21208_vm6, %v15583_v21  ;;  %v10390_v10 = vrot.slane %v21211_v29, 4  ;;  %v12120_v2 = vsel %vm17595_vm13, %v14005_v34, %v12119_v57  ;;  %v12042_v27 = vmax.bf16 %v11905_v36, %v11757_v30  ;;  %v12123_v46 = vsel %vm17595_vm13, %v12121_v54, %v12122_v28  ;;  %vm21234_vm6 = vmmov %vm21218_vm5 }
 0x585   : > { %14878 = vmatprep.mubr.msk.bf16.mxu0 %vm21209_vm2, %v19794_v43  ;;  %v11910_v43 = vrot.slane %v11909_v33, 4  ;;  %v12198_v38 = vmax.bf16 %v20033_v14, %v19997_v4  ;;  %v10381_v7 = vor.u32 %v19892_v50, %v19890_v35  ;;  %v14012_v21 = vcombine.low %v12212_v58, %v12213_v24  ;;  %v20073_v4 = vld [vmem:[%s20971_s10 + $0xc] sm:$0x3]  ;;  %vm21235_vm2 = vmmov %vm21191_vm0 }
 0x586   : > { %v12199_v41 = vmax.bf16 %v20043_v15, %v20004_v39  ;;  %v10391_v0 = vor.u32 %v10390_v10, %v20041_v52  ;;  %v10408_v30 = vshll.u32 %v20048_v26, 16  ;;  %v10412_v37 = vshrl.u32 %v20048_v26, 16  ;;  %v21219_v10 = vld [vmem:[#allocation37_spill] sm:$0xff] }
 0x587   : > { %v11915_v3 = vsel %vm17285_vm10, %v11910_v43, %v11914_v20  ;;  %v20075_v13 = vmax.bf16 %v12120_v2, %v12042_v27  ;;  %v10368_v35 = vrot.slane %v10367_v6, 4  ;;  %v10401_v50 = vrot.slane %v10399_v11, 4  ;;  %14972 = vmatprep.mubr.msk.bf16.mxu1 %vm21213_vm1, %v14012_v21  ;;  %v11760_v43 = vld [vmem:[%s19843_s16 + $0x48] sm:$0xf]  ;;  %v11761_v24 = vld [vmem:[%s19843_s16 + $0x4c] sm:$0xf]  ;;  %vm21240_vm1 = vmmov %vm21218_vm5 }
 0x588   : > { %v12043_v1 = vmax.bf16 %v11915_v3, %v11758_v22  ;;  %v10404_v22 = vrot.slane %v10402_v40, 5  ;;  %v10325_v19 = vsel %vm17285_vm10, %v19850_v47, %v19839_v62  ;;  %v10394_v34 = vshll.u32 %v20061_v45, 16  ;;  %v21223_v3 = vld [vmem:[#allocation39_spill] sm:$0xff] }
 0x589   : > { %v12214_v8 = vmax.bf16 %v12198_v38, %v20075_v13  ;;  %v21217_v62 = vshll.u32 %v19825_v18, 16  ;;  %v10392_v57 = vrot.slane %v10391_v0, 4  ;;  %v20108_v6 = vrot.slane %v10408_v30, 5  ;;  %v11762_v0 = vld [vmem:[%s19843_s16 + $0x50] sm:$0x1] }
 0x58a   : > { %v20080_v39 = vmax.bf16 %v12123_v46, %v12043_v1  ;;  %v10414_v33 = vrot.slane %v10412_v37, 4  ;;  %v10315_v20 = vsel %vm17285_vm10, %v19837_v49, %v19788_v5  ;;  %v10396_v28 = vrot.slane %v10394_v34, 5  ;;  %v21224_v46 = vld [vmem:[#allocation36_spill] sm:$0xff] }
 0x58b   : > { %v10372_v47 = vrot.slane %v21217_v62, 5  ;;  %v13899_v58 = vcombine.low %v10315_v20, %v10325_v19  ;;  %v10622_v11 = vrot.slane %v21219_v10, 5  ;;  %v13912_v2 = vrot.slane %v10588_v59, 9 }
 0x58c   : > { %14879 = vmatmul.mubr.msk.bf16.vlgmr.msra.gmra.mrb[16].mxu0 %vm21212_vm4, %v19832_v63  ;;  %v21215_v63 = vor.u32 %v19820_v61, %v19814_v25  ;;  %v12215_v25 = vmax.bf16 %v12199_v41, %v20080_v39  ;;  %v10382_v61 = vrot.slane %v10381_v7, 4  ;;  %v10397_v5 = vsel %vm17285_vm10, %v10392_v57, %v10396_v28  ;;  %vm21236_vm4 = vmmov %vm21191_vm0 }
 0x58d   : > { %14895 = vmatpush3.bf16.msra.mxu0 %v19778_v56  ;;  %14882 = vmatprep.mubr.msk.bf16.mxu0 %vm21214_vm14, %v19848_v42  ;;  %v10349_v56 = vsel %vm17285_vm10, %v19873_v23, %v19861_v51  ;;  %v21216_v42 = vor.u32 %v19829_v55, %v19827_v17  ;;  %v10373_v51 = vsel %vm17285_vm10, %v10368_v35, %v10372_v47  ;;  %v10418_v17 = vshll.u32 %v20093_v44, 16  ;;  %vm21241_vm14 = vmmov %vm21191_vm0 }
 0x58e   : > { %v10334_v31 = vrot.slane %v21215_v63, 4  ;;  %15427 = vmatprep.subr.msk.bf16.mxu0 %vm21218_vm5, %v20073_v4  ;;  %v10405_v23 = vor.u32 %v10404_v22, %v10401_v50  ;;  %v14013_v55 = vcombine.low %v12214_v8, %v12215_v25  ;;  %v10415_v49 = vor.u32 %v10414_v33, %v20108_v6  ;;  %v21225_v63 = vld [vmem:[#allocation38_spill] sm:$0xff]  ;;  %vm21242_vm5 = vmmov %vm21191_vm0 }
 0x58f   : > { %v10358_v48 = vrot.slane %v21216_v42, 4  ;;  %v10420_v36 = vrot.slane %v10418_v17, 5  ;;  %v10625_v27 = vrot.slane %v21223_v3, 5  ;;  %v10629_v38 = vrot.slane %v21224_v46, 5  ;;  %v11763_v33 = vld [vmem:[%s19843_s16 + $0x54] sm:$0xf] }
 0x590   : > { %v10339_v53 = vsel %vm17285_vm10, %v10334_v31, %v19807_v12  ;;  %14973 = vmatmul.mubr.msk.bf16.gmra.mrb[40].mxu1 %vm21220_vm3, %v14013_v55  ;;  %v10387_v12 = vsel %vm17285_vm10, %v10382_v61, %v20041_v52  ;;  %v11917_v7 = vshrl.u32 %v11760_v43, 16  ;;  %v11920_v21 = vshll.u32 %v11760_v43, 16  ;;  %v20222_v46 = vld [vmem:[%s20971_s10 + $0xe] sm:$0x3]  ;;  %vm21243_vm3 = vmmov %vm21191_vm0 }
 0x591   : > { %v10363_v29 = vsel %vm17285_vm10, %v10358_v48, %v19863_v32  ;;  %v13900_v54 = vcombine.low %v10339_v53, %v10349_v56  ;;  %v10406_v32 = vrot.slane %v10405_v23, 4  ;;  %v13902_v1 = vcombine.low %v10387_v12, %v10397_v5 }
 0x592   : > { %v13901_v40 = vcombine.low %v10363_v29, %v10373_v51  ;;  %v10624_v41 = vrot.slane %v10622_v11, 4  ;;  %v11926_v30 = vshll.u32 %v11761_v24, 16  ;;  %v11930_v37 = vshrl.u32 %v11761_v24, 16  ;;  %v11765_v29 = vld [vmem:[%s19843_s16 + $0x5c] sm:$0x1] }
 0x593   : > { %v10416_v35 = vrot.slane %v10415_v49, 4  ;;  %v20140_v52 = vsel %vm17595_vm13, %v13912_v2, %v10622_v11  ;;  %v11919_v50 = vrot.slane %v11917_v7, 4  ;;  %v11922_v22 = vrot.slane %v11920_v21, 5  ;;  %v10589_v21 = vld [vmem:[#allocation4 + $0x18] sm:$0xe] }
 0x594   : > { %14883 = vmatmul.mubr.msk.bf16.gmra.mrb[20].mxu0 %vm21221_vm8, %v13899_v58  ;;  %v10411_v19 = vsel %vm17285_vm10, %v10406_v32, %v20108_v6  ;;  %v10636_v31 = vrot.slane %v21225_v63, 5  ;;  %v11928_v34 = vrot.slane %v11926_v30, 5  ;;  %v11932_v8 = vrot.slane %v11930_v37, 4  ;;  %v11764_v6 = vld [vmem:[%s19843_s16 + $0x58] sm:$0xf]  ;;  %v21237_v63 = vld [vmem:[#allocation45_spill] sm:$0xff]  ;;  %vm21244_vm8 = vmmov %vm21191_vm0 }
 0x595   : > { %14886 = vmatprep.mubr.msk.bf16.mxu0 %vm21222_vm7, %v13900_v54  ;;  %v20148_v56 = vrot.slane %v10629_v38, 4  ;;  %v11923_v42 = vor.u32 %v11922_v22, %v11919_v50  ;;  %v11936_v48 = vshll.u32 %v11762_v0, 16  ;;  %v14006_v62 = vrot.slane %v11760_v43, 9  ;;  %vm21245_vm7 = vmmov %vm21191_vm0 }
 0x596   : > { %v10626_v47 = vsel %vm17595_vm13, %v10624_v41, %v10625_v27  ;;  %v11933_v25 = vor.u32 %v11932_v8, %v11928_v34  ;;  %v12126_v61 = vrot.slane %v11761_v24, 5  ;;  %v12129_v57 = vrot.slane %v11762_v0, 5 }
 0x597   : > { %v10421_v51 = vsel %vm17285_vm10, %v10416_v35, %v10420_v36  ;;  %v11924_v23 = vrot.slane %v11923_v42, 4  ;;  %v11938_v17 = vrot.slane %v11936_v48, 5  ;;  %v12200_v55 = vmax.bf16 %v20075_v13, %v20033_v14  ;;  %v21229_v42 = vld [vmem:[#allocation40_spill] sm:$0xff] }
 0x598   : > { %v11934_v20 = vrot.slane %v11933_v25, 4  ;;  %v12127_v28 = vsel %vm17595_vm13, %v14006_v62, %v12126_v61  ;;  %v12128_v59 = vrot.slane %v12126_v61, 4  ;;  %v12201_v58 = vmax.bf16 %v20080_v39, %v20043_v15  ;;  %v10590_v61 = vld [vmem:[#allocation4 + $0x24] sm:$0xe] }
 0x599   : > { %v11929_v53 = vsel %vm17285_vm10, %v11924_v23, %v11928_v34  ;;  %v11941_v10 = vshrl.u32 %v11763_v33, 16  ;;  %v11944_v11 = vshll.u32 %v11763_v33, 16  ;;  %v11950_v54 = vshll.u32 %v11764_v6, 16 }
 0x59a   : > { %v11939_v14 = vsel %vm17285_vm10, %v11934_v20, %v11938_v17  ;;  %v12130_v5 = vsel %vm17595_vm13, %v12128_v59, %v12129_v57  ;;  %v11954_v49 = vshrl.u32 %v11764_v6, 16  ;;  %v13903_v2 = vcombine.low %v10411_v19, %v10421_v51  ;;  %v21230_v57 = vld [vmem:[#allocation41_spill] sm:$0xff] }
 0x59b   : > { %v12045_v12 = vmax.bf16 %v11939_v14, %v11761_v24  ;;  %v11943_v32 = vrot.slane %v11941_v10, 4  ;;  %v11946_v15 = vrot.slane %v11944_v11, 5  ;;  %v11952_v36 = vrot.slane %v11950_v54, 5  ;;  %v21233_v54 = vld [vmem:[#allocation43_spill] sm:$0xff] }
 0x59c   : > { %14887 = vmatmul.mubr.msk.bf16.gmra.mrb[24].mxu0 %vm21226_vm11, %v13901_v40  ;;  %v12044_v40 = vmax.bf16 %v11929_v53, %v11760_v43  ;;  %v11956_v27 = vrot.slane %v11954_v49, 4  ;;  %v11960_v7 = vshll.u32 %v11765_v29, 16  ;;  %v14007_v0 = vrot.slane %v11763_v33, 9  ;;  %vm21246_vm11 = vmmov %vm21191_vm0 }
 0x59d   : > { %14890 = vmatprep.mubr.msk.bf16.mxu0 %vm21227_vm12, %v13902_v1  ;;  %v20173_v1 = vmax.bf16 %v12130_v5, %v12045_v12  ;;  %v11947_v41 = vor.u32 %v11946_v15, %v11943_v32  ;;  %v12133_v30 = vrot.slane %v11764_v6, 5  ;;  %v12136_v50 = vrot.slane %v11765_v29, 5  ;;  %v10591_v15 = vld [vmem:[#allocation4 + $0x30] sm:$0xe]  ;;  %vm21247_vm12 = vmmov %vm21191_vm0 }
 0x59e   : > { %v20171_v3 = vmax.bf16 %v12127_v28, %v12044_v40  ;;  %v11957_v37 = vor.u32 %v11956_v27, %v11952_v36  ;;  %v11962_v35 = vrot.slane %v11960_v7, 5  ;;  %v13921_v24 = vcombine.low %v20140_v52, %v10626_v47 }
 0x59f   : > { %v12217_v22 = vmax.bf16 %v12201_v58, %v20173_v1  ;;  %v11948_v19 = vrot.slane %v11947_v41, 4  ;;  %v12135_v34 = vrot.slane %v12133_v30, 4  ;;  %v13913_v8 = vrot.slane %v10589_v21, 9  ;;  %v21231_v58 = vld [vmem:[#allocation42_spill] sm:$0xff]  ;;  %v21239_v21 = vld [vmem:[#allocation44_spill] sm:$0xff] }
 0x5a0   : > { %v12216_v43 = vmax.bf16 %v12200_v55, %v20171_v3  ;;  %v10632_v48 = vrot.slane %v21229_v42, 5  ;;  %v10638_v62 = vrot.slane %v10636_v31, 4  ;;  %v11958_v25 = vrot.slane %v11957_v37, 4  ;;  %v10594_v42 = vld [vmem:[#allocation4 + $0x54] sm:$0xe] }
 0x5a1   : > { %v10639_v51 = vrot.slane %v21230_v57, 5  ;;  %v11953_v52 = vsel %vm17285_vm10, %v11948_v19, %v11952_v36  ;;  %v12134_v47 = vsel %vm17595_vm13, %v14007_v0, %v12133_v30  ;;  %v12137_v20 = vsel %vm17595_vm13, %v12135_v34, %v12136_v50  ;;  %v10592_v36 = vld [vmem:[#allocation4 + $0x3c] sm:$0xe]  ;;  %v10593_v50 = vld [vmem:[#allocation4 + $0x48] sm:$0xe] }
 0x5a2   : > { %v14014_v23 = vcombine.low %v12216_v43, %v12217_v22  ;;  %v11963_v17 = vsel %vm17285_vm10, %v11958_v25, %v11962_v35  ;;  %v12046_v55 = vmax.bf16 %v11953_v52, %v11763_v33  ;;  %v12202_v28 = vmax.bf16 %v20171_v3, %v20075_v13  ;;  %v11767_v57 = vld [vmem:[%s19843_s16 + $0x64] sm:$0xf] }
 0x5a3   : > { %v10633_v59 = vsel %vm17595_vm13, %v20148_v56, %v10632_v48  ;;  %v10643_v53 = vrot.slane %v21231_v58, 5  ;;  %v12047_v29 = vmax.bf16 %v11963_v17, %v11764_v6  ;;  %v12203_v10 = vmax.bf16 %v20173_v1, %v20080_v39 }
 0x5a4   : > { %14891 = vmatmul.mubr.msk.bf16.gmra.mrb[28].mxu0 %vm21228_vm15, %v13903_v2  ;;  %14976 = vmatprep.mubr.msk.bf16.mxu1 %vm21232_vm9, %v14014_v23  ;;  %v13914_v11 = vrot.slane %v10590_v61, 9  ;;  %v10640_v33 = vsel %vm17595_vm13, %v10638_v62, %v10639_v51  ;;  %v10650_v14 = vrot.slane %v21233_v54, 5  ;;  %v20204_v40 = vmax.bf16 %v12134_v47, %v12046_v55  ;;  %v21238_v2 = vld [vmem:[#allocation46_spill] sm:$0xff]  ;;  %vm21248_vm15 = vmmov %vm21191_vm0 }
 0x5a5   : > { %14896 = vmatprep.mubr.msk.bf16.mxu0 %vm21191_vm0, %v13921_v24  ;;  %v10630_v13 = vsel %vm17595_vm13, %v13913_v8, %v10629_v38  ;;  %v20210_v56 = vmax.bf16 %v12137_v20, %v12047_v29  ;;  %v10926_v6 = vsel %vm21234_vm6, %v20073_v4, 0  ;;  %v10645_v32 = vrot.slane %v10643_v53, 4  ;;  %v11768_v20 = vld [vmem:[%s19843_s16 + $0x68] sm:$0x1]  ;;  %vm21249_vm0 = vmmov %vm21240_vm1 }
 0x5a6   : > { %v13922_v5 = vcombine.low %v10630_v13, %v10633_v59  ;;  %v10637_v39 = vsel %vm17595_vm13, %v13914_v11, %v10636_v31  ;;  %v12218_v49 = vmax.bf16 %v12202_v28, %v20204_v40  ;;  %v10652_v4 = vrot.slane %v10650_v14, 4  ;;  %vm21250_vm9 = vmmov %vm21235_vm2 }
 0x5a7   : > { %v13923_v12 = vcombine.low %v10637_v39, %v10640_v33  ;;  %v12219_v38 = vmax.bf16 %v12203_v10, %v20210_v56  ;;  %v10646_v31 = vrot.slane %v21237_v63, 5  ;;  %v10657_v27 = vrot.slane %v21238_v2, 5  ;;  %vm21251_vm6 = vmmov %vm21235_vm2 }
 0x5a8   : > { %v10653_v41 = vrot.slane %v21239_v21, 5  ;;  %v13915_v0 = vrot.slane %v10591_v15, 9  ;;  %v10664_v43 = vrot.slane %v19841_v16, 5  ;;  %v13916_v37 = vrot.slane %v10592_v36, 9  ;;  %v11766_v16 = vld [vmem:[%s19843_s16 + $0x60] sm:$0xf] }
 0x5a9   : > { %v14015_v7 = vcombine.low %v12218_v49, %v12219_v38  ;;  %v10647_v30 = vsel %vm17595_vm13, %v10645_v32, %v10646_v31  ;;  %v10671_v24 = vrot.slane %v20048_v26, 5  ;;  %v10659_v19 = vrot.slane %v10657_v27, 4  ;;  %v10595_v26 = vld [vmem:[#allocation4 + $0x60] sm:$0xe]  ;;  %v11769_v32 = vld [vmem:[%s19843_s16 + $0x6c] sm:$0xf] }
 0x5aa   : > { %v10654_v35 = vsel %vm17595_vm13, %v10652_v4, %v10653_v41  ;;  %v10644_v22 = vsel %vm17595_vm13, %v13915_v0, %v10643_v53  ;;  %v10651_v8 = vsel %vm17595_vm13, %v13916_v37, %v10650_v14  ;;  %v13917_v62 = vrot.slane %v10593_v50, 9  ;;  %v11770_v31 = vld [vmem:[%s19843_s16 + $0x70] sm:$0xf]  ;;  %v11771_v0 = vld [vmem:[%s19843_s16 + $0x74] sm:$0x1]  ;;  %s14122_s16 = sshll.u32 %s15678_s24, 4 }
 0x5ab   : > { %14977 = vmatmul.mubr.msk.bf16.gmra.mrb[44].mxu1 %vm21241_vm14, %v14015_v7  ;;  %v13924_v34 = vcombine.low %v10644_v22, %v10647_v30  ;;  %v13925_v48 = vcombine.low %v10651_v8, %v10654_v35  ;;  %v10660_v25 = vrot.slane %v19825_v18, 5  ;;  %v10666_v61 = vrot.slane %v10664_v43, 4  ;;  %s12906_s24 = sshll.u32 %s15872_s12, 4  ;;  %s20893_s24 = int_to_ptr.vmem [resolvable:$true] %s12906_s24 }
 0x5ac   : > { %14897 = vmatmul.mubr.msk.bf16.vlgmr.msra.gmra.mrb[16].mxu0 %vm21235_vm2, %v13922_v5  ;;  %v10673_v51 = vrot.slane %v10671_v24, 4  ;;  %v10658_v23 = vsel %vm17595_vm13, %v13917_v62, %v10657_v27  ;;  %v10667_v47 = vrot.slane %v20061_v45, 5  ;;  %v11965_v17 = vshrl.u32 %v11766_v16, 16  ;;  %vm21252_vm2 = vmmov %vm21249_vm0 }
 0x5ad   : > { %14913 = vmatpush3.bf16.msra.mxu0 %v10926_v6  ;;  %14900 = vmatprep.mubr.msk.bf16.mxu0 %vm21236_vm4, %v13923_v12  ;;  %v10661_v52 = vsel %vm17595_vm13, %v10659_v19, %v10660_v25  ;;  %v13918_v55 = vrot.slane %v10594_v42, 9  ;;  %v10674_v18 = vrot.slane %v20093_v44, 5  ;;  %v11968_v28 = vshll.u32 %v11766_v16, 16  ;;  %vm21253_vm4 = vmmov %vm21243_vm3 }
 0x5ae   : > { %15428 = vmatprep.subr.msk.bf16.mxu0 %vm21240_vm1, %v20222_v46  ;;  %v11974_v59 = vshll.u32 %v11767_v57, 16  ;;  %v10668_v58 = vsel %vm17595_vm13, %v10666_v61, %v10667_v47  ;;  %v13919_v53 = vrot.slane %v10595_v26, 9  ;;  %v11967_v29 = vrot.slane %v11965_v17, 4  ;;  %v15584_v17 = vld [vmem:[#allocation4 + $0x18] sm:$0xff]   ;;  %vm21254_vm1 = vmmov %vm21243_vm3 }
 0x5af   : > { %v11978_v10 = vshrl.u32 %v11767_v57, 16  ;;  %v13926_v11 = vcombine.low %v10658_v23, %v10661_v52  ;;  %v10665_v33 = vsel %vm17595_vm13, %v13918_v55, %v10664_v43  ;;  %v10675_v45 = vsel %vm17595_vm13, %v10673_v51, %v10674_v18  ;;  %vm21255_vm14 = vmmov %vm21254_vm1 }
 0x5b0   : > { %v11970_v54 = vrot.slane %v11968_v28, 5  ;;  %v11976_v44 = vrot.slane %v11974_v59, 5  ;;  %v11984_v13 = vshll.u32 %v11768_v20, 16  ;;  %v14008_v5 = vrot.slane %v11766_v16, 9 }
 0x5b1   : > { %v11980_v14 = vrot.slane %v11978_v10, 4  ;;  %v13927_v6 = vcombine.low %v10665_v33, %v10668_v58  ;;  %v10672_v39 = vsel %vm17595_vm13, %v13919_v53, %v10671_v24  ;;  %v12140_v12 = vrot.slane %v11767_v57, 5 }
 0x5b2   : > { %v11971_v49 = vor.u32 %v11970_v54, %v11967_v29  ;;  %v13928_v38 = vcombine.low %v10672_v39, %v10675_v45  ;;  %v11986_v4 = vrot.slane %v11984_v13, 5  ;;  %v12143_v63 = vrot.slane %v11768_v20, 5  ;;  %v20295_v39 = vld [vmem:[#allocation4 + $0x1c] sm:$0xf] }
 0x5b3   : > { %v11981_v15 = vor.u32 %v11980_v14, %v11976_v44  ;;  %v12141_v2 = vsel %vm17595_vm13, %v14008_v5, %v12140_v12  ;;  %v12142_v27 = vrot.slane %v12140_v12, 4  ;;  %v12204_v7 = vmax.bf16 %v20204_v40, %v20171_v3  ;;  %v15585_v14 = vld [vmem:[#allocation4 + $0x24] sm:$0xff]  }
 0x5b4   : > { %14901 = vmatmul.mubr.msk.bf16.gmra.mrb[20].mxu0 %vm21242_vm5, %v13924_v34  ;;  %v11972_v36 = vrot.slane %v11971_v49, 4  ;;  %v12205_v41 = vmax.bf16 %v20210_v56, %v20173_v1  ;;  %v11989_v30 = vshrl.u32 %v11769_v32, 16  ;;  %v11992_v43 = vshll.u32 %v11769_v32, 16  ;;  %v20300_v49 = vld [vmem:[%s20971_s10 + $0x10] sm:$0x3]  ;;  %vm21256_vm5 = vmmov %vm21254_vm1 }
 0x5b5   : > { %14904 = vmatprep.mubr.msk.bf16.mxu0 %vm21243_vm3, %v13925_v48  ;;  %v11982_v21 = vrot.slane %v11981_v15, 4  ;;  %v12144_v35 = vsel %vm17595_vm13, %v12142_v27, %v12143_v63  ;;  %v11998_v50 = vshll.u32 %v11770_v31, 16  ;;  %v12002_v24 = vshrl.u32 %v11770_v31, 16  ;;  %v15587_v63 = vld [vmem:[#allocation4 + $0x3c] sm:$0xff]   ;;  %vm21257_vm3 = vmmov %vm21254_vm1 }
 0x5b6   : > { %v11977_v37 = vsel %vm17285_vm10, %v11972_v36, %v11976_v44  ;;  %v11991_v19 = vrot.slane %v11989_v30, 4  ;;  %v11994_v34 = vrot.slane %v11992_v43, 5  ;;  %v12008_v48 = vshll.u32 %v11771_v0, 16  ;;  %v20314_v30 = vld [vmem:[#allocation4 + $0x34] sm:$0xf] }
 0x5b7   : > { %v11987_v3 = vsel %vm17285_vm10, %v11982_v21, %v11986_v4  ;;  %v12048_v22 = vmax.bf16 %v11977_v37, %v11766_v16  ;;  %v12000_v42 = vrot.slane %v11998_v50, 5  ;;  %v12004_v1 = vrot.slane %v12002_v24, 4  ;;  %v20309_v4 = vld [vmem:[#allocation4 + $0x28] sm:$0xf]  ;;  %v20317_v43 = vld [vmem:[#allocation4 + $0x20] sm:$0x1] }
 0x5b8   : > { %v12049_v8 = vmax.bf16 %v11987_v3, %v11767_v57  ;;  %v11995_v25 = vor.u32 %v11994_v34, %v11991_v19  ;;  %v14009_v61 = vrot.slane %v11769_v32, 9  ;;  %v12147_v26 = vrot.slane %v11770_v31, 5  ;;  %v15588_v21 = vld [vmem:[#allocation4 + $0x48] sm:$0xff]   ;;  %v11047_v3 = vld [vmem:[#allocation4 + $0x30] sm:$0xf] }
 0x5b9   : > { %v12188_v62 = vmax.bf16 %v12141_v2, %v12048_v22  ;;  %v12005_v23 = vor.u32 %v12004_v1, %v12000_v42  ;;  %v12010_v52 = vrot.slane %v12008_v48, 5  ;;  %v12150_v47 = vrot.slane %v11771_v0, 5 }
 0x5ba   : > { %v12189_v51 = vmax.bf16 %v12144_v35, %v12049_v8  ;;  %v11996_v18 = vrot.slane %v11995_v25, 4  ;;  %v12149_v20 = vrot.slane %v12147_v26, 4  ;;  %v12148_v59 = vsel %vm17595_vm13, %v14009_v61, %v12147_v26  ;;  %v15589_v61 = vld [vmem:[#allocation4 + $0x54] sm:$0xff]  }
 0x5bb   : > { %v12220_v55 = vmax.bf16 %v12204_v7, %v12188_v62  ;;  %v12006_v28 = vrot.slane %v12005_v23, 4  ;;  %v12206_v58 = vmax.bf16 %v12188_v62, %v20204_v40  ;;  %v11308_v13 = vsel %vm21249_vm0, %v20222_v46, 0  ;;  %v15586_v40 = vld [vmem:[#allocation4 + $0x30] sm:$0xff]   ;;  %v11044_v7 = vld [vmem:[#allocation4 + $0x24] sm:$0xf] }
 0x5bc   : > { %14905 = vmatmul.mubr.msk.bf16.gmra.mrb[24].mxu0 %vm21244_vm8, %v13926_v11  ;;  %v12221_v16 = vmax.bf16 %v12205_v41, %v12189_v51  ;;  %v12001_v57 = vsel %vm17285_vm10, %v11996_v18, %v12000_v42  ;;  %v12151_v11 = vsel %vm17595_vm13, %v12149_v20, %v12150_v47  ;;  %v12207_v45 = vmax.bf16 %v12189_v51, %v20210_v56  ;;  %v20324_v23 = vld [vmem:[#allocation4 + $0x2c] sm:$0x1]  ;;  %v11050_v20 = vld [vmem:[#allocation4 + $0x3c] sm:$0xf]  ;;  %vm21258_vm8 = vmmov %vm21254_vm1 }
 0x5bd   : > { %14908 = vmatprep.mubr.msk.bf16.mxu0 %vm21245_vm7, %v13927_v6  ;;  %v12011_v29 = vsel %vm17285_vm10, %v12006_v28, %v12010_v52  ;;  %v12050_v10 = vmax.bf16 %v12001_v57, %v11769_v32  ;;  %v11041_v6 = vld [vmem:[#allocation4 + $0x18] sm:$0xf]  ;;  %v11075_v46 = vshll.u32 %v20295_v39, 16  ;;  %v11079_v15 = vshrl.u32 %v20295_v39, 16  ;;  %v15590_v52 = vld [vmem:[#allocation4 + $0x60] sm:$0xff]   ;;  %vm21259_vm7 = vmmov %vm21254_vm1 }
 0x5be   : > { %v14016_v53 = vcombine.low %v12220_v55, %v12221_v16  ;;  %v12051_v33 = vmax.bf16 %v12011_v29, %v11770_v31  ;;  %v11066_v32 = vshrl.u32 %v11041_v6, 16  ;;  %v11099_v41 = vshll.u32 %v20309_v4, 16  ;;  %v20330_v16 = vld [vmem:[#allocation4 + $0x40] sm:$0xf] }
 0x5bf   : > { %v12190_v54 = vmax.bf16 %v12148_v59, %v12050_v10  ;;  %v11077_v2 = vrot.slane %v11075_v46, 5  ;;  %v11081_v27 = vrot.slane %v11079_v15, 4  ;;  %v11103_v0 = vshrl.u32 %v20309_v4, 16  ;;  %v15591_v46 = vld [vmem:[#allocation4 + $0x6c] sm:$0xff]  }
 0x5c0   : > { %14980 = vmatprep.mubr.msk.bf16.mxu1 %vm21248_vm15, %v14016_v53  ;;  %v12191_v44 = vmax.bf16 %v12151_v11, %v12051_v33  ;;  %v11068_v31 = vrot.slane %v11066_v32, 4  ;;  %v11090_v37 = vshrl.u32 %v11044_v7, 16  ;;  %v11093_v35 = vshll.u32 %v11044_v7, 16  ;;  %v20334_v53 = vld [vmem:[#allocation4 + $0x4c] sm:$0xf]  ;;  %vm21262_vm15 = vmmov %vm21254_vm1 }
 0x5c1   : > { %v12222_v5 = vmax.bf16 %v12206_v58, %v12190_v54  ;;  %v11082_v24 = vor.u32 %v11081_v27, %v11077_v2  ;;  %v20319_v22 = vrot.slane %v11099_v41, 5  ;;  %v11105_v19 = vrot.slane %v11103_v0, 4  ;;  %v20340_v11 = vld [vmem:[#allocation4 + $0x38] sm:$0x1] }
 0x5c2   : > { %v12223_v12 = vmax.bf16 %v12207_v45, %v12191_v44  ;;  %v11123_v34 = vshll.u32 %v20314_v30, 16  ;;  %v11127_v8 = vshrl.u32 %v20314_v30, 16  ;;  %v11085_v42 = vshll.u32 %v20317_v43, 16 }
 0x5c3   : > { %v11092_v1 = vrot.slane %v11090_v37, 4  ;;  %v11095_v48 = vrot.slane %v11093_v35, 5  ;;  %v11114_v62 = vshrl.u32 %v11047_v3, 16  ;;  %v11117_v25 = vshll.u32 %v11047_v3, 16  ;;  %v20355_v35 = vld [vmem:[#allocation4 + $0x58] sm:$0xf] }
 0x5c4   : > { %14909 = vmatmul.mubr.msk.bf16.gmra.mrb[28].mxu0 %vm21246_vm11, %v13928_v38  ;;  %v14017_v56 = vcombine.low %v12222_v5, %v12223_v12  ;;  %v11069_v38 = vshll.u32 %v11041_v6, 16  ;;  %v11083_v51 = vrot.slane %v11082_v24, 4  ;;  %v11106_v47 = vor.u32 %v11105_v19, %v20319_v22  ;;  %v20361_v19 = vld [vmem:[#allocation4 + $0x44] sm:$0x1]  ;;  %vm21260_vm11 = vmmov %vm21249_vm0 }
 0x5c5   : > { %14914 = vmatprep.mubr.msk.bf16.mxu0 %vm21247_vm12, %v15584_v17  ;;  %v20327_v17 = vrot.slane %v11123_v34, 5  ;;  %v11129_v55 = vrot.slane %v11127_v8, 4  ;;  %v11087_v18 = vrot.slane %v11085_v42, 5  ;;  %v11096_v28 = vor.u32 %v11095_v48, %v11092_v1  ;;  %v20363_v34 = vld [vmem:[#allocation4 + $0x64] sm:$0xf]  ;;  %vm21261_vm12 = vmmov %vm21254_vm1 }
 0x5c6   : > { %14981 = vmatmul.mubr.msk.bf16.gmra.mrb[48].mxu1 %vm21253_vm4, %v14017_v56  ;;  %v11071_v36 = vrot.slane %v11069_v38, 5  ;;  %v11109_v57 = vshll.u32 %v20324_v23, 16  ;;  %v11116_v59 = vrot.slane %v11114_v62, 4  ;;  %v11119_v58 = vrot.slane %v11117_v25, 5  ;;  %v11056_v62 = vld [vmem:[#allocation4 + $0x54] sm:$0xf]  ;;  %vm21263_vm0 = vmmov %vm21254_vm1 }
 0x5c7   : > { %v11088_v10 = vsel %vm17285_vm10, %v11083_v51, %v11087_v18  ;;  %v11107_v33 = vrot.slane %v11106_v47, 4  ;;  %v11130_v45 = vor.u32 %v11129_v55, %v20327_v17  ;;  %v11147_v54 = vshll.u32 %v20330_v16, 16  ;;  %vm21267_vm4 = vmmov %vm21263_vm0 }
 0x5c8   : > { %v11072_v50 = vor.u32 %v11071_v36, %v11068_v31  ;;  %v11151_v44 = vshrl.u32 %v20330_v16, 16  ;;  %v11171_v5 = vshll.u32 %v20334_v53, 16  ;;  %v11175_v6 = vshrl.u32 %v20334_v53, 16 }
 0x5c9   : > { %v11097_v12 = vrot.slane %v11096_v28, 4  ;;  %v11111_v56 = vrot.slane %v11109_v57, 5  ;;  %v11120_v32 = vor.u32 %v11119_v58, %v11116_v59  ;;  %v11133_v38 = vshll.u32 %v20340_v11, 16 }
 0x5ca   : > { %v11073_v26 = vrot.slane %v11072_v50, 4  ;;  %v20350_v27 = vrot.slane %v11147_v54, 5  ;;  %v11153_v7 = vrot.slane %v11151_v44, 4  ;;  %v20353_v0 = vrot.slane %v11171_v5, 5 }
 0x5cb   : > { %v11112_v36 = vsel %vm17285_vm10, %v11107_v33, %v11111_v56  ;;  %v11177_v37 = vrot.slane %v11175_v6, 4  ;;  %v11102_v50 = vsel %vm17285_vm10, %v11097_v12, %v20319_v22  ;;  %v11121_v24 = vrot.slane %v11120_v32, 4  ;;  %v20386_v56 = vld [vmem:[#allocation4 + $0x5c] sm:$0x1] }
 0x5cc   : > { %14915 = vmatmul.mubr.msk.bf16.vlgmr.msra.gmra.mrb[16].mxu0 %vm21250_vm9, %v15585_v14  ;;  %v11078_v29 = vsel %vm17285_vm10, %v11073_v26, %v11077_v2  ;;  %v11053_v14 = vld [vmem:[#allocation4 + $0x48] sm:$0xf]  ;;  %v11131_v2 = vrot.slane %v11130_v45, 4  ;;  %v11135_v3 = vrot.slane %v11133_v38, 5  ;;  %v13956_v8 = vcombine.low %v11102_v50, %v11112_v36  ;;  %v20370_v26 = vld [vmem:[#allocation4 + $0x50] sm:$0x1]  ;;  %vm21264_vm9 = vmmov %vm21263_vm0 }
 0x5cd   : > { %14931 = vmatpush3.bf16.msra.mxu0 %v11308_v13  ;;  %14918 = vmatprep.mubr.msk.bf16.mxu0 %vm21251_vm6, %v15586_v40  ;;  %v11138_v13 = vshrl.u32 %v11050_v20, 16  ;;  %v11141_v40 = vshll.u32 %v11050_v20, 16  ;;  %v13955_v15 = vcombine.low %v11078_v29, %v11088_v10  ;;  %v11165_v31 = vshll.u32 %v11053_v14, 16  ;;  %v11062_v36 = vld [vmem:[#allocation4 + $0x6c] sm:$0xf]  ;;  %vm21265_vm6 = vmmov %vm21263_vm0 }
 0x5ce   : > { %15429 = vmatprep.subr.msk.bf16.mxu0 %vm21252_vm2, %v20300_v49  ;;  %v11562_v42 = vsel %vm21260_vm11, %v20300_v49, 0  ;;  %v11136_v25 = vsel %vm17285_vm10, %v11131_v2, %v11135_v3  ;;  %v11195_v22 = vshll.u32 %v20355_v35, 16  ;;  %v11199_v51 = vshrl.u32 %v20355_v35, 16  ;;  %vm21266_vm2 = vmmov %vm21263_vm0 }
 0x5cf   : > { %v11143_v41 = vrot.slane %v11141_v40, 5  ;;  %v11167_v48 = vrot.slane %v11165_v31, 5  ;;  %v11178_v55 = vor.u32 %v11177_v37, %v20353_v0  ;;  %v11219_v49 = vshll.u32 %v20363_v34, 16  ;;  %vm21275_vm11 = vmmov %vm21263_vm0 }
 0x5d0   : > { %v11223_v18 = vshrl.u32 %v20363_v34, 16  ;;  %v11126_v20 = vsel %vm17285_vm10, %v11121_v24, %v20327_v17  ;;  %v11157_v28 = vshll.u32 %v20361_v19, 16  ;;  %v11186_v57 = vshrl.u32 %v11056_v62, 16  ;;  %v20383_v17 = vld [vmem:[#allocation4 + $0x70] sm:$0xf] }
 0x5d1   : > { %v11189_v59 = vshll.u32 %v11056_v62, 16  ;;  %v11181_v29 = vshll.u32 %v20370_v26, 16  ;;  %v13957_v45 = vcombine.low %v11126_v20, %v11136_v25  ;;  %v11197_v44 = vrot.slane %v11195_v22, 5 }
 0x5d2   : > { %v11179_v40 = vrot.slane %v11178_v55, 4  ;;  %v11221_v5 = vrot.slane %v11219_v49, 5  ;;  %v11225_v6 = vrot.slane %v11223_v18, 4  ;;  %v11159_v12 = vrot.slane %v11157_v28, 5 }
 0x5d3   : > { %v11188_v32 = vrot.slane %v11186_v57, 4  ;;  %v11191_v38 = vrot.slane %v11189_v59, 5  ;;  %v11247_v37 = vshrl.u32 %v20383_v17, 16 }
 0x5d4   : > { %14919 = vmatmul.mubr.msk.bf16.gmra.mrb[20].mxu0 %vm21254_vm1, %v15587_v63  ;;  %v11162_v63 = vshrl.u32 %v11053_v14, 16  ;;  %v11201_v14 = vrot.slane %v11199_v51, 4  ;;  %v11226_v3 = vor.u32 %v11225_v6, %v11221_v5  ;;  %vm21268_vm1 = vmmov %vm21263_vm0 }
 0x5d5   : > { %14922 = vmatprep.mubr.msk.bf16.mxu0 %vm21255_vm14, %v15588_v21  ;;  %v11140_v21 = vrot.slane %v11138_v13, 4  ;;  %vm21270_vm14 = vmmov %vm21263_vm0 }
 0x5d6   : > { %v11164_v1 = vrot.slane %v11162_v63, 4  ;;  %v11227_v55 = vrot.slane %v11226_v3, 4  ;;  %v11425_v3 = vld [vmem:[#allocation4 + $0x30] sm:$0xe] }
 0x5d7   : > { %v11144_v47 = vor.u32 %v11143_v41, %v11140_v21  ;;  %v20390_v21 = vld [vmem:[#allocation4 + $0x68] sm:$0x1]  ;;  %v11243_v41 = vshll.u32 %v20383_v17, 16 }
 0x5d8   : > { %v11168_v58 = vor.u32 %v11167_v48, %v11164_v1  ;;  %v11234_v1 = vshrl.u32 %v11062_v36, 16  ;;  %v11237_v48 = vshll.u32 %v11062_v36, 16  ;;  %v11229_v22 = vshll.u32 %v20390_v21, 16 }
 0x5d9   : > { %v11145_v13 = vrot.slane %v11144_v47, 4  ;;  %v11249_v47 = vrot.slane %v11247_v37, 4  ;;  %v11471_v36 = vrot.slane %v20314_v30, 5  ;;  %v11474_v30 = vrot.slane %v20340_v11, 5 }
 0x5da   : > { %v11236_v20 = vrot.slane %v11234_v1, 4  ;;  %v11239_v28 = vrot.slane %v11237_v48, 5  ;;  %v11231_v59 = vrot.slane %v11229_v22, 5  ;;  %v13973_v1 = vrot.slane %v11425_v3, 9 }
 0x5db   : > { %v11150_v50 = vsel %vm17285_vm10, %v11145_v13, %v20350_v27 }
 0x5dc   : > { %14923 = vmatmul.mubr.msk.bf16.gmra.mrb[24].mxu0 %vm21256_vm5, %v15589_v61  ;;  %v11154_v61 = vor.u32 %v11153_v7, %v20350_v27  ;;  %v11202_v7 = vor.u32 %v11201_v14, %v11197_v44  ;;  %v11245_v27 = vrot.slane %v11243_v41, 5  ;;  %vm21271_vm5 = vmmov %vm21263_vm0 }
 0x5dd   : > { %14926 = vmatprep.mubr.msk.bf16.mxu0 %vm21257_vm3, %v15590_v52  ;;  %v11059_v52 = vld [vmem:[#allocation4 + $0x60] sm:$0xf]  ;;  %vm21272_vm3 = vmmov %vm21263_vm0 }
 0x5de   : > { %v11210_v10 = vshrl.u32 %v11059_v52, 16  ;;  %v11213_v33 = vshll.u32 %v11059_v52, 16  ;;  %v11155_v54 = vrot.slane %v11154_v61, 4  ;;  %v11203_v52 = vrot.slane %v11202_v7, 4 }
 0x5e0   : > { %v11212_v63 = vrot.slane %v11210_v10, 4  ;;  %v11215_v31 = vrot.slane %v11213_v33, 5  ;;  %v11160_v2 = vsel %vm17285_vm10, %v11155_v54, %v11159_v12  ;;  %v11232_v10 = vsel %vm17285_vm10, %v11227_v55, %v11231_v59 }
 0x5e1   : > { %v13958_v62 = vcombine.low %v11150_v50, %v11160_v2  ;;  %v11457_v33 = vrot.slane %v20295_v39, 5  ;;  %v11240_v54 = vor.u32 %v11239_v28, %v11236_v20  ;;  %v11423_v39 = vld [vmem:[#allocation4 + $0x18] sm:$0xe]  ;;  %v11424_v50 = vld [vmem:[#allocation4 + $0x24] sm:$0xe]  ;;  %v11499_v28 = vrot.slane %v20363_v34, 5 }
 0x5e2   : > { %v11216_v61 = vor.u32 %v11215_v31, %v11212_v63  ;;  %v11464_v63 = vrot.slane %v20309_v4, 5  ;;  %v13971_v31 = vrot.slane %v11423_v39, 9  ;;  %v11467_v4 = vrot.slane %v20324_v23, 5 }
 0x5e3   : > { %v11472_v23 = vsel %vm17595_vm13, %v13973_v1, %v11471_v36  ;;  %v11502_v34 = vrot.slane %v20390_v21, 5  ;;  %v11430_v21 = vld [vmem:[#allocation4 + $0x6c] sm:$0xe] }
 0x5e4   : > { %14927 = vmatmul.mubr.msk.bf16.gmra.mrb[28].mxu0 %vm21258_vm8, %v15591_v46  ;;  %v11169_v46 = vrot.slane %v11168_v58, 4  ;;  %v11217_v57 = vrot.slane %v11216_v61, 4  ;;  %v20406_v58 = vld [vmem:[#allocation4 + $0x74] sm:$0x1]  ;;  %v11458_v41 = vsel %vm17595_vm13, %v13971_v31, %v11457_v33  ;;  %vm21273_vm8 = vmmov %vm21263_vm0 }
 0x5e5   : > { %14932 = vmatprep.mubr.msk.bf16.mxu0 %vm21259_vm7, %v13955_v15  ;;  %v11183_v15 = vrot.slane %v11181_v29, 5  ;;  %v11250_v29 = vor.u32 %v11249_v47, %v11245_v27  ;;  %v11253_v14 = vshll.u32 %v20406_v58, 16  ;;  %vm21274_vm7 = vmmov %vm21263_vm0 }
 0x5e6   : > { %v11174_v25 = vsel %vm17285_vm10, %v11169_v46, %v20353_v0 }
 0x5e7   : > { %v11184_v24 = vsel %vm17285_vm10, %v11179_v40, %v11183_v15  ;;  %v11222_v40 = vsel %vm17285_vm10, %v11217_v57, %v11221_v5  ;;  %v11251_v12 = vrot.slane %v11250_v29, 4  ;;  %v11255_v46 = vrot.slane %v11253_v14, 5  ;;  %v11428_v29 = vld [vmem:[#allocation4 + $0x54] sm:$0xe] }
 0x5e8   : > { %v13959_v51 = vcombine.low %v11174_v25, %v11184_v24  ;;  %v13961_v6 = vcombine.low %v11222_v40, %v11232_v10  ;;  %v11460_v15 = vrot.slane %v20317_v43, 5  ;;  %v11466_v43 = vrot.slane %v11464_v63, 4 }
 0x5e9   : > { %v11473_v24 = vrot.slane %v11471_v36, 4  ;;  %v11501_v10 = vrot.slane %v11499_v28, 4  ;;  %v11506_v14 = vrot.slane %v20383_v17, 5  ;;  %v11509_v17 = vrot.slane %v20406_v58, 5  ;;  %v20488_v58 = vld [vmem:[%s20976_s15] ss:$0 sm:$0xff] }
 0x5ea   : > { %v11468_v9 = vsel %vm17595_vm13, %v11466_v43, %v11467_v4 }
 0x5eb   : > { %v11475_v48 = vsel %vm17595_vm13, %v11473_v24, %v11474_v30  ;;  %v11503_v40 = vsel %vm17595_vm13, %v11501_v10, %v11502_v34 }
 0x5ec   : > { %14933 = vmatmul.mubr.msk.bf16.vlgmr.msra.gmra.mrb[16].mxu0 %vm21261_vm12, %v13956_v8  ;;  %v11192_v8 = vor.u32 %v11191_v38, %v11188_v32  ;;  %v11459_v32 = vrot.slane %v11457_v33, 4  ;;  %v11241_v38 = vrot.slane %v11240_v54, 4  ;;  %v13982_v11 = vcombine.low %v11472_v23, %v11475_v48  ;;  %v11429_v33 = vld [vmem:[#allocation4 + $0x60] sm:$0xe] }
 0x5ed   : > { %14949 = vmatpush3.bf16.msra.mxu0 %v11562_v42  ;;  %14936 = vmatprep.mubr.msk.bf16.mxu0 %vm21262_vm15, %v13957_v45  ;;  %v11205_v42 = vshll.u32 %v20386_v56, 16 }
 0x5ee   : > { %v11193_v49 = vrot.slane %v11192_v8, 4  ;;  %v11461_v5 = vsel %vm17595_vm13, %v11459_v32, %v11460_v15  ;;  %v11246_v2 = vsel %vm17285_vm10, %v11241_v38, %v11245_v27  ;;  %v13972_v8 = vrot.slane %v11424_v50, 9  ;;  %v11427_v27 = vld [vmem:[#allocation4 + $0x48] sm:$0xe] }
 0x5ef   : > { %v11207_v18 = vrot.slane %v11205_v42, 5  ;;  %v13980_v37 = vcombine.low %v11458_v41, %v11461_v5  ;;  %v11478_v42 = vrot.slane %v20330_v16, 5  ;;  %v11481_v16 = vrot.slane %v20361_v19, 5 }
 0x5f0   : > { %v11198_v45 = vsel %vm17285_vm10, %v11193_v49, %v11197_v44  ;;  %v11256_v44 = vsel %vm17285_vm10, %v11251_v12, %v11255_v46  ;;  %v11465_v25 = vsel %vm17595_vm13, %v13972_v8, %v11464_v63  ;;  %v11492_v49 = vrot.slane %v20355_v35, 5  ;;  %v20483_v63 = vld [vmem:[%s20975_s14] ss:$0 sm:$0xff] }
 0x5f1   : > { %v11208_v0 = vsel %vm17285_vm10, %v11203_v52, %v11207_v18  ;;  %v13962_v7 = vcombine.low %v11246_v2, %v11256_v44  ;;  %v13981_v61 = vcombine.low %v11465_v25, %v11468_v9  ;;  %v11480_v22 = vrot.slane %v11478_v42, 4  ;;  %vm21269_vm10 = vmmov %vm21263_vm0 }
 0x5f2   : > { %v13960_v13 = vcombine.low %v11198_v45, %v11208_v0  ;;  %v13975_v18 = vrot.slane %v11427_v27, 9  ;;  %v11494_v0 = vrot.slane %v11492_v49, 4  ;;  %v11495_v35 = vrot.slane %v20386_v56, 5 }
 0x5f3   : > { %v11482_v55 = vsel %vm17595_vm13, %v11480_v22, %v11481_v16  ;;  %v13976_v45 = vrot.slane %v11428_v29, 9  ;;  %v11508_v38 = vrot.slane %v11506_v14, 4  ;;  %v13978_v46 = vrot.slane %v11430_v21, 9 }
 0x5f4   : > { %14937 = vmatmul.mubr.msk.bf16.gmra.mrb[20].mxu0 %vm21263_vm0, %v13958_v62  ;;  %v11485_v62 = vrot.slane %v20334_v53, 5  ;;  %v11488_v53 = vrot.slane %v20370_v26, 5  ;;  %v11496_v54 = vsel %vm17595_vm13, %v11494_v0, %v11495_v35 }
 0x5f5   : > { %14940 = vmatprep.mubr.msk.bf16.mxu0 %vm21264_vm9, %v13959_v51  ;;  %v11426_v51 = vld [vmem:[#allocation4 + $0x3c] sm:$0xe]  ;;  %v11510_v39 = vsel %vm17595_vm13, %v11508_v38, %v11509_v17  ;;  %v11507_v15 = vsel %vm17595_vm13, %v13978_v46, %v11506_v14 }
 0x5f6   : > { %v11487_v52 = vrot.slane %v11485_v62, 4  ;;  %v13974_v47 = vrot.slane %v11426_v51, 9  ;;  %v11486_v19 = vsel %vm17595_vm13, %v13975_v18, %v11485_v62  ;;  %v13987_v44 = vcombine.low %v11507_v15, %v11510_v39 }
 0x5f8   : > { %v11489_v20 = vsel %vm17595_vm13, %v11487_v52, %v11488_v53  ;;  %v11479_v57 = vsel %vm17595_vm13, %v13974_v47, %v11478_v42 }
 0x5f9   : > { %v13983_v59 = vcombine.low %v11479_v57, %v11482_v55  ;;  %v13984_v26 = vcombine.low %v11486_v19, %v11489_v20 }
 0x5fc   : > { %14941 = vmatmul.mubr.msk.bf16.gmra.mrb[24].mxu0 %vm21265_vm6, %v13960_v13  ;;  %v13977_v13 = vrot.slane %v11429_v33, 9 }
 0x5fd   : > { %14944 = vmatprep.mubr.msk.bf16.mxu0 %vm21266_vm2, %v13961_v6  ;;  %v11493_v6 = vsel %vm17595_vm13, %v13976_v45, %v11492_v49 }
 0x5fe   : > { %v13985_v12 = vcombine.low %v11493_v6, %v11496_v54  ;;  %v11500_v56 = vsel %vm17595_vm13, %v13977_v13, %v11499_v28  ;;  %vm21276_vm13 = vcmask 1040384  }
 0x5ff   : > { %v13986_v32 = vcombine.low %v11500_v56, %v11503_v40  ;;  %vm21277_vm12 = vmmov %vm21276_vm13 }
 0x600   : > { %vm21278_vm15 = vmmov %vm21277_vm12 }
 0x601   : > { %vm21279_vm0 = vmmov %vm21277_vm12 }
 0x602   : > { %vm21280_vm9 = vmmov %vm21279_vm0 }
 0x603   : > { %vm21281_vm6 = vmmov %vm21279_vm0 }
 0x604   : > { %14945 = vmatmul.mubr.msk.bf16.gmra.mrb[28].mxu0 %vm21267_vm4, %v13962_v7  ;;  %vm21282_vm2 = vmmov %vm21279_vm0 }
 0x605   : > { %14950 = vmatprep.mubr.msk.bf16.mxu0 %vm21268_vm1, %v13980_v37  ;;  %vm21283_vm4 = vmmov %vm21279_vm0 }
 0x606   : > { %vm21285_vm1 = vmmov %vm21279_vm0 }
 0x60c   : > { %14951 = vmatmul.mubr.msk.bf16.vlgmr.msra.gmra.mrb[16].mxu0 %vm21269_vm10, %v13981_v61  ;;  %vm21286_vm10 = vmmov %vm21279_vm0 }
 0x60d   : > { %14954 = vmatprep.mubr.msk.bf16.mxu0 %vm21270_vm14, %v13982_v11  ;;  %vm21287_vm14 = vmmov %vm21279_vm0 }
 0x614   : > { %14955 = vmatmul.mubr.msk.bf16.gmra.mrb[20].mxu0 %vm21271_vm5, %v13983_v59  ;;  %vm21288_vm5 = vmmov %vm21279_vm0 }
 0x615   : > { %14958 = vmatprep.mubr.msk.bf16.mxu0 %vm21272_vm3, %v13984_v26  ;;  %vm21289_vm3 = vmmov %vm21279_vm0 }
 0x61c   : > { %14959 = vmatmul.mubr.msk.bf16.gmra.mrb[24].mxu0 %vm21273_vm8, %v13985_v12  ;;  %vm21290_vm8 = vmmov %vm21279_vm0 }
 0x61d   : > { %14962 = vmatprep.mubr.msk.bf16.mxu0 %vm21274_vm7, %v13986_v32  ;;  %vm21291_vm7 = vmmov %vm21279_vm0 }
 0x624   : > { %14963 = vmatmul.mubr.msk.bf16.gmra.mrb[28].mxu0 %vm21275_vm11, %v13987_v44  ;;  %vm21292_vm11 = vmmov %vm21279_vm0 }
 0x64e   : > { %v14970_v31 = vpop.f32.mrb[36].mxu1 }
 0x64f   : > { %v12398_v5 = vmul.f32 %v14970_v31, %v20483_v63  ;;  %v12326_v36 = vpop.f32.mrb[37].mxu1 }
 0x650   : > { %v12396_v60 = vmul.f32 %v20483_v63, %v12326_v36  ;;  %v14971_v2 = vpop.f32.mrb[38].mxu1 }
 0x651   : > { %v12421_v7 = vadd.f32 %v20488_v58, %v12398_v5  ;;  %v12399_v41 = vmul.f32 %v14971_v2, %v20483_v63  ;;  %v12329_v37 = vpop.f32.mrb[39].mxu1 }
 0x652   : > { %v12419_v43 = vadd.f32 %v20488_v58, %v12396_v60  ;;  %v12397_v50 = vmul.f32 %v20483_v63, %v12329_v37 }
 0x653   : > { %v12437_v24 = vmax.f32 %v12421_v7, 0.0  ;;  %v12422_v4 = vadd.f32 %v20488_v58, %v12399_v41 }
 0x654   : > { %v12435_v3 = vmax.f32 %v12419_v43, 0.0  ;;  %v12420_v30 = vadd.f32 %v20488_v58, %v12397_v50 }
 0x655   : > { %v12695_v8 = vrot.slane %v12437_v24, 7  ;;  %v12438_v9 = vmax.f32 %v12422_v4, 0.0 }
 0x656   : > { %v12692_v42 = vrot.slane %v12435_v3, 7  ;;  %v12436_v1 = vmax.f32 %v12420_v30, 0.0 }
 0x657   : > { %v12696_v48 = vrot.slane %v12438_v9, 7  ;;  %12722 = vrot.lane.b32.xlu1 %v12695_v8, %s15700_s27 }
 0x658   : > { %v12693_v62 = vrot.slane %v12436_v1, 7  ;;  %12716 = vrot.lane.b32.xlu0 %v12692_v42, %s15700_s27 }
 0x659   : > { %v12697_v25 = vsel %vm21276_vm13, %v12695_v8, %v12696_v48  ;;  %vm12812_vm13 = vcmask 97280  }
 0x65a   : > { %v12694_v61 = vsel %vm21277_vm12, %v12692_v42, %v12693_v62  ;;  %vm12837_vm12 = vcmask 130048  }
 0x65b   : > { %12726 = vrot.lane.b32.xlu1 %v12696_v48, %s15700_s27 }
 0x65c   : > { %12720 = vrot.lane.b32.xlu0 %v12693_v62, %s15700_s27 }
 0x65f   : > { %12718 = vrot.lane.b32.xlu1 %v12694_v61, %s15700_s27 }
 0x660   : > { %12724 = vrot.lane.b32.xlu0 %v12697_v25, %s15700_s27 }
 0x663   : > { %v14974_v23 = vpop.f32.mrb[40].mxu1 }
 0x664   : > { %v12402_v11 = vmul.f32 %v14974_v23, %v20483_v63  ;;  %v12342_v22 = vpop.f32.mrb[41].mxu1 }
 0x665   : > { %v12400_v51 = vmul.f32 %v20483_v63, %v12342_v22  ;;  %v14975_v52 = vpop.f32.mrb[42].mxu1 }
 0x666   : > { %v12425_v16 = vadd.f32 %v20488_v58, %v12402_v11  ;;  %v12403_v27 = vmul.f32 %v14975_v52, %v20483_v63  ;;  %v12345_v53 = vpop.f32.mrb[43].mxu1 }
 0x667   : > { %v12423_v47 = vadd.f32 %v20488_v58, %v12400_v51  ;;  %v12401_v55 = vmul.f32 %v20483_v63, %v12345_v53  ;;  %v20559_v51 = vpop.permute.xlu0 %12492 }
 0x668   : > { %v12441_v49 = vmax.f32 %v12425_v16, 0.0  ;;  %v12426_v18 = vadd.f32 %v20488_v58, %v12403_v27  ;;  %v20568_v27 = vld [vmem:[%s20972_s11] ss:$0 sm:$0xff] }
 0x669   : > { %v12439_v20 = vmax.f32 %v12423_v47, 0.0  ;;  %v12424_v28 = vadd.f32 %v20488_v58, %v12401_v55  ;;  %v20573_v47 = vld [vmem:[%s21284_s21] ss:$0 sm:$0xff]  ;;  %s15600_s21 = scalar_lea.vmem %s20893_s24, 2048 }
 0x66a   : > { %v12701_v57 = vrot.slane %v12441_v49, 7  ;;  %v12442_v59 = vmax.f32 %v12426_v18, 0.0  ;;  %p15601_p0 = scmp.ne.s32.totalorder %s20893_s24, %s15600_s21 }
 0x66b   : > { %v12698_v19 = vrot.slane %v12439_v20, 7  ;;  %v12440_v26 = vmax.f32 %v12424_v28, 0.0  ;;  %v20563_v16 = vpop.permute.xlu0 %12500 }
 0x66c   : > { %v12702_v0 = vrot.slane %v12442_v59, 7  ;;  %12734 = vrot.lane.b32.xlu1 %v12701_v57, %s15700_s27  ;;  %p15602_p1 = pnand %p15601_p0, %p15841_p3 }
 0x66d   : > { %v12699_v29 = vrot.slane %v12440_v26, 7  ;;  %12728 = vrot.lane.b32.xlu0 %v12698_v19, %s15700_s27 }
 0x66e   : > { %v12703_v10 = vsel %vm21278_vm15, %v12701_v57, %v12702_v0  ;;  %vm21293_vm15 = vcmask 31744   ;;  %p15603_p2 = pneg %p15602_p1 }
 0x66f   : > { %v12700_v35 = vsel %vm21279_vm0, %v12698_v19, %v12699_v29  ;;  %v20581_v26 = vpop.permute.xlu0 %12494  ;;  %vm12862_vm0 = vcmask 162817  }
 0x670   : > { %12738 = vrot.lane.b32.xlu1 %v12702_v0, %s15700_s27 }
 0x671   : > { %12732 = vrot.lane.b32.xlu0 %v12699_v29, %s15700_s27 }
 0x674   : > { %12730 = vrot.lane.b32.xlu1 %v12700_v35, %s15700_s27 }
 0x675   : > { %12736 = vrot.lane.b32.xlu0 %v12703_v10, %s15700_s27 }
 0x67e   : > { %v14978_v33 = vpop.f32.mrb[44].mxu1 }
 0x67f   : > { %v12406_v34 = vmul.f32 %v14978_v33, %v20483_v63  ;;  %v12358_v45 = vpop.f32.mrb[45].mxu1 }
 0x680   : > { %v12404_v54 = vmul.f32 %v20483_v63, %v12358_v45  ;;  %v14979_v14 = vpop.f32.mrb[46].mxu1 }
 0x681   : > { %v12429_v13 = vadd.f32 %v20488_v58, %v12406_v34  ;;  %v12407_v40 = vmul.f32 %v14979_v14, %v20483_v63  ;;  %v12361_v6 = vpop.f32.mrb[47].mxu1 }
 0x682   : > { %v12427_v12 = vadd.f32 %v20488_v58, %v12404_v54  ;;  %v12405_v56 = vmul.f32 %v20483_v63, %v12361_v6 }
 0x683   : > { %v12445_v32 = vmax.f32 %v12429_v13, 0.0  ;;  %v12430_v38 = vadd.f32 %v20488_v58, %v12407_v40 }
 0x684   : > { %v12443_v21 = vmax.f32 %v12427_v12, 0.0  ;;  %v12428_v17 = vadd.f32 %v20488_v58, %v12405_v56 }
 0x685   : > { %v12707_v46 = vrot.slane %v12445_v32, 7  ;;  %v12446_v39 = vmax.f32 %v12430_v38, 0.0  ;;  %v20591_v38 = vpop.permute.xlu0 %12504 }
 0x686   : > { %v12704_v15 = vrot.slane %v12443_v21, 7  ;;  %v12444_v44 = vmax.f32 %v12428_v17, 0.0 }
 0x687   : > { %v12708_v31 = vrot.slane %v12446_v39, 7  ;;  %12746 = vrot.lane.b32.xlu1 %v12707_v46, %s15700_s27 }
 0x688   : > { %v12705_v5 = vrot.slane %v12444_v44, 7  ;;  %12740 = vrot.lane.b32.xlu0 %v12704_v15, %s15700_s27 }
 0x689   : > { %v12709_v36 = vsel %vm21280_vm9, %v12707_v46, %v12708_v31  ;;  %vm21294_vm9 = vmmov %vm21293_vm15 }
 0x68a   : > { %v12706_v60 = vsel %vm21281_vm6, %v12704_v15, %v12705_v5  ;;  %vm21295_vm6 = vmmov %vm21294_vm9 }
 0x68b   : > { %12750 = vrot.lane.b32.xlu1 %v12708_v31, %s15700_s27 }
 0x68c   : > { %12744 = vrot.lane.b32.xlu0 %v12705_v5, %s15700_s27 }
 0x68f   : > { %12742 = vrot.lane.b32.xlu1 %v12706_v60, %s15700_s27 }
 0x690   : > { %12748 = vrot.lane.b32.xlu0 %v12709_v36, %s15700_s27 }
 0x699   : > { %v14982_v2 = vpop.f32.mrb[48].mxu1 }
 0x69a   : > { %v12410_v7 = vmul.f32 %v14982_v2, %v20483_v63  ;;  %v12374_v41 = vpop.f32.mrb[49].mxu1 }
 0x69b   : > { %v12408_v37 = vmul.f32 %v20483_v63, %v12374_v41  ;;  %v14983_v43 = vpop.f32.mrb[50].mxu1 }
 0x69c   : > { %v12433_v50 = vadd.f32 %v20488_v58, %v12410_v7  ;;  %v12411_v24 = vmul.f32 %v14983_v43, %v20483_v63  ;;  %v12377_v4 = vpop.f32.mrb[51].mxu1 }
 0x69d   : > { %v12431_v3 = vadd.f32 %v20488_v58, %v12408_v37  ;;  %v12409_v30 = vmul.f32 %v20483_v63, %v12377_v4 }
 0x69e   : > { %v12449_v8 = vmax.f32 %v12433_v50, 0.0  ;;  %v12434_v9 = vadd.f32 %v20488_v58, %v12411_v24  ;;  %v20607_v24 = vpop.permute.xlu0 %12508 }
 0x69f   : > { %v12447_v42 = vmax.f32 %v12431_v3, 0.0  ;;  %v12432_v1 = vadd.f32 %v20488_v58, %v12409_v30  ;;  %v20557_v58 = vpop.permute.xlu1 %12498 }
 0x6a0   : > { %v12713_v48 = vrot.slane %v12449_v8, 7  ;;  %v12450_v62 = vmax.f32 %v12434_v9, 0.0 }
 0x6a1   : > { %v12710_v25 = vrot.slane %v12447_v42, 7  ;;  %v12448_v61 = vmax.f32 %v12432_v1, 0.0 }
 0x6a2   : > { %v20546_v23 = vrot.slane %v12450_v62, 7  ;;  %12758 = vrot.lane.b32.xlu1 %v12713_v48, %s15700_s27 }
 0x6a3   : > { %v12711_v11 = vrot.slane %v12448_v61, 7  ;;  %12752 = vrot.lane.b32.xlu0 %v12710_v25, %s15700_s27  ;;  %v20561_v52 = vpop.permute.xlu1 %12502 }
 0x6a4   : > { %v20552_v63 = vsel %vm21282_vm2, %v12713_v48, %v20546_v23  ;;  %vm12866_vm2 = vcmask 155648  }
 0x6a5   : > { %v12712_v22 = vsel %vm21283_vm4, %v12710_v25, %v12711_v11  ;;  %vm21296_vm4 = vmmov %vm21295_vm6 }
 0x6a6   : > { %12754 = vrot.lane.b32.xlu1 %v12712_v22, %s15700_s27 }
 0x6a7   : > { %12756 = vrot.lane.b32.xlu0 %v12711_v11, %s15700_s27  ;;  %v20577_v28 = vpop.permute.xlu1 %12496 }
 0x6ab   : > { %v20587_v6 = vpop.permute.xlu1 %12510 }
 0x6af   : > { %v20605_v43 = vpop.permute.xlu1 %12514 }
 0x6df   : > { %v14952_v53 = vpop.f32.mrb[16].mxu0 }
 0x6e0   : > { %v11686_v55 = vmul.f32 %v14952_v53, %v20568_v27  ;;  %v11598_v49 = vpop.f32.mrb[17].mxu0 }
 0x6e1   : > { %v11684_v18 = vmul.f32 %v20568_v27, %v11598_v49  ;;  %v14953_v20 = vpop.f32.mrb[18].mxu0 }
 0x6e2   : > { %v11709_v57 = vadd.f32 %v20573_v47, %v11686_v55  ;;  %v11687_v59 = vmul.f32 %v14953_v20, %v20568_v27  ;;  %v11601_v19 = vpop.f32.mrb[19].mxu0  ;;  %v20619_v20 = vpop.permute.xlu1 %12506 }
 0x6e3   : > { %v11707_v0 = vadd.f32 %v20573_v47, %v11684_v18  ;;  %v11685_v29 = vmul.f32 %v20568_v27, %v11601_v19  ;;  %v20623_v19 = vpop.permute.xlu0 %12512 }
 0x6e4   : > { %v11725_v10 = vmax.f32 %v11709_v57, 0.0  ;;  %v11710_v35 = vadd.f32 %v20573_v47, %v11687_v59 }
 0x6e5   : > { %v11723_v33 = vmax.f32 %v11707_v0, 0.0  ;;  %v11708_v34 = vadd.f32 %v20573_v47, %v11685_v29 }
 0x6e6   : > { %v12583_v45 = vrot.slane %v11725_v10, 7  ;;  %v11726_v54 = vmax.f32 %v11710_v35, 0.0 }
 0x6e7   : > { %v12580_v14 = vrot.slane %v11723_v33, 7  ;;  %v11724_v13 = vmax.f32 %v11708_v34, 0.0  ;;  %v14956_v40 = vpop.f32.mrb[20].mxu0 }
 0x6e8   : > { %v12584_v12 = vrot.slane %v11726_v54, 7  ;;  %v11690_v56 = vmul.f32 %v14956_v40, %v20568_v27  ;;  %v11614_v32 = vpop.f32.mrb[21].mxu0  ;;  %12610 = vrot.lane.b32.xlu1 %v12583_v45, %s15701_s29 }
 0x6e9   : > { %v12581_v21 = vrot.slane %v11724_v13, 7  ;;  %v11688_v17 = vmul.f32 %v20568_v27, %v11614_v32  ;;  %v14957_v46 = vpop.f32.mrb[22].mxu0  ;;  %12604 = vrot.lane.b32.xlu0 %v12580_v14, %s15701_s29  ;;  %v20631_v32 = vpop.permute.xlu1 %12522 }
 0x6ea   : > { %v11713_v39 = vadd.f32 %v20573_v47, %v11690_v56  ;;  %v11691_v15 = vmul.f32 %v14957_v46, %v20568_v27  ;;  %v11617_v44 = vpop.f32.mrb[23].mxu0  ;;  %v12585_v31 = vsel %vm21285_vm1, %v12583_v45, %v12584_v12  ;;  %vm21297_vm1 = vmmov %vm21296_vm4 }
 0x6eb   : > { %v11711_v5 = vadd.f32 %v20573_v47, %v11688_v17  ;;  %v11689_v36 = vmul.f32 %v20568_v27, %v11617_v44  ;;  %v12582_v60 = vsel %vm21286_vm10, %v12580_v14, %v12581_v21  ;;  %vm12864_vm10 = vcmask 162816  }
 0x6ec   : > { %v11729_v2 = vmax.f32 %v11713_v39, 0.0  ;;  %v11714_v7 = vadd.f32 %v20573_v47, %v11691_v15  ;;  %12614 = vrot.lane.b32.xlu1 %v12584_v12, %s15701_s29  ;;  %v20636_v15 = vpop.permute.xlu0 %12516 }
 0x6ed   : > { %v11727_v41 = vmax.f32 %v11711_v5, 0.0  ;;  %v11712_v37 = vadd.f32 %v20573_v47, %v11689_v36  ;;  %12608 = vrot.lane.b32.xlu0 %v12581_v21, %s15701_s29 }
 0x6ee   : > { %v11730_v50 = vmax.f32 %v11714_v7, 0.0  ;;  %v12589_v30 = vrot.slane %v11729_v2, 7 }
 0x6ef   : > { %v11728_v4 = vmax.f32 %v11712_v37, 0.0  ;;  %v14960_v3 = vpop.f32.mrb[24].mxu0  ;;  %v12586_v1 = vrot.slane %v11727_v41, 7 }
 0x6f0   : > { %v12590_v8 = vrot.slane %v11730_v50, 7  ;;  %v11694_v9 = vmul.f32 %v14960_v3, %v20568_v27  ;;  %v11630_v42 = vpop.f32.mrb[25].mxu0  ;;  %12606 = vrot.lane.b32.xlu1 %v12582_v60, %s15701_s29  ;;  %v20645_v50 = vpop.permute.xlu1 %12526 }
 0x6f1   : > { %v12587_v48 = vrot.slane %v11728_v4, 7  ;;  %v11692_v62 = vmul.f32 %v20568_v27, %v11630_v42  ;;  %v14961_v25 = vpop.f32.mrb[26].mxu0  ;;  %12612 = vrot.lane.b32.xlu0 %v12585_v31, %s15701_s29 }
 0x6f2   : > { %v11717_v61 = vadd.f32 %v20573_v47, %v11694_v9  ;;  %v11695_v11 = vmul.f32 %v14961_v25, %v20568_v27  ;;  %v11633_v22 = vpop.f32.mrb[27].mxu0  ;;  %v12591_v53 = vsel %vm21287_vm14, %v12589_v30, %v12590_v8  ;;  %vm21298_vm14 = vmmov %vm21297_vm1 }
 0x6f3   : > { %v11715_v55 = vadd.f32 %v20573_v47, %v11692_v62  ;;  %v11693_v49 = vmul.f32 %v20568_v27, %v11633_v22  ;;  %v12588_v18 = vsel %vm21288_vm5, %v12586_v1, %v12587_v48  ;;  %vm21299_vm5 = vmmov %vm21297_vm1 }
 0x6f4   : > { %v11733_v57 = vmax.f32 %v11717_v61, 0.0  ;;  %v11718_v59 = vadd.f32 %v20573_v47, %v11695_v11  ;;  %12622 = vrot.lane.b32.xlu1 %v12589_v30, %s15701_s29  ;;  %v20655_v42 = vpop.permute.xlu1 %12518 }
 0x6f5   : > { %v11731_v0 = vmax.f32 %v11715_v55, 0.0  ;;  %v11716_v29 = vadd.f32 %v20573_v47, %v11693_v49  ;;  %12616 = vrot.lane.b32.xlu0 %v12586_v1, %s15701_s29 }
 0x6f6   : > { %v11734_v10 = vmax.f32 %v11718_v59, 0.0  ;;  %v12595_v34 = vrot.slane %v11733_v57, 7 }
 0x6f7   : > { %v11732_v35 = vmax.f32 %v11716_v29, 0.0  ;;  %v14964_v33 = vpop.f32.mrb[28].mxu0  ;;  %v12592_v13 = vrot.slane %v11731_v0, 7 }
 0x6f8   : > { %v12596_v45 = vrot.slane %v11734_v10, 7  ;;  %v11698_v54 = vmul.f32 %v14964_v33, %v20568_v27  ;;  %v11646_v14 = vpop.f32.mrb[29].mxu0  ;;  %12626 = vrot.lane.b32.xlu1 %v12590_v8, %s15701_s29 }
 0x6f9   : > { %v12593_v40 = vrot.slane %v11732_v35, 7  ;;  %v11696_v12 = vmul.f32 %v20568_v27, %v11646_v14  ;;  %v14965_v56 = vpop.f32.mrb[30].mxu0  ;;  %12620 = vrot.lane.b32.xlu0 %v12587_v48, %s15701_s29  ;;  %v20661_v48 = vpop.permute.xlu1 %12534 }
 0x6fa   : > { %v11721_v21 = vadd.f32 %v20573_v47, %v11698_v54  ;;  %v11699_v17 = vmul.f32 %v14965_v56, %v20568_v27  ;;  %v11649_v46 = vpop.f32.mrb[31].mxu0  ;;  %v12597_v39 = vsel %vm21289_vm3, %v12595_v34, %v12596_v45  ;;  %v13126_v56 = vld [vmem:[%s17244_s28 + $0x48] ss:$36 sps:$4 sm:$0xff]   ;;  %vm21300_vm3 = vmmov %vm21297_vm1 }
 0x6fb   : > { %v11719_v44 = vadd.f32 %v20573_v47, %v11696_v12  ;;  %v11697_v31 = vmul.f32 %v20568_v27, %v11649_v46  ;;  %v12594_v5 = vsel %vm21290_vm8, %v12592_v13, %v12593_v40  ;;  %v20648_v27 = vpop.permute.xlu0 %12520  ;;  %v3215_v46 = vunpack.c.l.bf16 %v13126_v56  ;;  %vm21301_vm8 = vmmov %vm21297_vm1 }
 0x6fc   : > { %v11737_v36 = vmax.f32 %v11721_v21, 0.0  ;;  %v11722_v60 = vadd.f32 %v20573_v47, %v11699_v17  ;;  %12618 = vrot.lane.b32.xlu1 %v12588_v18, %s15701_s29  ;;  %v3218_v21 = vunpack.c.h.bf16 %v13126_v56  ;;  %v13132_v56 = vld [vmem:[%s17244_s28 + $0x90] ss:$36 sps:$4 sm:$0xff]  }
 0x6fd   : > { %v11735_v2 = vmax.f32 %v11719_v44, 0.0  ;;  %v11720_v7 = vadd.f32 %v20573_v47, %v11697_v31  ;;  %12624 = vrot.lane.b32.xlu0 %v12591_v53, %s15701_s29  ;;  %v20669_v25 = vpop.permute.xlu1 %12538  ;;  %v13125_v31 = vld [vmem:[%s17244_s28 + $0x60] sm:$0x1] }
 0x6fe   : > { %v11738_v41 = vmax.f32 %v11722_v60, 0.0  ;;  %v12601_v4 = vrot.slane %v11737_v36, 7 }
 0x6ff   : > { %v11736_v37 = vmax.f32 %v11720_v7, 0.0  ;;  %v12598_v30 = vrot.slane %v11735_v2, 7  ;;  %v20657_v1 = vpop.permute.xlu0 %12524  ;;  %v12788_v2 = vsel %vm21294_vm9, %v3215_v46, %v20559_v51  ;;  %v3217_v7 = vunpack.c.l.bf16 %v13125_v31  ;;  %vm21305_vm9 = vmmov %vm21297_vm1 }
 0x700   : > { %v12602_v3 = vrot.slane %v11738_v41, 7  ;;  %12634 = vrot.lane.b32.xlu1 %v12595_v34, %s15701_s29 }
 0x701   : > { %v12599_v8 = vrot.slane %v11736_v37, 7  ;;  %12628 = vrot.lane.b32.xlu0 %v12592_v13, %s15701_s29  ;;  %v20675_v11 = vpop.permute.xlu1 %12530 }
 0x702   : > { %v12603_v9 = vsel %vm21291_vm7, %v12601_v4, %v12602_v3  ;;  %vm21302_vm7 = vmmov %vm21297_vm1 }
 0x703   : > { %v12600_v47 = vsel %vm21292_vm11, %v12598_v30, %v12599_v8  ;;  %v20664_v62 = vpop.permute.xlu0 %12528  ;;  %vm21303_vm11 = vmmov %vm21297_vm1 }
 0x704   : > { %12638 = vrot.lane.b32.xlu1 %v12596_v45, %s15701_s29 }
 0x705   : > { %12632 = vrot.lane.b32.xlu0 %v12593_v40, %s15701_s29  ;;  %v12723_v53 = vpop.permute.xlu1 %12722 }
 0x707   : > { %v20671_v61 = vpop.permute.xlu0 %12532 }
 0x708   : > { %12630 = vrot.lane.b32.xlu1 %v12594_v5, %s15701_s29  ;;  %v12791_v5 = vsel %vm21293_vm15, %v3218_v21, %v20557_v58  ;;  %vm21304_vm15 = vmmov %vm21297_vm1 }
 0x709   : > { %12636 = vrot.lane.b32.xlu0 %v12597_v39, %s15701_s29  ;;  %v12727_v49 = vpop.permute.xlu1 %12726  ;;  %v13128_v39 = vld [vmem:[%s17244_s28 + $0x84] sm:$0x1] }
 0x70a   : > { %v3220_v36 = vunpack.c.l.bf16 %v13128_v39 }
 0x70b   : > { %v20679_v22 = vpop.permute.xlu0 %12536 }
 0x70c   : > { %12646 = vrot.lane.b32.xlu1 %v12601_v4, %s15701_s29  ;;  %v13127_v4 = vld [vmem:[%s17244_s28 + $0x54] ss:$36 sps:$4 sm:$0xff]  }
 0x70d   : > { %12640 = vrot.lane.b32.xlu0 %v12598_v30, %s15701_s29  ;;  %v20683_v57 = vpop.permute.xlu1 %12718  ;;  %v3216_v51 = vunpack.c.l.bf16 %v13127_v4 }
 0x70f   : > { %v12717_v55 = vpop.permute.xlu0 %12716  ;;  %v12789_v31 = vsel %vm21297_vm1, %v3216_v51, %v20581_v26 }
 0x710   : > { %12650 = vrot.lane.b32.xlu1 %v12602_v3, %s15701_s29 }
 0x711   : > { %12644 = vrot.lane.b32.xlu0 %v12599_v8, %s15701_s29  ;;  %v20687_v0 = vpop.permute.xlu1 %12734  ;;  %v12793_v8 = vsel %vm21295_vm6, %v3220_v36, %v20561_v52  ;;  %vm21306_vm6 = vmmov %vm21297_vm1 }
 0x713   : > { %v12721_v18 = vpop.permute.xlu0 %12720 }
 0x714   : > { %12642 = vrot.lane.b32.xlu1 %v12600_v47, %s15701_s29  ;;  %v3219_v47 = vunpack.c.h.bf16 %v13127_v4 }
 0x715   : > { %12648 = vrot.lane.b32.xlu0 %v12603_v9, %s15701_s29  ;;  %v20691_v10 = vpop.permute.xlu1 %12738  ;;  %s15702_s29 = smov [#allocation5]  }
 0x716   : > { %v12792_v36 = vsel %vm21298_vm14, %v3219_v47, %v20563_v16  ;;  %vm21308_vm14 = vmmov %vm21297_vm1 }
 0x717   : > { %v20685_v59 = vpop.permute.xlu0 %12724 }
 0x718   : > { %12762 = vrot.lane.b32.xlu1 %v20546_v23, %s15700_s27 }
 0x719   : > { %12760 = vrot.lane.b32.xlu0 %v20552_v63, %s15700_s27  ;;  %v20695_v35 = vpop.permute.xlu1 %12730  ;;  %s12903_s27 = sadd.s32 %s14122_s16, %s14031_s26  ;;  %s15604_s16 = sshll.u32 %s15702_s29, 4  ;;  %s15605_s16 = int_to_ptr.vmem [resolvable:$false] %s15604_s16 }
 0x71a   : > { %s14032_s25 = sshll.u32 %s12903_s27, 7  ;;  %s15606_s26 = scalar_lea.vmem %s15605_s16, 4096 }
 0x71b   : > { %v20689_v29 = vpop.permute.xlu0 %12728  ;;  %s20900_s20 = scalar_lea.hbm %s21316_s17, %s14032_s25  ;;  %p15607_p4 = scmp.lt.s32.totalorder %s20893_s24, %s15605_s16 }
 0x71c   : > { %p15608_p5 = scmp.lt.s32.totalorder %s15606_s26, %s15600_s21 }
 0x71d   : > { %v20699_v33 = vpop.permute.xlu1 %12746 }
 0x71e   : > { %p15609_p6 = por %p15608_p5, %p15607_p4 }
 0x71f   : > { %v20693_v23 = vpop.permute.xlu0 %12732 }
 0x720   : > { %p15610_p7 = pnand %p15609_p6, %p15603_p2 }
 0x721   : > { %v20703_v45 = vpop.permute.xlu1 %12750 }
 0x723   : > { %v20697_v63 = vpop.permute.xlu0 %12736 }
 0x725   : > { %v20707_v14 = vpop.permute.xlu1 %12742 }
 0x727   : > { %v20701_v34 = vpop.permute.xlu0 %12740 }
 0x729   : > { %v20711_v40 = vpop.permute.xlu1 %12758 }
 0x72b   : > { %v20705_v54 = vpop.permute.xlu0 %12744 }
 0x72d   : > { %v20716_v17 = vpop.permute.xlu1 %12754 }
 0x72f   : > { %v20709_v13 = vpop.permute.xlu0 %12748 }
 0x733   : > { %v20713_v12 = vpop.permute.xlu0 %12752 }
 0x737   : > { %v20719_v44 = vpop.permute.xlu0 %12756 }
 0x75a   : > { %v12611_v60 = vpop.permute.xlu1 %12610 }
 0x75b   : > { %v12816_v41 = vsel %vm12812_vm13, %v12791_v5, %v12611_v60  ;;  %v12605_v37 = vpop.permute.xlu0 %12604  ;;  %v3224_v5 = vunpack.c.h.bf16 %v13132_v56  ;;  %v13134_v60 = vld [vmem:[%s17244_s28 + $0xcc] sm:$0x1] }
 0x75c   : > { %v12841_v3 = vsel %vm12837_vm12, %v12816_v41, %v12723_v53  ;;  %v12813_v30 = vsel %vm12812_vm13, %v12788_v2, %v12605_v37  ;;  %v12790_v53 = vsel %vm21296_vm4, %v3217_v7, %v20577_v28  ;;  %v13131_v41 = vld [vmem:[%s17244_s28 + $0xa8] sm:$0x1]  ;;  %v3226_v4 = vunpack.c.l.bf16 %v13134_v60  ;;  %v13137_v60 = vld [vmem:[%s17244_s28 + $0xf0] sm:$0x1]  ;;  %vm21307_vm4 = vmmov %vm21297_vm1 }
 0x75d   : > { %12868 = vst.msk [vmem:[%s15872_s12 + $0xf] sm:$0xfe] %vm12862_vm0, %v12841_v3  ;;  %v12838_v58 = vsel %vm12837_vm12, %v12813_v30, %v12717_v55  ;;  %v12797_v16 = vsel %vm21299_vm5, %v3224_v5, %v20587_v6  ;;  %vm21309_vm5 = vmmov %vm21297_vm1 }
 0x75e   : > { %12863 = vst.msk [vmem:[%s15872_s12 - $0x1] sm:$0xfe] %vm12862_vm0, %v12838_v58  ;;  %v12615_v9 = vpop.permute.xlu1 %12614  ;;  %v13130_v58 = vld [vmem:[%s17244_s28 + $0x9c] ss:$36 sps:$4 sm:$0xff]  }
 0x75f   : > { %v12818_v21 = vsel %vm12812_vm13, %v12793_v8, %v12615_v9  ;;  %v12609_v46 = vpop.permute.xlu0 %12608  ;;  %v3222_v47 = vunpack.c.l.bf16 %v13130_v58 }
 0x760   : > { %v12843_v55 = vsel %vm12837_vm12, %v12818_v21, %v12727_v49  ;;  %v12815_v52 = vsel %vm12812_vm13, %v12790_v53, %v12609_v46  ;;  %v3221_v49 = vunpack.c.l.bf16 %v13132_v56  ;;  %v13138_v21 = vld [vmem:[%s17244_s28 + $0xd8] ss:$36 sps:$4 sm:$0xff]  }
 0x761   : > { %12870 = vst.msk [vmem:[%s15872_s12 + $0x1f] sm:$0x1] %vm12866_vm2, %v12843_v55  ;;  %v12840_v39 = vsel %vm12837_vm12, %v12815_v52, %v12721_v18 }
 0x762   : > { %12867 = vst.msk [vmem:[%s15872_s12 + $0xf] sm:$0x1] %vm12866_vm2, %v12840_v39  ;;  %v12607_v28 = vpop.permute.xlu1 %12606  ;;  %v12794_v30 = vsel %vm21300_vm3, %v3221_v49, %v20591_v38  ;;  %v12799_v38 = vsel %vm21301_vm8, %v3226_v4, %v20605_v43  ;;  %v3230_v39 = vunpack.c.h.bf16 %v13138_v21  ;;  %vm21310_vm3 = vmmov %vm21297_vm1 }
 0x763   : > { %v12814_v2 = vsel %vm12812_vm13, %v12789_v31, %v12607_v28  ;;  %v12613_v7 = vpop.permute.xlu0 %12612  ;;  %v13140_v28 = vld [vmem:[%s17244_s28 + $0x114] sm:$0x1]  ;;  %vm21311_vm8 = vmmov %vm21297_vm1 }
 0x764   : > { %v12839_v26 = vsel %vm12837_vm12, %v12814_v2, %v20683_v57  ;;  %v12817_v18 = vsel %vm12812_vm13, %v12792_v36, %v12613_v7  ;;  %v3223_v57 = vunpack.c.l.bf16 %v13131_v41  ;;  %v3232_v7 = vunpack.c.l.bf16 %v13140_v28 }
 0x765   : > { %12865 = vst.msk [vmem:[%s15872_s12 + $0x7] sm:$0xff] %vm12864_vm10, %v12839_v26  ;;  %v12842_v37 = vsel %vm12837_vm12, %v12817_v18, %v20685_v59  ;;  %v13136_v18 = vld [vmem:[%s17244_s28 + $0xe4] ss:$36 sps:$4 sm:$0xff]  }
 0x766   : > { %12869 = vst.msk [vmem:[%s15872_s12 + $0x17] sm:$0xff] %vm12864_vm10, %v12842_v37  ;;  %v12623_v3 = vpop.permute.xlu1 %12622  ;;  %v12796_v56 = vsel %vm21302_vm7, %v3223_v57, %v20607_v24  ;;  %v12795_v24 = vsel %vm21303_vm11, %v3222_v47, %v20619_v20  ;;  %vm21312_vm7 = vmmov %vm21297_vm1 }
 0x767   : > { %v12822_v8 = vsel %vm12812_vm13, %v12797_v16, %v12623_v3  ;;  %v12617_v51 = vpop.permute.xlu0 %12616  ;;  %v3228_v3 = vunpack.c.l.bf16 %v13136_v18  ;;  %vm21313_vm11 = vmmov %vm21297_vm1 }
 0x768   : > { %v12847_v59 = vsel %vm12837_vm12, %v12822_v8, %v20687_v0  ;;  %v12819_v9 = vsel %vm12812_vm13, %v12794_v30, %v12617_v51  ;;  %v3225_v0 = vunpack.c.h.bf16 %v13130_v58  ;;  %v3231_v58 = vunpack.c.h.bf16 %v13136_v18 }
 0x769   : > { %12874 = vst.msk [vmem:[%s15872_s12 + $0x2f] sm:$0xfe] %vm12862_vm0, %v12847_v59  ;;  %v12844_v6 = vsel %vm12837_vm12, %v12819_v9, %v20689_v29 }
 0x76a   : > { %12871 = vst.msk [vmem:[%s15872_s12 + $0x1f] sm:$0xfe] %vm12862_vm0, %v12844_v6  ;;  %v12627_v53 = vpop.permute.xlu1 %12626  ;;  %v12798_v5 = vsel %vm21304_vm15, %v3225_v0, %v20623_v19  ;;  %v12803_v19 = vsel %vm21305_vm9, %v3230_v39, %v20631_v32 }
 0x76b   : > { %v12824_v46 = vsel %vm12812_vm13, %v12799_v38, %v12627_v53  ;;  %v12621_v55 = vpop.permute.xlu0 %12620  ;;  %v12804_v38 = vsel %vm21309_vm5, %v3231_v58, %v20657_v1 }
 0x76c   : > { %v12849_v29 = vsel %vm12837_vm12, %v12824_v46, %v20691_v10  ;;  %v12821_v43 = vsel %vm12812_vm13, %v12796_v56, %v12621_v55  ;;  %v3227_v10 = vunpack.c.l.bf16 %v13138_v21  ;;  %v13143_v56 = vld [vmem:[%s17244_s28 + $0x138] sm:$0x1]  ;;  %v13142_v55 = vld [vmem:[%s17244_s28 + $0x12c] ss:$36 sps:$4 sm:$0xff]  }
 0x76d   : > { %12876 = vst.msk [vmem:[%s15872_s12 + $0x3f] sm:$0x1] %vm12866_vm2, %v12849_v29  ;;  %v12846_v52 = vsel %vm12837_vm12, %v12821_v43, %v20693_v23  ;;  %v3235_v46 = vunpack.c.l.bf16 %v13143_v56  ;;  %v3234_v39 = vunpack.c.l.bf16 %v13142_v55 }
 0x76e   : > { %12873 = vst.msk [vmem:[%s15872_s12 + $0x2f] sm:$0x1] %vm12866_vm2, %v12846_v52  ;;  %v12619_v31 = vpop.permute.xlu1 %12618  ;;  %v12800_v26 = vsel %vm21306_vm6, %v3227_v10, %v20636_v15  ;;  %v12805_v15 = vsel %vm21307_vm4, %v3232_v7, %v20645_v50 }
 0x76f   : > { %v12820_v36 = vsel %vm12812_vm13, %v12795_v24, %v12619_v31  ;;  %v12625_v49 = vpop.permute.xlu0 %12624  ;;  %v13146_v24 = vld [vmem:[%s17244_s28 + $0x15c] sm:$0x1]  ;;  %v12808_v31 = vsel %vm21312_vm7, %v3235_v46, %v20671_v61 }
 0x770   : > { %v12845_v23 = vsel %vm12837_vm12, %v12820_v36, %v20695_v35  ;;  %v12823_v20 = vsel %vm12812_vm13, %v12798_v5, %v12625_v49  ;;  %v3229_v35 = vunpack.c.l.bf16 %v13137_v60  ;;  %v3238_v10 = vunpack.c.l.bf16 %v13146_v24 }
 0x771   : > { %12872 = vst.msk [vmem:[%s15872_s12 + $0x27] sm:$0xff] %vm12864_vm10, %v12845_v23  ;;  %v12848_v2 = vsel %vm12837_vm12, %v12823_v20, %v20697_v63  ;;  %v3237_v36 = vunpack.c.h.bf16 %v13142_v55 }
 0x772   : > { %12875 = vst.msk [vmem:[%s15872_s12 + $0x37] sm:$0xff] %vm12864_vm10, %v12848_v2  ;;  %v12635_v41 = vpop.permute.xlu1 %12634  ;;  %v12802_v57 = vsel %vm21297_vm1, %v3229_v35, %v20648_v27  ;;  %v12801_v27 = vsel %vm21308_vm14, %v3228_v3, %v20655_v42 }
 0x773   : > { %v12828_v37 = vsel %vm12812_vm13, %v12803_v19, %v12635_v41  ;;  %v12629_v16 = vpop.permute.xlu0 %12628 }
 0x774   : > { %v12853_v63 = vsel %vm12837_vm12, %v12828_v37, %v20699_v33  ;;  %v12825_v4 = vsel %vm12812_vm13, %v12800_v26, %v12629_v16  ;;  %v13144_v33 = vld [vmem:[%s17244_s28 + $0x120] ss:$36 sps:$4 sm:$0xff]  }
 0x775   : > { %12880 = vst.msk [vmem:[%s15872_s12 + $0x4f] sm:$0xfe] %vm12862_vm0, %v12853_v63  ;;  %v12850_v32 = vsel %vm12837_vm12, %v12825_v4, %v20701_v34  ;;  %v3236_v9 = vunpack.c.h.bf16 %v13144_v33 }
 0x776   : > { %12877 = vst.msk [vmem:[%s15872_s12 + $0x3f] sm:$0xfe] %vm12862_vm0, %v12850_v32  ;;  %v12639_v30 = vpop.permute.xlu1 %12638 }
 0x777   : > { %v12830_v8 = vsel %vm12812_vm13, %v12805_v15, %v12639_v30  ;;  %v12633_v51 = vpop.permute.xlu0 %12632  ;;  %v12809_v1 = vsel %vm21310_vm3, %v3236_v9, %v20661_v48 }
 0x778   : > { %v12855_v34 = vsel %vm12837_vm12, %v12830_v8, %v20703_v45  ;;  %v12827_v59 = vsel %vm12812_vm13, %v12802_v57, %v12633_v51  ;;  %v3233_v45 = vunpack.c.l.bf16 %v13144_v33 }
 0x779   : > { %12882 = vst.msk [vmem:[%s15872_s12 + $0x5f] sm:$0x1] %vm12866_vm2, %v12855_v34  ;;  %v12852_v50 = vsel %vm12837_vm12, %v12827_v59, %v20705_v54 }
 0x77a   : > { %12879 = vst.msk [vmem:[%s15872_s12 + $0x4f] sm:$0x1] %vm12866_vm2, %v12852_v50  ;;  %v12631_v6 = vpop.permute.xlu1 %12630 }
 0x77b   : > { %v12826_v47 = vsel %vm12812_vm13, %v12801_v27, %v12631_v6  ;;  %v12637_v53 = vpop.permute.xlu0 %12636 }
 0x77c   : > { %v12851_v54 = vsel %vm12837_vm12, %v12826_v47, %v20707_v14  ;;  %v12829_v42 = vsel %vm12812_vm13, %v12804_v38, %v12637_v53  ;;  %v12806_v14 = vsel %vm21311_vm8, %v3233_v45, %v20664_v62 }
 0x77d   : > { %12878 = vst.msk [vmem:[%s15872_s12 + $0x47] sm:$0xff] %vm12864_vm10, %v12851_v54  ;;  %v12854_v0 = vsel %vm12837_vm12, %v12829_v42, %v20709_v13 }
 0x77e   : > { %12881 = vst.msk [vmem:[%s15872_s12 + $0x57] sm:$0xff] %vm12864_vm10, %v12854_v0  ;;  %v12647_v21 = vpop.permute.xlu1 %12646 }
 0x77f   : > { %v12834_v29 = vsel %vm12812_vm13, %v12809_v1, %v12647_v21  ;;  %v12641_v43 = vpop.permute.xlu0 %12640 }
 0x780   : > { %v12859_v52 = vsel %vm12837_vm12, %v12834_v29, %v20711_v40  ;;  %v12831_v13 = vsel %vm12812_vm13, %v12806_v14, %v12641_v43 }
 0x781   : > { %12886 = vst.msk [vmem:[%s15872_s12 + $0x6f] sm:$0xfe] %vm12862_vm0, %v12859_v52  ;;  %v12856_v48 = vsel %vm12837_vm12, %v12831_v13, %v20713_v12  ;;  %v12807_v12 = vsel %vm21313_vm11, %v3234_v39, %v20675_v11 }
 0x782   : > { %12883 = vst.msk [vmem:[%s15872_s12 + $0x5f] sm:$0xfe] %vm12862_vm0, %v12856_v48  ;;  %v12651_v62 = vpop.permute.xlu1 %12650  ;;  %vm21314_vm0 = vmmov %vm21297_vm1 }
 0x783   : > { %v12645_v40 = vpop.permute.xlu0 %12644  ;;  %vm21315_vm15 = vmmov %vm21314_vm0 }
 0x784   : > { %v12833_v5 = vsel %vm12812_vm13, %v12808_v31, %v12645_v40  ;;  %v12810_v11 = vsel %vm21315_vm15, %v3237_v36, %v20679_v22 }
 0x785   : > { %v12858_v28 = vsel %vm12837_vm12, %v12833_v5, %v20719_v44  ;;  %v12811_v44 = vsel %vm21314_vm0, %v3238_v10, %v20669_v25 }
 0x786   : > { %12885 = vst.msk [vmem:[%s15872_s12 + $0x6f] sm:$0x1] %vm12866_vm2, %v12858_v28  ;;  %v12643_v49 = vpop.permute.xlu1 %12642  ;;  %v12836_v20 = vsel %vm12812_vm13, %v12811_v44, %v12651_v62 }
 0x787   : > { %v12832_v60 = vsel %vm12812_vm13, %v12807_v12, %v12643_v49  ;;  %v12649_v61 = vpop.permute.xlu0 %12648 }
 0x788   : > { %v12857_v23 = vsel %vm12837_vm12, %v12832_v60, %v20716_v17  ;;  %v12835_v19 = vsel %vm12812_vm13, %v12810_v11, %v12649_v61 }
 0x789   : > { %12884 = vst.msk [vmem:[%s15872_s12 + $0x67] sm:$0xff] %vm12864_vm10, %v12857_v23 }
 0x78a   : > { %v12763_v2 = vpop.permute.xlu1 %12762 }
 0x78b   : > { %v12861_v17 = vsel %vm12837_vm12, %v12836_v20, %v12763_v2  ;;  %v12761_v7 = vpop.permute.xlu0 %12760 }
 0x78c   : > { %12888 = vst.msk [vmem:[%s15872_s12 + $0x7f] sm:$0x1] %vm12866_vm2, %v12861_v17  ;;  %v12860_v25 = vsel %vm12837_vm12, %v12835_v19, %v12761_v7 }
 0x78d   : > { %12887 = vst.msk [vmem:[%s15872_s12 + $0x77] sm:$0xff] %vm12864_vm10, %v12860_v25 }
 0x78e   : > { %15613 = shalt.err (!%p15610_p7)
}
 0x78f   : > { %s15614_s30 = scalar_lea.hbm %s20900_s20, 2048  ;;  %s15618_s25 = scalar_lea.hbm %s21316_s17, 8192 }
 0x790   : > { %p15615_p9 = scmp.ne.s32.totalorder %s20900_s20, %s15614_s30  ;;  %p15619_p12 = scmp.lt.u32.totalorder %s20900_s20, %s21316_s17 }
 0x791   : > { %p15620_p13 = scmp.lt.u32.totalorder %s15618_s25, %s15614_s30  ;;  %p15622_p1 = scmp.lt.u32.totalorder %s15614_s30, %s20900_s20 }
 0x792   : > { %p15616_p10 = pnand %p15615_p9, %p15841_p3 }
 0x793   : > { %p15621_p0 = por %p15620_p13, %p15619_p12 }
 0x794   : > { %p15617_p11 = pneg %p15616_p10 }
 0x795   : > { %p15623_p2 = por %p15622_p1, %p15621_p0 }
 0x797   : > { %p15624_p4 = pnand %p15623_p2, %p15617_p11 }
 0x799   : > { %15627 = shalt.err (!%p15624_p4)
}
 0x79a   : > { %s15703_s21 = smov 128   ;;  %s15704_s29 = smov 8  }
 0x79b   : > { %15431 = dma.vmem_to_hbm [thread:$0]  (%p15841_p3), %s20893_s24, 2048, %s20900_s20, %s20909_s18, %s15703_s21, %s15703_s21, %s15704_s29  }
 0x79c PF: > { %s21317_s16 = sld [smem:[#allocation11_spill]]  ;;  %s21318_s26 = sld [smem:[#allocation8_spill]] }
 0x7a2   : > { %p15437_p5 = scmp.ge.s32.totalorder %s21317_s16, 2  ;;  %s12921_s27 = sand.u32 1, %s21318_s26  }
 0x7a3   : > { %s12922_s30 = scalar_lea.sflag [#allocation6], %s12921_s27 }
 0x7a4   : > { %p15434_p6 = pnand %p15437_p5, %p15850_p8 }
 0x7a6   : > { %15661 = dma.done.wait (!%p15434_p6), %s12922_s30, 2048  }
 0x7a7   : > { %15663 = vsyncadd (!%p15434_p6), %s12922_s30, 4294965248  ;;  %s29_s28 = sadd.s32 1, %s21317_s16   ;;  %s21320_s25 = sld [smem:[#allocation15_spill]] }
 0x7a8   : > { %p26_p7 = scmp.ge.s32.totalorder %s29_s28, 6   ;;  %s21321_s24 = sld [smem:[#allocation9_spill]] }
 0x7a9   : > { %s21322_s19 = sld [smem:[#allocation10_spill]]  ;;  %s21323_s26 = sld [smem:[#allocation12_spill]] }
 0x7aa   : > { %s21324_s27 = sld [smem:[#allocation13_spill]]  ;;  %s21325_s21 = smov %s15670_s22 }
 0x7ab   : > { %s21326_s22 = smov %s15674_s23  ;;  %28 = sbr.rel (!%p26_p7) target bundleno = 9 (0x9), region = 156 }
 0x7ad   : > { %s21327_s23 = smov %s21320_s25 }
 0x7af   : > { %s21328_s25 = smov %s21322_s19 }
 0x7b2   :  { %12927 = vsyncpa [#allocation6], 1 }
 0x7b3   :  { %12929 = vsyncpa [#allocation6 + $0x1], 1 }

</bundles_post_ra>
